<compile_context>
chip_gen: v5e
topology: v5e:2x2
jax: 0.10.0
libtpu: 0.0.40
codegen_flags: <defaults>
</compile_context>

<pallas_src>
import jax
import jax.numpy as jnp
from jax.experimental import pallas as pl
from jax.experimental.pallas import tpu as pltpu

_VMEM = pl.BlockSpec(memory_space=pltpu.MemorySpace.VMEM)


# ----------------------------- recurrence ----------------------------------- #

def _run_direction(pre, whh, reverse):
    """One LSTM direction given hoisted pre-activations.

    pre: (T, B, 4H) = x_t @ W_ih + (b_ih + b_hh), gate order (i, f, g, o)
    whh: (H, 4H)
    Returns (T, B, H) f32 hidden states in natural time order.
    """
    T, B, _ = pre.shape
    H = whh.shape[0]

    h_t = jnp.zeros((B, H), jnp.float32)
    c_t = jnp.zeros((B, H), jnp.float32)
    outs = [None] * T

    order = range(T - 1, -1, -1) if reverse else range(T)
    for t in order:                              # trace-time unrolled (T static)
        g = pre[t] + jnp.dot(h_t, whh, preferred_element_type=jnp.float32)  # (B, 4H)
        i_g = jax.nn.sigmoid(g[:, 0 * H:1 * H])
        f_g = jax.nn.sigmoid(g[:, 1 * H:2 * H])
        g_g = jnp.tanh(g[:, 2 * H:3 * H])
        o_g = jax.nn.sigmoid(g[:, 3 * H:4 * H])
        c_t = f_g * c_t + i_g * g_g
        h_t = o_g * jnp.tanh(c_t)
        outs[t] = h_t

    return jnp.stack(outs, axis=0)               # (T, B, H)


# ----------------------------- kernel --------------------------------------- #

def _lstm_fix_kernel(
    x_ref,                                       # (T, B, F) time-major input
    wih0_ref, bias0_ref,                         # layer 0: (F, 8H), (1, 8H)
    wih1f_ref, wih1b_ref, bias1_ref,             # layer 1: (H, 8H) x2, (1, 8H)
    wih2f_ref, wih2b_ref, bias2_ref,             # layer 2: (H, 8H) x2, (1, 8H)
    whh0f_ref, whh0b_ref,                        # recurrent weights (H, 4H)
    whh1f_ref, whh1b_ref,
    whh2f_ref, whh2b_ref,
    dw1f_ref, dw1b_ref, db1_ref,                 # dense1 split: (H,16)x2, (1,16)
    dw2_ref, db2_ref,                            # dense2: (16, 2), (1, 2)
    probs_ref, feat_ref,                         # outputs: (B, 2), (B, 16)
):
    T, B, F = x_ref.shape
    H = whh0f_ref.shape[0]
    G = 4 * H

    x = x_ref[...]                                           # (T, B, F)
    # F.normalize(x, p=2, dim=-2): L2 over the sequence axis, eps clamp 1e-12.
    norm = jnp.sqrt(jnp.sum(x * x, axis=0, keepdims=True))
    h = x / jnp.maximum(norm, 1e-12)

    # TODO(synk): inter-layer dropout(p=0.1) is training-only in PyTorch;
    # eval-mode semantics (identity) are used here.

    # ---- layer 0: one fused (T*B, F) @ (F, 8H) projection for both dirs ----
    pre_all = (jnp.dot(h.reshape(T * B, F), wih0_ref[...],
                       preferred_element_type=jnp.float32)
               + bias0_ref[...])                             # (T*B, 8H)
    pre_f = pre_all[:, :G].reshape(T, B, G)                  # vreg-aligned split
    pre_b = pre_all[:, G:].reshape(T, B, G)
    out_f = _run_direction(pre_f, whh0f_ref[...], reverse=False)
    out_b = _run_direction(pre_b, whh0b_ref[...], reverse=True)

    # ---- layers 1 & 2: no (T, B, 2H) concat -- split input weights instead ----
    for wf_ref, wb_ref, bl_ref, whf_ref, whb_ref in (
            (wih1f_ref, wih1b_ref, bias1_ref, whh1f_ref, whh1b_ref),
            (wih2f_ref, wih2b_ref, bias2_ref, whh2f_ref, whh2b_ref)):
        pre_all = (jnp.dot(out_f.reshape(T * B, H), wf_ref[...],
                           preferred_element_type=jnp.float32)
                   + jnp.dot(out_b.reshape(T * B, H), wb_ref[...],
                             preferred_element_type=jnp.float32)
                   + bl_ref[...])                            # (T*B, 8H)
        pre_f = pre_all[:, :G].reshape(T, B, G)
        pre_b = pre_all[:, G:].reshape(T, B, G)
        out_f = _run_direction(pre_f, whf_ref[...], reverse=False)
        out_b = _run_direction(pre_b, whb_ref[...], reverse=True)

    # ---- dense head fused into the same kernel (no extra launch / HBM hop) ----
    last_f = out_f[T - 1]                                    # (B, H)
    last_b = out_b[T - 1]                                    # (B, H) bwd state at t = T-1
    e = (jnp.dot(last_f, dw1f_ref[...], preferred_element_type=jnp.float32)
         + jnp.dot(last_b, dw1b_ref[...], preferred_element_type=jnp.float32)
         + db1_ref[...])                                     # (B, 16)
    feat_ref[...] = e.astype(feat_ref.dtype)

    logits = jnp.dot(e, dw2_ref[...],
                     preferred_element_type=jnp.float32) + db2_ref[...]
    m = jnp.max(logits, axis=-1, keepdims=True)
    p = jnp.exp(logits - m)
    probs_ref[...] = (p / jnp.sum(p, axis=-1, keepdims=True)).astype(probs_ref.dtype)


# ----------------------------- wrapper --------------------------------------- #

def lstm_fix_forward(x, params):
    """x: (B, T, F) batch-first, matching the PyTorch module."""
    B, T, F = x.shape
    H = params["lstm"][0]["fwd"][1].shape[0]
    xt = jnp.transpose(x, (1, 0, 2))                         # single transpose

    lstm = params["lstm"]

    # Fuse per-direction gate weights into kernel-ready layouts (tiny, done
    # once per traced call; in real use precompute outside the hot path).
    w0f, whh0f, b0f = lstm[0]["fwd"]
    w0b, whh0b, b0b = lstm[0]["bwd"]
    wih0 = jnp.concatenate([w0f, w0b], axis=1)               # (F, 8H)
    bias0 = jnp.concatenate([b0f, b0b], axis=1)              # (1, 8H)

    fused_upper = []                                         # layers 1, 2
    whh_refs = [whh0f, whh0b]
    for l in (1, 2):
        wf, whhf, bf = lstm[l]["fwd"]                        # wf: (2H, 4H)
        wb, whhb, bb = lstm[l]["bwd"]
        w_all = jnp.concatenate([wf, wb], axis=1)            # (2H, 8H)
        fused_upper.extend([w_all[:H], w_all[H:],            # (H, 8H) x2
                            jnp.concatenate([bf, bb], axis=1)])
        whh_refs.extend([whhf, whhb])

    dw1f = params["w1"][:H]                                  # (H, 16)
    dw1b = params["w1"][H:]                                  # (H, 16)

    flat = ([xt, wih0, bias0] + fused_upper + whh_refs
            + [dw1f, dw1b, params["b1"], params["w2"], params["b2"]])

    # TODO(synk): on v7x the fwd/bwd recurrences could run on the two
    # TensorCores via core_map; single-core fused version kept for simplicity.
    probs, e_feature = pl.pallas_call(
        _lstm_fix_kernel,
        out_shape=(jax.ShapeDtypeStruct((B, 2), jnp.float32),
                   jax.ShapeDtypeStruct((B, 16), jnp.float32)),
        in_specs=[_VMEM] * len(flat),
        out_specs=(_VMEM, _VMEM),
        compiler_params=pltpu.CompilerParams(vmem_limit_bytes=32 << 20),
    )(*flat)
    return probs, e_feature


# ----------------------------- params ---------------------------------------- #

def init_params(key, input_size):
    """PyTorch-equivalent LSTM/Linear params (transposed to (in, out) layout).

    Fused gate columns follow PyTorch order [i, f, g, o]; the per-direction
    bias is b_ih + b_hh combined.
    """
    H = input_size
    keys = iter(jax.random.split(key, 32))
    k_lstm = H ** -0.5            # PyTorch LSTM init: U(-1/sqrt(H), 1/sqrt(H))
    params = {"lstm": []}
    for layer in range(3):
        d_in = input_size if layer == 0 else 2 * H
        layer_p = {}
        for direction in ("fwd", "bwd"):
            wih = jax.random.uniform(next(keys), (d_in, 4 * H), jnp.float32,
                                     -k_lstm, k_lstm)
            whh = jax.random.uniform(next(keys), (H, 4 * H), jnp.float32,
                                     -k_lstm, k_lstm)
            b = jax.random.uniform(next(keys), (1, 4 * H), jnp.float32,
                                   -k_lstm, k_lstm)
            layer_p[direction] = (wih, whh, b)
        params["lstm"].append(layer_p)
    k1 = (2 * H) ** -0.5
    params["w1"] = jax.random.uniform(next(keys), (2 * H, 16), jnp.float32, -k1, k1)
    params["b1"] = jax.random.uniform(next(keys), (1, 16), jnp.float32, -k1, k1)
    k2 = 16 ** -0.5
    params["w2"] = jax.random.uniform(next(keys), (16, 2), jnp.float32, -k2, k2)
    params["b2"] = jax.random.uniform(next(keys), (1, 2), jnp.float32, -k2, k2)
    return params


# ----------------------------- main ------------------------------------------- #

if __name__ == "__main__":
    B, T, F = 2, 8, 32            # batch, seq_len, input_size (== hidden_size)
    key = jax.random.PRNGKey(0)
    kx, kp = jax.random.split(key)
    x = jax.random.normal(kx, (B, T, F), jnp.float32)
    params = init_params(kp, F)

    fwd = jax.jit(lstm_fix_forward)
    probs, e_feature = fwd(x, params)
    jax.block_until_ready((probs, e_feature))

    assert probs.shape == (B, 2)
    assert e_feature.shape == (B, 16)
    assert bool(jnp.all(jnp.isfinite(probs))) and bool(jnp.all(jnp.isfinite(e_feature)))
    assert bool(jnp.allclose(jnp.sum(probs, axis=-1), 1.0, atol=1e-5))
    print("KERNEL_OK")
</pallas_src>

<mosaic_0001>
module attributes {stable_mosaic.version = 11 : i64} {
  func.func @_lstm_fix_kernel(%arg0: memref<8x2x32xf32, #tpu.memory_space<vmem>>, %arg1: memref<32x256xf32, #tpu.memory_space<vmem>>, %arg2: memref<1x256xf32, #tpu.memory_space<vmem>>, %arg3: memref<32x256xf32, #tpu.memory_space<vmem>>, %arg4: memref<32x256xf32, #tpu.memory_space<vmem>>, %arg5: memref<1x256xf32, #tpu.memory_space<vmem>>, %arg6: memref<32x256xf32, #tpu.memory_space<vmem>>, %arg7: memref<32x256xf32, #tpu.memory_space<vmem>>, %arg8: memref<1x256xf32, #tpu.memory_space<vmem>>, %arg9: memref<32x128xf32, #tpu.memory_space<vmem>>, %arg10: memref<32x128xf32, #tpu.memory_space<vmem>>, %arg11: memref<32x128xf32, #tpu.memory_space<vmem>>, %arg12: memref<32x128xf32, #tpu.memory_space<vmem>>, %arg13: memref<32x128xf32, #tpu.memory_space<vmem>>, %arg14: memref<32x128xf32, #tpu.memory_space<vmem>>, %arg15: memref<32x16xf32, #tpu.memory_space<vmem>>, %arg16: memref<32x16xf32, #tpu.memory_space<vmem>>, %arg17: memref<1x16xf32, #tpu.memory_space<vmem>>, %arg18: memref<16x2xf32, #tpu.memory_space<vmem>>, %arg19: memref<1x2xf32, #tpu.memory_space<vmem>>, %arg20: memref<2x2xf32, #tpu.memory_space<vmem>>, %arg21: memref<2x16xf32, #tpu.memory_space<vmem>>) attributes {dimension_semantics = [], scalar_prefetch = 0 : i64, scratch_operands = 0 : i64, tpu.core_type = #tpu.core_type<tc>} {
    %c0 = arith.constant 0 : index
    %c0_0 = arith.constant 0 : index
    %c0_1 = arith.constant 0 : index
    %0 = vector.load %arg0[%c0, %c0_0, %c0_1] : memref<8x2x32xf32, #tpu.memory_space<vmem>>, vector<8x2x32xf32>
    %1 = arith.mulf %0, %0 : vector<8x2x32xf32>
    %cst = arith.constant dense<0.000000e+00> : vector<2x32xf32>
    %2 = vector.multi_reduction <add>, %1, %cst [0] : vector<8x2x32xf32> to vector<2x32xf32>
    %3 = vector.shape_cast %2 : vector<2x32xf32> to vector<1x2x32xf32>
    %4 = math.sqrt %3 : vector<1x2x32xf32>
    %cst_2 = arith.constant 9.99999996E-13 : f32
    %5 = vector.broadcast %cst_2 : f32 to vector<1x2x32xf32>
    %6 = arith.maximumf %4, %5 : vector<1x2x32xf32>
    %7 = vector.broadcast %6 : vector<1x2x32xf32> to vector<8x2x32xf32>
    %8 = arith.divf %0, %7 : vector<8x2x32xf32>
    %9 = vector.shape_cast %8 : vector<8x2x32xf32> to vector<16x32xf32>
    %c0_3 = arith.constant 0 : index
    %c0_4 = arith.constant 0 : index
    %10 = vector.load %arg1[%c0_3, %c0_4] : memref<32x256xf32, #tpu.memory_space<vmem>>, vector<32x256xf32>
    %cst_5 = arith.constant dense<0.000000e+00> : vector<16x256xf32>
    %11 = tpu.matmul %9, %10, %cst_5 {dimension_numbers = #tpu.dot_dimension_numbers<[1], [0], [0], [1], [0, 0, 1, 1], [], []>} : vector<16x32xf32>, vector<32x256xf32>, vector<16x256xf32> -> vector<16x256xf32>
    %c0_6 = arith.constant 0 : index
    %c0_7 = arith.constant 0 : index
    %12 = vector.load %arg2[%c0_6, %c0_7] : memref<1x256xf32, #tpu.memory_space<vmem>>, vector<1x256xf32>
    %13 = vector.broadcast %12 : vector<1x256xf32> to vector<16x256xf32>
    %14 = arith.addf %11, %13 : vector<16x256xf32>
    %15 = vector.extract_strided_slice %14 {offsets = [0, 0], sizes = [16, 128], strides = [1, 1]} : vector<16x256xf32> to vector<16x128xf32>
    %16 = vector.shape_cast %15 : vector<16x128xf32> to vector<8x2x128xf32>
    %17 = vector.extract_strided_slice %14 {offsets = [0, 128], sizes = [16, 128], strides = [1, 1]} : vector<16x256xf32> to vector<16x128xf32>
    %18 = vector.shape_cast %17 : vector<16x128xf32> to vector<8x2x128xf32>
    %c0_8 = arith.constant 0 : index
    %c0_9 = arith.constant 0 : index
    %19 = vector.load %arg9[%c0_8, %c0_9] : memref<32x128xf32, #tpu.memory_space<vmem>>, vector<32x128xf32>
    %cst_10 = arith.constant 0.000000e+00 : f32
    %20 = vector.broadcast %cst_10 : f32 to vector<2x32xf32>
    %cst_11 = arith.constant 0.000000e+00 : f32
    %21 = vector.broadcast %cst_11 : f32 to vector<2x32xf32>
    %22 = vector.extract_strided_slice %16 {offsets = [0, 0, 0], sizes = [1, 2, 128], strides = [1, 1, 1]} : vector<8x2x128xf32> to vector<1x2x128xf32>
    %23 = vector.shape_cast %22 : vector<1x2x128xf32> to vector<2x128xf32>
    %cst_12 = arith.constant dense<0.000000e+00> : vector<2x128xf32>
    %24 = tpu.matmul %20, %19, %cst_12 {dimension_numbers = #tpu.dot_dimension_numbers<[1], [0], [0], [1], [0, 0, 1, 1], [], []>} : vector<2x32xf32>, vector<32x128xf32>, vector<2x128xf32> -> vector<2x128xf32>
    %25 = arith.addf %23, %24 : vector<2x128xf32>
    %26 = vector.extract_strided_slice %25 {offsets = [0, 0], sizes = [2, 32], strides = [1, 1]} : vector<2x128xf32> to vector<2x32xf32>
    %27 = arith.negf %26 : vector<2x32xf32>
    %28 = math.exp %27 : vector<2x32xf32>
    %cst_13 = arith.constant 1.000000e+00 : f32
    %29 = vector.broadcast %cst_13 : f32 to vector<2x32xf32>
    %30 = arith.addf %29, %28 : vector<2x32xf32>
    %31 = arith.divf %29, %30 : vector<2x32xf32>
    %32 = vector.extract_strided_slice %25 {offsets = [0, 32], sizes = [2, 32], strides = [1, 1]} : vector<2x128xf32> to vector<2x32xf32>
    %33 = arith.negf %32 : vector<2x32xf32>
    %34 = math.exp %33 : vector<2x32xf32>
    %cst_14 = arith.constant 1.000000e+00 : f32
    %35 = vector.broadcast %cst_14 : f32 to vector<2x32xf32>
    %36 = arith.addf %35, %34 : vector<2x32xf32>
    %37 = arith.divf %35, %36 : vector<2x32xf32>
    %38 = vector.extract_strided_slice %25 {offsets = [0, 64], sizes = [2, 32], strides = [1, 1]} : vector<2x128xf32> to vector<2x32xf32>
    %39 = math.tanh %38 : vector<2x32xf32>
    %40 = vector.extract_strided_slice %25 {offsets = [0, 96], sizes = [2, 32], strides = [1, 1]} : vector<2x128xf32> to vector<2x32xf32>
    %41 = arith.negf %40 : vector<2x32xf32>
    %42 = math.exp %41 : vector<2x32xf32>
    %cst_15 = arith.constant 1.000000e+00 : f32
    %43 = vector.broadcast %cst_15 : f32 to vector<2x32xf32>
    %44 = arith.addf %43, %42 : vector<2x32xf32>
    %45 = arith.divf %43, %44 : vector<2x32xf32>
    %46 = arith.mulf %37, %21 : vector<2x32xf32>
    %47 = arith.mulf %31, %39 : vector<2x32xf32>
    %48 = arith.addf %46, %47 : vector<2x32xf32>
    %49 = math.tanh %48 : vector<2x32xf32>
    %50 = arith.mulf %45, %49 : vector<2x32xf32>
    %51 = vector.extract_strided_slice %16 {offsets = [1, 0, 0], sizes = [1, 2, 128], strides = [1, 1, 1]} : vector<8x2x128xf32> to vector<1x2x128xf32>
    %52 = vector.shape_cast %51 : vector<1x2x128xf32> to vector<2x128xf32>
    %cst_16 = arith.constant dense<0.000000e+00> : vector<2x128xf32>
    %53 = tpu.matmul %50, %19, %cst_16 {dimension_numbers = #tpu.dot_dimension_numbers<[1], [0], [0], [1], [0, 0, 1, 1], [], []>} : vector<2x32xf32>, vector<32x128xf32>, vector<2x128xf32> -> vector<2x128xf32>
    %54 = arith.addf %52, %53 : vector<2x128xf32>
    %55 = vector.extract_strided_slice %54 {offsets = [0, 0], sizes = [2, 32], strides = [1, 1]} : vector<2x128xf32> to vector<2x32xf32>
    %56 = arith.negf %55 : vector<2x32xf32>
    %57 = math.exp %56 : vector<2x32xf32>
    %cst_17 = arith.constant 1.000000e+00 : f32
    %58 = vector.broadcast %cst_17 : f32 to vector<2x32xf32>
    %59 = arith.addf %58, %57 : vector<2x32xf32>
    %60 = arith.divf %58, %59 : vector<2x32xf32>
    %61 = vector.extract_strided_slice %54 {offsets = [0, 32], sizes = [2, 32], strides = [1, 1]} : vector<2x128xf32> to vector<2x32xf32>
    %62 = arith.negf %61 : vector<2x32xf32>
    %63 = math.exp %62 : vector<2x32xf32>
    %cst_18 = arith.constant 1.000000e+00 : f32
    %64 = vector.broadcast %cst_18 : f32 to vector<2x32xf32>
    %65 = arith.addf %64, %63 : vector<2x32xf32>
    %66 = arith.divf %64, %65 : vector<2x32xf32>
    %67 = vector.extract_strided_slice %54 {offsets = [0, 64], sizes = [2, 32], strides = [1, 1]} : vector<2x128xf32> to vector<2x32xf32>
    %68 = math.tanh %67 : vector<2x32xf32>
    %69 = vector.extract_strided_slice %54 {offsets = [0, 96], sizes = [2, 32], strides = [1, 1]} : vector<2x128xf32> to vector<2x32xf32>
    %70 = arith.negf %69 : vector<2x32xf32>
    %71 = math.exp %70 : vector<2x32xf32>
    %cst_19 = arith.constant 1.000000e+00 : f32
    %72 = vector.broadcast %cst_19 : f32 to vector<2x32xf32>
    %73 = arith.addf %72, %71 : vector<2x32xf32>
    %74 = arith.divf %72, %73 : vector<2x32xf32>
    %75 = arith.mulf %66, %48 : vector<2x32xf32>
    %76 = arith.mulf %60, %68 : vector<2x32xf32>
    %77 = arith.addf %75, %76 : vector<2x32xf32>
    %78 = math.tanh %77 : vector<2x32xf32>
    %79 = arith.mulf %74, %78 : vector<2x32xf32>
    %80 = vector.extract_strided_slice %16 {offsets = [2, 0, 0], sizes = [1, 2, 128], strides = [1, 1, 1]} : vector<8x2x128xf32> to vector<1x2x128xf32>
    %81 = vector.shape_cast %80 : vector<1x2x128xf32> to vector<2x128xf32>
    %cst_20 = arith.constant dense<0.000000e+00> : vector<2x128xf32>
    %82 = tpu.matmul %79, %19, %cst_20 {dimension_numbers = #tpu.dot_dimension_numbers<[1], [0], [0], [1], [0, 0, 1, 1], [], []>} : vector<2x32xf32>, vector<32x128xf32>, vector<2x128xf32> -> vector<2x128xf32>
    %83 = arith.addf %81, %82 : vector<2x128xf32>
    %84 = vector.extract_strided_slice %83 {offsets = [0, 0], sizes = [2, 32], strides = [1, 1]} : vector<2x128xf32> to vector<2x32xf32>
    %85 = arith.negf %84 : vector<2x32xf32>
    %86 = math.exp %85 : vector<2x32xf32>
    %cst_21 = arith.constant 1.000000e+00 : f32
    %87 = vector.broadcast %cst_21 : f32 to vector<2x32xf32>
    %88 = arith.addf %87, %86 : vector<2x32xf32>
    %89 = arith.divf %87, %88 : vector<2x32xf32>
    %90 = vector.extract_strided_slice %83 {offsets = [0, 32], sizes = [2, 32], strides = [1, 1]} : vector<2x128xf32> to vector<2x32xf32>
    %91 = arith.negf %90 : vector<2x32xf32>
    %92 = math.exp %91 : vector<2x32xf32>
    %cst_22 = arith.constant 1.000000e+00 : f32
    %93 = vector.broadcast %cst_22 : f32 to vector<2x32xf32>
    %94 = arith.addf %93, %92 : vector<2x32xf32>
    %95 = arith.divf %93, %94 : vector<2x32xf32>
    %96 = vector.extract_strided_slice %83 {offsets = [0, 64], sizes = [2, 32], strides = [1, 1]} : vector<2x128xf32> to vector<2x32xf32>
    %97 = math.tanh %96 : vector<2x32xf32>
    %98 = vector.extract_strided_slice %83 {offsets = [0, 96], sizes = [2, 32], strides = [1, 1]} : vector<2x128xf32> to vector<2x32xf32>
    %99 = arith.negf %98 : vector<2x32xf32>
    %100 = math.exp %99 : vector<2x32xf32>
    %cst_23 = arith.constant 1.000000e+00 : f32
    %101 = vector.broadcast %cst_23 : f32 to vector<2x32xf32>
    %102 = arith.addf %101, %100 : vector<2x32xf32>
    %103 = arith.divf %101, %102 : vector<2x32xf32>
    %104 = arith.mulf %95, %77 : vector<2x32xf32>
    %105 = arith.mulf %89, %97 : vector<2x32xf32>
    %106 = arith.addf %104, %105 : vector<2x32xf32>
    %107 = math.tanh %106 : vector<2x32xf32>
    %108 = arith.mulf %103, %107 : vector<2x32xf32>
    %109 = vector.extract_strided_slice %16 {offsets = [3, 0, 0], sizes = [1, 2, 128], strides = [1, 1, 1]} : vector<8x2x128xf32> to vector<1x2x128xf32>
    %110 = vector.shape_cast %109 : vector<1x2x128xf32> to vector<2x128xf32>
    %cst_24 = arith.constant dense<0.000000e+00> : vector<2x128xf32>
    %111 = tpu.matmul %108, %19, %cst_24 {dimension_numbers = #tpu.dot_dimension_numbers<[1], [0], [0], [1], [0, 0, 1, 1], [], []>} : vector<2x32xf32>, vector<32x128xf32>, vector<2x128xf32> -> vector<2x128xf32>
    %112 = arith.addf %110, %111 : vector<2x128xf32>
    %113 = vector.extract_strided_slice %112 {offsets = [0, 0], sizes = [2, 32], strides = [1, 1]} : vector<2x128xf32> to vector<2x32xf32>
    %114 = arith.negf %113 : vector<2x32xf32>
    %115 = math.exp %114 : vector<2x32xf32>
    %cst_25 = arith.constant 1.000000e+00 : f32
    %116 = vector.broadcast %cst_25 : f32 to vector<2x32xf32>
    %117 = arith.addf %116, %115 : vector<2x32xf32>
    %118 = arith.divf %116, %117 : vector<2x32xf32>
    %119 = vector.extract_strided_slice %112 {offsets = [0, 32], sizes = [2, 32], strides = [1, 1]} : vector<2x128xf32> to vector<2x32xf32>
    %120 = arith.negf %119 : vector<2x32xf32>
    %121 = math.exp %120 : vector<2x32xf32>
    %cst_26 = arith.constant 1.000000e+00 : f32
    %122 = vector.broadcast %cst_26 : f32 to vector<2x32xf32>
    %123 = arith.addf %122, %121 : vector<2x32xf32>
    %124 = arith.divf %122, %123 : vector<2x32xf32>
    %125 = vector.extract_strided_slice %112 {offsets = [0, 64], sizes = [2, 32], strides = [1, 1]} : vector<2x128xf32> to vector<2x32xf32>
    %126 = math.tanh %125 : vector<2x32xf32>
    %127 = vector.extract_strided_slice %112 {offsets = [0, 96], sizes = [2, 32], strides = [1, 1]} : vector<2x128xf32> to vector<2x32xf32>
    %128 = arith.negf %127 : vector<2x32xf32>
    %129 = math.exp %128 : vector<2x32xf32>
    %cst_27 = arith.constant 1.000000e+00 : f32
    %130 = vector.broadcast %cst_27 : f32 to vector<2x32xf32>
    %131 = arith.addf %130, %129 : vector<2x32xf32>
    %132 = arith.divf %130, %131 : vector<2x32xf32>
    %133 = arith.mulf %124, %106 : vector<2x32xf32>
    %134 = arith.mulf %118, %126 : vector<2x32xf32>
    %135 = arith.addf %133, %134 : vector<2x32xf32>
    %136 = math.tanh %135 : vector<2x32xf32>
    %137 = arith.mulf %132, %136 : vector<2x32xf32>
    %138 = vector.extract_strided_slice %16 {offsets = [4, 0, 0], sizes = [1, 2, 128], strides = [1, 1, 1]} : vector<8x2x128xf32> to vector<1x2x128xf32>
    %139 = vector.shape_cast %138 : vector<1x2x128xf32> to vector<2x128xf32>
    %cst_28 = arith.constant dense<0.000000e+00> : vector<2x128xf32>
    %140 = tpu.matmul %137, %19, %cst_28 {dimension_numbers = #tpu.dot_dimension_numbers<[1], [0], [0], [1], [0, 0, 1, 1], [], []>} : vector<2x32xf32>, vector<32x128xf32>, vector<2x128xf32> -> vector<2x128xf32>
    %141 = arith.addf %139, %140 : vector<2x128xf32>
    %142 = vector.extract_strided_slice %141 {offsets = [0, 0], sizes = [2, 32], strides = [1, 1]} : vector<2x128xf32> to vector<2x32xf32>
    %143 = arith.negf %142 : vector<2x32xf32>
    %144 = math.exp %143 : vector<2x32xf32>
    %cst_29 = arith.constant 1.000000e+00 : f32
    %145 = vector.broadcast %cst_29 : f32 to vector<2x32xf32>
    %146 = arith.addf %145, %144 : vector<2x32xf32>
    %147 = arith.divf %145, %146 : vector<2x32xf32>
    %148 = vector.extract_strided_slice %141 {offsets = [0, 32], sizes = [2, 32], strides = [1, 1]} : vector<2x128xf32> to vector<2x32xf32>
    %149 = arith.negf %148 : vector<2x32xf32>
    %150 = math.exp %149 : vector<2x32xf32>
    %cst_30 = arith.constant 1.000000e+00 : f32
    %151 = vector.broadcast %cst_30 : f32 to vector<2x32xf32>
    %152 = arith.addf %151, %150 : vector<2x32xf32>
    %153 = arith.divf %151, %152 : vector<2x32xf32>
    %154 = vector.extract_strided_slice %141 {offsets = [0, 64], sizes = [2, 32], strides = [1, 1]} : vector<2x128xf32> to vector<2x32xf32>
    %155 = math.tanh %154 : vector<2x32xf32>
    %156 = vector.extract_strided_slice %141 {offsets = [0, 96], sizes = [2, 32], strides = [1, 1]} : vector<2x128xf32> to vector<2x32xf32>
    %157 = arith.negf %156 : vector<2x32xf32>
    %158 = math.exp %157 : vector<2x32xf32>
    %cst_31 = arith.constant 1.000000e+00 : f32
    %159 = vector.broadcast %cst_31 : f32 to vector<2x32xf32>
    %160 = arith.addf %159, %158 : vector<2x32xf32>
    %161 = arith.divf %159, %160 : vector<2x32xf32>
    %162 = arith.mulf %153, %135 : vector<2x32xf32>
    %163 = arith.mulf %147, %155 : vector<2x32xf32>
    %164 = arith.addf %162, %163 : vector<2x32xf32>
    %165 = math.tanh %164 : vector<2x32xf32>
    %166 = arith.mulf %161, %165 : vector<2x32xf32>
    %167 = vector.extract_strided_slice %16 {offsets = [5, 0, 0], sizes = [1, 2, 128], strides = [1, 1, 1]} : vector<8x2x128xf32> to vector<1x2x128xf32>
    %168 = vector.shape_cast %167 : vector<1x2x128xf32> to vector<2x128xf32>
    %cst_32 = arith.constant dense<0.000000e+00> : vector<2x128xf32>
    %169 = tpu.matmul %166, %19, %cst_32 {dimension_numbers = #tpu.dot_dimension_numbers<[1], [0], [0], [1], [0, 0, 1, 1], [], []>} : vector<2x32xf32>, vector<32x128xf32>, vector<2x128xf32> -> vector<2x128xf32>
    %170 = arith.addf %168, %169 : vector<2x128xf32>
    %171 = vector.extract_strided_slice %170 {offsets = [0, 0], sizes = [2, 32], strides = [1, 1]} : vector<2x128xf32> to vector<2x32xf32>
    %172 = arith.negf %171 : vector<2x32xf32>
    %173 = math.exp %172 : vector<2x32xf32>
    %cst_33 = arith.constant 1.000000e+00 : f32
    %174 = vector.broadcast %cst_33 : f32 to vector<2x32xf32>
    %175 = arith.addf %174, %173 : vector<2x32xf32>
    %176 = arith.divf %174, %175 : vector<2x32xf32>
    %177 = vector.extract_strided_slice %170 {offsets = [0, 32], sizes = [2, 32], strides = [1, 1]} : vector<2x128xf32> to vector<2x32xf32>
    %178 = arith.negf %177 : vector<2x32xf32>
    %179 = math.exp %178 : vector<2x32xf32>
    %cst_34 = arith.constant 1.000000e+00 : f32
    %180 = vector.broadcast %cst_34 : f32 to vector<2x32xf32>
    %181 = arith.addf %180, %179 : vector<2x32xf32>
    %182 = arith.divf %180, %181 : vector<2x32xf32>
    %183 = vector.extract_strided_slice %170 {offsets = [0, 64], sizes = [2, 32], strides = [1, 1]} : vector<2x128xf32> to vector<2x32xf32>
    %184 = math.tanh %183 : vector<2x32xf32>
    %185 = vector.extract_strided_slice %170 {offsets = [0, 96], sizes = [2, 32], strides = [1, 1]} : vector<2x128xf32> to vector<2x32xf32>
    %186 = arith.negf %185 : vector<2x32xf32>
    %187 = math.exp %186 : vector<2x32xf32>
    %cst_35 = arith.constant 1.000000e+00 : f32
    %188 = vector.broadcast %cst_35 : f32 to vector<2x32xf32>
    %189 = arith.addf %188, %187 : vector<2x32xf32>
    %190 = arith.divf %188, %189 : vector<2x32xf32>
    %191 = arith.mulf %182, %164 : vector<2x32xf32>
    %192 = arith.mulf %176, %184 : vector<2x32xf32>
    %193 = arith.addf %191, %192 : vector<2x32xf32>
    %194 = math.tanh %193 : vector<2x32xf32>
    %195 = arith.mulf %190, %194 : vector<2x32xf32>
    %196 = vector.extract_strided_slice %16 {offsets = [6, 0, 0], sizes = [1, 2, 128], strides = [1, 1, 1]} : vector<8x2x128xf32> to vector<1x2x128xf32>
    %197 = vector.shape_cast %196 : vector<1x2x128xf32> to vector<2x128xf32>
    %cst_36 = arith.constant dense<0.000000e+00> : vector<2x128xf32>
    %198 = tpu.matmul %195, %19, %cst_36 {dimension_numbers = #tpu.dot_dimension_numbers<[1], [0], [0], [1], [0, 0, 1, 1], [], []>} : vector<2x32xf32>, vector<32x128xf32>, vector<2x128xf32> -> vector<2x128xf32>
    %199 = arith.addf %197, %198 : vector<2x128xf32>
    %200 = vector.extract_strided_slice %199 {offsets = [0, 0], sizes = [2, 32], strides = [1, 1]} : vector<2x128xf32> to vector<2x32xf32>
    %201 = arith.negf %200 : vector<2x32xf32>
    %202 = math.exp %201 : vector<2x32xf32>
    %cst_37 = arith.constant 1.000000e+00 : f32
    %203 = vector.broadcast %cst_37 : f32 to vector<2x32xf32>
    %204 = arith.addf %203, %202 : vector<2x32xf32>
    %205 = arith.divf %203, %204 : vector<2x32xf32>
    %206 = vector.extract_strided_slice %199 {offsets = [0, 32], sizes = [2, 32], strides = [1, 1]} : vector<2x128xf32> to vector<2x32xf32>
    %207 = arith.negf %206 : vector<2x32xf32>
    %208 = math.exp %207 : vector<2x32xf32>
    %cst_38 = arith.constant 1.000000e+00 : f32
    %209 = vector.broadcast %cst_38 : f32 to vector<2x32xf32>
    %210 = arith.addf %209, %208 : vector<2x32xf32>
    %211 = arith.divf %209, %210 : vector<2x32xf32>
    %212 = vector.extract_strided_slice %199 {offsets = [0, 64], sizes = [2, 32], strides = [1, 1]} : vector<2x128xf32> to vector<2x32xf32>
    %213 = math.tanh %212 : vector<2x32xf32>
    %214 = vector.extract_strided_slice %199 {offsets = [0, 96], sizes = [2, 32], strides = [1, 1]} : vector<2x128xf32> to vector<2x32xf32>
    %215 = arith.negf %214 : vector<2x32xf32>
    %216 = math.exp %215 : vector<2x32xf32>
    %cst_39 = arith.constant 1.000000e+00 : f32
    %217 = vector.broadcast %cst_39 : f32 to vector<2x32xf32>
    %218 = arith.addf %217, %216 : vector<2x32xf32>
    %219 = arith.divf %217, %218 : vector<2x32xf32>
    %220 = arith.mulf %211, %193 : vector<2x32xf32>
    %221 = arith.mulf %205, %213 : vector<2x32xf32>
    %222 = arith.addf %220, %221 : vector<2x32xf32>
    %223 = math.tanh %222 : vector<2x32xf32>
    %224 = arith.mulf %219, %223 : vector<2x32xf32>
    %225 = vector.extract_strided_slice %16 {offsets = [7, 0, 0], sizes = [1, 2, 128], strides = [1, 1, 1]} : vector<8x2x128xf32> to vector<1x2x128xf32>
    %226 = vector.shape_cast %225 : vector<1x2x128xf32> to vector<2x128xf32>
    %cst_40 = arith.constant dense<0.000000e+00> : vector<2x128xf32>
    %227 = tpu.matmul %224, %19, %cst_40 {dimension_numbers = #tpu.dot_dimension_numbers<[1], [0], [0], [1], [0, 0, 1, 1], [], []>} : vector<2x32xf32>, vector<32x128xf32>, vector<2x128xf32> -> vector<2x128xf32>
    %228 = arith.addf %226, %227 : vector<2x128xf32>
    %229 = vector.extract_strided_slice %228 {offsets = [0, 0], sizes = [2, 32], strides = [1, 1]} : vector<2x128xf32> to vector<2x32xf32>
    %230 = arith.negf %229 : vector<2x32xf32>
    %231 = math.exp %230 : vector<2x32xf32>
    %cst_41 = arith.constant 1.000000e+00 : f32
    %232 = vector.broadcast %cst_41 : f32 to vector<2x32xf32>
    %233 = arith.addf %232, %231 : vector<2x32xf32>
    %234 = arith.divf %232, %233 : vector<2x32xf32>
    %235 = vector.extract_strided_slice %228 {offsets = [0, 32], sizes = [2, 32], strides = [1, 1]} : vector<2x128xf32> to vector<2x32xf32>
    %236 = arith.negf %235 : vector<2x32xf32>
    %237 = math.exp %236 : vector<2x32xf32>
    %cst_42 = arith.constant 1.000000e+00 : f32
    %238 = vector.broadcast %cst_42 : f32 to vector<2x32xf32>
    %239 = arith.addf %238, %237 : vector<2x32xf32>
    %240 = arith.divf %238, %239 : vector<2x32xf32>
    %241 = vector.extract_strided_slice %228 {offsets = [0, 64], sizes = [2, 32], strides = [1, 1]} : vector<2x128xf32> to vector<2x32xf32>
    %242 = math.tanh %241 : vector<2x32xf32>
    %243 = vector.extract_strided_slice %228 {offsets = [0, 96], sizes = [2, 32], strides = [1, 1]} : vector<2x128xf32> to vector<2x32xf32>
    %244 = arith.negf %243 : vector<2x32xf32>
    %245 = math.exp %244 : vector<2x32xf32>
    %cst_43 = arith.constant 1.000000e+00 : f32
    %246 = vector.broadcast %cst_43 : f32 to vector<2x32xf32>
    %247 = arith.addf %246, %245 : vector<2x32xf32>
    %248 = arith.divf %246, %247 : vector<2x32xf32>
    %249 = arith.mulf %240, %222 : vector<2x32xf32>
    %250 = arith.mulf %234, %242 : vector<2x32xf32>
    %251 = arith.addf %249, %250 : vector<2x32xf32>
    %252 = math.tanh %251 : vector<2x32xf32>
    %253 = arith.mulf %248, %252 : vector<2x32xf32>
    %254 = vector.shape_cast %50 : vector<2x32xf32> to vector<1x2x32xf32>
    %255 = vector.shape_cast %79 : vector<2x32xf32> to vector<1x2x32xf32>
    %256 = vector.shape_cast %108 : vector<2x32xf32> to vector<1x2x32xf32>
    %257 = vector.shape_cast %137 : vector<2x32xf32> to vector<1x2x32xf32>
    %258 = vector.shape_cast %166 : vector<2x32xf32> to vector<1x2x32xf32>
    %259 = vector.shape_cast %195 : vector<2x32xf32> to vector<1x2x32xf32>
    %260 = vector.shape_cast %224 : vector<2x32xf32> to vector<1x2x32xf32>
    %261 = vector.shape_cast %253 : vector<2x32xf32> to vector<1x2x32xf32>
    %262 = tpu.concatenate %254, %255, %256, %257, %258, %259, %260, %261 in 0 : vector<1x2x32xf32>, vector<1x2x32xf32>, vector<1x2x32xf32>, vector<1x2x32xf32>, vector<1x2x32xf32>, vector<1x2x32xf32>, vector<1x2x32xf32>, vector<1x2x32xf32> -> vector<8x2x32xf32>
    %c0_44 = arith.constant 0 : index
    %c0_45 = arith.constant 0 : index
    %263 = vector.load %arg10[%c0_44, %c0_45] : memref<32x128xf32, #tpu.memory_space<vmem>>, vector<32x128xf32>
    %cst_46 = arith.constant 0.000000e+00 : f32
    %264 = vector.broadcast %cst_46 : f32 to vector<2x32xf32>
    %cst_47 = arith.constant 0.000000e+00 : f32
    %265 = vector.broadcast %cst_47 : f32 to vector<2x32xf32>
    %266 = vector.extract_strided_slice %18 {offsets = [7, 0, 0], sizes = [1, 2, 128], strides = [1, 1, 1]} : vector<8x2x128xf32> to vector<1x2x128xf32>
    %267 = vector.shape_cast %266 : vector<1x2x128xf32> to vector<2x128xf32>
    %cst_48 = arith.constant dense<0.000000e+00> : vector<2x128xf32>
    %268 = tpu.matmul %264, %263, %cst_48 {dimension_numbers = #tpu.dot_dimension_numbers<[1], [0], [0], [1], [0, 0, 1, 1], [], []>} : vector<2x32xf32>, vector<32x128xf32>, vector<2x128xf32> -> vector<2x128xf32>
    %269 = arith.addf %267, %268 : vector<2x128xf32>
    %270 = vector.extract_strided_slice %269 {offsets = [0, 0], sizes = [2, 32], strides = [1, 1]} : vector<2x128xf32> to vector<2x32xf32>
    %271 = arith.negf %270 : vector<2x32xf32>
    %272 = math.exp %271 : vector<2x32xf32>
    %cst_49 = arith.constant 1.000000e+00 : f32
    %273 = vector.broadcast %cst_49 : f32 to vector<2x32xf32>
    %274 = arith.addf %273, %272 : vector<2x32xf32>
    %275 = arith.divf %273, %274 : vector<2x32xf32>
    %276 = vector.extract_strided_slice %269 {offsets = [0, 32], sizes = [2, 32], strides = [1, 1]} : vector<2x128xf32> to vector<2x32xf32>
    %277 = arith.negf %276 : vector<2x32xf32>
    %278 = math.exp %277 : vector<2x32xf32>
    %cst_50 = arith.constant 1.000000e+00 : f32
    %279 = vector.broadcast %cst_50 : f32 to vector<2x32xf32>
    %280 = arith.addf %279, %278 : vector<2x32xf32>
    %281 = arith.divf %279, %280 : vector<2x32xf32>
    %282 = vector.extract_strided_slice %269 {offsets = [0, 64], sizes = [2, 32], strides = [1, 1]} : vector<2x128xf32> to vector<2x32xf32>
    %283 = math.tanh %282 : vector<2x32xf32>
    %284 = vector.extract_strided_slice %269 {offsets = [0, 96], sizes = [2, 32], strides = [1, 1]} : vector<2x128xf32> to vector<2x32xf32>
    %285 = arith.negf %284 : vector<2x32xf32>
    %286 = math.exp %285 : vector<2x32xf32>
    %cst_51 = arith.constant 1.000000e+00 : f32
    %287 = vector.broadcast %cst_51 : f32 to vector<2x32xf32>
    %288 = arith.addf %287, %286 : vector<2x32xf32>
    %289 = arith.divf %287, %288 : vector<2x32xf32>
    %290 = arith.mulf %281, %265 : vector<2x32xf32>
    %291 = arith.mulf %275, %283 : vector<2x32xf32>
    %292 = arith.addf %290, %291 : vector<2x32xf32>
    %293 = math.tanh %292 : vector<2x32xf32>
    %294 = arith.mulf %289, %293 : vector<2x32xf32>
    %295 = vector.extract_strided_slice %18 {offsets = [6, 0, 0], sizes = [1, 2, 128], strides = [1, 1, 1]} : vector<8x2x128xf32> to vector<1x2x128xf32>
    %296 = vector.shape_cast %295 : vector<1x2x128xf32> to vector<2x128xf32>
    %cst_52 = arith.constant dense<0.000000e+00> : vector<2x128xf32>
    %297 = tpu.matmul %294, %263, %cst_52 {dimension_numbers = #tpu.dot_dimension_numbers<[1], [0], [0], [1], [0, 0, 1, 1], [], []>} : vector<2x32xf32>, vector<32x128xf32>, vector<2x128xf32> -> vector<2x128xf32>
    %298 = arith.addf %296, %297 : vector<2x128xf32>
    %299 = vector.extract_strided_slice %298 {offsets = [0, 0], sizes = [2, 32], strides = [1, 1]} : vector<2x128xf32> to vector<2x32xf32>
    %300 = arith.negf %299 : vector<2x32xf32>
    %301 = math.exp %300 : vector<2x32xf32>
    %cst_53 = arith.constant 1.000000e+00 : f32
    %302 = vector.broadcast %cst_53 : f32 to vector<2x32xf32>
    %303 = arith.addf %302, %301 : vector<2x32xf32>
    %304 = arith.divf %302, %303 : vector<2x32xf32>
    %305 = vector.extract_strided_slice %298 {offsets = [0, 32], sizes = [2, 32], strides = [1, 1]} : vector<2x128xf32> to vector<2x32xf32>
    %306 = arith.negf %305 : vector<2x32xf32>
    %307 = math.exp %306 : vector<2x32xf32>
    %cst_54 = arith.constant 1.000000e+00 : f32
    %308 = vector.broadcast %cst_54 : f32 to vector<2x32xf32>
    %309 = arith.addf %308, %307 : vector<2x32xf32>
    %310 = arith.divf %308, %309 : vector<2x32xf32>
    %311 = vector.extract_strided_slice %298 {offsets = [0, 64], sizes = [2, 32], strides = [1, 1]} : vector<2x128xf32> to vector<2x32xf32>
    %312 = math.tanh %311 : vector<2x32xf32>
    %313 = vector.extract_strided_slice %298 {offsets = [0, 96], sizes = [2, 32], strides = [1, 1]} : vector<2x128xf32> to vector<2x32xf32>
    %314 = arith.negf %313 : vector<2x32xf32>
    %315 = math.exp %314 : vector<2x32xf32>
    %cst_55 = arith.constant 1.000000e+00 : f32
    %316 = vector.broadcast %cst_55 : f32 to vector<2x32xf32>
    %317 = arith.addf %316, %315 : vector<2x32xf32>
    %318 = arith.divf %316, %317 : vector<2x32xf32>
    %319 = arith.mulf %310, %292 : vector<2x32xf32>
    %320 = arith.mulf %304, %312 : vector<2x32xf32>
    %321 = arith.addf %319, %320 : vector<2x32xf32>
    %322 = math.tanh %321 : vector<2x32xf32>
    %323 = arith.mulf %318, %322 : vector<2x32xf32>
    %324 = vector.extract_strided_slice %18 {offsets = [5, 0, 0], sizes = [1, 2, 128], strides = [1, 1, 1]} : vector<8x2x128xf32> to vector<1x2x128xf32>
    %325 = vector.shape_cast %324 : vector<1x2x128xf32> to vector<2x128xf32>
    %cst_56 = arith.constant dense<0.000000e+00> : vector<2x128xf32>
    %326 = tpu.matmul %323, %263, %cst_56 {dimension_numbers = #tpu.dot_dimension_numbers<[1], [0], [0], [1], [0, 0, 1, 1], [], []>} : vector<2x32xf32>, vector<32x128xf32>, vector<2x128xf32> -> vector<2x128xf32>
    %327 = arith.addf %325, %326 : vector<2x128xf32>
    %328 = vector.extract_strided_slice %327 {offsets = [0, 0], sizes = [2, 32], strides = [1, 1]} : vector<2x128xf32> to vector<2x32xf32>
    %329 = arith.negf %328 : vector<2x32xf32>
    %330 = math.exp %329 : vector<2x32xf32>
    %cst_57 = arith.constant 1.000000e+00 : f32
    %331 = vector.broadcast %cst_57 : f32 to vector<2x32xf32>
    %332 = arith.addf %331, %330 : vector<2x32xf32>
    %333 = arith.divf %331, %332 : vector<2x32xf32>
    %334 = vector.extract_strided_slice %327 {offsets = [0, 32], sizes = [2, 32], strides = [1, 1]} : vector<2x128xf32> to vector<2x32xf32>
    %335 = arith.negf %334 : vector<2x32xf32>
    %336 = math.exp %335 : vector<2x32xf32>
    %cst_58 = arith.constant 1.000000e+00 : f32
    %337 = vector.broadcast %cst_58 : f32 to vector<2x32xf32>
    %338 = arith.addf %337, %336 : vector<2x32xf32>
    %339 = arith.divf %337, %338 : vector<2x32xf32>
    %340 = vector.extract_strided_slice %327 {offsets = [0, 64], sizes = [2, 32], strides = [1, 1]} : vector<2x128xf32> to vector<2x32xf32>
    %341 = math.tanh %340 : vector<2x32xf32>
    %342 = vector.extract_strided_slice %327 {offsets = [0, 96], sizes = [2, 32], strides = [1, 1]} : vector<2x128xf32> to vector<2x32xf32>
    %343 = arith.negf %342 : vector<2x32xf32>
    %344 = math.exp %343 : vector<2x32xf32>
    %cst_59 = arith.constant 1.000000e+00 : f32
    %345 = vector.broadcast %cst_59 : f32 to vector<2x32xf32>
    %346 = arith.addf %345, %344 : vector<2x32xf32>
    %347 = arith.divf %345, %346 : vector<2x32xf32>
    %348 = arith.mulf %339, %321 : vector<2x32xf32>
    %349 = arith.mulf %333, %341 : vector<2x32xf32>
    %350 = arith.addf %348, %349 : vector<2x32xf32>
    %351 = math.tanh %350 : vector<2x32xf32>
    %352 = arith.mulf %347, %351 : vector<2x32xf32>
    %353 = vector.extract_strided_slice %18 {offsets = [4, 0, 0], sizes = [1, 2, 128], strides = [1, 1, 1]} : vector<8x2x128xf32> to vector<1x2x128xf32>
    %354 = vector.shape_cast %353 : vector<1x2x128xf32> to vector<2x128xf32>
    %cst_60 = arith.constant dense<0.000000e+00> : vector<2x128xf32>
    %355 = tpu.matmul %352, %263, %cst_60 {dimension_numbers = #tpu.dot_dimension_numbers<[1], [0], [0], [1], [0, 0, 1, 1], [], []>} : vector<2x32xf32>, vector<32x128xf32>, vector<2x128xf32> -> vector<2x128xf32>
    %356 = arith.addf %354, %355 : vector<2x128xf32>
    %357 = vector.extract_strided_slice %356 {offsets = [0, 0], sizes = [2, 32], strides = [1, 1]} : vector<2x128xf32> to vector<2x32xf32>
    %358 = arith.negf %357 : vector<2x32xf32>
    %359 = math.exp %358 : vector<2x32xf32>
    %cst_61 = arith.constant 1.000000e+00 : f32
    %360 = vector.broadcast %cst_61 : f32 to vector<2x32xf32>
    %361 = arith.addf %360, %359 : vector<2x32xf32>
    %362 = arith.divf %360, %361 : vector<2x32xf32>
    %363 = vector.extract_strided_slice %356 {offsets = [0, 32], sizes = [2, 32], strides = [1, 1]} : vector<2x128xf32> to vector<2x32xf32>
    %364 = arith.negf %363 : vector<2x32xf32>
    %365 = math.exp %364 : vector<2x32xf32>
    %cst_62 = arith.constant 1.000000e+00 : f32
    %366 = vector.broadcast %cst_62 : f32 to vector<2x32xf32>
    %367 = arith.addf %366, %365 : vector<2x32xf32>
    %368 = arith.divf %366, %367 : vector<2x32xf32>
    %369 = vector.extract_strided_slice %356 {offsets = [0, 64], sizes = [2, 32], strides = [1, 1]} : vector<2x128xf32> to vector<2x32xf32>
    %370 = math.tanh %369 : vector<2x32xf32>
    %371 = vector.extract_strided_slice %356 {offsets = [0, 96], sizes = [2, 32], strides = [1, 1]} : vector<2x128xf32> to vector<2x32xf32>
    %372 = arith.negf %371 : vector<2x32xf32>
    %373 = math.exp %372 : vector<2x32xf32>
    %cst_63 = arith.constant 1.000000e+00 : f32
    %374 = vector.broadcast %cst_63 : f32 to vector<2x32xf32>
    %375 = arith.addf %374, %373 : vector<2x32xf32>
    %376 = arith.divf %374, %375 : vector<2x32xf32>
    %377 = arith.mulf %368, %350 : vector<2x32xf32>
    %378 = arith.mulf %362, %370 : vector<2x32xf32>
    %379 = arith.addf %377, %378 : vector<2x32xf32>
    %380 = math.tanh %379 : vector<2x32xf32>
    %381 = arith.mulf %376, %380 : vector<2x32xf32>
    %382 = vector.extract_strided_slice %18 {offsets = [3, 0, 0], sizes = [1, 2, 128], strides = [1, 1, 1]} : vector<8x2x128xf32> to vector<1x2x128xf32>
    %383 = vector.shape_cast %382 : vector<1x2x128xf32> to vector<2x128xf32>
    %cst_64 = arith.constant dense<0.000000e+00> : vector<2x128xf32>
    %384 = tpu.matmul %381, %263, %cst_64 {dimension_numbers = #tpu.dot_dimension_numbers<[1], [0], [0], [1], [0, 0, 1, 1], [], []>} : vector<2x32xf32>, vector<32x128xf32>, vector<2x128xf32> -> vector<2x128xf32>
    %385 = arith.addf %383, %384 : vector<2x128xf32>
    %386 = vector.extract_strided_slice %385 {offsets = [0, 0], sizes = [2, 32], strides = [1, 1]} : vector<2x128xf32> to vector<2x32xf32>
    %387 = arith.negf %386 : vector<2x32xf32>
    %388 = math.exp %387 : vector<2x32xf32>
    %cst_65 = arith.constant 1.000000e+00 : f32
    %389 = vector.broadcast %cst_65 : f32 to vector<2x32xf32>
    %390 = arith.addf %389, %388 : vector<2x32xf32>
    %391 = arith.divf %389, %390 : vector<2x32xf32>
    %392 = vector.extract_strided_slice %385 {offsets = [0, 32], sizes = [2, 32], strides = [1, 1]} : vector<2x128xf32> to vector<2x32xf32>
    %393 = arith.negf %392 : vector<2x32xf32>
    %394 = math.exp %393 : vector<2x32xf32>
    %cst_66 = arith.constant 1.000000e+00 : f32
    %395 = vector.broadcast %cst_66 : f32 to vector<2x32xf32>
    %396 = arith.addf %395, %394 : vector<2x32xf32>
    %397 = arith.divf %395, %396 : vector<2x32xf32>
    %398 = vector.extract_strided_slice %385 {offsets = [0, 64], sizes = [2, 32], strides = [1, 1]} : vector<2x128xf32> to vector<2x32xf32>
    %399 = math.tanh %398 : vector<2x32xf32>
    %400 = vector.extract_strided_slice %385 {offsets = [0, 96], sizes = [2, 32], strides = [1, 1]} : vector<2x128xf32> to vector<2x32xf32>
    %401 = arith.negf %400 : vector<2x32xf32>
    %402 = math.exp %401 : vector<2x32xf32>
    %cst_67 = arith.constant 1.000000e+00 : f32
    %403 = vector.broadcast %cst_67 : f32 to vector<2x32xf32>
    %404 = arith.addf %403, %402 : vector<2x32xf32>
    %405 = arith.divf %403, %404 : vector<2x32xf32>
    %406 = arith.mulf %397, %379 : vector<2x32xf32>
    %407 = arith.mulf %391, %399 : vector<2x32xf32>
    %408 = arith.addf %406, %407 : vector<2x32xf32>
    %409 = math.tanh %408 : vector<2x32xf32>
    %410 = arith.mulf %405, %409 : vector<2x32xf32>
    %411 = vector.extract_strided_slice %18 {offsets = [2, 0, 0], sizes = [1, 2, 128], strides = [1, 1, 1]} : vector<8x2x128xf32> to vector<1x2x128xf32>
    %412 = vector.shape_cast %411 : vector<1x2x128xf32> to vector<2x128xf32>
    %cst_68 = arith.constant dense<0.000000e+00> : vector<2x128xf32>
    %413 = tpu.matmul %410, %263, %cst_68 {dimension_numbers = #tpu.dot_dimension_numbers<[1], [0], [0], [1], [0, 0, 1, 1], [], []>} : vector<2x32xf32>, vector<32x128xf32>, vector<2x128xf32> -> vector<2x128xf32>
    %414 = arith.addf %412, %413 : vector<2x128xf32>
    %415 = vector.extract_strided_slice %414 {offsets = [0, 0], sizes = [2, 32], strides = [1, 1]} : vector<2x128xf32> to vector<2x32xf32>
    %416 = arith.negf %415 : vector<2x32xf32>
    %417 = math.exp %416 : vector<2x32xf32>
    %cst_69 = arith.constant 1.000000e+00 : f32
    %418 = vector.broadcast %cst_69 : f32 to vector<2x32xf32>
    %419 = arith.addf %418, %417 : vector<2x32xf32>
    %420 = arith.divf %418, %419 : vector<2x32xf32>
    %421 = vector.extract_strided_slice %414 {offsets = [0, 32], sizes = [2, 32], strides = [1, 1]} : vector<2x128xf32> to vector<2x32xf32>
    %422 = arith.negf %421 : vector<2x32xf32>
    %423 = math.exp %422 : vector<2x32xf32>
    %cst_70 = arith.constant 1.000000e+00 : f32
    %424 = vector.broadcast %cst_70 : f32 to vector<2x32xf32>
    %425 = arith.addf %424, %423 : vector<2x32xf32>
    %426 = arith.divf %424, %425 : vector<2x32xf32>
    %427 = vector.extract_strided_slice %414 {offsets = [0, 64], sizes = [2, 32], strides = [1, 1]} : vector<2x128xf32> to vector<2x32xf32>
    %428 = math.tanh %427 : vector<2x32xf32>
    %429 = vector.extract_strided_slice %414 {offsets = [0, 96], sizes = [2, 32], strides = [1, 1]} : vector<2x128xf32> to vector<2x32xf32>
    %430 = arith.negf %429 : vector<2x32xf32>
    %431 = math.exp %430 : vector<2x32xf32>
    %cst_71 = arith.constant 1.000000e+00 : f32
    %432 = vector.broadcast %cst_71 : f32 to vector<2x32xf32>
    %433 = arith.addf %432, %431 : vector<2x32xf32>
    %434 = arith.divf %432, %433 : vector<2x32xf32>
    %435 = arith.mulf %426, %408 : vector<2x32xf32>
    %436 = arith.mulf %420, %428 : vector<2x32xf32>
    %437 = arith.addf %435, %436 : vector<2x32xf32>
    %438 = math.tanh %437 : vector<2x32xf32>
    %439 = arith.mulf %434, %438 : vector<2x32xf32>
    %440 = vector.extract_strided_slice %18 {offsets = [1, 0, 0], sizes = [1, 2, 128], strides = [1, 1, 1]} : vector<8x2x128xf32> to vector<1x2x128xf32>
    %441 = vector.shape_cast %440 : vector<1x2x128xf32> to vector<2x128xf32>
    %cst_72 = arith.constant dense<0.000000e+00> : vector<2x128xf32>
    %442 = tpu.matmul %439, %263, %cst_72 {dimension_numbers = #tpu.dot_dimension_numbers<[1], [0], [0], [1], [0, 0, 1, 1], [], []>} : vector<2x32xf32>, vector<32x128xf32>, vector<2x128xf32> -> vector<2x128xf32>
    %443 = arith.addf %441, %442 : vector<2x128xf32>
    %444 = vector.extract_strided_slice %443 {offsets = [0, 0], sizes = [2, 32], strides = [1, 1]} : vector<2x128xf32> to vector<2x32xf32>
    %445 = arith.negf %444 : vector<2x32xf32>
    %446 = math.exp %445 : vector<2x32xf32>
    %cst_73 = arith.constant 1.000000e+00 : f32
    %447 = vector.broadcast %cst_73 : f32 to vector<2x32xf32>
    %448 = arith.addf %447, %446 : vector<2x32xf32>
    %449 = arith.divf %447, %448 : vector<2x32xf32>
    %450 = vector.extract_strided_slice %443 {offsets = [0, 32], sizes = [2, 32], strides = [1, 1]} : vector<2x128xf32> to vector<2x32xf32>
    %451 = arith.negf %450 : vector<2x32xf32>
    %452 = math.exp %451 : vector<2x32xf32>
    %cst_74 = arith.constant 1.000000e+00 : f32
    %453 = vector.broadcast %cst_74 : f32 to vector<2x32xf32>
    %454 = arith.addf %453, %452 : vector<2x32xf32>
    %455 = arith.divf %453, %454 : vector<2x32xf32>
    %456 = vector.extract_strided_slice %443 {offsets = [0, 64], sizes = [2, 32], strides = [1, 1]} : vector<2x128xf32> to vector<2x32xf32>
    %457 = math.tanh %456 : vector<2x32xf32>
    %458 = vector.extract_strided_slice %443 {offsets = [0, 96], sizes = [2, 32], strides = [1, 1]} : vector<2x128xf32> to vector<2x32xf32>
    %459 = arith.negf %458 : vector<2x32xf32>
    %460 = math.exp %459 : vector<2x32xf32>
    %cst_75 = arith.constant 1.000000e+00 : f32
    %461 = vector.broadcast %cst_75 : f32 to vector<2x32xf32>
    %462 = arith.addf %461, %460 : vector<2x32xf32>
    %463 = arith.divf %461, %462 : vector<2x32xf32>
    %464 = arith.mulf %455, %437 : vector<2x32xf32>
    %465 = arith.mulf %449, %457 : vector<2x32xf32>
    %466 = arith.addf %464, %465 : vector<2x32xf32>
    %467 = math.tanh %466 : vector<2x32xf32>
    %468 = arith.mulf %463, %467 : vector<2x32xf32>
    %469 = vector.extract_strided_slice %18 {offsets = [0, 0, 0], sizes = [1, 2, 128], strides = [1, 1, 1]} : vector<8x2x128xf32> to vector<1x2x128xf32>
    %470 = vector.shape_cast %469 : vector<1x2x128xf32> to vector<2x128xf32>
    %cst_76 = arith.constant dense<0.000000e+00> : vector<2x128xf32>
    %471 = tpu.matmul %468, %263, %cst_76 {dimension_numbers = #tpu.dot_dimension_numbers<[1], [0], [0], [1], [0, 0, 1, 1], [], []>} : vector<2x32xf32>, vector<32x128xf32>, vector<2x128xf32> -> vector<2x128xf32>
    %472 = arith.addf %470, %471 : vector<2x128xf32>
    %473 = vector.extract_strided_slice %472 {offsets = [0, 0], sizes = [2, 32], strides = [1, 1]} : vector<2x128xf32> to vector<2x32xf32>
    %474 = arith.negf %473 : vector<2x32xf32>
    %475 = math.exp %474 : vector<2x32xf32>
    %cst_77 = arith.constant 1.000000e+00 : f32
    %476 = vector.broadcast %cst_77 : f32 to vector<2x32xf32>
    %477 = arith.addf %476, %475 : vector<2x32xf32>
    %478 = arith.divf %476, %477 : vector<2x32xf32>
    %479 = vector.extract_strided_slice %472 {offsets = [0, 32], sizes = [2, 32], strides = [1, 1]} : vector<2x128xf32> to vector<2x32xf32>
    %480 = arith.negf %479 : vector<2x32xf32>
    %481 = math.exp %480 : vector<2x32xf32>
    %cst_78 = arith.constant 1.000000e+00 : f32
    %482 = vector.broadcast %cst_78 : f32 to vector<2x32xf32>
    %483 = arith.addf %482, %481 : vector<2x32xf32>
    %484 = arith.divf %482, %483 : vector<2x32xf32>
    %485 = vector.extract_strided_slice %472 {offsets = [0, 64], sizes = [2, 32], strides = [1, 1]} : vector<2x128xf32> to vector<2x32xf32>
    %486 = math.tanh %485 : vector<2x32xf32>
    %487 = vector.extract_strided_slice %472 {offsets = [0, 96], sizes = [2, 32], strides = [1, 1]} : vector<2x128xf32> to vector<2x32xf32>
    %488 = arith.negf %487 : vector<2x32xf32>
    %489 = math.exp %488 : vector<2x32xf32>
    %cst_79 = arith.constant 1.000000e+00 : f32
    %490 = vector.broadcast %cst_79 : f32 to vector<2x32xf32>
    %491 = arith.addf %490, %489 : vector<2x32xf32>
    %492 = arith.divf %490, %491 : vector<2x32xf32>
    %493 = arith.mulf %484, %466 : vector<2x32xf32>
    %494 = arith.mulf %478, %486 : vector<2x32xf32>
    %495 = arith.addf %493, %494 : vector<2x32xf32>
    %496 = math.tanh %495 : vector<2x32xf32>
    %497 = arith.mulf %492, %496 : vector<2x32xf32>
    %498 = vector.shape_cast %497 : vector<2x32xf32> to vector<1x2x32xf32>
    %499 = vector.shape_cast %468 : vector<2x32xf32> to vector<1x2x32xf32>
    %500 = vector.shape_cast %439 : vector<2x32xf32> to vector<1x2x32xf32>
    %501 = vector.shape_cast %410 : vector<2x32xf32> to vector<1x2x32xf32>
    %502 = vector.shape_cast %381 : vector<2x32xf32> to vector<1x2x32xf32>
    %503 = vector.shape_cast %352 : vector<2x32xf32> to vector<1x2x32xf32>
    %504 = vector.shape_cast %323 : vector<2x32xf32> to vector<1x2x32xf32>
    %505 = vector.shape_cast %294 : vector<2x32xf32> to vector<1x2x32xf32>
    %506 = tpu.concatenate %498, %499, %500, %501, %502, %503, %504, %505 in 0 : vector<1x2x32xf32>, vector<1x2x32xf32>, vector<1x2x32xf32>, vector<1x2x32xf32>, vector<1x2x32xf32>, vector<1x2x32xf32>, vector<1x2x32xf32>, vector<1x2x32xf32> -> vector<8x2x32xf32>
    %507 = vector.shape_cast %262 : vector<8x2x32xf32> to vector<16x32xf32>
    %c0_80 = arith.constant 0 : index
    %c0_81 = arith.constant 0 : index
    %508 = vector.load %arg3[%c0_80, %c0_81] : memref<32x256xf32, #tpu.memory_space<vmem>>, vector<32x256xf32>
    %cst_82 = arith.constant dense<0.000000e+00> : vector<16x256xf32>
    %509 = tpu.matmul %507, %508, %cst_82 {dimension_numbers = #tpu.dot_dimension_numbers<[1], [0], [0], [1], [0, 0, 1, 1], [], []>} : vector<16x32xf32>, vector<32x256xf32>, vector<16x256xf32> -> vector<16x256xf32>
    %510 = vector.shape_cast %506 : vector<8x2x32xf32> to vector<16x32xf32>
    %c0_83 = arith.constant 0 : index
    %c0_84 = arith.constant 0 : index
    %511 = vector.load %arg4[%c0_83, %c0_84] : memref<32x256xf32, #tpu.memory_space<vmem>>, vector<32x256xf32>
    %cst_85 = arith.constant dense<0.000000e+00> : vector<16x256xf32>
    %512 = tpu.matmul %510, %511, %cst_85 {dimension_numbers = #tpu.dot_dimension_numbers<[1], [0], [0], [1], [0, 0, 1, 1], [], []>} : vector<16x32xf32>, vector<32x256xf32>, vector<16x256xf32> -> vector<16x256xf32>
    %513 = arith.addf %509, %512 : vector<16x256xf32>
    %c0_86 = arith.constant 0 : index
    %c0_87 = arith.constant 0 : index
    %514 = vector.load %arg5[%c0_86, %c0_87] : memref<1x256xf32, #tpu.memory_space<vmem>>, vector<1x256xf32>
    %515 = vector.broadcast %514 : vector<1x256xf32> to vector<16x256xf32>
    %516 = arith.addf %513, %515 : vector<16x256xf32>
    %517 = vector.extract_strided_slice %516 {offsets = [0, 0], sizes = [16, 128], strides = [1, 1]} : vector<16x256xf32> to vector<16x128xf32>
    %518 = vector.shape_cast %517 : vector<16x128xf32> to vector<8x2x128xf32>
    %519 = vector.extract_strided_slice %516 {offsets = [0, 128], sizes = [16, 128], strides = [1, 1]} : vector<16x256xf32> to vector<16x128xf32>
    %520 = vector.shape_cast %519 : vector<16x128xf32> to vector<8x2x128xf32>
    %c0_88 = arith.constant 0 : index
    %c0_89 = arith.constant 0 : index
    %521 = vector.load %arg11[%c0_88, %c0_89] : memref<32x128xf32, #tpu.memory_space<vmem>>, vector<32x128xf32>
    %cst_90 = arith.constant 0.000000e+00 : f32
    %522 = vector.broadcast %cst_90 : f32 to vector<2x32xf32>
    %cst_91 = arith.constant 0.000000e+00 : f32
    %523 = vector.broadcast %cst_91 : f32 to vector<2x32xf32>
    %524 = vector.extract_strided_slice %518 {offsets = [0, 0, 0], sizes = [1, 2, 128], strides = [1, 1, 1]} : vector<8x2x128xf32> to vector<1x2x128xf32>
    %525 = vector.shape_cast %524 : vector<1x2x128xf32> to vector<2x128xf32>
    %cst_92 = arith.constant dense<0.000000e+00> : vector<2x128xf32>
    %526 = tpu.matmul %522, %521, %cst_92 {dimension_numbers = #tpu.dot_dimension_numbers<[1], [0], [0], [1], [0, 0, 1, 1], [], []>} : vector<2x32xf32>, vector<32x128xf32>, vector<2x128xf32> -> vector<2x128xf32>
    %527 = arith.addf %525, %526 : vector<2x128xf32>
    %528 = vector.extract_strided_slice %527 {offsets = [0, 0], sizes = [2, 32], strides = [1, 1]} : vector<2x128xf32> to vector<2x32xf32>
    %529 = arith.negf %528 : vector<2x32xf32>
    %530 = math.exp %529 : vector<2x32xf32>
    %cst_93 = arith.constant 1.000000e+00 : f32
    %531 = vector.broadcast %cst_93 : f32 to vector<2x32xf32>
    %532 = arith.addf %531, %530 : vector<2x32xf32>
    %533 = arith.divf %531, %532 : vector<2x32xf32>
    %534 = vector.extract_strided_slice %527 {offsets = [0, 32], sizes = [2, 32], strides = [1, 1]} : vector<2x128xf32> to vector<2x32xf32>
    %535 = arith.negf %534 : vector<2x32xf32>
    %536 = math.exp %535 : vector<2x32xf32>
    %cst_94 = arith.constant 1.000000e+00 : f32
    %537 = vector.broadcast %cst_94 : f32 to vector<2x32xf32>
    %538 = arith.addf %537, %536 : vector<2x32xf32>
    %539 = arith.divf %537, %538 : vector<2x32xf32>
    %540 = vector.extract_strided_slice %527 {offsets = [0, 64], sizes = [2, 32], strides = [1, 1]} : vector<2x128xf32> to vector<2x32xf32>
    %541 = math.tanh %540 : vector<2x32xf32>
    %542 = vector.extract_strided_slice %527 {offsets = [0, 96], sizes = [2, 32], strides = [1, 1]} : vector<2x128xf32> to vector<2x32xf32>
    %543 = arith.negf %542 : vector<2x32xf32>
    %544 = math.exp %543 : vector<2x32xf32>
    %cst_95 = arith.constant 1.000000e+00 : f32
    %545 = vector.broadcast %cst_95 : f32 to vector<2x32xf32>
    %546 = arith.addf %545, %544 : vector<2x32xf32>
    %547 = arith.divf %545, %546 : vector<2x32xf32>
    %548 = arith.mulf %539, %523 : vector<2x32xf32>
    %549 = arith.mulf %533, %541 : vector<2x32xf32>
    %550 = arith.addf %548, %549 : vector<2x32xf32>
    %551 = math.tanh %550 : vector<2x32xf32>
    %552 = arith.mulf %547, %551 : vector<2x32xf32>
    %553 = vector.extract_strided_slice %518 {offsets = [1, 0, 0], sizes = [1, 2, 128], strides = [1, 1, 1]} : vector<8x2x128xf32> to vector<1x2x128xf32>
    %554 = vector.shape_cast %553 : vector<1x2x128xf32> to vector<2x128xf32>
    %cst_96 = arith.constant dense<0.000000e+00> : vector<2x128xf32>
    %555 = tpu.matmul %552, %521, %cst_96 {dimension_numbers = #tpu.dot_dimension_numbers<[1], [0], [0], [1], [0, 0, 1, 1], [], []>} : vector<2x32xf32>, vector<32x128xf32>, vector<2x128xf32> -> vector<2x128xf32>
    %556 = arith.addf %554, %555 : vector<2x128xf32>
    %557 = vector.extract_strided_slice %556 {offsets = [0, 0], sizes = [2, 32], strides = [1, 1]} : vector<2x128xf32> to vector<2x32xf32>
    %558 = arith.negf %557 : vector<2x32xf32>
    %559 = math.exp %558 : vector<2x32xf32>
    %cst_97 = arith.constant 1.000000e+00 : f32
    %560 = vector.broadcast %cst_97 : f32 to vector<2x32xf32>
    %561 = arith.addf %560, %559 : vector<2x32xf32>
    %562 = arith.divf %560, %561 : vector<2x32xf32>
    %563 = vector.extract_strided_slice %556 {offsets = [0, 32], sizes = [2, 32], strides = [1, 1]} : vector<2x128xf32> to vector<2x32xf32>
    %564 = arith.negf %563 : vector<2x32xf32>
    %565 = math.exp %564 : vector<2x32xf32>
    %cst_98 = arith.constant 1.000000e+00 : f32
    %566 = vector.broadcast %cst_98 : f32 to vector<2x32xf32>
    %567 = arith.addf %566, %565 : vector<2x32xf32>
    %568 = arith.divf %566, %567 : vector<2x32xf32>
    %569 = vector.extract_strided_slice %556 {offsets = [0, 64], sizes = [2, 32], strides = [1, 1]} : vector<2x128xf32> to vector<2x32xf32>
    %570 = math.tanh %569 : vector<2x32xf32>
    %571 = vector.extract_strided_slice %556 {offsets = [0, 96], sizes = [2, 32], strides = [1, 1]} : vector<2x128xf32> to vector<2x32xf32>
    %572 = arith.negf %571 : vector<2x32xf32>
    %573 = math.exp %572 : vector<2x32xf32>
    %cst_99 = arith.constant 1.000000e+00 : f32
    %574 = vector.broadcast %cst_99 : f32 to vector<2x32xf32>
    %575 = arith.addf %574, %573 : vector<2x32xf32>
    %576 = arith.divf %574, %575 : vector<2x32xf32>
    %577 = arith.mulf %568, %550 : vector<2x32xf32>
    %578 = arith.mulf %562, %570 : vector<2x32xf32>
    %579 = arith.addf %577, %578 : vector<2x32xf32>
    %580 = math.tanh %579 : vector<2x32xf32>
    %581 = arith.mulf %576, %580 : vector<2x32xf32>
    %582 = vector.extract_strided_slice %518 {offsets = [2, 0, 0], sizes = [1, 2, 128], strides = [1, 1, 1]} : vector<8x2x128xf32> to vector<1x2x128xf32>
    %583 = vector.shape_cast %582 : vector<1x2x128xf32> to vector<2x128xf32>
    %cst_100 = arith.constant dense<0.000000e+00> : vector<2x128xf32>
    %584 = tpu.matmul %581, %521, %cst_100 {dimension_numbers = #tpu.dot_dimension_numbers<[1], [0], [0], [1], [0, 0, 1, 1], [], []>} : vector<2x32xf32>, vector<32x128xf32>, vector<2x128xf32> -> vector<2x128xf32>
    %585 = arith.addf %583, %584 : vector<2x128xf32>
    %586 = vector.extract_strided_slice %585 {offsets = [0, 0], sizes = [2, 32], strides = [1, 1]} : vector<2x128xf32> to vector<2x32xf32>
    %587 = arith.negf %586 : vector<2x32xf32>
    %588 = math.exp %587 : vector<2x32xf32>
    %cst_101 = arith.constant 1.000000e+00 : f32
    %589 = vector.broadcast %cst_101 : f32 to vector<2x32xf32>
    %590 = arith.addf %589, %588 : vector<2x32xf32>
    %591 = arith.divf %589, %590 : vector<2x32xf32>
    %592 = vector.extract_strided_slice %585 {offsets = [0, 32], sizes = [2, 32], strides = [1, 1]} : vector<2x128xf32> to vector<2x32xf32>
    %593 = arith.negf %592 : vector<2x32xf32>
    %594 = math.exp %593 : vector<2x32xf32>
    %cst_102 = arith.constant 1.000000e+00 : f32
    %595 = vector.broadcast %cst_102 : f32 to vector<2x32xf32>
    %596 = arith.addf %595, %594 : vector<2x32xf32>
    %597 = arith.divf %595, %596 : vector<2x32xf32>
    %598 = vector.extract_strided_slice %585 {offsets = [0, 64], sizes = [2, 32], strides = [1, 1]} : vector<2x128xf32> to vector<2x32xf32>
    %599 = math.tanh %598 : vector<2x32xf32>
    %600 = vector.extract_strided_slice %585 {offsets = [0, 96], sizes = [2, 32], strides = [1, 1]} : vector<2x128xf32> to vector<2x32xf32>
    %601 = arith.negf %600 : vector<2x32xf32>
    %602 = math.exp %601 : vector<2x32xf32>
    %cst_103 = arith.constant 1.000000e+00 : f32
    %603 = vector.broadcast %cst_103 : f32 to vector<2x32xf32>
    %604 = arith.addf %603, %602 : vector<2x32xf32>
    %605 = arith.divf %603, %604 : vector<2x32xf32>
    %606 = arith.mulf %597, %579 : vector<2x32xf32>
    %607 = arith.mulf %591, %599 : vector<2x32xf32>
    %608 = arith.addf %606, %607 : vector<2x32xf32>
    %609 = math.tanh %608 : vector<2x32xf32>
    %610 = arith.mulf %605, %609 : vector<2x32xf32>
    %611 = vector.extract_strided_slice %518 {offsets = [3, 0, 0], sizes = [1, 2, 128], strides = [1, 1, 1]} : vector<8x2x128xf32> to vector<1x2x128xf32>
    %612 = vector.shape_cast %611 : vector<1x2x128xf32> to vector<2x128xf32>
    %cst_104 = arith.constant dense<0.000000e+00> : vector<2x128xf32>
    %613 = tpu.matmul %610, %521, %cst_104 {dimension_numbers = #tpu.dot_dimension_numbers<[1], [0], [0], [1], [0, 0, 1, 1], [], []>} : vector<2x32xf32>, vector<32x128xf32>, vector<2x128xf32> -> vector<2x128xf32>
    %614 = arith.addf %612, %613 : vector<2x128xf32>
    %615 = vector.extract_strided_slice %614 {offsets = [0, 0], sizes = [2, 32], strides = [1, 1]} : vector<2x128xf32> to vector<2x32xf32>
    %616 = arith.negf %615 : vector<2x32xf32>
    %617 = math.exp %616 : vector<2x32xf32>
    %cst_105 = arith.constant 1.000000e+00 : f32
    %618 = vector.broadcast %cst_105 : f32 to vector<2x32xf32>
    %619 = arith.addf %618, %617 : vector<2x32xf32>
    %620 = arith.divf %618, %619 : vector<2x32xf32>
    %621 = vector.extract_strided_slice %614 {offsets = [0, 32], sizes = [2, 32], strides = [1, 1]} : vector<2x128xf32> to vector<2x32xf32>
    %622 = arith.negf %621 : vector<2x32xf32>
    %623 = math.exp %622 : vector<2x32xf32>
    %cst_106 = arith.constant 1.000000e+00 : f32
    %624 = vector.broadcast %cst_106 : f32 to vector<2x32xf32>
    %625 = arith.addf %624, %623 : vector<2x32xf32>
    %626 = arith.divf %624, %625 : vector<2x32xf32>
    %627 = vector.extract_strided_slice %614 {offsets = [0, 64], sizes = [2, 32], strides = [1, 1]} : vector<2x128xf32> to vector<2x32xf32>
    %628 = math.tanh %627 : vector<2x32xf32>
    %629 = vector.extract_strided_slice %614 {offsets = [0, 96], sizes = [2, 32], strides = [1, 1]} : vector<2x128xf32> to vector<2x32xf32>
    %630 = arith.negf %629 : vector<2x32xf32>
    %631 = math.exp %630 : vector<2x32xf32>
    %cst_107 = arith.constant 1.000000e+00 : f32
    %632 = vector.broadcast %cst_107 : f32 to vector<2x32xf32>
    %633 = arith.addf %632, %631 : vector<2x32xf32>
    %634 = arith.divf %632, %633 : vector<2x32xf32>
    %635 = arith.mulf %626, %608 : vector<2x32xf32>
    %636 = arith.mulf %620, %628 : vector<2x32xf32>
    %637 = arith.addf %635, %636 : vector<2x32xf32>
    %638 = math.tanh %637 : vector<2x32xf32>
    %639 = arith.mulf %634, %638 : vector<2x32xf32>
    %640 = vector.extract_strided_slice %518 {offsets = [4, 0, 0], sizes = [1, 2, 128], strides = [1, 1, 1]} : vector<8x2x128xf32> to vector<1x2x128xf32>
    %641 = vector.shape_cast %640 : vector<1x2x128xf32> to vector<2x128xf32>
    %cst_108 = arith.constant dense<0.000000e+00> : vector<2x128xf32>
    %642 = tpu.matmul %639, %521, %cst_108 {dimension_numbers = #tpu.dot_dimension_numbers<[1], [0], [0], [1], [0, 0, 1, 1], [], []>} : vector<2x32xf32>, vector<32x128xf32>, vector<2x128xf32> -> vector<2x128xf32>
    %643 = arith.addf %641, %642 : vector<2x128xf32>
    %644 = vector.extract_strided_slice %643 {offsets = [0, 0], sizes = [2, 32], strides = [1, 1]} : vector<2x128xf32> to vector<2x32xf32>
    %645 = arith.negf %644 : vector<2x32xf32>
    %646 = math.exp %645 : vector<2x32xf32>
    %cst_109 = arith.constant 1.000000e+00 : f32
    %647 = vector.broadcast %cst_109 : f32 to vector<2x32xf32>
    %648 = arith.addf %647, %646 : vector<2x32xf32>
    %649 = arith.divf %647, %648 : vector<2x32xf32>
    %650 = vector.extract_strided_slice %643 {offsets = [0, 32], sizes = [2, 32], strides = [1, 1]} : vector<2x128xf32> to vector<2x32xf32>
    %651 = arith.negf %650 : vector<2x32xf32>
    %652 = math.exp %651 : vector<2x32xf32>
    %cst_110 = arith.constant 1.000000e+00 : f32
    %653 = vector.broadcast %cst_110 : f32 to vector<2x32xf32>
    %654 = arith.addf %653, %652 : vector<2x32xf32>
    %655 = arith.divf %653, %654 : vector<2x32xf32>
    %656 = vector.extract_strided_slice %643 {offsets = [0, 64], sizes = [2, 32], strides = [1, 1]} : vector<2x128xf32> to vector<2x32xf32>
    %657 = math.tanh %656 : vector<2x32xf32>
    %658 = vector.extract_strided_slice %643 {offsets = [0, 96], sizes = [2, 32], strides = [1, 1]} : vector<2x128xf32> to vector<2x32xf32>
    %659 = arith.negf %658 : vector<2x32xf32>
    %660 = math.exp %659 : vector<2x32xf32>
    %cst_111 = arith.constant 1.000000e+00 : f32
    %661 = vector.broadcast %cst_111 : f32 to vector<2x32xf32>
    %662 = arith.addf %661, %660 : vector<2x32xf32>
    %663 = arith.divf %661, %662 : vector<2x32xf32>
    %664 = arith.mulf %655, %637 : vector<2x32xf32>
    %665 = arith.mulf %649, %657 : vector<2x32xf32>
    %666 = arith.addf %664, %665 : vector<2x32xf32>
    %667 = math.tanh %666 : vector<2x32xf32>
    %668 = arith.mulf %663, %667 : vector<2x32xf32>
    %669 = vector.extract_strided_slice %518 {offsets = [5, 0, 0], sizes = [1, 2, 128], strides = [1, 1, 1]} : vector<8x2x128xf32> to vector<1x2x128xf32>
    %670 = vector.shape_cast %669 : vector<1x2x128xf32> to vector<2x128xf32>
    %cst_112 = arith.constant dense<0.000000e+00> : vector<2x128xf32>
    %671 = tpu.matmul %668, %521, %cst_112 {dimension_numbers = #tpu.dot_dimension_numbers<[1], [0], [0], [1], [0, 0, 1, 1], [], []>} : vector<2x32xf32>, vector<32x128xf32>, vector<2x128xf32> -> vector<2x128xf32>
    %672 = arith.addf %670, %671 : vector<2x128xf32>
    %673 = vector.extract_strided_slice %672 {offsets = [0, 0], sizes = [2, 32], strides = [1, 1]} : vector<2x128xf32> to vector<2x32xf32>
    %674 = arith.negf %673 : vector<2x32xf32>
    %675 = math.exp %674 : vector<2x32xf32>
    %cst_113 = arith.constant 1.000000e+00 : f32
    %676 = vector.broadcast %cst_113 : f32 to vector<2x32xf32>
    %677 = arith.addf %676, %675 : vector<2x32xf32>
    %678 = arith.divf %676, %677 : vector<2x32xf32>
    %679 = vector.extract_strided_slice %672 {offsets = [0, 32], sizes = [2, 32], strides = [1, 1]} : vector<2x128xf32> to vector<2x32xf32>
    %680 = arith.negf %679 : vector<2x32xf32>
    %681 = math.exp %680 : vector<2x32xf32>
    %cst_114 = arith.constant 1.000000e+00 : f32
    %682 = vector.broadcast %cst_114 : f32 to vector<2x32xf32>
    %683 = arith.addf %682, %681 : vector<2x32xf32>
    %684 = arith.divf %682, %683 : vector<2x32xf32>
    %685 = vector.extract_strided_slice %672 {offsets = [0, 64], sizes = [2, 32], strides = [1, 1]} : vector<2x128xf32> to vector<2x32xf32>
    %686 = math.tanh %685 : vector<2x32xf32>
    %687 = vector.extract_strided_slice %672 {offsets = [0, 96], sizes = [2, 32], strides = [1, 1]} : vector<2x128xf32> to vector<2x32xf32>
    %688 = arith.negf %687 : vector<2x32xf32>
    %689 = math.exp %688 : vector<2x32xf32>
    %cst_115 = arith.constant 1.000000e+00 : f32
    %690 = vector.broadcast %cst_115 : f32 to vector<2x32xf32>
    %691 = arith.addf %690, %689 : vector<2x32xf32>
    %692 = arith.divf %690, %691 : vector<2x32xf32>
    %693 = arith.mulf %684, %666 : vector<2x32xf32>
    %694 = arith.mulf %678, %686 : vector<2x32xf32>
    %695 = arith.addf %693, %694 : vector<2x32xf32>
    %696 = math.tanh %695 : vector<2x32xf32>
    %697 = arith.mulf %692, %696 : vector<2x32xf32>
    %698 = vector.extract_strided_slice %518 {offsets = [6, 0, 0], sizes = [1, 2, 128], strides = [1, 1, 1]} : vector<8x2x128xf32> to vector<1x2x128xf32>
    %699 = vector.shape_cast %698 : vector<1x2x128xf32> to vector<2x128xf32>
    %cst_116 = arith.constant dense<0.000000e+00> : vector<2x128xf32>
    %700 = tpu.matmul %697, %521, %cst_116 {dimension_numbers = #tpu.dot_dimension_numbers<[1], [0], [0], [1], [0, 0, 1, 1], [], []>} : vector<2x32xf32>, vector<32x128xf32>, vector<2x128xf32> -> vector<2x128xf32>
    %701 = arith.addf %699, %700 : vector<2x128xf32>
    %702 = vector.extract_strided_slice %701 {offsets = [0, 0], sizes = [2, 32], strides = [1, 1]} : vector<2x128xf32> to vector<2x32xf32>
    %703 = arith.negf %702 : vector<2x32xf32>
    %704 = math.exp %703 : vector<2x32xf32>
    %cst_117 = arith.constant 1.000000e+00 : f32
    %705 = vector.broadcast %cst_117 : f32 to vector<2x32xf32>
    %706 = arith.addf %705, %704 : vector<2x32xf32>
    %707 = arith.divf %705, %706 : vector<2x32xf32>
    %708 = vector.extract_strided_slice %701 {offsets = [0, 32], sizes = [2, 32], strides = [1, 1]} : vector<2x128xf32> to vector<2x32xf32>
    %709 = arith.negf %708 : vector<2x32xf32>
    %710 = math.exp %709 : vector<2x32xf32>
    %cst_118 = arith.constant 1.000000e+00 : f32
    %711 = vector.broadcast %cst_118 : f32 to vector<2x32xf32>
    %712 = arith.addf %711, %710 : vector<2x32xf32>
    %713 = arith.divf %711, %712 : vector<2x32xf32>
    %714 = vector.extract_strided_slice %701 {offsets = [0, 64], sizes = [2, 32], strides = [1, 1]} : vector<2x128xf32> to vector<2x32xf32>
    %715 = math.tanh %714 : vector<2x32xf32>
    %716 = vector.extract_strided_slice %701 {offsets = [0, 96], sizes = [2, 32], strides = [1, 1]} : vector<2x128xf32> to vector<2x32xf32>
    %717 = arith.negf %716 : vector<2x32xf32>
    %718 = math.exp %717 : vector<2x32xf32>
    %cst_119 = arith.constant 1.000000e+00 : f32
    %719 = vector.broadcast %cst_119 : f32 to vector<2x32xf32>
    %720 = arith.addf %719, %718 : vector<2x32xf32>
    %721 = arith.divf %719, %720 : vector<2x32xf32>
    %722 = arith.mulf %713, %695 : vector<2x32xf32>
    %723 = arith.mulf %707, %715 : vector<2x32xf32>
    %724 = arith.addf %722, %723 : vector<2x32xf32>
    %725 = math.tanh %724 : vector<2x32xf32>
    %726 = arith.mulf %721, %725 : vector<2x32xf32>
    %727 = vector.extract_strided_slice %518 {offsets = [7, 0, 0], sizes = [1, 2, 128], strides = [1, 1, 1]} : vector<8x2x128xf32> to vector<1x2x128xf32>
    %728 = vector.shape_cast %727 : vector<1x2x128xf32> to vector<2x128xf32>
    %cst_120 = arith.constant dense<0.000000e+00> : vector<2x128xf32>
    %729 = tpu.matmul %726, %521, %cst_120 {dimension_numbers = #tpu.dot_dimension_numbers<[1], [0], [0], [1], [0, 0, 1, 1], [], []>} : vector<2x32xf32>, vector<32x128xf32>, vector<2x128xf32> -> vector<2x128xf32>
    %730 = arith.addf %728, %729 : vector<2x128xf32>
    %731 = vector.extract_strided_slice %730 {offsets = [0, 0], sizes = [2, 32], strides = [1, 1]} : vector<2x128xf32> to vector<2x32xf32>
    %732 = arith.negf %731 : vector<2x32xf32>
    %733 = math.exp %732 : vector<2x32xf32>
    %cst_121 = arith.constant 1.000000e+00 : f32
    %734 = vector.broadcast %cst_121 : f32 to vector<2x32xf32>
    %735 = arith.addf %734, %733 : vector<2x32xf32>
    %736 = arith.divf %734, %735 : vector<2x32xf32>
    %737 = vector.extract_strided_slice %730 {offsets = [0, 32], sizes = [2, 32], strides = [1, 1]} : vector<2x128xf32> to vector<2x32xf32>
    %738 = arith.negf %737 : vector<2x32xf32>
    %739 = math.exp %738 : vector<2x32xf32>
    %cst_122 = arith.constant 1.000000e+00 : f32
    %740 = vector.broadcast %cst_122 : f32 to vector<2x32xf32>
    %741 = arith.addf %740, %739 : vector<2x32xf32>
    %742 = arith.divf %740, %741 : vector<2x32xf32>
    %743 = vector.extract_strided_slice %730 {offsets = [0, 64], sizes = [2, 32], strides = [1, 1]} : vector<2x128xf32> to vector<2x32xf32>
    %744 = math.tanh %743 : vector<2x32xf32>
    %745 = vector.extract_strided_slice %730 {offsets = [0, 96], sizes = [2, 32], strides = [1, 1]} : vector<2x128xf32> to vector<2x32xf32>
    %746 = arith.negf %745 : vector<2x32xf32>
    %747 = math.exp %746 : vector<2x32xf32>
    %cst_123 = arith.constant 1.000000e+00 : f32
    %748 = vector.broadcast %cst_123 : f32 to vector<2x32xf32>
    %749 = arith.addf %748, %747 : vector<2x32xf32>
    %750 = arith.divf %748, %749 : vector<2x32xf32>
    %751 = arith.mulf %742, %724 : vector<2x32xf32>
    %752 = arith.mulf %736, %744 : vector<2x32xf32>
    %753 = arith.addf %751, %752 : vector<2x32xf32>
    %754 = math.tanh %753 : vector<2x32xf32>
    %755 = arith.mulf %750, %754 : vector<2x32xf32>
    %756 = vector.shape_cast %552 : vector<2x32xf32> to vector<1x2x32xf32>
    %757 = vector.shape_cast %581 : vector<2x32xf32> to vector<1x2x32xf32>
    %758 = vector.shape_cast %610 : vector<2x32xf32> to vector<1x2x32xf32>
    %759 = vector.shape_cast %639 : vector<2x32xf32> to vector<1x2x32xf32>
    %760 = vector.shape_cast %668 : vector<2x32xf32> to vector<1x2x32xf32>
    %761 = vector.shape_cast %697 : vector<2x32xf32> to vector<1x2x32xf32>
    %762 = vector.shape_cast %726 : vector<2x32xf32> to vector<1x2x32xf32>
    %763 = vector.shape_cast %755 : vector<2x32xf32> to vector<1x2x32xf32>
    %764 = tpu.concatenate %756, %757, %758, %759, %760, %761, %762, %763 in 0 : vector<1x2x32xf32>, vector<1x2x32xf32>, vector<1x2x32xf32>, vector<1x2x32xf32>, vector<1x2x32xf32>, vector<1x2x32xf32>, vector<1x2x32xf32>, vector<1x2x32xf32> -> vector<8x2x32xf32>
    %c0_124 = arith.constant 0 : index
    %c0_125 = arith.constant 0 : index
    %765 = vector.load %arg12[%c0_124, %c0_125] : memref<32x128xf32, #tpu.memory_space<vmem>>, vector<32x128xf32>
    %cst_126 = arith.constant 0.000000e+00 : f32
    %766 = vector.broadcast %cst_126 : f32 to vector<2x32xf32>
    %cst_127 = arith.constant 0.000000e+00 : f32
    %767 = vector.broadcast %cst_127 : f32 to vector<2x32xf32>
    %768 = vector.extract_strided_slice %520 {offsets = [7, 0, 0], sizes = [1, 2, 128], strides = [1, 1, 1]} : vector<8x2x128xf32> to vector<1x2x128xf32>
    %769 = vector.shape_cast %768 : vector<1x2x128xf32> to vector<2x128xf32>
    %cst_128 = arith.constant dense<0.000000e+00> : vector<2x128xf32>
    %770 = tpu.matmul %766, %765, %cst_128 {dimension_numbers = #tpu.dot_dimension_numbers<[1], [0], [0], [1], [0, 0, 1, 1], [], []>} : vector<2x32xf32>, vector<32x128xf32>, vector<2x128xf32> -> vector<2x128xf32>
    %771 = arith.addf %769, %770 : vector<2x128xf32>
    %772 = vector.extract_strided_slice %771 {offsets = [0, 0], sizes = [2, 32], strides = [1, 1]} : vector<2x128xf32> to vector<2x32xf32>
    %773 = arith.negf %772 : vector<2x32xf32>
    %774 = math.exp %773 : vector<2x32xf32>
    %cst_129 = arith.constant 1.000000e+00 : f32
    %775 = vector.broadcast %cst_129 : f32 to vector<2x32xf32>
    %776 = arith.addf %775, %774 : vector<2x32xf32>
    %777 = arith.divf %775, %776 : vector<2x32xf32>
    %778 = vector.extract_strided_slice %771 {offsets = [0, 32], sizes = [2, 32], strides = [1, 1]} : vector<2x128xf32> to vector<2x32xf32>
    %779 = arith.negf %778 : vector<2x32xf32>
    %780 = math.exp %779 : vector<2x32xf32>
    %cst_130 = arith.constant 1.000000e+00 : f32
    %781 = vector.broadcast %cst_130 : f32 to vector<2x32xf32>
    %782 = arith.addf %781, %780 : vector<2x32xf32>
    %783 = arith.divf %781, %782 : vector<2x32xf32>
    %784 = vector.extract_strided_slice %771 {offsets = [0, 64], sizes = [2, 32], strides = [1, 1]} : vector<2x128xf32> to vector<2x32xf32>
    %785 = math.tanh %784 : vector<2x32xf32>
    %786 = vector.extract_strided_slice %771 {offsets = [0, 96], sizes = [2, 32], strides = [1, 1]} : vector<2x128xf32> to vector<2x32xf32>
    %787 = arith.negf %786 : vector<2x32xf32>
    %788 = math.exp %787 : vector<2x32xf32>
    %cst_131 = arith.constant 1.000000e+00 : f32
    %789 = vector.broadcast %cst_131 : f32 to vector<2x32xf32>
    %790 = arith.addf %789, %788 : vector<2x32xf32>
    %791 = arith.divf %789, %790 : vector<2x32xf32>
    %792 = arith.mulf %783, %767 : vector<2x32xf32>
    %793 = arith.mulf %777, %785 : vector<2x32xf32>
    %794 = arith.addf %792, %793 : vector<2x32xf32>
    %795 = math.tanh %794 : vector<2x32xf32>
    %796 = arith.mulf %791, %795 : vector<2x32xf32>
    %797 = vector.extract_strided_slice %520 {offsets = [6, 0, 0], sizes = [1, 2, 128], strides = [1, 1, 1]} : vector<8x2x128xf32> to vector<1x2x128xf32>
    %798 = vector.shape_cast %797 : vector<1x2x128xf32> to vector<2x128xf32>
    %cst_132 = arith.constant dense<0.000000e+00> : vector<2x128xf32>
    %799 = tpu.matmul %796, %765, %cst_132 {dimension_numbers = #tpu.dot_dimension_numbers<[1], [0], [0], [1], [0, 0, 1, 1], [], []>} : vector<2x32xf32>, vector<32x128xf32>, vector<2x128xf32> -> vector<2x128xf32>
    %800 = arith.addf %798, %799 : vector<2x128xf32>
    %801 = vector.extract_strided_slice %800 {offsets = [0, 0], sizes = [2, 32], strides = [1, 1]} : vector<2x128xf32> to vector<2x32xf32>
    %802 = arith.negf %801 : vector<2x32xf32>
    %803 = math.exp %802 : vector<2x32xf32>
    %cst_133 = arith.constant 1.000000e+00 : f32
    %804 = vector.broadcast %cst_133 : f32 to vector<2x32xf32>
    %805 = arith.addf %804, %803 : vector<2x32xf32>
    %806 = arith.divf %804, %805 : vector<2x32xf32>
    %807 = vector.extract_strided_slice %800 {offsets = [0, 32], sizes = [2, 32], strides = [1, 1]} : vector<2x128xf32> to vector<2x32xf32>
    %808 = arith.negf %807 : vector<2x32xf32>
    %809 = math.exp %808 : vector<2x32xf32>
    %cst_134 = arith.constant 1.000000e+00 : f32
    %810 = vector.broadcast %cst_134 : f32 to vector<2x32xf32>
    %811 = arith.addf %810, %809 : vector<2x32xf32>
    %812 = arith.divf %810, %811 : vector<2x32xf32>
    %813 = vector.extract_strided_slice %800 {offsets = [0, 64], sizes = [2, 32], strides = [1, 1]} : vector<2x128xf32> to vector<2x32xf32>
    %814 = math.tanh %813 : vector<2x32xf32>
    %815 = vector.extract_strided_slice %800 {offsets = [0, 96], sizes = [2, 32], strides = [1, 1]} : vector<2x128xf32> to vector<2x32xf32>
    %816 = arith.negf %815 : vector<2x32xf32>
    %817 = math.exp %816 : vector<2x32xf32>
    %cst_135 = arith.constant 1.000000e+00 : f32
    %818 = vector.broadcast %cst_135 : f32 to vector<2x32xf32>
    %819 = arith.addf %818, %817 : vector<2x32xf32>
    %820 = arith.divf %818, %819 : vector<2x32xf32>
    %821 = arith.mulf %812, %794 : vector<2x32xf32>
    %822 = arith.mulf %806, %814 : vector<2x32xf32>
    %823 = arith.addf %821, %822 : vector<2x32xf32>
    %824 = math.tanh %823 : vector<2x32xf32>
    %825 = arith.mulf %820, %824 : vector<2x32xf32>
    %826 = vector.extract_strided_slice %520 {offsets = [5, 0, 0], sizes = [1, 2, 128], strides = [1, 1, 1]} : vector<8x2x128xf32> to vector<1x2x128xf32>
    %827 = vector.shape_cast %826 : vector<1x2x128xf32> to vector<2x128xf32>
    %cst_136 = arith.constant dense<0.000000e+00> : vector<2x128xf32>
    %828 = tpu.matmul %825, %765, %cst_136 {dimension_numbers = #tpu.dot_dimension_numbers<[1], [0], [0], [1], [0, 0, 1, 1], [], []>} : vector<2x32xf32>, vector<32x128xf32>, vector<2x128xf32> -> vector<2x128xf32>
    %829 = arith.addf %827, %828 : vector<2x128xf32>
    %830 = vector.extract_strided_slice %829 {offsets = [0, 0], sizes = [2, 32], strides = [1, 1]} : vector<2x128xf32> to vector<2x32xf32>
    %831 = arith.negf %830 : vector<2x32xf32>
    %832 = math.exp %831 : vector<2x32xf32>
    %cst_137 = arith.constant 1.000000e+00 : f32
    %833 = vector.broadcast %cst_137 : f32 to vector<2x32xf32>
    %834 = arith.addf %833, %832 : vector<2x32xf32>
    %835 = arith.divf %833, %834 : vector<2x32xf32>
    %836 = vector.extract_strided_slice %829 {offsets = [0, 32], sizes = [2, 32], strides = [1, 1]} : vector<2x128xf32> to vector<2x32xf32>
    %837 = arith.negf %836 : vector<2x32xf32>
    %838 = math.exp %837 : vector<2x32xf32>
    %cst_138 = arith.constant 1.000000e+00 : f32
    %839 = vector.broadcast %cst_138 : f32 to vector<2x32xf32>
    %840 = arith.addf %839, %838 : vector<2x32xf32>
    %841 = arith.divf %839, %840 : vector<2x32xf32>
    %842 = vector.extract_strided_slice %829 {offsets = [0, 64], sizes = [2, 32], strides = [1, 1]} : vector<2x128xf32> to vector<2x32xf32>
    %843 = math.tanh %842 : vector<2x32xf32>
    %844 = vector.extract_strided_slice %829 {offsets = [0, 96], sizes = [2, 32], strides = [1, 1]} : vector<2x128xf32> to vector<2x32xf32>
    %845 = arith.negf %844 : vector<2x32xf32>
    %846 = math.exp %845 : vector<2x32xf32>
    %cst_139 = arith.constant 1.000000e+00 : f32
    %847 = vector.broadcast %cst_139 : f32 to vector<2x32xf32>
    %848 = arith.addf %847, %846 : vector<2x32xf32>
    %849 = arith.divf %847, %848 : vector<2x32xf32>
    %850 = arith.mulf %841, %823 : vector<2x32xf32>
    %851 = arith.mulf %835, %843 : vector<2x32xf32>
    %852 = arith.addf %850, %851 : vector<2x32xf32>
    %853 = math.tanh %852 : vector<2x32xf32>
    %854 = arith.mulf %849, %853 : vector<2x32xf32>
    %855 = vector.extract_strided_slice %520 {offsets = [4, 0, 0], sizes = [1, 2, 128], strides = [1, 1, 1]} : vector<8x2x128xf32> to vector<1x2x128xf32>
    %856 = vector.shape_cast %855 : vector<1x2x128xf32> to vector<2x128xf32>
    %cst_140 = arith.constant dense<0.000000e+00> : vector<2x128xf32>
    %857 = tpu.matmul %854, %765, %cst_140 {dimension_numbers = #tpu.dot_dimension_numbers<[1], [0], [0], [1], [0, 0, 1, 1], [], []>} : vector<2x32xf32>, vector<32x128xf32>, vector<2x128xf32> -> vector<2x128xf32>
    %858 = arith.addf %856, %857 : vector<2x128xf32>
    %859 = vector.extract_strided_slice %858 {offsets = [0, 0], sizes = [2, 32], strides = [1, 1]} : vector<2x128xf32> to vector<2x32xf32>
    %860 = arith.negf %859 : vector<2x32xf32>
    %861 = math.exp %860 : vector<2x32xf32>
    %cst_141 = arith.constant 1.000000e+00 : f32
    %862 = vector.broadcast %cst_141 : f32 to vector<2x32xf32>
    %863 = arith.addf %862, %861 : vector<2x32xf32>
    %864 = arith.divf %862, %863 : vector<2x32xf32>
    %865 = vector.extract_strided_slice %858 {offsets = [0, 32], sizes = [2, 32], strides = [1, 1]} : vector<2x128xf32> to vector<2x32xf32>
    %866 = arith.negf %865 : vector<2x32xf32>
    %867 = math.exp %866 : vector<2x32xf32>
    %cst_142 = arith.constant 1.000000e+00 : f32
    %868 = vector.broadcast %cst_142 : f32 to vector<2x32xf32>
    %869 = arith.addf %868, %867 : vector<2x32xf32>
    %870 = arith.divf %868, %869 : vector<2x32xf32>
    %871 = vector.extract_strided_slice %858 {offsets = [0, 64], sizes = [2, 32], strides = [1, 1]} : vector<2x128xf32> to vector<2x32xf32>
    %872 = math.tanh %871 : vector<2x32xf32>
    %873 = vector.extract_strided_slice %858 {offsets = [0, 96], sizes = [2, 32], strides = [1, 1]} : vector<2x128xf32> to vector<2x32xf32>
    %874 = arith.negf %873 : vector<2x32xf32>
    %875 = math.exp %874 : vector<2x32xf32>
    %cst_143 = arith.constant 1.000000e+00 : f32
    %876 = vector.broadcast %cst_143 : f32 to vector<2x32xf32>
    %877 = arith.addf %876, %875 : vector<2x32xf32>
    %878 = arith.divf %876, %877 : vector<2x32xf32>
    %879 = arith.mulf %870, %852 : vector<2x32xf32>
    %880 = arith.mulf %864, %872 : vector<2x32xf32>
    %881 = arith.addf %879, %880 : vector<2x32xf32>
    %882 = math.tanh %881 : vector<2x32xf32>
    %883 = arith.mulf %878, %882 : vector<2x32xf32>
    %884 = vector.extract_strided_slice %520 {offsets = [3, 0, 0], sizes = [1, 2, 128], strides = [1, 1, 1]} : vector<8x2x128xf32> to vector<1x2x128xf32>
    %885 = vector.shape_cast %884 : vector<1x2x128xf32> to vector<2x128xf32>
    %cst_144 = arith.constant dense<0.000000e+00> : vector<2x128xf32>
    %886 = tpu.matmul %883, %765, %cst_144 {dimension_numbers = #tpu.dot_dimension_numbers<[1], [0], [0], [1], [0, 0, 1, 1], [], []>} : vector<2x32xf32>, vector<32x128xf32>, vector<2x128xf32> -> vector<2x128xf32>
    %887 = arith.addf %885, %886 : vector<2x128xf32>
    %888 = vector.extract_strided_slice %887 {offsets = [0, 0], sizes = [2, 32], strides = [1, 1]} : vector<2x128xf32> to vector<2x32xf32>
    %889 = arith.negf %888 : vector<2x32xf32>
    %890 = math.exp %889 : vector<2x32xf32>
    %cst_145 = arith.constant 1.000000e+00 : f32
    %891 = vector.broadcast %cst_145 : f32 to vector<2x32xf32>
    %892 = arith.addf %891, %890 : vector<2x32xf32>
    %893 = arith.divf %891, %892 : vector<2x32xf32>
    %894 = vector.extract_strided_slice %887 {offsets = [0, 32], sizes = [2, 32], strides = [1, 1]} : vector<2x128xf32> to vector<2x32xf32>
    %895 = arith.negf %894 : vector<2x32xf32>
    %896 = math.exp %895 : vector<2x32xf32>
    %cst_146 = arith.constant 1.000000e+00 : f32
    %897 = vector.broadcast %cst_146 : f32 to vector<2x32xf32>
    %898 = arith.addf %897, %896 : vector<2x32xf32>
    %899 = arith.divf %897, %898 : vector<2x32xf32>
    %900 = vector.extract_strided_slice %887 {offsets = [0, 64], sizes = [2, 32], strides = [1, 1]} : vector<2x128xf32> to vector<2x32xf32>
    %901 = math.tanh %900 : vector<2x32xf32>
    %902 = vector.extract_strided_slice %887 {offsets = [0, 96], sizes = [2, 32], strides = [1, 1]} : vector<2x128xf32> to vector<2x32xf32>
    %903 = arith.negf %902 : vector<2x32xf32>
    %904 = math.exp %903 : vector<2x32xf32>
    %cst_147 = arith.constant 1.000000e+00 : f32
    %905 = vector.broadcast %cst_147 : f32 to vector<2x32xf32>
    %906 = arith.addf %905, %904 : vector<2x32xf32>
    %907 = arith.divf %905, %906 : vector<2x32xf32>
    %908 = arith.mulf %899, %881 : vector<2x32xf32>
    %909 = arith.mulf %893, %901 : vector<2x32xf32>
    %910 = arith.addf %908, %909 : vector<2x32xf32>
    %911 = math.tanh %910 : vector<2x32xf32>
    %912 = arith.mulf %907, %911 : vector<2x32xf32>
    %913 = vector.extract_strided_slice %520 {offsets = [2, 0, 0], sizes = [1, 2, 128], strides = [1, 1, 1]} : vector<8x2x128xf32> to vector<1x2x128xf32>
    %914 = vector.shape_cast %913 : vector<1x2x128xf32> to vector<2x128xf32>
    %cst_148 = arith.constant dense<0.000000e+00> : vector<2x128xf32>
    %915 = tpu.matmul %912, %765, %cst_148 {dimension_numbers = #tpu.dot_dimension_numbers<[1], [0], [0], [1], [0, 0, 1, 1], [], []>} : vector<2x32xf32>, vector<32x128xf32>, vector<2x128xf32> -> vector<2x128xf32>
    %916 = arith.addf %914, %915 : vector<2x128xf32>
    %917 = vector.extract_strided_slice %916 {offsets = [0, 0], sizes = [2, 32], strides = [1, 1]} : vector<2x128xf32> to vector<2x32xf32>
    %918 = arith.negf %917 : vector<2x32xf32>
    %919 = math.exp %918 : vector<2x32xf32>
    %cst_149 = arith.constant 1.000000e+00 : f32
    %920 = vector.broadcast %cst_149 : f32 to vector<2x32xf32>
    %921 = arith.addf %920, %919 : vector<2x32xf32>
    %922 = arith.divf %920, %921 : vector<2x32xf32>
    %923 = vector.extract_strided_slice %916 {offsets = [0, 32], sizes = [2, 32], strides = [1, 1]} : vector<2x128xf32> to vector<2x32xf32>
    %924 = arith.negf %923 : vector<2x32xf32>
    %925 = math.exp %924 : vector<2x32xf32>
    %cst_150 = arith.constant 1.000000e+00 : f32
    %926 = vector.broadcast %cst_150 : f32 to vector<2x32xf32>
    %927 = arith.addf %926, %925 : vector<2x32xf32>
    %928 = arith.divf %926, %927 : vector<2x32xf32>
    %929 = vector.extract_strided_slice %916 {offsets = [0, 64], sizes = [2, 32], strides = [1, 1]} : vector<2x128xf32> to vector<2x32xf32>
    %930 = math.tanh %929 : vector<2x32xf32>
    %931 = vector.extract_strided_slice %916 {offsets = [0, 96], sizes = [2, 32], strides = [1, 1]} : vector<2x128xf32> to vector<2x32xf32>
    %932 = arith.negf %931 : vector<2x32xf32>
    %933 = math.exp %932 : vector<2x32xf32>
    %cst_151 = arith.constant 1.000000e+00 : f32
    %934 = vector.broadcast %cst_151 : f32 to vector<2x32xf32>
    %935 = arith.addf %934, %933 : vector<2x32xf32>
    %936 = arith.divf %934, %935 : vector<2x32xf32>
    %937 = arith.mulf %928, %910 : vector<2x32xf32>
    %938 = arith.mulf %922, %930 : vector<2x32xf32>
    %939 = arith.addf %937, %938 : vector<2x32xf32>
    %940 = math.tanh %939 : vector<2x32xf32>
    %941 = arith.mulf %936, %940 : vector<2x32xf32>
    %942 = vector.extract_strided_slice %520 {offsets = [1, 0, 0], sizes = [1, 2, 128], strides = [1, 1, 1]} : vector<8x2x128xf32> to vector<1x2x128xf32>
    %943 = vector.shape_cast %942 : vector<1x2x128xf32> to vector<2x128xf32>
    %cst_152 = arith.constant dense<0.000000e+00> : vector<2x128xf32>
    %944 = tpu.matmul %941, %765, %cst_152 {dimension_numbers = #tpu.dot_dimension_numbers<[1], [0], [0], [1], [0, 0, 1, 1], [], []>} : vector<2x32xf32>, vector<32x128xf32>, vector<2x128xf32> -> vector<2x128xf32>
    %945 = arith.addf %943, %944 : vector<2x128xf32>
    %946 = vector.extract_strided_slice %945 {offsets = [0, 0], sizes = [2, 32], strides = [1, 1]} : vector<2x128xf32> to vector<2x32xf32>
    %947 = arith.negf %946 : vector<2x32xf32>
    %948 = math.exp %947 : vector<2x32xf32>
    %cst_153 = arith.constant 1.000000e+00 : f32
    %949 = vector.broadcast %cst_153 : f32 to vector<2x32xf32>
    %950 = arith.addf %949, %948 : vector<2x32xf32>
    %951 = arith.divf %949, %950 : vector<2x32xf32>
    %952 = vector.extract_strided_slice %945 {offsets = [0, 32], sizes = [2, 32], strides = [1, 1]} : vector<2x128xf32> to vector<2x32xf32>
    %953 = arith.negf %952 : vector<2x32xf32>
    %954 = math.exp %953 : vector<2x32xf32>
    %cst_154 = arith.constant 1.000000e+00 : f32
    %955 = vector.broadcast %cst_154 : f32 to vector<2x32xf32>
    %956 = arith.addf %955, %954 : vector<2x32xf32>
    %957 = arith.divf %955, %956 : vector<2x32xf32>
    %958 = vector.extract_strided_slice %945 {offsets = [0, 64], sizes = [2, 32], strides = [1, 1]} : vector<2x128xf32> to vector<2x32xf32>
    %959 = math.tanh %958 : vector<2x32xf32>
    %960 = vector.extract_strided_slice %945 {offsets = [0, 96], sizes = [2, 32], strides = [1, 1]} : vector<2x128xf32> to vector<2x32xf32>
    %961 = arith.negf %960 : vector<2x32xf32>
    %962 = math.exp %961 : vector<2x32xf32>
    %cst_155 = arith.constant 1.000000e+00 : f32
    %963 = vector.broadcast %cst_155 : f32 to vector<2x32xf32>
    %964 = arith.addf %963, %962 : vector<2x32xf32>
    %965 = arith.divf %963, %964 : vector<2x32xf32>
    %966 = arith.mulf %957, %939 : vector<2x32xf32>
    %967 = arith.mulf %951, %959 : vector<2x32xf32>
    %968 = arith.addf %966, %967 : vector<2x32xf32>
    %969 = math.tanh %968 : vector<2x32xf32>
    %970 = arith.mulf %965, %969 : vector<2x32xf32>
    %971 = vector.extract_strided_slice %520 {offsets = [0, 0, 0], sizes = [1, 2, 128], strides = [1, 1, 1]} : vector<8x2x128xf32> to vector<1x2x128xf32>
    %972 = vector.shape_cast %971 : vector<1x2x128xf32> to vector<2x128xf32>
    %cst_156 = arith.constant dense<0.000000e+00> : vector<2x128xf32>
    %973 = tpu.matmul %970, %765, %cst_156 {dimension_numbers = #tpu.dot_dimension_numbers<[1], [0], [0], [1], [0, 0, 1, 1], [], []>} : vector<2x32xf32>, vector<32x128xf32>, vector<2x128xf32> -> vector<2x128xf32>
    %974 = arith.addf %972, %973 : vector<2x128xf32>
    %975 = vector.extract_strided_slice %974 {offsets = [0, 0], sizes = [2, 32], strides = [1, 1]} : vector<2x128xf32> to vector<2x32xf32>
    %976 = arith.negf %975 : vector<2x32xf32>
    %977 = math.exp %976 : vector<2x32xf32>
    %cst_157 = arith.constant 1.000000e+00 : f32
    %978 = vector.broadcast %cst_157 : f32 to vector<2x32xf32>
    %979 = arith.addf %978, %977 : vector<2x32xf32>
    %980 = arith.divf %978, %979 : vector<2x32xf32>
    %981 = vector.extract_strided_slice %974 {offsets = [0, 32], sizes = [2, 32], strides = [1, 1]} : vector<2x128xf32> to vector<2x32xf32>
    %982 = arith.negf %981 : vector<2x32xf32>
    %983 = math.exp %982 : vector<2x32xf32>
    %cst_158 = arith.constant 1.000000e+00 : f32
    %984 = vector.broadcast %cst_158 : f32 to vector<2x32xf32>
    %985 = arith.addf %984, %983 : vector<2x32xf32>
    %986 = arith.divf %984, %985 : vector<2x32xf32>
    %987 = vector.extract_strided_slice %974 {offsets = [0, 64], sizes = [2, 32], strides = [1, 1]} : vector<2x128xf32> to vector<2x32xf32>
    %988 = math.tanh %987 : vector<2x32xf32>
    %989 = vector.extract_strided_slice %974 {offsets = [0, 96], sizes = [2, 32], strides = [1, 1]} : vector<2x128xf32> to vector<2x32xf32>
    %990 = arith.negf %989 : vector<2x32xf32>
    %991 = math.exp %990 : vector<2x32xf32>
    %cst_159 = arith.constant 1.000000e+00 : f32
    %992 = vector.broadcast %cst_159 : f32 to vector<2x32xf32>
    %993 = arith.addf %992, %991 : vector<2x32xf32>
    %994 = arith.divf %992, %993 : vector<2x32xf32>
    %995 = arith.mulf %986, %968 : vector<2x32xf32>
    %996 = arith.mulf %980, %988 : vector<2x32xf32>
    %997 = arith.addf %995, %996 : vector<2x32xf32>
    %998 = math.tanh %997 : vector<2x32xf32>
    %999 = arith.mulf %994, %998 : vector<2x32xf32>
    %1000 = vector.shape_cast %999 : vector<2x32xf32> to vector<1x2x32xf32>
    %1001 = vector.shape_cast %970 : vector<2x32xf32> to vector<1x2x32xf32>
    %1002 = vector.shape_cast %941 : vector<2x32xf32> to vector<1x2x32xf32>
    %1003 = vector.shape_cast %912 : vector<2x32xf32> to vector<1x2x32xf32>
    %1004 = vector.shape_cast %883 : vector<2x32xf32> to vector<1x2x32xf32>
    %1005 = vector.shape_cast %854 : vector<2x32xf32> to vector<1x2x32xf32>
    %1006 = vector.shape_cast %825 : vector<2x32xf32> to vector<1x2x32xf32>
    %1007 = vector.shape_cast %796 : vector<2x32xf32> to vector<1x2x32xf32>
    %1008 = tpu.concatenate %1000, %1001, %1002, %1003, %1004, %1005, %1006, %1007 in 0 : vector<1x2x32xf32>, vector<1x2x32xf32>, vector<1x2x32xf32>, vector<1x2x32xf32>, vector<1x2x32xf32>, vector<1x2x32xf32>, vector<1x2x32xf32>, vector<1x2x32xf32> -> vector<8x2x32xf32>
    %1009 = vector.shape_cast %764 : vector<8x2x32xf32> to vector<16x32xf32>
    %c0_160 = arith.constant 0 : index
    %c0_161 = arith.constant 0 : index
    %1010 = vector.load %arg6[%c0_160, %c0_161] : memref<32x256xf32, #tpu.memory_space<vmem>>, vector<32x256xf32>
    %cst_162 = arith.constant dense<0.000000e+00> : vector<16x256xf32>
    %1011 = tpu.matmul %1009, %1010, %cst_162 {dimension_numbers = #tpu.dot_dimension_numbers<[1], [0], [0], [1], [0, 0, 1, 1], [], []>} : vector<16x32xf32>, vector<32x256xf32>, vector<16x256xf32> -> vector<16x256xf32>
    %1012 = vector.shape_cast %1008 : vector<8x2x32xf32> to vector<16x32xf32>
    %c0_163 = arith.constant 0 : index
    %c0_164 = arith.constant 0 : index
    %1013 = vector.load %arg7[%c0_163, %c0_164] : memref<32x256xf32, #tpu.memory_space<vmem>>, vector<32x256xf32>
    %cst_165 = arith.constant dense<0.000000e+00> : vector<16x256xf32>
    %1014 = tpu.matmul %1012, %1013, %cst_165 {dimension_numbers = #tpu.dot_dimension_numbers<[1], [0], [0], [1], [0, 0, 1, 1], [], []>} : vector<16x32xf32>, vector<32x256xf32>, vector<16x256xf32> -> vector<16x256xf32>
    %1015 = arith.addf %1011, %1014 : vector<16x256xf32>
    %c0_166 = arith.constant 0 : index
    %c0_167 = arith.constant 0 : index
    %1016 = vector.load %arg8[%c0_166, %c0_167] : memref<1x256xf32, #tpu.memory_space<vmem>>, vector<1x256xf32>
    %1017 = vector.broadcast %1016 : vector<1x256xf32> to vector<16x256xf32>
    %1018 = arith.addf %1015, %1017 : vector<16x256xf32>
    %1019 = vector.extract_strided_slice %1018 {offsets = [0, 0], sizes = [16, 128], strides = [1, 1]} : vector<16x256xf32> to vector<16x128xf32>
    %1020 = vector.shape_cast %1019 : vector<16x128xf32> to vector<8x2x128xf32>
    %1021 = vector.extract_strided_slice %1018 {offsets = [0, 128], sizes = [16, 128], strides = [1, 1]} : vector<16x256xf32> to vector<16x128xf32>
    %1022 = vector.shape_cast %1021 : vector<16x128xf32> to vector<8x2x128xf32>
    %c0_168 = arith.constant 0 : index
    %c0_169 = arith.constant 0 : index
    %1023 = vector.load %arg13[%c0_168, %c0_169] : memref<32x128xf32, #tpu.memory_space<vmem>>, vector<32x128xf32>
    %cst_170 = arith.constant 0.000000e+00 : f32
    %1024 = vector.broadcast %cst_170 : f32 to vector<2x32xf32>
    %cst_171 = arith.constant 0.000000e+00 : f32
    %1025 = vector.broadcast %cst_171 : f32 to vector<2x32xf32>
    %1026 = vector.extract_strided_slice %1020 {offsets = [0, 0, 0], sizes = [1, 2, 128], strides = [1, 1, 1]} : vector<8x2x128xf32> to vector<1x2x128xf32>
    %1027 = vector.shape_cast %1026 : vector<1x2x128xf32> to vector<2x128xf32>
    %cst_172 = arith.constant dense<0.000000e+00> : vector<2x128xf32>
    %1028 = tpu.matmul %1024, %1023, %cst_172 {dimension_numbers = #tpu.dot_dimension_numbers<[1], [0], [0], [1], [0, 0, 1, 1], [], []>} : vector<2x32xf32>, vector<32x128xf32>, vector<2x128xf32> -> vector<2x128xf32>
    %1029 = arith.addf %1027, %1028 : vector<2x128xf32>
    %1030 = vector.extract_strided_slice %1029 {offsets = [0, 0], sizes = [2, 32], strides = [1, 1]} : vector<2x128xf32> to vector<2x32xf32>
    %1031 = arith.negf %1030 : vector<2x32xf32>
    %1032 = math.exp %1031 : vector<2x32xf32>
    %cst_173 = arith.constant 1.000000e+00 : f32
    %1033 = vector.broadcast %cst_173 : f32 to vector<2x32xf32>
    %1034 = arith.addf %1033, %1032 : vector<2x32xf32>
    %1035 = arith.divf %1033, %1034 : vector<2x32xf32>
    %1036 = vector.extract_strided_slice %1029 {offsets = [0, 32], sizes = [2, 32], strides = [1, 1]} : vector<2x128xf32> to vector<2x32xf32>
    %1037 = arith.negf %1036 : vector<2x32xf32>
    %1038 = math.exp %1037 : vector<2x32xf32>
    %cst_174 = arith.constant 1.000000e+00 : f32
    %1039 = vector.broadcast %cst_174 : f32 to vector<2x32xf32>
    %1040 = arith.addf %1039, %1038 : vector<2x32xf32>
    %1041 = arith.divf %1039, %1040 : vector<2x32xf32>
    %1042 = vector.extract_strided_slice %1029 {offsets = [0, 64], sizes = [2, 32], strides = [1, 1]} : vector<2x128xf32> to vector<2x32xf32>
    %1043 = math.tanh %1042 : vector<2x32xf32>
    %1044 = vector.extract_strided_slice %1029 {offsets = [0, 96], sizes = [2, 32], strides = [1, 1]} : vector<2x128xf32> to vector<2x32xf32>
    %1045 = arith.negf %1044 : vector<2x32xf32>
    %1046 = math.exp %1045 : vector<2x32xf32>
    %cst_175 = arith.constant 1.000000e+00 : f32
    %1047 = vector.broadcast %cst_175 : f32 to vector<2x32xf32>
    %1048 = arith.addf %1047, %1046 : vector<2x32xf32>
    %1049 = arith.divf %1047, %1048 : vector<2x32xf32>
    %1050 = arith.mulf %1041, %1025 : vector<2x32xf32>
    %1051 = arith.mulf %1035, %1043 : vector<2x32xf32>
    %1052 = arith.addf %1050, %1051 : vector<2x32xf32>
    %1053 = math.tanh %1052 : vector<2x32xf32>
    %1054 = arith.mulf %1049, %1053 : vector<2x32xf32>
    %1055 = vector.extract_strided_slice %1020 {offsets = [1, 0, 0], sizes = [1, 2, 128], strides = [1, 1, 1]} : vector<8x2x128xf32> to vector<1x2x128xf32>
    %1056 = vector.shape_cast %1055 : vector<1x2x128xf32> to vector<2x128xf32>
    %cst_176 = arith.constant dense<0.000000e+00> : vector<2x128xf32>
    %1057 = tpu.matmul %1054, %1023, %cst_176 {dimension_numbers = #tpu.dot_dimension_numbers<[1], [0], [0], [1], [0, 0, 1, 1], [], []>} : vector<2x32xf32>, vector<32x128xf32>, vector<2x128xf32> -> vector<2x128xf32>
    %1058 = arith.addf %1056, %1057 : vector<2x128xf32>
    %1059 = vector.extract_strided_slice %1058 {offsets = [0, 0], sizes = [2, 32], strides = [1, 1]} : vector<2x128xf32> to vector<2x32xf32>
    %1060 = arith.negf %1059 : vector<2x32xf32>
    %1061 = math.exp %1060 : vector<2x32xf32>
    %cst_177 = arith.constant 1.000000e+00 : f32
    %1062 = vector.broadcast %cst_177 : f32 to vector<2x32xf32>
    %1063 = arith.addf %1062, %1061 : vector<2x32xf32>
    %1064 = arith.divf %1062, %1063 : vector<2x32xf32>
    %1065 = vector.extract_strided_slice %1058 {offsets = [0, 32], sizes = [2, 32], strides = [1, 1]} : vector<2x128xf32> to vector<2x32xf32>
    %1066 = arith.negf %1065 : vector<2x32xf32>
    %1067 = math.exp %1066 : vector<2x32xf32>
    %cst_178 = arith.constant 1.000000e+00 : f32
    %1068 = vector.broadcast %cst_178 : f32 to vector<2x32xf32>
    %1069 = arith.addf %1068, %1067 : vector<2x32xf32>
    %1070 = arith.divf %1068, %1069 : vector<2x32xf32>
    %1071 = vector.extract_strided_slice %1058 {offsets = [0, 64], sizes = [2, 32], strides = [1, 1]} : vector<2x128xf32> to vector<2x32xf32>
    %1072 = math.tanh %1071 : vector<2x32xf32>
    %1073 = vector.extract_strided_slice %1058 {offsets = [0, 96], sizes = [2, 32], strides = [1, 1]} : vector<2x128xf32> to vector<2x32xf32>
    %1074 = arith.negf %1073 : vector<2x32xf32>
    %1075 = math.exp %1074 : vector<2x32xf32>
    %cst_179 = arith.constant 1.000000e+00 : f32
    %1076 = vector.broadcast %cst_179 : f32 to vector<2x32xf32>
    %1077 = arith.addf %1076, %1075 : vector<2x32xf32>
    %1078 = arith.divf %1076, %1077 : vector<2x32xf32>
    %1079 = arith.mulf %1070, %1052 : vector<2x32xf32>
    %1080 = arith.mulf %1064, %1072 : vector<2x32xf32>
    %1081 = arith.addf %1079, %1080 : vector<2x32xf32>
    %1082 = math.tanh %1081 : vector<2x32xf32>
    %1083 = arith.mulf %1078, %1082 : vector<2x32xf32>
    %1084 = vector.extract_strided_slice %1020 {offsets = [2, 0, 0], sizes = [1, 2, 128], strides = [1, 1, 1]} : vector<8x2x128xf32> to vector<1x2x128xf32>
    %1085 = vector.shape_cast %1084 : vector<1x2x128xf32> to vector<2x128xf32>
    %cst_180 = arith.constant dense<0.000000e+00> : vector<2x128xf32>
    %1086 = tpu.matmul %1083, %1023, %cst_180 {dimension_numbers = #tpu.dot_dimension_numbers<[1], [0], [0], [1], [0, 0, 1, 1], [], []>} : vector<2x32xf32>, vector<32x128xf32>, vector<2x128xf32> -> vector<2x128xf32>
    %1087 = arith.addf %1085, %1086 : vector<2x128xf32>
    %1088 = vector.extract_strided_slice %1087 {offsets = [0, 0], sizes = [2, 32], strides = [1, 1]} : vector<2x128xf32> to vector<2x32xf32>
    %1089 = arith.negf %1088 : vector<2x32xf32>
    %1090 = math.exp %1089 : vector<2x32xf32>
    %cst_181 = arith.constant 1.000000e+00 : f32
    %1091 = vector.broadcast %cst_181 : f32 to vector<2x32xf32>
    %1092 = arith.addf %1091, %1090 : vector<2x32xf32>
    %1093 = arith.divf %1091, %1092 : vector<2x32xf32>
    %1094 = vector.extract_strided_slice %1087 {offsets = [0, 32], sizes = [2, 32], strides = [1, 1]} : vector<2x128xf32> to vector<2x32xf32>
    %1095 = arith.negf %1094 : vector<2x32xf32>
    %1096 = math.exp %1095 : vector<2x32xf32>
    %cst_182 = arith.constant 1.000000e+00 : f32
    %1097 = vector.broadcast %cst_182 : f32 to vector<2x32xf32>
    %1098 = arith.addf %1097, %1096 : vector<2x32xf32>
    %1099 = arith.divf %1097, %1098 : vector<2x32xf32>
    %1100 = vector.extract_strided_slice %1087 {offsets = [0, 64], sizes = [2, 32], strides = [1, 1]} : vector<2x128xf32> to vector<2x32xf32>
    %1101 = math.tanh %1100 : vector<2x32xf32>
    %1102 = vector.extract_strided_slice %1087 {offsets = [0, 96], sizes = [2, 32], strides = [1, 1]} : vector<2x128xf32> to vector<2x32xf32>
    %1103 = arith.negf %1102 : vector<2x32xf32>
    %1104 = math.exp %1103 : vector<2x32xf32>
    %cst_183 = arith.constant 1.000000e+00 : f32
    %1105 = vector.broadcast %cst_183 : f32 to vector<2x32xf32>
    %1106 = arith.addf %1105, %1104 : vector<2x32xf32>
    %1107 = arith.divf %1105, %1106 : vector<2x32xf32>
    %1108 = arith.mulf %1099, %1081 : vector<2x32xf32>
    %1109 = arith.mulf %1093, %1101 : vector<2x32xf32>
    %1110 = arith.addf %1108, %1109 : vector<2x32xf32>
    %1111 = math.tanh %1110 : vector<2x32xf32>
    %1112 = arith.mulf %1107, %1111 : vector<2x32xf32>
    %1113 = vector.extract_strided_slice %1020 {offsets = [3, 0, 0], sizes = [1, 2, 128], strides = [1, 1, 1]} : vector<8x2x128xf32> to vector<1x2x128xf32>
    %1114 = vector.shape_cast %1113 : vector<1x2x128xf32> to vector<2x128xf32>
    %cst_184 = arith.constant dense<0.000000e+00> : vector<2x128xf32>
    %1115 = tpu.matmul %1112, %1023, %cst_184 {dimension_numbers = #tpu.dot_dimension_numbers<[1], [0], [0], [1], [0, 0, 1, 1], [], []>} : vector<2x32xf32>, vector<32x128xf32>, vector<2x128xf32> -> vector<2x128xf32>
    %1116 = arith.addf %1114, %1115 : vector<2x128xf32>
    %1117 = vector.extract_strided_slice %1116 {offsets = [0, 0], sizes = [2, 32], strides = [1, 1]} : vector<2x128xf32> to vector<2x32xf32>
    %1118 = arith.negf %1117 : vector<2x32xf32>
    %1119 = math.exp %1118 : vector<2x32xf32>
    %cst_185 = arith.constant 1.000000e+00 : f32
    %1120 = vector.broadcast %cst_185 : f32 to vector<2x32xf32>
    %1121 = arith.addf %1120, %1119 : vector<2x32xf32>
    %1122 = arith.divf %1120, %1121 : vector<2x32xf32>
    %1123 = vector.extract_strided_slice %1116 {offsets = [0, 32], sizes = [2, 32], strides = [1, 1]} : vector<2x128xf32> to vector<2x32xf32>
    %1124 = arith.negf %1123 : vector<2x32xf32>
    %1125 = math.exp %1124 : vector<2x32xf32>
    %cst_186 = arith.constant 1.000000e+00 : f32
    %1126 = vector.broadcast %cst_186 : f32 to vector<2x32xf32>
    %1127 = arith.addf %1126, %1125 : vector<2x32xf32>
    %1128 = arith.divf %1126, %1127 : vector<2x32xf32>
    %1129 = vector.extract_strided_slice %1116 {offsets = [0, 64], sizes = [2, 32], strides = [1, 1]} : vector<2x128xf32> to vector<2x32xf32>
    %1130 = math.tanh %1129 : vector<2x32xf32>
    %1131 = vector.extract_strided_slice %1116 {offsets = [0, 96], sizes = [2, 32], strides = [1, 1]} : vector<2x128xf32> to vector<2x32xf32>
    %1132 = arith.negf %1131 : vector<2x32xf32>
    %1133 = math.exp %1132 : vector<2x32xf32>
    %cst_187 = arith.constant 1.000000e+00 : f32
    %1134 = vector.broadcast %cst_187 : f32 to vector<2x32xf32>
    %1135 = arith.addf %1134, %1133 : vector<2x32xf32>
    %1136 = arith.divf %1134, %1135 : vector<2x32xf32>
    %1137 = arith.mulf %1128, %1110 : vector<2x32xf32>
    %1138 = arith.mulf %1122, %1130 : vector<2x32xf32>
    %1139 = arith.addf %1137, %1138 : vector<2x32xf32>
    %1140 = math.tanh %1139 : vector<2x32xf32>
    %1141 = arith.mulf %1136, %1140 : vector<2x32xf32>
    %1142 = vector.extract_strided_slice %1020 {offsets = [4, 0, 0], sizes = [1, 2, 128], strides = [1, 1, 1]} : vector<8x2x128xf32> to vector<1x2x128xf32>
    %1143 = vector.shape_cast %1142 : vector<1x2x128xf32> to vector<2x128xf32>
    %cst_188 = arith.constant dense<0.000000e+00> : vector<2x128xf32>
    %1144 = tpu.matmul %1141, %1023, %cst_188 {dimension_numbers = #tpu.dot_dimension_numbers<[1], [0], [0], [1], [0, 0, 1, 1], [], []>} : vector<2x32xf32>, vector<32x128xf32>, vector<2x128xf32> -> vector<2x128xf32>
    %1145 = arith.addf %1143, %1144 : vector<2x128xf32>
    %1146 = vector.extract_strided_slice %1145 {offsets = [0, 0], sizes = [2, 32], strides = [1, 1]} : vector<2x128xf32> to vector<2x32xf32>
    %1147 = arith.negf %1146 : vector<2x32xf32>
    %1148 = math.exp %1147 : vector<2x32xf32>
    %cst_189 = arith.constant 1.000000e+00 : f32
    %1149 = vector.broadcast %cst_189 : f32 to vector<2x32xf32>
    %1150 = arith.addf %1149, %1148 : vector<2x32xf32>
    %1151 = arith.divf %1149, %1150 : vector<2x32xf32>
    %1152 = vector.extract_strided_slice %1145 {offsets = [0, 32], sizes = [2, 32], strides = [1, 1]} : vector<2x128xf32> to vector<2x32xf32>
    %1153 = arith.negf %1152 : vector<2x32xf32>
    %1154 = math.exp %1153 : vector<2x32xf32>
    %cst_190 = arith.constant 1.000000e+00 : f32
    %1155 = vector.broadcast %cst_190 : f32 to vector<2x32xf32>
    %1156 = arith.addf %1155, %1154 : vector<2x32xf32>
    %1157 = arith.divf %1155, %1156 : vector<2x32xf32>
    %1158 = vector.extract_strided_slice %1145 {offsets = [0, 64], sizes = [2, 32], strides = [1, 1]} : vector<2x128xf32> to vector<2x32xf32>
    %1159 = math.tanh %1158 : vector<2x32xf32>
    %1160 = vector.extract_strided_slice %1145 {offsets = [0, 96], sizes = [2, 32], strides = [1, 1]} : vector<2x128xf32> to vector<2x32xf32>
    %1161 = arith.negf %1160 : vector<2x32xf32>
    %1162 = math.exp %1161 : vector<2x32xf32>
    %cst_191 = arith.constant 1.000000e+00 : f32
    %1163 = vector.broadcast %cst_191 : f32 to vector<2x32xf32>
    %1164 = arith.addf %1163, %1162 : vector<2x32xf32>
    %1165 = arith.divf %1163, %1164 : vector<2x32xf32>
    %1166 = arith.mulf %1157, %1139 : vector<2x32xf32>
    %1167 = arith.mulf %1151, %1159 : vector<2x32xf32>
    %1168 = arith.addf %1166, %1167 : vector<2x32xf32>
    %1169 = math.tanh %1168 : vector<2x32xf32>
    %1170 = arith.mulf %1165, %1169 : vector<2x32xf32>
    %1171 = vector.extract_strided_slice %1020 {offsets = [5, 0, 0], sizes = [1, 2, 128], strides = [1, 1, 1]} : vector<8x2x128xf32> to vector<1x2x128xf32>
    %1172 = vector.shape_cast %1171 : vector<1x2x128xf32> to vector<2x128xf32>
    %cst_192 = arith.constant dense<0.000000e+00> : vector<2x128xf32>
    %1173 = tpu.matmul %1170, %1023, %cst_192 {dimension_numbers = #tpu.dot_dimension_numbers<[1], [0], [0], [1], [0, 0, 1, 1], [], []>} : vector<2x32xf32>, vector<32x128xf32>, vector<2x128xf32> -> vector<2x128xf32>
    %1174 = arith.addf %1172, %1173 : vector<2x128xf32>
    %1175 = vector.extract_strided_slice %1174 {offsets = [0, 0], sizes = [2, 32], strides = [1, 1]} : vector<2x128xf32> to vector<2x32xf32>
    %1176 = arith.negf %1175 : vector<2x32xf32>
    %1177 = math.exp %1176 : vector<2x32xf32>
    %cst_193 = arith.constant 1.000000e+00 : f32
    %1178 = vector.broadcast %cst_193 : f32 to vector<2x32xf32>
    %1179 = arith.addf %1178, %1177 : vector<2x32xf32>
    %1180 = arith.divf %1178, %1179 : vector<2x32xf32>
    %1181 = vector.extract_strided_slice %1174 {offsets = [0, 32], sizes = [2, 32], strides = [1, 1]} : vector<2x128xf32> to vector<2x32xf32>
    %1182 = arith.negf %1181 : vector<2x32xf32>
    %1183 = math.exp %1182 : vector<2x32xf32>
    %cst_194 = arith.constant 1.000000e+00 : f32
    %1184 = vector.broadcast %cst_194 : f32 to vector<2x32xf32>
    %1185 = arith.addf %1184, %1183 : vector<2x32xf32>
    %1186 = arith.divf %1184, %1185 : vector<2x32xf32>
    %1187 = vector.extract_strided_slice %1174 {offsets = [0, 64], sizes = [2, 32], strides = [1, 1]} : vector<2x128xf32> to vector<2x32xf32>
    %1188 = math.tanh %1187 : vector<2x32xf32>
    %1189 = vector.extract_strided_slice %1174 {offsets = [0, 96], sizes = [2, 32], strides = [1, 1]} : vector<2x128xf32> to vector<2x32xf32>
    %1190 = arith.negf %1189 : vector<2x32xf32>
    %1191 = math.exp %1190 : vector<2x32xf32>
    %cst_195 = arith.constant 1.000000e+00 : f32
    %1192 = vector.broadcast %cst_195 : f32 to vector<2x32xf32>
    %1193 = arith.addf %1192, %1191 : vector<2x32xf32>
    %1194 = arith.divf %1192, %1193 : vector<2x32xf32>
    %1195 = arith.mulf %1186, %1168 : vector<2x32xf32>
    %1196 = arith.mulf %1180, %1188 : vector<2x32xf32>
    %1197 = arith.addf %1195, %1196 : vector<2x32xf32>
    %1198 = math.tanh %1197 : vector<2x32xf32>
    %1199 = arith.mulf %1194, %1198 : vector<2x32xf32>
    %1200 = vector.extract_strided_slice %1020 {offsets = [6, 0, 0], sizes = [1, 2, 128], strides = [1, 1, 1]} : vector<8x2x128xf32> to vector<1x2x128xf32>
    %1201 = vector.shape_cast %1200 : vector<1x2x128xf32> to vector<2x128xf32>
    %cst_196 = arith.constant dense<0.000000e+00> : vector<2x128xf32>
    %1202 = tpu.matmul %1199, %1023, %cst_196 {dimension_numbers = #tpu.dot_dimension_numbers<[1], [0], [0], [1], [0, 0, 1, 1], [], []>} : vector<2x32xf32>, vector<32x128xf32>, vector<2x128xf32> -> vector<2x128xf32>
    %1203 = arith.addf %1201, %1202 : vector<2x128xf32>
    %1204 = vector.extract_strided_slice %1203 {offsets = [0, 0], sizes = [2, 32], strides = [1, 1]} : vector<2x128xf32> to vector<2x32xf32>
    %1205 = arith.negf %1204 : vector<2x32xf32>
    %1206 = math.exp %1205 : vector<2x32xf32>
    %cst_197 = arith.constant 1.000000e+00 : f32
    %1207 = vector.broadcast %cst_197 : f32 to vector<2x32xf32>
    %1208 = arith.addf %1207, %1206 : vector<2x32xf32>
    %1209 = arith.divf %1207, %1208 : vector<2x32xf32>
    %1210 = vector.extract_strided_slice %1203 {offsets = [0, 32], sizes = [2, 32], strides = [1, 1]} : vector<2x128xf32> to vector<2x32xf32>
    %1211 = arith.negf %1210 : vector<2x32xf32>
    %1212 = math.exp %1211 : vector<2x32xf32>
    %cst_198 = arith.constant 1.000000e+00 : f32
    %1213 = vector.broadcast %cst_198 : f32 to vector<2x32xf32>
    %1214 = arith.addf %1213, %1212 : vector<2x32xf32>
    %1215 = arith.divf %1213, %1214 : vector<2x32xf32>
    %1216 = vector.extract_strided_slice %1203 {offsets = [0, 64], sizes = [2, 32], strides = [1, 1]} : vector<2x128xf32> to vector<2x32xf32>
    %1217 = math.tanh %1216 : vector<2x32xf32>
    %1218 = vector.extract_strided_slice %1203 {offsets = [0, 96], sizes = [2, 32], strides = [1, 1]} : vector<2x128xf32> to vector<2x32xf32>
    %1219 = arith.negf %1218 : vector<2x32xf32>
    %1220 = math.exp %1219 : vector<2x32xf32>
    %cst_199 = arith.constant 1.000000e+00 : f32
    %1221 = vector.broadcast %cst_199 : f32 to vector<2x32xf32>
    %1222 = arith.addf %1221, %1220 : vector<2x32xf32>
    %1223 = arith.divf %1221, %1222 : vector<2x32xf32>
    %1224 = arith.mulf %1215, %1197 : vector<2x32xf32>
    %1225 = arith.mulf %1209, %1217 : vector<2x32xf32>
    %1226 = arith.addf %1224, %1225 : vector<2x32xf32>
    %1227 = math.tanh %1226 : vector<2x32xf32>
    %1228 = arith.mulf %1223, %1227 : vector<2x32xf32>
    %1229 = vector.extract_strided_slice %1020 {offsets = [7, 0, 0], sizes = [1, 2, 128], strides = [1, 1, 1]} : vector<8x2x128xf32> to vector<1x2x128xf32>
    %1230 = vector.shape_cast %1229 : vector<1x2x128xf32> to vector<2x128xf32>
    %cst_200 = arith.constant dense<0.000000e+00> : vector<2x128xf32>
    %1231 = tpu.matmul %1228, %1023, %cst_200 {dimension_numbers = #tpu.dot_dimension_numbers<[1], [0], [0], [1], [0, 0, 1, 1], [], []>} : vector<2x32xf32>, vector<32x128xf32>, vector<2x128xf32> -> vector<2x128xf32>
    %1232 = arith.addf %1230, %1231 : vector<2x128xf32>
    %1233 = vector.extract_strided_slice %1232 {offsets = [0, 0], sizes = [2, 32], strides = [1, 1]} : vector<2x128xf32> to vector<2x32xf32>
    %1234 = arith.negf %1233 : vector<2x32xf32>
    %1235 = math.exp %1234 : vector<2x32xf32>
    %cst_201 = arith.constant 1.000000e+00 : f32
    %1236 = vector.broadcast %cst_201 : f32 to vector<2x32xf32>
    %1237 = arith.addf %1236, %1235 : vector<2x32xf32>
    %1238 = arith.divf %1236, %1237 : vector<2x32xf32>
    %1239 = vector.extract_strided_slice %1232 {offsets = [0, 32], sizes = [2, 32], strides = [1, 1]} : vector<2x128xf32> to vector<2x32xf32>
    %1240 = arith.negf %1239 : vector<2x32xf32>
    %1241 = math.exp %1240 : vector<2x32xf32>
    %cst_202 = arith.constant 1.000000e+00 : f32
    %1242 = vector.broadcast %cst_202 : f32 to vector<2x32xf32>
    %1243 = arith.addf %1242, %1241 : vector<2x32xf32>
    %1244 = arith.divf %1242, %1243 : vector<2x32xf32>
    %1245 = vector.extract_strided_slice %1232 {offsets = [0, 64], sizes = [2, 32], strides = [1, 1]} : vector<2x128xf32> to vector<2x32xf32>
    %1246 = math.tanh %1245 : vector<2x32xf32>
    %1247 = vector.extract_strided_slice %1232 {offsets = [0, 96], sizes = [2, 32], strides = [1, 1]} : vector<2x128xf32> to vector<2x32xf32>
    %1248 = arith.negf %1247 : vector<2x32xf32>
    %1249 = math.exp %1248 : vector<2x32xf32>
    %cst_203 = arith.constant 1.000000e+00 : f32
    %1250 = vector.broadcast %cst_203 : f32 to vector<2x32xf32>
    %1251 = arith.addf %1250, %1249 : vector<2x32xf32>
    %1252 = arith.divf %1250, %1251 : vector<2x32xf32>
    %1253 = arith.mulf %1244, %1226 : vector<2x32xf32>
    %1254 = arith.mulf %1238, %1246 : vector<2x32xf32>
    %1255 = arith.addf %1253, %1254 : vector<2x32xf32>
    %1256 = math.tanh %1255 : vector<2x32xf32>
    %1257 = arith.mulf %1252, %1256 : vector<2x32xf32>
    %1258 = vector.shape_cast %1054 : vector<2x32xf32> to vector<1x2x32xf32>
    %1259 = vector.shape_cast %1083 : vector<2x32xf32> to vector<1x2x32xf32>
    %1260 = vector.shape_cast %1112 : vector<2x32xf32> to vector<1x2x32xf32>
    %1261 = vector.shape_cast %1141 : vector<2x32xf32> to vector<1x2x32xf32>
    %1262 = vector.shape_cast %1170 : vector<2x32xf32> to vector<1x2x32xf32>
    %1263 = vector.shape_cast %1199 : vector<2x32xf32> to vector<1x2x32xf32>
    %1264 = vector.shape_cast %1228 : vector<2x32xf32> to vector<1x2x32xf32>
    %1265 = vector.shape_cast %1257 : vector<2x32xf32> to vector<1x2x32xf32>
    %1266 = tpu.concatenate %1258, %1259, %1260, %1261, %1262, %1263, %1264, %1265 in 0 : vector<1x2x32xf32>, vector<1x2x32xf32>, vector<1x2x32xf32>, vector<1x2x32xf32>, vector<1x2x32xf32>, vector<1x2x32xf32>, vector<1x2x32xf32>, vector<1x2x32xf32> -> vector<8x2x32xf32>
    %c0_204 = arith.constant 0 : index
    %c0_205 = arith.constant 0 : index
    %1267 = vector.load %arg14[%c0_204, %c0_205] : memref<32x128xf32, #tpu.memory_space<vmem>>, vector<32x128xf32>
    %cst_206 = arith.constant 0.000000e+00 : f32
    %1268 = vector.broadcast %cst_206 : f32 to vector<2x32xf32>
    %cst_207 = arith.constant 0.000000e+00 : f32
    %1269 = vector.broadcast %cst_207 : f32 to vector<2x32xf32>
    %1270 = vector.extract_strided_slice %1022 {offsets = [7, 0, 0], sizes = [1, 2, 128], strides = [1, 1, 1]} : vector<8x2x128xf32> to vector<1x2x128xf32>
    %1271 = vector.shape_cast %1270 : vector<1x2x128xf32> to vector<2x128xf32>
    %cst_208 = arith.constant dense<0.000000e+00> : vector<2x128xf32>
    %1272 = tpu.matmul %1268, %1267, %cst_208 {dimension_numbers = #tpu.dot_dimension_numbers<[1], [0], [0], [1], [0, 0, 1, 1], [], []>} : vector<2x32xf32>, vector<32x128xf32>, vector<2x128xf32> -> vector<2x128xf32>
    %1273 = arith.addf %1271, %1272 : vector<2x128xf32>
    %1274 = vector.extract_strided_slice %1273 {offsets = [0, 0], sizes = [2, 32], strides = [1, 1]} : vector<2x128xf32> to vector<2x32xf32>
    %1275 = arith.negf %1274 : vector<2x32xf32>
    %1276 = math.exp %1275 : vector<2x32xf32>
    %cst_209 = arith.constant 1.000000e+00 : f32
    %1277 = vector.broadcast %cst_209 : f32 to vector<2x32xf32>
    %1278 = arith.addf %1277, %1276 : vector<2x32xf32>
    %1279 = arith.divf %1277, %1278 : vector<2x32xf32>
    %1280 = vector.extract_strided_slice %1273 {offsets = [0, 32], sizes = [2, 32], strides = [1, 1]} : vector<2x128xf32> to vector<2x32xf32>
    %1281 = arith.negf %1280 : vector<2x32xf32>
    %1282 = math.exp %1281 : vector<2x32xf32>
    %cst_210 = arith.constant 1.000000e+00 : f32
    %1283 = vector.broadcast %cst_210 : f32 to vector<2x32xf32>
    %1284 = arith.addf %1283, %1282 : vector<2x32xf32>
    %1285 = arith.divf %1283, %1284 : vector<2x32xf32>
    %1286 = vector.extract_strided_slice %1273 {offsets = [0, 64], sizes = [2, 32], strides = [1, 1]} : vector<2x128xf32> to vector<2x32xf32>
    %1287 = math.tanh %1286 : vector<2x32xf32>
    %1288 = vector.extract_strided_slice %1273 {offsets = [0, 96], sizes = [2, 32], strides = [1, 1]} : vector<2x128xf32> to vector<2x32xf32>
    %1289 = arith.negf %1288 : vector<2x32xf32>
    %1290 = math.exp %1289 : vector<2x32xf32>
    %cst_211 = arith.constant 1.000000e+00 : f32
    %1291 = vector.broadcast %cst_211 : f32 to vector<2x32xf32>
    %1292 = arith.addf %1291, %1290 : vector<2x32xf32>
    %1293 = arith.divf %1291, %1292 : vector<2x32xf32>
    %1294 = arith.mulf %1285, %1269 : vector<2x32xf32>
    %1295 = arith.mulf %1279, %1287 : vector<2x32xf32>
    %1296 = arith.addf %1294, %1295 : vector<2x32xf32>
    %1297 = math.tanh %1296 : vector<2x32xf32>
    %1298 = arith.mulf %1293, %1297 : vector<2x32xf32>
    %1299 = vector.extract_strided_slice %1022 {offsets = [6, 0, 0], sizes = [1, 2, 128], strides = [1, 1, 1]} : vector<8x2x128xf32> to vector<1x2x128xf32>
    %1300 = vector.shape_cast %1299 : vector<1x2x128xf32> to vector<2x128xf32>
    %cst_212 = arith.constant dense<0.000000e+00> : vector<2x128xf32>
    %1301 = tpu.matmul %1298, %1267, %cst_212 {dimension_numbers = #tpu.dot_dimension_numbers<[1], [0], [0], [1], [0, 0, 1, 1], [], []>} : vector<2x32xf32>, vector<32x128xf32>, vector<2x128xf32> -> vector<2x128xf32>
    %1302 = arith.addf %1300, %1301 : vector<2x128xf32>
    %1303 = vector.extract_strided_slice %1302 {offsets = [0, 0], sizes = [2, 32], strides = [1, 1]} : vector<2x128xf32> to vector<2x32xf32>
    %1304 = arith.negf %1303 : vector<2x32xf32>
    %1305 = math.exp %1304 : vector<2x32xf32>
    %cst_213 = arith.constant 1.000000e+00 : f32
    %1306 = vector.broadcast %cst_213 : f32 to vector<2x32xf32>
    %1307 = arith.addf %1306, %1305 : vector<2x32xf32>
    %1308 = arith.divf %1306, %1307 : vector<2x32xf32>
    %1309 = vector.extract_strided_slice %1302 {offsets = [0, 32], sizes = [2, 32], strides = [1, 1]} : vector<2x128xf32> to vector<2x32xf32>
    %1310 = arith.negf %1309 : vector<2x32xf32>
    %1311 = math.exp %1310 : vector<2x32xf32>
    %cst_214 = arith.constant 1.000000e+00 : f32
    %1312 = vector.broadcast %cst_214 : f32 to vector<2x32xf32>
    %1313 = arith.addf %1312, %1311 : vector<2x32xf32>
    %1314 = arith.divf %1312, %1313 : vector<2x32xf32>
    %1315 = vector.extract_strided_slice %1302 {offsets = [0, 64], sizes = [2, 32], strides = [1, 1]} : vector<2x128xf32> to vector<2x32xf32>
    %1316 = math.tanh %1315 : vector<2x32xf32>
    %1317 = vector.extract_strided_slice %1302 {offsets = [0, 96], sizes = [2, 32], strides = [1, 1]} : vector<2x128xf32> to vector<2x32xf32>
    %1318 = arith.negf %1317 : vector<2x32xf32>
    %1319 = math.exp %1318 : vector<2x32xf32>
    %cst_215 = arith.constant 1.000000e+00 : f32
    %1320 = vector.broadcast %cst_215 : f32 to vector<2x32xf32>
    %1321 = arith.addf %1320, %1319 : vector<2x32xf32>
    %1322 = arith.divf %1320, %1321 : vector<2x32xf32>
    %1323 = arith.mulf %1314, %1296 : vector<2x32xf32>
    %1324 = arith.mulf %1308, %1316 : vector<2x32xf32>
    %1325 = arith.addf %1323, %1324 : vector<2x32xf32>
    %1326 = math.tanh %1325 : vector<2x32xf32>
    %1327 = arith.mulf %1322, %1326 : vector<2x32xf32>
    %1328 = vector.extract_strided_slice %1022 {offsets = [5, 0, 0], sizes = [1, 2, 128], strides = [1, 1, 1]} : vector<8x2x128xf32> to vector<1x2x128xf32>
    %1329 = vector.shape_cast %1328 : vector<1x2x128xf32> to vector<2x128xf32>
    %cst_216 = arith.constant dense<0.000000e+00> : vector<2x128xf32>
    %1330 = tpu.matmul %1327, %1267, %cst_216 {dimension_numbers = #tpu.dot_dimension_numbers<[1], [0], [0], [1], [0, 0, 1, 1], [], []>} : vector<2x32xf32>, vector<32x128xf32>, vector<2x128xf32> -> vector<2x128xf32>
    %1331 = arith.addf %1329, %1330 : vector<2x128xf32>
    %1332 = vector.extract_strided_slice %1331 {offsets = [0, 0], sizes = [2, 32], strides = [1, 1]} : vector<2x128xf32> to vector<2x32xf32>
    %1333 = arith.negf %1332 : vector<2x32xf32>
    %1334 = math.exp %1333 : vector<2x32xf32>
    %cst_217 = arith.constant 1.000000e+00 : f32
    %1335 = vector.broadcast %cst_217 : f32 to vector<2x32xf32>
    %1336 = arith.addf %1335, %1334 : vector<2x32xf32>
    %1337 = arith.divf %1335, %1336 : vector<2x32xf32>
    %1338 = vector.extract_strided_slice %1331 {offsets = [0, 32], sizes = [2, 32], strides = [1, 1]} : vector<2x128xf32> to vector<2x32xf32>
    %1339 = arith.negf %1338 : vector<2x32xf32>
    %1340 = math.exp %1339 : vector<2x32xf32>
    %cst_218 = arith.constant 1.000000e+00 : f32
    %1341 = vector.broadcast %cst_218 : f32 to vector<2x32xf32>
    %1342 = arith.addf %1341, %1340 : vector<2x32xf32>
    %1343 = arith.divf %1341, %1342 : vector<2x32xf32>
    %1344 = vector.extract_strided_slice %1331 {offsets = [0, 64], sizes = [2, 32], strides = [1, 1]} : vector<2x128xf32> to vector<2x32xf32>
    %1345 = math.tanh %1344 : vector<2x32xf32>
    %1346 = vector.extract_strided_slice %1331 {offsets = [0, 96], sizes = [2, 32], strides = [1, 1]} : vector<2x128xf32> to vector<2x32xf32>
    %1347 = arith.negf %1346 : vector<2x32xf32>
    %1348 = math.exp %1347 : vector<2x32xf32>
    %cst_219 = arith.constant 1.000000e+00 : f32
    %1349 = vector.broadcast %cst_219 : f32 to vector<2x32xf32>
    %1350 = arith.addf %1349, %1348 : vector<2x32xf32>
    %1351 = arith.divf %1349, %1350 : vector<2x32xf32>
    %1352 = arith.mulf %1343, %1325 : vector<2x32xf32>
    %1353 = arith.mulf %1337, %1345 : vector<2x32xf32>
    %1354 = arith.addf %1352, %1353 : vector<2x32xf32>
    %1355 = math.tanh %1354 : vector<2x32xf32>
    %1356 = arith.mulf %1351, %1355 : vector<2x32xf32>
    %1357 = vector.extract_strided_slice %1022 {offsets = [4, 0, 0], sizes = [1, 2, 128], strides = [1, 1, 1]} : vector<8x2x128xf32> to vector<1x2x128xf32>
    %1358 = vector.shape_cast %1357 : vector<1x2x128xf32> to vector<2x128xf32>
    %cst_220 = arith.constant dense<0.000000e+00> : vector<2x128xf32>
    %1359 = tpu.matmul %1356, %1267, %cst_220 {dimension_numbers = #tpu.dot_dimension_numbers<[1], [0], [0], [1], [0, 0, 1, 1], [], []>} : vector<2x32xf32>, vector<32x128xf32>, vector<2x128xf32> -> vector<2x128xf32>
    %1360 = arith.addf %1358, %1359 : vector<2x128xf32>
    %1361 = vector.extract_strided_slice %1360 {offsets = [0, 0], sizes = [2, 32], strides = [1, 1]} : vector<2x128xf32> to vector<2x32xf32>
    %1362 = arith.negf %1361 : vector<2x32xf32>
    %1363 = math.exp %1362 : vector<2x32xf32>
    %cst_221 = arith.constant 1.000000e+00 : f32
    %1364 = vector.broadcast %cst_221 : f32 to vector<2x32xf32>
    %1365 = arith.addf %1364, %1363 : vector<2x32xf32>
    %1366 = arith.divf %1364, %1365 : vector<2x32xf32>
    %1367 = vector.extract_strided_slice %1360 {offsets = [0, 32], sizes = [2, 32], strides = [1, 1]} : vector<2x128xf32> to vector<2x32xf32>
    %1368 = arith.negf %1367 : vector<2x32xf32>
    %1369 = math.exp %1368 : vector<2x32xf32>
    %cst_222 = arith.constant 1.000000e+00 : f32
    %1370 = vector.broadcast %cst_222 : f32 to vector<2x32xf32>
    %1371 = arith.addf %1370, %1369 : vector<2x32xf32>
    %1372 = arith.divf %1370, %1371 : vector<2x32xf32>
    %1373 = vector.extract_strided_slice %1360 {offsets = [0, 64], sizes = [2, 32], strides = [1, 1]} : vector<2x128xf32> to vector<2x32xf32>
    %1374 = math.tanh %1373 : vector<2x32xf32>
    %1375 = vector.extract_strided_slice %1360 {offsets = [0, 96], sizes = [2, 32], strides = [1, 1]} : vector<2x128xf32> to vector<2x32xf32>
    %1376 = arith.negf %1375 : vector<2x32xf32>
    %1377 = math.exp %1376 : vector<2x32xf32>
    %cst_223 = arith.constant 1.000000e+00 : f32
    %1378 = vector.broadcast %cst_223 : f32 to vector<2x32xf32>
    %1379 = arith.addf %1378, %1377 : vector<2x32xf32>
    %1380 = arith.divf %1378, %1379 : vector<2x32xf32>
    %1381 = arith.mulf %1372, %1354 : vector<2x32xf32>
    %1382 = arith.mulf %1366, %1374 : vector<2x32xf32>
    %1383 = arith.addf %1381, %1382 : vector<2x32xf32>
    %1384 = math.tanh %1383 : vector<2x32xf32>
    %1385 = arith.mulf %1380, %1384 : vector<2x32xf32>
    %1386 = vector.extract_strided_slice %1022 {offsets = [3, 0, 0], sizes = [1, 2, 128], strides = [1, 1, 1]} : vector<8x2x128xf32> to vector<1x2x128xf32>
    %1387 = vector.shape_cast %1386 : vector<1x2x128xf32> to vector<2x128xf32>
    %cst_224 = arith.constant dense<0.000000e+00> : vector<2x128xf32>
    %1388 = tpu.matmul %1385, %1267, %cst_224 {dimension_numbers = #tpu.dot_dimension_numbers<[1], [0], [0], [1], [0, 0, 1, 1], [], []>} : vector<2x32xf32>, vector<32x128xf32>, vector<2x128xf32> -> vector<2x128xf32>
    %1389 = arith.addf %1387, %1388 : vector<2x128xf32>
    %1390 = vector.extract_strided_slice %1389 {offsets = [0, 0], sizes = [2, 32], strides = [1, 1]} : vector<2x128xf32> to vector<2x32xf32>
    %1391 = arith.negf %1390 : vector<2x32xf32>
    %1392 = math.exp %1391 : vector<2x32xf32>
    %cst_225 = arith.constant 1.000000e+00 : f32
    %1393 = vector.broadcast %cst_225 : f32 to vector<2x32xf32>
    %1394 = arith.addf %1393, %1392 : vector<2x32xf32>
    %1395 = arith.divf %1393, %1394 : vector<2x32xf32>
    %1396 = vector.extract_strided_slice %1389 {offsets = [0, 32], sizes = [2, 32], strides = [1, 1]} : vector<2x128xf32> to vector<2x32xf32>
    %1397 = arith.negf %1396 : vector<2x32xf32>
    %1398 = math.exp %1397 : vector<2x32xf32>
    %cst_226 = arith.constant 1.000000e+00 : f32
    %1399 = vector.broadcast %cst_226 : f32 to vector<2x32xf32>
    %1400 = arith.addf %1399, %1398 : vector<2x32xf32>
    %1401 = arith.divf %1399, %1400 : vector<2x32xf32>
    %1402 = vector.extract_strided_slice %1389 {offsets = [0, 64], sizes = [2, 32], strides = [1, 1]} : vector<2x128xf32> to vector<2x32xf32>
    %1403 = math.tanh %1402 : vector<2x32xf32>
    %1404 = vector.extract_strided_slice %1389 {offsets = [0, 96], sizes = [2, 32], strides = [1, 1]} : vector<2x128xf32> to vector<2x32xf32>
    %1405 = arith.negf %1404 : vector<2x32xf32>
    %1406 = math.exp %1405 : vector<2x32xf32>
    %cst_227 = arith.constant 1.000000e+00 : f32
    %1407 = vector.broadcast %cst_227 : f32 to vector<2x32xf32>
    %1408 = arith.addf %1407, %1406 : vector<2x32xf32>
    %1409 = arith.divf %1407, %1408 : vector<2x32xf32>
    %1410 = arith.mulf %1401, %1383 : vector<2x32xf32>
    %1411 = arith.mulf %1395, %1403 : vector<2x32xf32>
    %1412 = arith.addf %1410, %1411 : vector<2x32xf32>
    %1413 = math.tanh %1412 : vector<2x32xf32>
    %1414 = arith.mulf %1409, %1413 : vector<2x32xf32>
    %1415 = vector.extract_strided_slice %1022 {offsets = [2, 0, 0], sizes = [1, 2, 128], strides = [1, 1, 1]} : vector<8x2x128xf32> to vector<1x2x128xf32>
    %1416 = vector.shape_cast %1415 : vector<1x2x128xf32> to vector<2x128xf32>
    %cst_228 = arith.constant dense<0.000000e+00> : vector<2x128xf32>
    %1417 = tpu.matmul %1414, %1267, %cst_228 {dimension_numbers = #tpu.dot_dimension_numbers<[1], [0], [0], [1], [0, 0, 1, 1], [], []>} : vector<2x32xf32>, vector<32x128xf32>, vector<2x128xf32> -> vector<2x128xf32>
    %1418 = arith.addf %1416, %1417 : vector<2x128xf32>
    %1419 = vector.extract_strided_slice %1418 {offsets = [0, 0], sizes = [2, 32], strides = [1, 1]} : vector<2x128xf32> to vector<2x32xf32>
    %1420 = arith.negf %1419 : vector<2x32xf32>
    %1421 = math.exp %1420 : vector<2x32xf32>
    %cst_229 = arith.constant 1.000000e+00 : f32
    %1422 = vector.broadcast %cst_229 : f32 to vector<2x32xf32>
    %1423 = arith.addf %1422, %1421 : vector<2x32xf32>
    %1424 = arith.divf %1422, %1423 : vector<2x32xf32>
    %1425 = vector.extract_strided_slice %1418 {offsets = [0, 32], sizes = [2, 32], strides = [1, 1]} : vector<2x128xf32> to vector<2x32xf32>
    %1426 = arith.negf %1425 : vector<2x32xf32>
    %1427 = math.exp %1426 : vector<2x32xf32>
    %cst_230 = arith.constant 1.000000e+00 : f32
    %1428 = vector.broadcast %cst_230 : f32 to vector<2x32xf32>
    %1429 = arith.addf %1428, %1427 : vector<2x32xf32>
    %1430 = arith.divf %1428, %1429 : vector<2x32xf32>
    %1431 = vector.extract_strided_slice %1418 {offsets = [0, 64], sizes = [2, 32], strides = [1, 1]} : vector<2x128xf32> to vector<2x32xf32>
    %1432 = math.tanh %1431 : vector<2x32xf32>
    %1433 = vector.extract_strided_slice %1418 {offsets = [0, 96], sizes = [2, 32], strides = [1, 1]} : vector<2x128xf32> to vector<2x32xf32>
    %1434 = arith.negf %1433 : vector<2x32xf32>
    %1435 = math.exp %1434 : vector<2x32xf32>
    %cst_231 = arith.constant 1.000000e+00 : f32
    %1436 = vector.broadcast %cst_231 : f32 to vector<2x32xf32>
    %1437 = arith.addf %1436, %1435 : vector<2x32xf32>
    %1438 = arith.divf %1436, %1437 : vector<2x32xf32>
    %1439 = arith.mulf %1430, %1412 : vector<2x32xf32>
    %1440 = arith.mulf %1424, %1432 : vector<2x32xf32>
    %1441 = arith.addf %1439, %1440 : vector<2x32xf32>
    %1442 = math.tanh %1441 : vector<2x32xf32>
    %1443 = arith.mulf %1438, %1442 : vector<2x32xf32>
    %1444 = vector.extract_strided_slice %1022 {offsets = [1, 0, 0], sizes = [1, 2, 128], strides = [1, 1, 1]} : vector<8x2x128xf32> to vector<1x2x128xf32>
    %1445 = vector.shape_cast %1444 : vector<1x2x128xf32> to vector<2x128xf32>
    %cst_232 = arith.constant dense<0.000000e+00> : vector<2x128xf32>
    %1446 = tpu.matmul %1443, %1267, %cst_232 {dimension_numbers = #tpu.dot_dimension_numbers<[1], [0], [0], [1], [0, 0, 1, 1], [], []>} : vector<2x32xf32>, vector<32x128xf32>, vector<2x128xf32> -> vector<2x128xf32>
    %1447 = arith.addf %1445, %1446 : vector<2x128xf32>
    %1448 = vector.extract_strided_slice %1447 {offsets = [0, 0], sizes = [2, 32], strides = [1, 1]} : vector<2x128xf32> to vector<2x32xf32>
    %1449 = arith.negf %1448 : vector<2x32xf32>
    %1450 = math.exp %1449 : vector<2x32xf32>
    %cst_233 = arith.constant 1.000000e+00 : f32
    %1451 = vector.broadcast %cst_233 : f32 to vector<2x32xf32>
    %1452 = arith.addf %1451, %1450 : vector<2x32xf32>
    %1453 = arith.divf %1451, %1452 : vector<2x32xf32>
    %1454 = vector.extract_strided_slice %1447 {offsets = [0, 32], sizes = [2, 32], strides = [1, 1]} : vector<2x128xf32> to vector<2x32xf32>
    %1455 = arith.negf %1454 : vector<2x32xf32>
    %1456 = math.exp %1455 : vector<2x32xf32>
    %cst_234 = arith.constant 1.000000e+00 : f32
    %1457 = vector.broadcast %cst_234 : f32 to vector<2x32xf32>
    %1458 = arith.addf %1457, %1456 : vector<2x32xf32>
    %1459 = arith.divf %1457, %1458 : vector<2x32xf32>
    %1460 = vector.extract_strided_slice %1447 {offsets = [0, 64], sizes = [2, 32], strides = [1, 1]} : vector<2x128xf32> to vector<2x32xf32>
    %1461 = math.tanh %1460 : vector<2x32xf32>
    %1462 = vector.extract_strided_slice %1447 {offsets = [0, 96], sizes = [2, 32], strides = [1, 1]} : vector<2x128xf32> to vector<2x32xf32>
    %1463 = arith.negf %1462 : vector<2x32xf32>
    %1464 = math.exp %1463 : vector<2x32xf32>
    %cst_235 = arith.constant 1.000000e+00 : f32
    %1465 = vector.broadcast %cst_235 : f32 to vector<2x32xf32>
    %1466 = arith.addf %1465, %1464 : vector<2x32xf32>
    %1467 = arith.divf %1465, %1466 : vector<2x32xf32>
    %1468 = arith.mulf %1459, %1441 : vector<2x32xf32>
    %1469 = arith.mulf %1453, %1461 : vector<2x32xf32>
    %1470 = arith.addf %1468, %1469 : vector<2x32xf32>
    %1471 = math.tanh %1470 : vector<2x32xf32>
    %1472 = arith.mulf %1467, %1471 : vector<2x32xf32>
    %1473 = vector.extract_strided_slice %1022 {offsets = [0, 0, 0], sizes = [1, 2, 128], strides = [1, 1, 1]} : vector<8x2x128xf32> to vector<1x2x128xf32>
    %1474 = vector.shape_cast %1473 : vector<1x2x128xf32> to vector<2x128xf32>
    %cst_236 = arith.constant dense<0.000000e+00> : vector<2x128xf32>
    %1475 = tpu.matmul %1472, %1267, %cst_236 {dimension_numbers = #tpu.dot_dimension_numbers<[1], [0], [0], [1], [0, 0, 1, 1], [], []>} : vector<2x32xf32>, vector<32x128xf32>, vector<2x128xf32> -> vector<2x128xf32>
    %1476 = arith.addf %1474, %1475 : vector<2x128xf32>
    %1477 = vector.extract_strided_slice %1476 {offsets = [0, 0], sizes = [2, 32], strides = [1, 1]} : vector<2x128xf32> to vector<2x32xf32>
    %1478 = arith.negf %1477 : vector<2x32xf32>
    %1479 = math.exp %1478 : vector<2x32xf32>
    %cst_237 = arith.constant 1.000000e+00 : f32
    %1480 = vector.broadcast %cst_237 : f32 to vector<2x32xf32>
    %1481 = arith.addf %1480, %1479 : vector<2x32xf32>
    %1482 = arith.divf %1480, %1481 : vector<2x32xf32>
    %1483 = vector.extract_strided_slice %1476 {offsets = [0, 32], sizes = [2, 32], strides = [1, 1]} : vector<2x128xf32> to vector<2x32xf32>
    %1484 = arith.negf %1483 : vector<2x32xf32>
    %1485 = math.exp %1484 : vector<2x32xf32>
    %cst_238 = arith.constant 1.000000e+00 : f32
    %1486 = vector.broadcast %cst_238 : f32 to vector<2x32xf32>
    %1487 = arith.addf %1486, %1485 : vector<2x32xf32>
    %1488 = arith.divf %1486, %1487 : vector<2x32xf32>
    %1489 = vector.extract_strided_slice %1476 {offsets = [0, 64], sizes = [2, 32], strides = [1, 1]} : vector<2x128xf32> to vector<2x32xf32>
    %1490 = math.tanh %1489 : vector<2x32xf32>
    %1491 = vector.extract_strided_slice %1476 {offsets = [0, 96], sizes = [2, 32], strides = [1, 1]} : vector<2x128xf32> to vector<2x32xf32>
    %1492 = arith.negf %1491 : vector<2x32xf32>
    %1493 = math.exp %1492 : vector<2x32xf32>
    %cst_239 = arith.constant 1.000000e+00 : f32
    %1494 = vector.broadcast %cst_239 : f32 to vector<2x32xf32>
    %1495 = arith.addf %1494, %1493 : vector<2x32xf32>
    %1496 = arith.divf %1494, %1495 : vector<2x32xf32>
    %1497 = arith.mulf %1488, %1470 : vector<2x32xf32>
    %1498 = arith.mulf %1482, %1490 : vector<2x32xf32>
    %1499 = arith.addf %1497, %1498 : vector<2x32xf32>
    %1500 = math.tanh %1499 : vector<2x32xf32>
    %1501 = arith.mulf %1496, %1500 : vector<2x32xf32>
    %1502 = vector.shape_cast %1501 : vector<2x32xf32> to vector<1x2x32xf32>
    %1503 = vector.shape_cast %1472 : vector<2x32xf32> to vector<1x2x32xf32>
    %1504 = vector.shape_cast %1443 : vector<2x32xf32> to vector<1x2x32xf32>
    %1505 = vector.shape_cast %1414 : vector<2x32xf32> to vector<1x2x32xf32>
    %1506 = vector.shape_cast %1385 : vector<2x32xf32> to vector<1x2x32xf32>
    %1507 = vector.shape_cast %1356 : vector<2x32xf32> to vector<1x2x32xf32>
    %1508 = vector.shape_cast %1327 : vector<2x32xf32> to vector<1x2x32xf32>
    %1509 = vector.shape_cast %1298 : vector<2x32xf32> to vector<1x2x32xf32>
    %1510 = tpu.concatenate %1502, %1503, %1504, %1505, %1506, %1507, %1508, %1509 in 0 : vector<1x2x32xf32>, vector<1x2x32xf32>, vector<1x2x32xf32>, vector<1x2x32xf32>, vector<1x2x32xf32>, vector<1x2x32xf32>, vector<1x2x32xf32>, vector<1x2x32xf32> -> vector<8x2x32xf32>
    %1511 = vector.extract_strided_slice %1266 {offsets = [7, 0, 0], sizes = [1, 2, 32], strides = [1, 1, 1]} : vector<8x2x32xf32> to vector<1x2x32xf32>
    %1512 = vector.shape_cast %1511 : vector<1x2x32xf32> to vector<2x32xf32>
    %1513 = vector.extract_strided_slice %1510 {offsets = [7, 0, 0], sizes = [1, 2, 32], strides = [1, 1, 1]} : vector<8x2x32xf32> to vector<1x2x32xf32>
    %1514 = vector.shape_cast %1513 : vector<1x2x32xf32> to vector<2x32xf32>
    %c0_240 = arith.constant 0 : index
    %c0_241 = arith.constant 0 : index
    %1515 = vector.load %arg15[%c0_240, %c0_241] : memref<32x16xf32, #tpu.memory_space<vmem>>, vector<32x16xf32>
    %cst_242 = arith.constant dense<0.000000e+00> : vector<2x16xf32>
    %1516 = tpu.matmul %1512, %1515, %cst_242 {dimension_numbers = #tpu.dot_dimension_numbers<[1], [0], [0], [1], [0, 0, 1, 1], [], []>} : vector<2x32xf32>, vector<32x16xf32>, vector<2x16xf32> -> vector<2x16xf32>
    %c0_243 = arith.constant 0 : index
    %c0_244 = arith.constant 0 : index
    %1517 = vector.load %arg16[%c0_243, %c0_244] : memref<32x16xf32, #tpu.memory_space<vmem>>, vector<32x16xf32>
    %cst_245 = arith.constant dense<0.000000e+00> : vector<2x16xf32>
    %1518 = tpu.matmul %1514, %1517, %cst_245 {dimension_numbers = #tpu.dot_dimension_numbers<[1], [0], [0], [1], [0, 0, 1, 1], [], []>} : vector<2x32xf32>, vector<32x16xf32>, vector<2x16xf32> -> vector<2x16xf32>
    %1519 = arith.addf %1516, %1518 : vector<2x16xf32>
    %c0_246 = arith.constant 0 : index
    %c0_247 = arith.constant 0 : index
    %1520 = vector.load %arg17[%c0_246, %c0_247] : memref<1x16xf32, #tpu.memory_space<vmem>>, vector<1x16xf32>
    %1521 = vector.broadcast %1520 : vector<1x16xf32> to vector<2x16xf32>
    %1522 = arith.addf %1519, %1521 : vector<2x16xf32>
    %c0_248 = arith.constant 0 : index
    %c0_249 = arith.constant 0 : index
    %1523 = vector.load %arg21[%c0_248, %c0_249] : memref<2x16xf32, #tpu.memory_space<vmem>>, vector<2x16xf32>
    tpu.vector_store %arg21[%c0_248, %c0_249], %1522 {strides = array<i32>} : memref<2x16xf32, #tpu.memory_space<vmem>>, vector<2x16xf32>,
    %c0_250 = arith.constant 0 : index
    %c0_251 = arith.constant 0 : index
    %1524 = vector.load %arg18[%c0_250, %c0_251] : memref<16x2xf32, #tpu.memory_space<vmem>>, vector<16x2xf32>
    %cst_252 = arith.constant dense<0.000000e+00> : vector<2x2xf32>
    %1525 = tpu.matmul %1522, %1524, %cst_252 {dimension_numbers = #tpu.dot_dimension_numbers<[1], [0], [0], [1], [0, 0, 1, 1], [], []>} : vector<2x16xf32>, vector<16x2xf32>, vector<2x2xf32> -> vector<2x2xf32>
    %c0_253 = arith.constant 0 : index
    %c0_254 = arith.constant 0 : index
    %1526 = vector.load %arg19[%c0_253, %c0_254] : memref<1x2xf32, #tpu.memory_space<vmem>>, vector<1x2xf32>
    %1527 = vector.broadcast %1526 : vector<1x2xf32> to vector<2x2xf32>
    %1528 = arith.addf %1525, %1527 : vector<2x2xf32>
    %cst_255 = arith.constant dense<0xFF800000> : vector<2xf32>
    %1529 = vector.multi_reduction <maximumf>, %1528, %cst_255 [1] : vector<2x2xf32> to vector<2xf32>
    %1530 = vector.shape_cast %1529 : vector<2xf32> to vector<2x1xf32>
    %1531 = vector.broadcast %1530 : vector<2x1xf32> to vector<2x2xf32>
    %1532 = arith.subf %1528, %1531 : vector<2x2xf32>
    %1533 = math.exp %1532 : vector<2x2xf32>
    %cst_256 = arith.constant dense<0.000000e+00> : vector<2xf32>
    %1534 = vector.multi_reduction <add>, %1533, %cst_256 [1] : vector<2x2xf32> to vector<2xf32>
    %1535 = vector.shape_cast %1534 : vector<2xf32> to vector<2x1xf32>
    %1536 = vector.broadcast %1535 : vector<2x1xf32> to vector<2x2xf32>
    %1537 = arith.divf %1533, %1536 : vector<2x2xf32>
    %c0_257 = arith.constant 0 : index
    %c0_258 = arith.constant 0 : index
    %1538 = vector.load %arg20[%c0_257, %c0_258] : memref<2x2xf32, #tpu.memory_space<vmem>>, vector<2x2xf32>
    tpu.vector_store %arg20[%c0_257, %c0_258], %1537 {strides = array<i32>} : memref<2x2xf32, #tpu.memory_space<vmem>>, vector<2x2xf32>,
    return
  }
}

</mosaic_0001>

<bundles_post_ra>
// kernel: lstm_fix_forward.1
= control target key start
LH: loop header
LB: loop body
LE: loop exit
PB: predicated region body
PF: predicated region fallthrough
CT: control target
= control target key end

     0   :  { %s5540_s0 = inlined_call_operand.vmem [shape: f32[8,2,32], index: 0, kind: input, shape index: {}]   ;;  %s5541_s1 = inlined_call_operand.vmem [shape: f32[32,256], index: 1, kind: input, shape index: {}]   ;;  %s5542_s2 = inlined_call_operand.vmem [shape: f32[1,256], index: 2, kind: input, shape index: {}]   ;;  %s5543_s3 = inlined_call_operand.vmem [shape: f32[32,256], index: 3, kind: input, shape index: {}]   ;;  %s5544_s4 = inlined_call_operand.vmem [shape: f32[32,256], index: 4, kind: input, shape index: {}]   ;;  %s5545_s5 = inlined_call_operand.vmem [shape: f32[1,256], index: 5, kind: input, shape index: {}]   ;;  %s5546_s6 = inlined_call_operand.vmem [shape: f32[32,256], index: 6, kind: input, shape index: {}]   ;;  %s5547_s7 = inlined_call_operand.vmem [shape: f32[32,256], index: 7, kind: input, shape index: {}]   ;;  %s5548_s8 = inlined_call_operand.vmem [shape: f32[1,256], index: 8, kind: input, shape index: {}]   ;;  %s5549_s9 = inlined_call_operand.vmem [shape: f32[32,128], index: 9, kind: input, shape index: {}]   ;;  %s5550_s10 = inlined_call_operand.vmem [shape: f32[32,128], index: 10, kind: input, shape index: {}]   ;;  %s5551_s11 = inlined_call_operand.vmem [shape: f32[32,128], index: 11, kind: input, shape index: {}]   ;;  %s5552_s12 = inlined_call_operand.vmem [shape: f32[32,128], index: 12, kind: input, shape index: {}]   ;;  %s5553_s13 = inlined_call_operand.vmem [shape: f32[32,128], index: 13, kind: input, shape index: {}]   ;;  %s5554_s14 = inlined_call_operand.vmem [shape: f32[32,128], index: 14, kind: input, shape index: {}]   ;;  %s5555_s15 = inlined_call_operand.vmem [shape: f32[32,16], index: 15, kind: input, shape index: {}]   ;;  %s5556_s16 = inlined_call_operand.vmem [shape: f32[32,16], index: 16, kind: input, shape index: {}]   ;;  %s5557_s17 = inlined_call_operand.vmem [shape: f32[1,16], index: 17, kind: input, shape index: {}]   ;;  %s5558_s18 = inlined_call_operand.vmem [shape: f32[16,2], index: 18, kind: input, shape index: {}]   ;;  %s5559_s19 = inlined_call_operand.vmem [shape: f32[1,2], index: 19, kind: input, shape index: {}]   ;;  %s5560_s20 = inlined_call_operand.hbm [shape: f32[2,2], index: 20, kind: output, shape index: {0}]   ;;  %s5561_s21 = inlined_call_operand.hbm [shape: f32[2,16], index: 21, kind: output, shape index: {1}]  }
   0x1   :  { %5566 = sst [smem:[#allocation8_spill]] %s5540_s0 }
   0x2   :  { %5567 = sst [smem:[#allocation9_spill]] %s5541_s1 }
   0x3   :  { %5568 = sst [smem:[#allocation10_spill]] %s5542_s2 }
   0x4   :  { %5569 = sst [smem:[#allocation11_spill]] %s5543_s3 }
   0x5   :  { %5570 = sst [smem:[#allocation12_spill]] %s5544_s4 }
   0x6   :  { %5571 = sst [smem:[#allocation13_spill]] %s5545_s5 }
   0x7   :  { %27 = vsyncpa [#allocation3], 0  ;;  %v4520_v0 = vld [vmem:[%s5549_s9 + $0x18] sm:$0xff]  ;;  %v4525_v1 = vld [vmem:[%s5549_s9 + $0x10] sm:$0xff]  ;;  %s5572_s29 = sld [smem:[#allocation9_spill]]  ;;  %vm85_vm0 = vcmask 254976  }
   0x8   :  { %273 = vmatpush.msra.mxu2 %v4520_v0  ;;  %v4537_v4 = vld [vmem:[%s5549_s9 + $0x8] sm:$0xff]  ;;  %s5573_s2 = sld [smem:[#allocation8_spill]]  ;;  %338 = vmatpush.msra.mxu3 %v4520_v0  ;;  %v4569_v11 = vld [vmem:[%s5549_s9] sm:$0xff] }
   0xa   :  { %274 = vmatpush.msra.mxu2 %v4525_v1  ;;  %339 = vmatpush.msra.mxu3 %v4525_v1 }
   0xc   :  { %275 = vmatpush.msra.mxu2 %v4537_v4  ;;  %340 = vmatpush.msra.mxu3 %v4537_v4 }
   0xd   :  { %v142_v2 = vld [vmem:[%s5572_s29 + $0x30] sm:$0xff]  ;;  %v140_v3 = vld [vmem:[%s5572_s29 + $0x20] sm:$0xff] }
   0xe   :  { %192 = vmatpush.msra.mxu0 %v142_v2  ;;  %v138_v5 = vld [vmem:[%s5572_s29 + $0x10] sm:$0xff]  ;;  %v4545_v6 = vld [vmem:[%s5573_s2] sm:$0x3]  ;;  %v4552_v7 = vld [vmem:[%s5573_s2 + $0x2] sm:$0x3]  ;;  %276 = vmatpush.msra.mxu2 %v4569_v11 }
   0xf   :  { %v4557_v8 = vld [vmem:[%s5573_s2 + $0x4] sm:$0x3]  ;;  %v4562_v9 = vld [vmem:[%s5573_s2 + $0x6] sm:$0x3]  ;;  %v77_v10 = vmul.f32 %v4545_v6, %v4545_v6  ;;  %v4577_v13 = vld [vmem:[%s5573_s2 + $0x8] sm:$0x3]  ;;  %v78_v14 = vmul.f32 %v4552_v7, %v4552_v7 }
  0x10   :  { %193 = vmatpush.msra.mxu0 %v140_v3  ;;  %v136_v12 = vld [vmem:[%s5572_s29] sm:$0xff]  ;;  %v79_v15 = vmul.f32 %v4557_v8, %v4557_v8  ;;  %v80_v16 = vmul.f32 %v4562_v9, %v4562_v9  ;;  %v4590_v17 = vld [vmem:[%s5573_s2 + $0xa] sm:$0x3]  ;;  %v81_v19 = vmul.f32 %v4577_v13, %v4577_v13  ;;  %v4602_v22 = vld [vmem:[%s5573_s2 + $0xc] sm:$0x3] }
  0x11   :  { %v86_v18 = vsel %vm85_vm0, %v77_v10, 0.0  ;;  %v87_v20 = vsel %vm85_vm0, %v78_v14, 0.0 }
  0x12   :  { %194 = vmatpush.msra.mxu0 %v138_v5  ;;  %v89_v21 = vsel %vm85_vm0, %v79_v15, 0.0  ;;  %v88_v23 = vadd.f32 %v87_v20, %v86_v18 }
  0x14   :  { %195 = vmatpush.msra.mxu0 %v136_v12 }
  0x15   :  { %28 = vsyncpa [#allocation5], 0  ;;  %v4402_v24 = vmov 0.0   ;;  %v82_v25 = vmul.f32 %v4590_v17, %v4590_v17  ;;  %v91_v26 = vsel %vm85_vm0, %v80_v16, 0.0  ;;  %341 = vmatpush.msra.mxu3 %v4569_v11  ;;  %v4612_v27 = vld [vmem:[%s5573_s2 + $0xe] sm:$0x3]  ;;  %v90_v28 = vadd.f32 %v89_v21, %v88_v23  ;;  %403 = vmatpush.msrb.mxu2 %v4520_v0 }
  0x16   :  { %277 = vmatmul.f32.vlgmr.msra.gmra.mxu2 %v4402_v24  ;;  %v83_v29 = vmul.f32 %v4602_v22, %v4602_v22  ;;  %v93_v30 = vsel %vm85_vm0, %v81_v19, 0.0  ;;  %533 = vmatpush.msrb.mxu0 %v4520_v0  ;;  %v84_v32 = vmul.f32 %v4612_v27, %v4612_v27  ;;  %vm175_vm7 = vcmask 261120   ;;  %s5574_s0 = sld [smem:[#allocation10_spill]]  ;;  %s4403_s4 = smov 64  }
  0x17   :  { %468 = vmatpush.msrb.mxu3 %v4520_v0  ;;  %v92_v31 = vadd.f32 %v91_v26, %v90_v28  ;;  %404 = vmatpush.msrb.mxu2 %v4525_v1  ;;  %v95_v33 = vsel %vm85_vm0, %v82_v25, 0.0  ;;  %s4404_s30 = smov 32   ;;  %s5575_s1 = sld [smem:[#allocation12_spill]] }
  0x18   :  { %534 = vmatpush.msrb.mxu0 %v4525_v1  ;;  %v97_v35 = vsel %vm85_vm0, %v83_v29, 0.0  ;;  %v99_v37 = vsel %vm85_vm0, %v84_v32, 0.0  ;;  %s5576_s24 = sld [smem:[#allocation11_spill]]  ;;  %s3823_s9 = sshll.u32 %s5560_s20, 4  ;;  %s3824_s9 = int_to_ptr.hbm [resolvable:$true] %s3823_s9 }
  0x19   :  { %469 = vmatpush.msrb.mxu3 %v4525_v1  ;;  %v94_v34 = vadd.f32 %v93_v30, %v92_v31  ;;  %405 = vmatpush.msrb.mxu2 %v4537_v4  ;;  %s5577_s22 = sld [smem:[#allocation13_spill]] }
  0x1a   :  { %535 = vmatpush.msrb.mxu0 %v4537_v4 }
  0x1b   :  { %470 = vmatpush.msrb.mxu3 %v4537_v4  ;;  %v96_v36 = vadd.f32 %v95_v33, %v94_v34  ;;  %406 = vmatpush.msrb.mxu2 %v4569_v11 }
  0x1c   :  { %536 = vmatpush.msrb.mxu0 %v4569_v11  ;;  %v4655_v5 = vld [vmem:[%s5574_s0] sm:$0x3] }
  0x1d   :  { %471 = vmatpush.msrb.mxu3 %v4569_v11  ;;  %663 = vmatpush.msra.mxu2 %v4520_v0  ;;  %v98_v38 = vadd.f32 %v97_v35, %v96_v36 }
  0x1f   :  { %664 = vmatpush.msra.mxu2 %v4525_v1  ;;  %v100_v39 = vadd.f32 %v99_v37, %v98_v38 }
  0x21   :  { %665 = vmatpush.msra.mxu2 %v4537_v4  ;;  %3966 = vrsqrt.f32 %v100_v39  ;;  %vm108_vm1 = vcmp.eq.f32.partialorder %v100_v39, inf  ;;  %v111_v46 = vand.u32 2147483648, %v100_v39  ;;  %vm110_vm2 = vcmp.eq.f32.partialorder %v100_v39, 0.0 }
  0x23   :  { %666 = vmatpush.msra.mxu2 %v4569_v11 }
  0x27   :  { %v3967_v40 = vpop.eup %3966 }
  0x28   :  { %v102_v41 = vmul.f32 %v3967_v40, %v100_v39 }
  0x2a   :  { %v103_v42 = vmul.f32 %v3967_v40, %v102_v41 }
  0x2c   :  { %v104_v43 = vmul.f32 0.5, %v103_v42 }
  0x2e   :  { %v105_v44 = vsub.f32 1.5, %v104_v43 }
  0x30   :  { %v106_v45 = vmul.f32 %v3967_v40, %v105_v44 }
  0x32   :  { %v107_v47 = vmul.f32 %v106_v45, %v100_v39 }
  0x34   :  { %v109_v48 = vsel %vm108_vm1, %v100_v39, %v107_v47 }
  0x35   :  { %v112_v49 = vsel %vm110_vm2, %v111_v46, %v109_v48 }
  0x36   :  { %v113_v50 = vmax.f32 %v112_v49, 1e-12 }
  0x38   :  { %3968 = vrcp.f32 %v113_v50  ;;  %v125_v53 = vand.u32 2147483648, %v113_v50  ;;  %vm119_vm3 = vweird.f32 %v113_v50  ;;  %v123_v55 = vand.u32 2147483647, %v113_v50 }
  0x3a   :  { %v126_v57 = vor.u32 1.1754944e-38, %v125_v53  ;;  %vm124_vm6 = vcmp.eq.f32.partialorder %v123_v55, 8.507059e+37 }
  0x3e   :  { %v3969_v51 = vpop.eup %3968 }
  0x3f   :  { %v115_v52 = vmul.f32 %v3969_v51, %v113_v50  ;;  %vm120_vm4 = vweird.f32 %v3969_v51 }
  0x40   :  { %vm121_vm5 = vmor %vm119_vm3, %vm120_vm4 }
  0x41   :  { %v116_v54 = vsub.f32 1.0, %v115_v52 }
  0x43   :  { %v117_v56 = vmul.f32 %v3969_v51, %v116_v54 }
  0x45   :  { %v118_v58 = vadd.f32 %v3969_v51, %v117_v56 }
  0x47   :  { %v122_v59 = vsel %vm121_vm5, %v3969_v51, %v118_v58 }
  0x48   :  { %v4638_v60 = vsel %vm124_vm6, %v126_v57, %v122_v59 }
  0x49   :  { %v128_v61 = vmul.f32 %v4638_v60, %v4545_v6  ;;  %v129_v62 = vmul.f32 %v4638_v60, %v4552_v7  ;;  %v130_v63 = vmul.f32 %v4638_v60, %v4557_v8  ;;  %v131_v2 = vmul.f32 %v4638_v60, %v4562_v9 }
  0x4a   :  { %v146_v6 = vperm.slane %v4655_v5, 0 }
  0x4b   :  { %158 = vst [vmem:[#allocation1] ss:$4 sm:$0xff] %v128_v61 }
  0x4c   :  { %160 = vst [vmem:[#allocation1 + $0x1] ss:$4 sm:$0xff] %v129_v62 }
  0x4d   :  { %162 = vst [vmem:[#allocation1 + $0x2] ss:$4 sm:$0xff] %v130_v63 }
  0x4e   :  { %164 = vst [vmem:[#allocation1 + $0x3] ss:$4 sm:$0xff] %v131_v2 }
  0x55   :  { %v4648_v3 = vld.sshfl [vmem:[#allocation1] sm:$0xff pattern:$0x73625140] }
  0x56   :  { %3848 = vmatmul.msk.f32.vlgmr.msra.gmra.mxu0 %vm175_vm7, %v4648_v3 }
  0x99   :  { %v278_v8 = vpop.f32.mrf.mxu2 }
  0xd3   :  { %v197_v7 = vpop.f32.mrf.mxu0 }
  0xd4   :  { %v4660_v9 = vadd.f32 %v197_v7, %v146_v6 }
  0xd6   :  { %v281_v10 = vadd.f32 %v278_v8, %v4660_v9  ;;  %v228_v41 = vrot.slane %v4660_v9, 2 }
  0xd8   :  { %3970 = vtanh.f32 %v281_v10  ;;  %v3852_v14 = vmul.f32 -1.442695, %v281_v10 }
  0xda   :  { %3972 = vpow2.f32 %v3852_v14  ;;  %v229_v14 = vrot.slane %v4660_v9, 4 }
  0xde   :  { %v3971_v12 = vpop.eup %3970 }
  0xdf   :  { %304 = vrot.lane.b32.xlu0 %v3971_v12, %s4403_s4 }
  0xe0   :  { %v3973_v15 = vpop.eup %3972 }
  0xe1   :  { %v285_v16 = vadd.f32 1.0, %v3973_v15 }
  0xe3   :  { %3974 = vrcp.f32 %v285_v16  ;;  %v297_v25 = vand.u32 2147483648, %v285_v16  ;;  %vm291_vm9 = vweird.f32 %v285_v16  ;;  %v295_v26 = vand.u32 2147483647, %v285_v16 }
  0xe5   :  { %v298_v29 = vor.u32 1.1754944e-38, %v297_v25  ;;  %vm296_vm11 = vcmp.eq.f32.partialorder %v295_v26, 8.507059e+37 }
  0xe9   :  { %v3975_v18 = vpop.eup %3974 }
  0xea   :  { %v287_v19 = vmul.f32 %v3975_v18, %v285_v16  ;;  %vm292_vm8 = vweird.f32 %v3975_v18 }
  0xeb   :  { %vm293_vm10 = vmor %vm291_vm9, %vm292_vm8 }
  0xec   :  { %v288_v20 = vsub.f32 1.0, %v287_v19 }
  0xee   :  { %v289_v21 = vmul.f32 %v3975_v18, %v288_v20 }
  0xf0   :  { %v290_v23 = vadd.f32 %v3975_v18, %v289_v21 }
  0xf2   :  { %v294_v28 = vsel %vm293_vm10, %v3975_v18, %v290_v23 }
  0xf3   :  { %v299_v31 = vsel %vm296_vm11, %v298_v29, %v294_v28 }
  0xf4   :  { %v302_v33 = vmul.f32 0.0, %v299_v31 }
 0x151   :  { %v305_v30 = vpop.permute.xlu0 %304 }
 0x152   :  { %v307_v32 = vmul.f32 %v305_v30, %v299_v31 }
 0x154   :  { %309 = vrot.lane.b32.xlu0 %v307_v32, %s4404_s30 }
 0x1c6   :  { %v310_v34 = vpop.permute.xlu0 %309 }
 0x1c7   :  { %v312_v35 = vadd.f32 %v310_v34, %v302_v33 }
 0x1c9   :  { %3976 = vtanh.f32 %v312_v35 }
 0x1cf   :  { %v3977_v36 = vpop.eup %3976 }
 0x1d0   :  { %315 = vrot.lane.b32.xlu1 %v3977_v36, %s4403_s4 }
 0x242   :  { %v316_v37 = vpop.permute.xlu1 %315 }
 0x243   :  { %v4666_v38 = vmul.f32 %v316_v37, %v299_v31 }
 0x245   :  { %320 = vst [vmem:[#allocation1] ss:$4 sm:$0xff] %v4666_v38 }
 0x24c   :  { %v321_v39 = vld.sshfl [vmem:[#allocation1] sm:$0xff pattern:$0x73625140] }
 0x24d   :  { %322 = vrot.lane.b32.xlu1 %v321_v39, %s4404_s30 }
 0x2bf   :  { %v323_v40 = vpop.permute.xlu1 %322 }
 0x2c0   :  { %3853 = vmatmul.msk.f32.vlgmr.msra.gmra.mxu3 %vm175_vm7, %v323_v40 }
 0x2c1   :  { %728 = vmatpush.msra.mxu3 %v4520_v0 }
 0x2c3   :  { %729 = vmatpush.msra.mxu3 %v4525_v1 }
 0x2c5   :  { %730 = vmatpush.msra.mxu3 %v4537_v4 }
 0x2c7   :  { %731 = vmatpush.msra.mxu3 %v4569_v11 }
 0x343   :  { %v343_v42 = vpop.f32.mrf.mxu3 }
 0x344   :  { %v346_v43 = vadd.f32 %v343_v42, %v228_v41 }
 0x346   :  { %3978 = vtanh.f32 %v346_v43  ;;  %v3854_v45 = vmul.f32 -1.442695, %v346_v43 }
 0x348   :  { %3980 = vpow2.f32 %v3854_v45 }
 0x34c   :  { %v3979_v44 = vpop.eup %3978 }
 0x34d   :  { %369 = vrot.lane.b32.xlu2 %v3979_v44, %s4403_s4 }
 0x34e   :  { %v3981_v46 = vpop.eup %3980 }
 0x34f   :  { %v350_v47 = vadd.f32 1.0, %v3981_v46  ;;  %v230_v46 = vrot.slane %v4660_v9, 6 }
 0x351   :  { %3982 = vrcp.f32 %v350_v47  ;;  %v362_v53 = vand.u32 2147483648, %v350_v47  ;;  %vm356_vm13 = vweird.f32 %v350_v47  ;;  %v360_v54 = vand.u32 2147483647, %v350_v47 }
 0x353   :  { %v363_v56 = vor.u32 1.1754944e-38, %v362_v53  ;;  %vm361_vm15 = vcmp.eq.f32.partialorder %v360_v54, 8.507059e+37 }
 0x357   :  { %v3983_v48 = vpop.eup %3982 }
 0x358   :  { %v352_v49 = vmul.f32 %v3983_v48, %v350_v47  ;;  %vm357_vm12 = vweird.f32 %v3983_v48 }
 0x359   :  { %vm358_vm14 = vmor %vm356_vm13, %vm357_vm12 }
 0x35a   :  { %v353_v50 = vsub.f32 1.0, %v352_v49 }
 0x35c   :  { %v354_v51 = vmul.f32 %v3983_v48, %v353_v50 }
 0x35e   :  { %v355_v52 = vadd.f32 %v3983_v48, %v354_v51 }
 0x360   :  { %v359_v55 = vsel %vm358_vm14, %v3983_v48, %v355_v52 }
 0x361   :  { %v364_v58 = vsel %vm361_vm15, %v363_v56, %v359_v55 }
 0x362   :  { %v367_v61 = vmul.f32 %v364_v58, %v312_v35 }
 0x3a7   :  { %v370_v57 = vpop.permute.xlu2 %369 }
 0x3a8   :  { %v372_v59 = vmul.f32 %v370_v57, %v364_v58 }
 0x3aa   :  { %374 = vrot.lane.b32.xlu2 %v372_v59, %s4404_s30 }
 0x404   :  { %v375_v62 = vpop.permute.xlu2 %374 }
 0x405   :  { %v377_v63 = vadd.f32 %v375_v62, %v367_v61 }
 0x407   :  { %3984 = vtanh.f32 %v377_v63 }
 0x40d   :  { %v3985_v2 = vpop.eup %3984 }
 0x40e   :  { %380 = vrot.lane.b32.xlu0 %v3985_v2, %s4403_s4 }
 0x480   :  { %v381_v7 = vpop.permute.xlu0 %380 }
 0x481   :  { %v4679_v8 = vmul.f32 %v381_v7, %v364_v58 }
 0x483   :  { %385 = vst [vmem:[#allocation1] ss:$4 sm:$0xff] %v4679_v8 }
 0x48a   :  { %v386_v10 = vld.sshfl [vmem:[#allocation1] sm:$0xff pattern:$0x73625140] }
 0x48b   :  { %387 = vrot.lane.b32.xlu1 %v386_v10, %s4404_s30 }
 0x4fd   :  { %v388_v12 = vpop.permute.xlu1 %387 }
 0x4fe   :  { %3855 = vmatmul.msk.f32.vlgmr.msrb.gmra.mxu2 %vm175_vm7, %v388_v12 }
 0x581   :  { %v408_v15 = vpop.f32.mrf.mxu2 }
 0x582   :  { %v411_v16 = vadd.f32 %v408_v15, %v229_v14  ;;  %v132_v15 = vmul.f32 %v4638_v60, %v4577_v13 }
 0x584   :  { %3986 = vtanh.f32 %v411_v16  ;;  %v3856_v19 = vmul.f32 -1.442695, %v411_v16  ;;  %v133_v16 = vmul.f32 %v4638_v60, %v4590_v17  ;;  %166 = vst [vmem:[#allocation1 + $0x20] ss:$4 sm:$0xff] %v132_v15 }
 0x586   :  { %3988 = vpow2.f32 %v3856_v19  ;;  %v135_v19 = vmul.f32 %v4638_v60, %v4612_v27  ;;  %168 = vst [vmem:[#allocation1 + $0x21] ss:$4 sm:$0xff] %v133_v16 }
 0x588   :  { %172 = vst [vmem:[#allocation1 + $0x23] ss:$4 sm:$0xff] %v135_v19 }
 0x58a   :  { %v3987_v18 = vpop.eup %3986 }
 0x58b   :  { %434 = vrot.lane.b32.xlu2 %v3987_v18, %s4403_s4  ;;  %v134_v18 = vmul.f32 %v4638_v60, %v4602_v22 }
 0x58c   :  { %v3989_v20 = vpop.eup %3988 }
 0x58d   :  { %v415_v21 = vadd.f32 1.0, %v3989_v20  ;;  %170 = vst [vmem:[#allocation1 + $0x22] ss:$4 sm:$0xff] %v134_v18 }
 0x58f   :  { %3990 = vrcp.f32 %v415_v21  ;;  %v427_v30 = vand.u32 2147483648, %v415_v21  ;;  %vm421_vm1 = vweird.f32 %v415_v21  ;;  %v425_v31 = vand.u32 2147483647, %v415_v21 }
 0x591   :  { %v428_v33 = vor.u32 1.1754944e-38, %v427_v30  ;;  %vm426_vm3 = vcmp.eq.f32.partialorder %v425_v31, 8.507059e+37 }
 0x594   :  { %v4705_v20 = vld.sshfl [vmem:[#allocation1 + $0x20] sm:$0xff pattern:$0x73625140] }
 0x595   :  { %v3991_v23 = vpop.eup %3990  ;;  %3849 = vmatmul.msk.f32.gmra.mxu0 %vm175_vm7, %v4705_v20 }
 0x596   :  { %v417_v25 = vmul.f32 %v3991_v23, %v415_v21  ;;  %vm422_vm0 = vweird.f32 %v3991_v23 }
 0x597   :  { %vm423_vm2 = vmor %vm421_vm1, %vm422_vm0 }
 0x598   :  { %v418_v26 = vsub.f32 1.0, %v417_v25 }
 0x59a   :  { %v419_v28 = vmul.f32 %v3991_v23, %v418_v26 }
 0x59c   :  { %v420_v29 = vadd.f32 %v3991_v23, %v419_v28 }
 0x59e   :  { %v424_v32 = vsel %vm423_vm2, %v3991_v23, %v420_v29 }
 0x59f   :  { %v429_v35 = vsel %vm426_vm3, %v428_v33, %v424_v32 }
 0x5a0   :  { %v432_v37 = vmul.f32 %v429_v35, %v377_v63 }
 0x5e5   :  { %v435_v34 = vpop.permute.xlu2 %434 }
 0x5e6   :  { %v437_v36 = vmul.f32 %v435_v34, %v429_v35 }
 0x5e8   :  { %439 = vrot.lane.b32.xlu0 %v437_v36, %s4404_s30 }
 0x612   :  { %v200_v27 = vpop.f32.mrf.mxu0 }
 0x613   :  { %v4716_v60 = vadd.f32 %v200_v27, %v146_v6 }
 0x65a   :  { %v440_v39 = vpop.permute.xlu0 %439 }
 0x65b   :  { %v442_v40 = vadd.f32 %v440_v39, %v432_v37 }
 0x65d   :  { %3992 = vtanh.f32 %v442_v40 }
 0x663   :  { %v3993_v41 = vpop.eup %3992 }
 0x664   :  { %445 = vrot.lane.b32.xlu1 %v3993_v41, %s4403_s4 }
 0x6d6   :  { %v446_v42 = vpop.permute.xlu1 %445 }
 0x6d7   :  { %v4688_v43 = vmul.f32 %v446_v42, %v429_v35 }
 0x6d9   :  { %450 = vst [vmem:[#allocation1] ss:$4 sm:$0xff] %v4688_v43 }
 0x6e0   :  { %v451_v44 = vld.sshfl [vmem:[#allocation1] sm:$0xff pattern:$0x73625140] }
 0x6e1   :  { %452 = vrot.lane.b32.xlu2 %v451_v44, %s4404_s30 }
 0x73b   :  { %v453_v45 = vpop.permute.xlu2 %452 }
 0x73c   :  { %3857 = vmatmul.msk.f32.vlgmr.msrb.gmra.mxu3 %vm175_vm7, %v453_v45 }
 0x7bf   :  { %v473_v47 = vpop.f32.mrf.mxu3 }
 0x7c0   :  { %v476_v48 = vadd.f32 %v473_v47, %v230_v46 }
 0x7c2   :  { %3994 = vtanh.f32 %v476_v48  ;;  %v3858_v50 = vmul.f32 -1.442695, %v476_v48  ;;  %v143_v48 = vld [vmem:[%s5572_s29 + $0x38] sm:$0xff] }
 0x7c3   :  { %215 = vmatpush.msra.mxu1 %v143_v48 }
 0x7c4   :  { %3996 = vpow2.f32 %v3858_v50  ;;  %v4734_v50 = vld [vmem:[%s5550_s10 + $0x18] sm:$0xff] }
 0x7c5   :  { %790 = vmatpush.msra.mxu0 %v4734_v50  ;;  %920 = vmatpush.msrb.mxu2 %v4734_v50 }
 0x7c6   :  { %985 = vmatpush.msrb.mxu3 %v4734_v50 }
 0x7c8   :  { %v3995_v49 = vpop.eup %3994 }
 0x7c9   :  { %499 = vrot.lane.b32.xlu0 %v3995_v49, %s4403_s4  ;;  %v141_v49 = vld [vmem:[%s5572_s29 + $0x28] sm:$0xff] }
 0x7ca   :  { %v3997_v51 = vpop.eup %3996  ;;  %216 = vmatpush.msra.mxu1 %v141_v49 }
 0x7cb   :  { %v480_v52 = vadd.f32 1.0, %v3997_v51  ;;  %v4739_v51 = vld [vmem:[%s5550_s10 + $0x10] sm:$0xff] }
 0x7cc   :  { %791 = vmatpush.msra.mxu0 %v4739_v51  ;;  %921 = vmatpush.msrb.mxu2 %v4739_v51 }
 0x7cd   :  { %3998 = vrcp.f32 %v480_v52  ;;  %v492_v58 = vand.u32 2147483648, %v480_v52  ;;  %vm486_vm5 = vweird.f32 %v480_v52  ;;  %v490_v9 = vand.u32 2147483647, %v480_v52  ;;  %986 = vmatpush.msrb.mxu3 %v4739_v51 }
 0x7cf   :  { %v493_v61 = vor.u32 1.1754944e-38, %v492_v58  ;;  %vm491_vm8 = vcmp.eq.f32.partialorder %v490_v9, 8.507059e+37  ;;  %v231_v9 = vrot.slane %v4716_v60, 2 }
 0x7d3   :  { %v3999_v53 = vpop.eup %3998 }
 0x7d4   :  { %v482_v54 = vmul.f32 %v3999_v53, %v480_v52  ;;  %vm487_vm4 = vweird.f32 %v3999_v53  ;;  %v139_v52 = vld [vmem:[%s5572_s29 + $0x18] sm:$0xff] }
 0x7d5   :  { %vm488_vm6 = vmor %vm486_vm5, %vm487_vm4  ;;  %217 = vmatpush.msra.mxu1 %v139_v52 }
 0x7d6   :  { %v483_v55 = vsub.f32 1.0, %v482_v54  ;;  %v137_v54 = vld [vmem:[%s5572_s29 + $0x8] sm:$0xff] }
 0x7d7   :  { %218 = vmatpush.msra.mxu1 %v137_v54 }
 0x7d8   :  { %v484_v56 = vmul.f32 %v3999_v53, %v483_v55  ;;  %v4760_v55 = vld [vmem:[%s5550_s10] sm:$0xff]  ;;  %3850 = vmatmul.msk.f32.vlgmr.msra.gmra.mxu1 %vm175_vm7, %v4648_v3 }
 0x7d9   :  { %598 = vmatpush.msrb.mxu1 %v4520_v0 }
 0x7da   :  { %v485_v57 = vadd.f32 %v3999_v53, %v484_v56 }
 0x7db   :  { %599 = vmatpush.msrb.mxu1 %v4525_v1 }
 0x7dc   :  { %v489_v59 = vsel %vm488_vm6, %v3999_v53, %v485_v57  ;;  %v4749_v53 = vld [vmem:[%s5550_s10 + $0x8] sm:$0xff] }
 0x7dd   :  { %v494_v63 = vsel %vm491_vm8, %v493_v61, %v489_v59  ;;  %792 = vmatpush.msra.mxu0 %v4749_v53  ;;  %922 = vmatpush.msrb.mxu2 %v4749_v53 }
 0x7de   :  { %v497_v7 = vmul.f32 %v494_v63, %v442_v40  ;;  %987 = vmatpush.msrb.mxu3 %v4749_v53  ;;  %600 = vmatpush.msrb.mxu1 %v4537_v4 }
 0x7df   :  { %793 = vmatpush.msra.mxu0 %v4760_v55  ;;  %923 = vmatpush.msrb.mxu2 %v4760_v55 }
 0x7e0   :  { %988 = vmatpush.msrb.mxu3 %v4760_v55  ;;  %601 = vmatpush.msrb.mxu1 %v4569_v11  ;;  %v147_v11 = vperm.slane %v4655_v5, 1 }
 0x7e1   :  { %3851 = vmatmul.msk.f32.gmra.mxu1 %vm175_vm7, %v4705_v20 }
 0x7e2   :  { %855 = vmatpush.msra.mxu1 %v4734_v50 }
 0x7e4   :  { %856 = vmatpush.msra.mxu1 %v4739_v51 }
 0x7e6   :  { %857 = vmatpush.msra.mxu1 %v4749_v53 }
 0x7e8   :  { %858 = vmatpush.msra.mxu1 %v4760_v55 }
 0x83b   :  { %v500_v62 = vpop.permute.xlu0 %499 }
 0x83c   :  { %v502_v2 = vmul.f32 %v500_v62, %v494_v63 }
 0x83e   :  { %504 = vrot.lane.b32.xlu1 %v502_v2, %s4404_s30 }
 0x855   :  { %v220_v3 = vpop.f32.mrf.mxu1 }
 0x856   :  { %v4791_v56 = vadd.f32 %v220_v3, %v147_v11 }
 0x85e   :  { %v223_v58 = vpop.f32.mrf.mxu1 }
 0x8b0   :  { %v505_v10 = vpop.permute.xlu1 %504 }
 0x8b1   :  { %v507_v12 = vadd.f32 %v505_v10, %v497_v7 }
 0x8b3   :  { %4000 = vtanh.f32 %v507_v12 }
 0x8b9   :  { %v4001_v14 = vpop.eup %4000 }
 0x8ba   :  { %510 = vrot.lane.b32.xlu2 %v4001_v14, %s4403_s4 }
 0x914   :  { %v511_v21 = vpop.permute.xlu2 %510 }
 0x915   :  { %v4709_v13 = vmul.f32 %v511_v21, %v494_v63 }
 0x917   :  { %515 = vst [vmem:[#allocation1] ss:$4 sm:$0xff] %v4709_v13 }
 0x91e   :  { %v516_v17 = vld.sshfl [vmem:[#allocation1] sm:$0xff pattern:$0x73625140] }
 0x91f   :  { %517 = vrot.lane.b32.xlu0 %v516_v17, %s4404_s30 }
 0x991   :  { %v518_v22 = vpop.permute.xlu0 %517 }
 0x992   :  { %3859 = vmatmul.msk.f32.vlgmr.msrb.gmra.mxu0 %vm175_vm7, %v518_v22 }
 0x993   :  { %1050 = vmatpush.msrb.mxu0 %v4734_v50 }
 0x995   :  { %1051 = vmatpush.msrb.mxu0 %v4739_v51 }
 0x997   :  { %1052 = vmatpush.msrb.mxu0 %v4749_v53 }
 0x999   :  { %1053 = vmatpush.msrb.mxu0 %v4760_v55 }
 0x99a   :  { %794 = vmatmul.f32.vlgmr.msra.gmra.mxu0 %v4402_v24 }
 0xa0f   :  { %v538_v23 = vpop.f32.mrf.mxu0 }
 0xa10   :  { %v541_v25 = vadd.f32 %v538_v23, %v4716_v60 }
 0xa12   :  { %4002 = vtanh.f32 %v541_v25  ;;  %v3860_v28 = vmul.f32 -1.442695, %v541_v25  ;;  %v4802_v25 = vadd.f32 %v223_v58, %v147_v11 }
 0xa14   :  { %4004 = vpow2.f32 %v3860_v28  ;;  %v247_v28 = vrot.slane %v4802_v25, 6 }
 0xa18   :  { %v4003_v26 = vpop.eup %4002 }
 0xa19   :  { %564 = vrot.lane.b32.xlu1 %v4003_v26, %s4403_s4 }
 0xa1a   :  { %v4005_v29 = vpop.eup %4004 }
 0xa1b   :  { %v545_v30 = vadd.f32 1.0, %v4005_v29  ;;  %v795_v29 = vpop.f32.mrf.mxu0 }
 0xa1d   :  { %4006 = vrcp.f32 %v545_v30  ;;  %v557_v6 = vand.u32 2147483648, %v545_v30  ;;  %vm551_vm10 = vweird.f32 %v545_v30  ;;  %v555_v36 = vand.u32 2147483647, %v545_v30 }
 0xa1f   :  { %v558_v39 = vor.u32 1.1754944e-38, %v557_v6  ;;  %vm556_vm12 = vcmp.eq.f32.partialorder %v555_v36, 8.507059e+37 }
 0xa23   :  { %v4007_v31 = vpop.eup %4006 }
 0xa24   :  { %v547_v32 = vmul.f32 %v4007_v31, %v545_v30  ;;  %vm552_vm9 = vweird.f32 %v4007_v31 }
 0xa25   :  { %vm553_vm11 = vmor %vm551_vm10, %vm552_vm9 }
 0xa26   :  { %v548_v33 = vsub.f32 1.0, %v547_v32 }
 0xa28   :  { %v549_v34 = vmul.f32 %v4007_v31, %v548_v33 }
 0xa2a   :  { %v550_v35 = vadd.f32 %v4007_v31, %v549_v34 }
 0xa2c   :  { %v554_v37 = vsel %vm553_vm11, %v4007_v31, %v550_v35  ;;  %v798_v31 = vadd.f32 %v795_v29, %v247_v28 }
 0xa2d   :  { %v559_v41 = vsel %vm556_vm12, %v558_v39, %v554_v37 }
 0xa2e   :  { %v562_v44 = vmul.f32 %v559_v41, %v507_v12  ;;  %v3867_v36 = vmul.f32 -1.442695, %v798_v31 }
 0xa8b   :  { %v565_v40 = vpop.permute.xlu1 %564 }
 0xa8c   :  { %v567_v42 = vmul.f32 %v565_v40, %v559_v41 }
 0xa8e   :  { %569 = vrot.lane.b32.xlu2 %v567_v42, %s4404_s30  ;;  %v232_v42 = vrot.slane %v4716_v60, 4 }
 0xae8   :  { %v570_v45 = vpop.permute.xlu2 %569 }
 0xae9   :  { %v4721_v46 = vadd.f32 %v570_v45, %v562_v44 }
 0xaeb   :  { %4008 = vtanh.f32 %v4721_v46 }
 0xaf1   :  { %v4009_v47 = vpop.eup %4008 }
 0xaf2   :  { %575 = vrot.lane.b32.xlu0 %v4009_v47, %s4403_s4 }
 0xb64   :  { %v576_v0 = vpop.permute.xlu0 %575 }
 0xb65   :  { %v4785_v1 = vmul.f32 %v576_v0, %v559_v41 }
 0xb67   :  { %580 = vst [vmem:[#allocation1] ss:$4 sm:$0xff] %v4785_v1 }
 0xb6e   :  { %v581_v4 = vld.sshfl [vmem:[#allocation1] sm:$0xff pattern:$0x73625140] }
 0xb6f   :  { %582 = vrot.lane.b32.xlu1 %v581_v4, %s4404_s30 }
 0xbe1   :  { %v583_v57 = vpop.permute.xlu1 %582 }
 0xbe2   :  { %3861 = vmatmul.msk.f32.vlgmr.msrb.gmra.mxu1 %vm175_vm7, %v583_v57 }
 0xbe3   :  { %1115 = vmatpush.msrb.mxu1 %v4734_v50 }
 0xbe5   :  { %1116 = vmatpush.msrb.mxu1 %v4739_v51 }
 0xbe7   :  { %1117 = vmatpush.msrb.mxu1 %v4749_v53 }
 0xbe9   :  { %1118 = vmatpush.msrb.mxu1 %v4760_v55 }
 0xc5f   :  { %v603_v59 = vpop.f32.mrf.mxu1 }
 0xc60   :  { %v606_v61 = vadd.f32 %v603_v59, %v231_v9 }
 0xc62   :  { %4010 = vtanh.f32 %v606_v61  ;;  %v3862_v62 = vmul.f32 -1.442695, %v606_v61 }
 0xc64   :  { %4012 = vpow2.f32 %v3862_v62 }
 0xc68   :  { %v4011_v5 = vpop.eup %4010 }
 0xc69   :  { %629 = vrot.lane.b32.xlu2 %v4011_v5, %s4403_s4 }
 0xc6a   :  { %v4013_v63 = vpop.eup %4012 }
 0xc6b   :  { %v610_v2 = vadd.f32 1.0, %v4013_v63 }
 0xc6d   :  { %4014 = vrcp.f32 %v610_v2  ;;  %v622_v16 = vand.u32 2147483648, %v610_v2  ;;  %vm616_vm14 = vweird.f32 %v610_v2  ;;  %v620_v18 = vand.u32 2147483647, %v610_v2 }
 0xc6f   :  { %v623_v20 = vor.u32 1.1754944e-38, %v622_v16  ;;  %vm621_vm0 = vcmp.eq.f32.partialorder %v620_v18, 8.507059e+37 }
 0xc73   :  { %v4015_v7 = vpop.eup %4014 }
 0xc74   :  { %v612_v10 = vmul.f32 %v4015_v7, %v610_v2  ;;  %vm617_vm13 = vweird.f32 %v4015_v7 }
 0xc75   :  { %vm618_vm15 = vmor %vm616_vm14, %vm617_vm13 }
 0xc76   :  { %v613_v12 = vsub.f32 1.0, %v612_v10 }
 0xc78   :  { %v614_v14 = vmul.f32 %v4015_v7, %v613_v12 }
 0xc7a   :  { %v615_v15 = vadd.f32 %v4015_v7, %v614_v14 }
 0xc7c   :  { %v619_v19 = vsel %vm618_vm15, %v4015_v7, %v615_v15 }
 0xc7d   :  { %v624_v17 = vsel %vm621_vm0, %v623_v20, %v619_v19 }
 0xc7e   :  { %v627_v27 = vmul.f32 %v624_v17, %v4721_v46 }
 0xcc3   :  { %v630_v21 = vpop.permute.xlu2 %629 }
 0xcc4   :  { %v632_v22 = vmul.f32 %v630_v21, %v624_v17 }
 0xcc6   :  { %634 = vrot.lane.b32.xlu0 %v632_v22, %s4404_s30 }
 0xd38   :  { %v635_v23 = vpop.permute.xlu0 %634 }
 0xd39   :  { %v4804_v26 = vadd.f32 %v635_v23, %v627_v27 }
 0xd3b   :  { %4016 = vtanh.f32 %v4804_v26 }
 0xd3c   :  { %4018 = vtanh.f32 %v798_v31 }
 0xd3d   :  { %4020 = vpow2.f32 %v3867_v36 }
 0xd41   :  { %v4017_v30 = vpop.eup %4016 }
 0xd42   :  { %640 = vrot.lane.b32.xlu1 %v4017_v30, %s4403_s4  ;;  %v4019_v32 = vpop.eup %4018 }
 0xd43   :  { %v4021_v37 = vpop.eup %4020 }
 0xd44   :  { %v802_v39 = vadd.f32 1.0, %v4021_v37 }
 0xd46   :  { %4022 = vrcp.f32 %v802_v39  ;;  %vm808_vm1 = vweird.f32 %v802_v39  ;;  %v814_v48 = vand.u32 2147483648, %v802_v39  ;;  %v812_v52 = vand.u32 2147483647, %v802_v39 }
 0xd48   :  { %v815_v0 = vor.u32 1.1754944e-38, %v814_v48  ;;  %vm813_vm4 = vcmp.eq.f32.partialorder %v812_v52, 8.507059e+37 }
 0xd4a   :  { %821 = vrot.lane.b32.xlu1 %v4019_v32, %s4403_s4 }
 0xd4c   :  { %v4023_v40 = vpop.eup %4022 }
 0xd4d   :  { %v804_v41 = vmul.f32 %v4023_v40, %v802_v39  ;;  %vm809_vm2 = vweird.f32 %v4023_v40 }
 0xd4e   :  { %vm810_vm3 = vmor %vm808_vm1, %vm809_vm2 }
 0xd4f   :  { %v805_v44 = vsub.f32 1.0, %v804_v41 }
 0xd51   :  { %v806_v47 = vmul.f32 %v4023_v40, %v805_v44 }
 0xd53   :  { %v807_v49 = vadd.f32 %v4023_v40, %v806_v47 }
 0xd55   :  { %v811_v4 = vsel %vm810_vm3, %v4023_v40, %v807_v49 }
 0xd56   :  { %v816_v3 = vsel %vm813_vm4, %v815_v0, %v811_v4 }
 0xd57   :  { %v819_v19 = vmul.f32 0.0, %v816_v3 }
 0xdb4   :  { %v641_v33 = vpop.permute.xlu1 %640 }
 0xdb5   :  { %v4810_v34 = vmul.f32 %v641_v33, %v624_v17 }
 0xdb7   :  { %645 = vst [vmem:[#allocation1] ss:$4 sm:$0xff] %v4810_v34 }
 0xdbc   :  { %v822_v11 = vpop.permute.xlu1 %821 }
 0xdbd   :  { %v824_v57 = vmul.f32 %v822_v11, %v816_v3 }
 0xdbe   :  { %v646_v35 = vld.sshfl [vmem:[#allocation1] sm:$0xff pattern:$0x73625140] }
 0xdbf   :  { %647 = vrot.lane.b32.xlu2 %v646_v35, %s4404_s30 }
 0xe19   :  { %v648_v6 = vpop.permute.xlu2 %647 }
 0xe1a   :  { %3863 = vmatmul.msk.f32.vlgmr.msra.gmra.mxu2 %vm175_vm7, %v648_v6  ;;  %v246_v6 = vrot.slane %v4802_v25, 4 }
 0xe1b   :  { %1180 = vmatpush.msra.mxu2 %v4734_v50 }
 0xe1d   :  { %1181 = vmatpush.msra.mxu2 %v4739_v51 }
 0xe1f   :  { %1182 = vmatpush.msra.mxu2 %v4749_v53 }
 0xe21   :  { %1183 = vmatpush.msra.mxu2 %v4760_v55 }
 0xe9d   :  { %v668_v45 = vpop.f32.mrf.mxu2 }
 0xe9e   :  { %v671_v46 = vadd.f32 %v668_v45, %v232_v42 }
 0xea0   :  { %4024 = vtanh.f32 %v671_v46  ;;  %v3864_v58 = vmul.f32 -1.442695, %v671_v46 }
 0xea2   :  { %4026 = vpow2.f32 %v3864_v58 }
 0xea6   :  { %v4025_v54 = vpop.eup %4024 }
 0xea7   :  { %694 = vrot.lane.b32.xlu0 %v4025_v54, %s4403_s4 }
 0xea8   :  { %v4027_v9 = vpop.eup %4026 }
 0xea9   :  { %v675_v59 = vadd.f32 1.0, %v4027_v9 }
 0xeab   :  { %4028 = vrcp.f32 %v675_v59  ;;  %v687_v7 = vand.u32 2147483648, %v675_v59  ;;  %vm681_vm6 = vweird.f32 %v675_v59  ;;  %v685_v10 = vand.u32 2147483647, %v675_v59 }
 0xead   :  { %v688_v14 = vor.u32 1.1754944e-38, %v687_v7  ;;  %vm686_vm9 = vcmp.eq.f32.partialorder %v685_v10, 8.507059e+37 }
 0xeaf   :  { %826 = vrot.lane.b32.xlu0 %v824_v57, %s4404_s30 }
 0xeb1   :  { %v4029_v61 = vpop.eup %4028 }
 0xeb2   :  { %v677_v5 = vmul.f32 %v4029_v61, %v675_v59  ;;  %vm682_vm5 = vweird.f32 %v4029_v61 }
 0xeb3   :  { %vm683_vm8 = vmor %vm681_vm6, %vm682_vm5 }
 0xeb4   :  { %v678_v62 = vsub.f32 1.0, %v677_v5 }
 0xeb6   :  { %v679_v63 = vmul.f32 %v4029_v61, %v678_v62 }
 0xeb8   :  { %v680_v2 = vadd.f32 %v4029_v61, %v679_v63 }
 0xeba   :  { %v684_v12 = vsel %vm683_vm8, %v4029_v61, %v680_v2  ;;  %v245_v2 = vrot.slane %v4802_v25, 2 }
 0xebb   :  { %v689_v16 = vsel %vm686_vm9, %v688_v14, %v684_v12 }
 0xebc   :  { %v692_v22 = vmul.f32 %v689_v16, %v4804_v26 }
 0xf19   :  { %v695_v15 = vpop.permute.xlu0 %694 }
 0xf1a   :  { %v697_v18 = vmul.f32 %v695_v15, %v689_v16 }
 0xf1c   :  { %699 = vrot.lane.b32.xlu2 %v697_v18, %s4404_s30 }
 0xf21   :  { %v827_v20 = vpop.permute.xlu0 %826 }
 0xf22   :  { %v829_v21 = vadd.f32 %v827_v20, %v819_v19 }
 0xf24   :  { %4030 = vtanh.f32 %v829_v21 }
 0xf2a   :  { %v4031_v17 = vpop.eup %4030 }
 0xf2b   :  { %832 = vrot.lane.b32.xlu2 %v4031_v17, %s4403_s4 }
 0xf76   :  { %v700_v27 = vpop.permute.xlu2 %699 }
 0xf77   :  { %v4825_v23 = vadd.f32 %v700_v27, %v692_v22 }
 0xf79   :  { %4032 = vtanh.f32 %v4825_v23 }
 0xf7f   :  { %v4033_v28 = vpop.eup %4032 }
 0xf80   :  { %705 = vrot.lane.b32.xlu1 %v4033_v28, %s4403_s4 }
 0xf85   :  { %v833_v29 = vpop.permute.xlu2 %832 }
 0xf86   :  { %v835_v30 = vmul.f32 %v833_v29, %v816_v3 }
 0xf88   :  { %1322 = vst [vmem:[#allocation1 + $0x23] ss:$4 sm:$0xff] %v835_v30 }
 0xff2   :  { %v706_v31 = vpop.permute.xlu1 %705 }
 0xff3   :  { %v4829_v32 = vmul.f32 %v706_v31, %v689_v16 }
 0xff5   :  { %710 = vst [vmem:[#allocation1] ss:$4 sm:$0xff] %v4829_v32 }
 0xffc   :  { %v711_v33 = vld.sshfl [vmem:[#allocation1] sm:$0xff pattern:$0x73625140] }
 0xffd   :  { %837 = vst [vmem:[#allocation1] ss:$4 sm:$0xff] %v835_v30 }
0x1004   :  { %v838_v35 = vld.sshfl [vmem:[#allocation1] sm:$0xff pattern:$0x73625140] }
0x1005   :  { %839 = vrot.lane.b32.xlu0 %v838_v35, %s4404_s30 }
0x1077   :  { %v840_v26 = vpop.permute.xlu0 %839 }
0x1078   :  { %3868 = vmatmul.msk.f32.vlgmr.msra.gmra.mxu1 %vm175_vm7, %v840_v26 }
0x10f5   :  { %v860_v36 = vpop.f32.mrf.mxu1 }
0x10f6   :  { %v863_v37 = vadd.f32 %v860_v36, %v246_v6 }
0x10f8   :  { %4034 = vtanh.f32 %v863_v37  ;;  %v3869_v40 = vmul.f32 -1.442695, %v863_v37 }
0x10fa   :  { %4036 = vpow2.f32 %v3869_v40 }
0x10fe   :  { %v4035_v39 = vpop.eup %4034 }
0x10ff   :  { %886 = vrot.lane.b32.xlu1 %v4035_v39, %s4403_s4 }
0x1100   :  { %v4037_v41 = vpop.eup %4036 }
0x1101   :  { %v867_v42 = vadd.f32 1.0, %v4037_v41 }
0x1103   :  { %4038 = vrcp.f32 %v867_v42  ;;  %v879_v49 = vand.u32 2147483648, %v867_v42  ;;  %vm873_vm11 = vweird.f32 %v867_v42  ;;  %v877_v52 = vand.u32 2147483647, %v867_v42 }
0x1105   :  { %v880_v0 = vor.u32 1.1754944e-38, %v879_v49  ;;  %vm878_vm13 = vcmp.eq.f32.partialorder %v877_v52, 8.507059e+37 }
0x1109   :  { %v4039_v44 = vpop.eup %4038 }
0x110a   :  { %v869_v45 = vmul.f32 %v4039_v44, %v867_v42  ;;  %vm874_vm10 = vweird.f32 %v4039_v44 }
0x110b   :  { %vm875_vm12 = vmor %vm873_vm11, %vm874_vm10 }
0x110c   :  { %v870_v46 = vsub.f32 1.0, %v869_v45 }
0x110e   :  { %v871_v47 = vmul.f32 %v4039_v44, %v870_v46 }
0x1110   :  { %v872_v48 = vadd.f32 %v4039_v44, %v871_v47 }
0x1112   :  { %v876_v54 = vsel %vm875_vm12, %v4039_v44, %v872_v48 }
0x1113   :  { %v881_v11 = vsel %vm878_vm13, %v880_v0, %v876_v54 }
0x1114   :  { %v884_v57 = vmul.f32 %v881_v11, %v829_v21 }
0x1171   :  { %v887_v4 = vpop.permute.xlu1 %886 }
0x1172   :  { %v889_v3 = vmul.f32 %v887_v4, %v881_v11 }
0x1174   :  { %891 = vrot.lane.b32.xlu2 %v889_v3, %s4404_s30 }
0x11ce   :  { %v892_v58 = vpop.permute.xlu2 %891 }
0x11cf   :  { %v894_v9 = vadd.f32 %v892_v58, %v884_v57 }
0x11d1   :  { %4040 = vtanh.f32 %v894_v9 }
0x11d7   :  { %v4041_v59 = vpop.eup %4040 }
0x11d8   :  { %897 = vrot.lane.b32.xlu0 %v4041_v59, %s4403_s4 }
0x124a   :  { %v898_v61 = vpop.permute.xlu0 %897 }
0x124b   :  { %v900_v5 = vmul.f32 %v898_v61, %v881_v11 }
0x124d   :  { %902 = vst [vmem:[#allocation1] ss:$4 sm:$0xff] %v900_v5 }
0x124e   :  { %1320 = vst [vmem:[#allocation1 + $0x22] ss:$4 sm:$0xff] %v900_v5 }
0x1254   :  { %v903_v62 = vld.sshfl [vmem:[#allocation1] sm:$0xff pattern:$0x73625140] }
0x1255   :  { %904 = vrot.lane.b32.xlu1 %v903_v62, %s4404_s30 }
0x12c7   :  { %v905_v63 = vpop.permute.xlu1 %904 }
0x12c8   :  { %3870 = vmatmul.msk.f32.vlgmr.msrb.gmra.mxu2 %vm175_vm7, %v905_v63 }
0x134b   :  { %v925_v7 = vpop.f32.mrf.mxu2 }
0x134c   :  { %v928_v10 = vadd.f32 %v925_v7, %v245_v2 }
0x134e   :  { %4042 = vtanh.f32 %v928_v10  ;;  %v3871_v14 = vmul.f32 -1.442695, %v928_v10 }
0x1350   :  { %4044 = vpow2.f32 %v3871_v14 }
0x1354   :  { %v4043_v12 = vpop.eup %4042 }
0x1355   :  { %951 = vrot.lane.b32.xlu2 %v4043_v12, %s4403_s4  ;;  %v244_v12 = vrot.slane %v4791_v56, 6 }
0x1356   :  { %v4045_v15 = vpop.eup %4044 }
0x1357   :  { %v932_v16 = vadd.f32 1.0, %v4045_v15 }
0x1359   :  { %4046 = vrcp.f32 %v932_v16  ;;  %v944_v22 = vand.u32 2147483648, %v932_v16  ;;  %vm938_vm15 = vweird.f32 %v932_v16  ;;  %v942_v27 = vand.u32 2147483647, %v932_v16 }
0x135b   :  { %v945_v29 = vor.u32 1.1754944e-38, %v944_v22  ;;  %vm943_vm1 = vcmp.eq.f32.partialorder %v942_v27, 8.507059e+37 }
0x135d   :  { %712 = vrot.lane.b32.xlu2 %v711_v33, %s4404_s30 }
0x135f   :  { %v4047_v18 = vpop.eup %4046 }
0x1360   :  { %v934_v19 = vmul.f32 %v4047_v18, %v932_v16  ;;  %vm939_vm14 = vweird.f32 %v4047_v18 }
0x1361   :  { %vm940_vm0 = vmor %vm938_vm15, %vm939_vm14 }
0x1362   :  { %v935_v20 = vsub.f32 1.0, %v934_v19 }
0x1364   :  { %v936_v21 = vmul.f32 %v4047_v18, %v935_v20 }
0x1366   :  { %v937_v17 = vadd.f32 %v4047_v18, %v936_v21 }
0x1368   :  { %v941_v28 = vsel %vm940_vm0, %v4047_v18, %v937_v17 }
0x1369   :  { %v946_v31 = vsel %vm943_vm1, %v945_v29, %v941_v28 }
0x136a   :  { %v949_v26 = vmul.f32 %v946_v31, %v894_v9 }
0x13af   :  { %v952_v30 = vpop.permute.xlu2 %951 }
0x13b0   :  { %v954_v33 = vmul.f32 %v952_v30, %v946_v31 }
0x13b2   :  { %956 = vrot.lane.b32.xlu0 %v954_v33, %s4404_s30 }
0x13b7   :  { %v713_v35 = vpop.permute.xlu2 %712 }
0x13b8   :  { %3865 = vmatmul.msk.f32.vlgmr.msra.gmra.mxu3 %vm175_vm7, %v713_v35 }
0x13b9   :  { %1245 = vmatpush.msra.mxu3 %v4734_v50 }
0x13bb   :  { %1246 = vmatpush.msra.mxu3 %v4739_v51 }
0x13bd   :  { %1247 = vmatpush.msra.mxu3 %v4749_v53 }
0x13bf   :  { %1248 = vmatpush.msra.mxu3 %v4760_v55 }
0x1424   :  { %v957_v6 = vpop.permute.xlu0 %956 }
0x1425   :  { %v959_v36 = vadd.f32 %v957_v6, %v949_v26 }
0x1427   :  { %4048 = vtanh.f32 %v959_v36 }
0x142d   :  { %v4049_v37 = vpop.eup %4048 }
0x142e   :  { %962 = vrot.lane.b32.xlu1 %v4049_v37, %s4403_s4 }
0x143b   :  { %v4852_v51 = vpop.f32.mrf.mxu3 }
0x14a0   :  { %v963_v39 = vpop.permute.xlu1 %962 }
0x14a1   :  { %v965_v40 = vmul.f32 %v963_v39, %v946_v31 }
0x14a3   :  { %967 = vst [vmem:[#allocation1] ss:$4 sm:$0xff] %v965_v40 }
0x14a4   :  { %1318 = vst [vmem:[#allocation1 + $0x21] ss:$4 sm:$0xff] %v965_v40 }
0x14aa   :  { %v968_v41 = vld.sshfl [vmem:[#allocation1] sm:$0xff pattern:$0x73625140] }
0x14ab   :  { %969 = vrot.lane.b32.xlu0 %v968_v41, %s4404_s30 }
0x151d   :  { %v970_v50 = vpop.permute.xlu0 %969 }
0x151e   :  { %3872 = vmatmul.msk.f32.vlgmr.msrb.gmra.mxu3 %vm175_vm7, %v970_v50  ;;  %v243_v50 = vrot.slane %v4791_v56, 4 }
0x15a1   :  { %v990_v53 = vpop.f32.mrf.mxu3 }
0x15a2   :  { %v993_v55 = vadd.f32 %v990_v53, %v4802_v25 }
0x15a4   :  { %4050 = vtanh.f32 %v993_v55  ;;  %v3873_v44 = vmul.f32 -1.442695, %v993_v55 }
0x15a6   :  { %4052 = vpow2.f32 %v3873_v44 }
0x15aa   :  { %v4051_v42 = vpop.eup %4050 }
0x15ab   :  { %1016 = vrot.lane.b32.xlu1 %v4051_v42, %s4403_s4 }
0x15ac   :  { %v4053_v45 = vpop.eup %4052 }
0x15ad   :  { %v997_v46 = vadd.f32 1.0, %v4053_v45 }
0x15af   :  { %4054 = vrcp.f32 %v997_v46  ;;  %v1009_v0 = vand.u32 2147483648, %v997_v46  ;;  %vm1003_vm3 = vweird.f32 %v997_v46  ;;  %v1007_v4 = vand.u32 2147483647, %v997_v46 }
0x15b1   :  { %v1010_v11 = vor.u32 1.1754944e-38, %v1009_v0  ;;  %vm1008_vm5 = vcmp.eq.f32.partialorder %v1007_v4, 8.507059e+37 }
0x15b5   :  { %v4055_v47 = vpop.eup %4054 }
0x15b6   :  { %v999_v48 = vmul.f32 %v4055_v47, %v997_v46  ;;  %vm1004_vm2 = vweird.f32 %v4055_v47 }
0x15b7   :  { %vm1005_vm4 = vmor %vm1003_vm3, %vm1004_vm2 }
0x15b8   :  { %v1000_v49 = vsub.f32 1.0, %v999_v48 }
0x15ba   :  { %v1001_v52 = vmul.f32 %v4055_v47, %v1000_v49 }
0x15bc   :  { %v1002_v54 = vadd.f32 %v4055_v47, %v1001_v52 }
0x15be   :  { %v1006_v25 = vsel %vm1005_vm4, %v4055_v47, %v1002_v54 }
0x15bf   :  { %v1011_v57 = vsel %vm1008_vm5, %v1010_v11, %v1006_v25 }
0x15c0   :  { %v1014_v9 = vmul.f32 %v1011_v57, %v959_v36 }
0x161d   :  { %v1017_v3 = vpop.permute.xlu1 %1016 }
0x161e   :  { %v1019_v58 = vmul.f32 %v1017_v3, %v1011_v57 }
0x1620   :  { %1021 = vrot.lane.b32.xlu2 %v1019_v58, %s4404_s30 }
0x167a   :  { %v1022_v59 = vpop.permute.xlu2 %1021 }
0x167b   :  { %v1024_v61 = vadd.f32 %v1022_v59, %v1014_v9 }
0x167d   :  { %4056 = vtanh.f32 %v1024_v61 }
0x1683   :  { %v4057_v5 = vpop.eup %4056 }
0x1684   :  { %1027 = vrot.lane.b32.xlu0 %v4057_v5, %s4403_s4 }
0x16f6   :  { %v1028_v62 = vpop.permute.xlu0 %1027 }
0x16f7   :  { %v1030_v63 = vmul.f32 %v1028_v62, %v1011_v57 }
0x16f9   :  { %1032 = vst [vmem:[#allocation1] ss:$4 sm:$0xff] %v1030_v63 }
0x16fa   :  { %1316 = vst [vmem:[#allocation1 + $0x20] ss:$4 sm:$0xff] %v1030_v63 }
0x1700   :  { %v1033_v2 = vld.sshfl [vmem:[#allocation1] sm:$0xff pattern:$0x73625140] }
0x1701   :  { %v4858_v7 = vld.sshfl [vmem:[#allocation1 + $0x20] sm:$0xff pattern:$0x73625140]  ;;  %1034 = vrot.lane.b32.xlu1 %v1033_v2, %s4404_s30 }
0x1702   :  { %1388 = vst [vmem:[#allocation1 + $0x20] ss:$4 sm:$0xff] %v4785_v1 }
0x1703   :  { %1390 = vst [vmem:[#allocation1 + $0x21] ss:$4 sm:$0xff] %v4810_v34 }
0x1704   :  { %1392 = vst [vmem:[#allocation1 + $0x22] ss:$4 sm:$0xff] %v4829_v32 }
0x1773   :  { %v1035_v10 = vpop.permute.xlu1 %1034 }
0x1774   :  { %3874 = vmatmul.msk.f32.vlgmr.msrb.gmra.mxu0 %vm175_vm7, %v1035_v10 }
0x17f1   :  { %v1055_v14 = vpop.f32.mrf.mxu0 }
0x17f2   :  { %v1058_v15 = vadd.f32 %v1055_v14, %v244_v12  ;;  %v242_v12 = vrot.slane %v4791_v56, 2 }
0x17f4   :  { %4058 = vtanh.f32 %v1058_v15  ;;  %v3875_v18 = vmul.f32 -1.442695, %v1058_v15 }
0x17f6   :  { %4060 = vpow2.f32 %v3875_v18 }
0x17fa   :  { %v4059_v16 = vpop.eup %4058 }
0x17fb   :  { %1081 = vrot.lane.b32.xlu2 %v4059_v16, %s4403_s4 }
0x17fc   :  { %v4061_v19 = vpop.eup %4060 }
0x17fd   :  { %v1062_v20 = vadd.f32 1.0, %v4061_v19 }
0x17ff   :  { %4062 = vrcp.f32 %v1062_v20  ;;  %v1074_v22 = vand.u32 2147483648, %v1062_v20  ;;  %vm1068_vm8 = vweird.f32 %v1062_v20  ;;  %v1072_v27 = vand.u32 2147483647, %v1062_v20 }
0x1801   :  { %v1075_v29 = vor.u32 1.1754944e-38, %v1074_v22  ;;  %vm1073_vm10 = vcmp.eq.f32.partialorder %v1072_v27, 8.507059e+37 }
0x1805   :  { %v4063_v1 = vpop.eup %4062 }
0x1806   :  { %v1064_v34 = vmul.f32 %v4063_v1, %v1062_v20  ;;  %vm1069_vm6 = vweird.f32 %v4063_v1 }
0x1807   :  { %vm1070_vm9 = vmor %vm1068_vm8, %vm1069_vm6 }
0x1808   :  { %v1065_v21 = vsub.f32 1.0, %v1064_v34 }
0x180a   :  { %v1066_v32 = vmul.f32 %v4063_v1, %v1065_v21 }
0x180c   :  { %v1067_v17 = vadd.f32 %v4063_v1, %v1066_v32 }
0x180e   :  { %v1071_v28 = vsel %vm1070_vm9, %v4063_v1, %v1067_v17 }
0x180f   :  { %v1076_v31 = vsel %vm1073_vm10, %v1075_v29, %v1071_v28 }
0x1810   :  { %v1079_v35 = vmul.f32 %v1076_v31, %v1024_v61 }
0x1855   :  { %v1082_v30 = vpop.permute.xlu2 %1081 }
0x1856   :  { %v1084_v33 = vmul.f32 %v1082_v30, %v1076_v31 }
0x1858   :  { %1086 = vrot.lane.b32.xlu0 %v1084_v33, %s4404_s30 }
0x18ca   :  { %v1087_v26 = vpop.permute.xlu0 %1086 }
0x18cb   :  { %v1089_v6 = vadd.f32 %v1087_v26, %v1079_v35 }
0x18cd   :  { %4064 = vtanh.f32 %v1089_v6 }
0x18d3   :  { %v4065_v36 = vpop.eup %4064 }
0x18d4   :  { %1092 = vrot.lane.b32.xlu1 %v4065_v36, %s4403_s4 }
0x1946   :  { %v1093_v37 = vpop.permute.xlu1 %1092 }
0x1947   :  { %v4869_v39 = vmul.f32 %v1093_v37, %v1076_v31 }
0x1949   :  { %1097 = vst [vmem:[#allocation1] ss:$4 sm:$0xff] %v4869_v39 }
0x1950   :  { %v1098_v40 = vld.sshfl [vmem:[#allocation1] sm:$0xff pattern:$0x73625140] }
0x1951   :  { %1099 = vrot.lane.b32.xlu2 %v1098_v40, %s4404_s30 }
0x19ab   :  { %v1100_v41 = vpop.permute.xlu2 %1099 }
0x19ac   :  { %3876 = vmatmul.msk.f32.vlgmr.msrb.gmra.mxu1 %vm175_vm7, %v1100_v41 }
0x1a29   :  { %v1120_v53 = vpop.f32.mrf.mxu1 }
0x1a2a   :  { %v1123_v55 = vadd.f32 %v1120_v53, %v243_v50 }
0x1a2c   :  { %4066 = vtanh.f32 %v1123_v55  ;;  %v3877_v44 = vmul.f32 -1.442695, %v1123_v55 }
0x1a2e   :  { %4068 = vpow2.f32 %v3877_v44 }
0x1a32   :  { %v4067_v42 = vpop.eup %4066 }
0x1a33   :  { %1146 = vrot.lane.b32.xlu0 %v4067_v42, %s4403_s4 }
0x1a34   :  { %v4069_v45 = vpop.eup %4068 }
0x1a35   :  { %v1127_v46 = vadd.f32 1.0, %v4069_v45 }
0x1a37   :  { %4070 = vrcp.f32 %v1127_v46  ;;  %v1139_v0 = vand.u32 2147483648, %v1127_v46  ;;  %vm1133_vm12 = vweird.f32 %v1127_v46  ;;  %v1137_v4 = vand.u32 2147483647, %v1127_v46 }
0x1a39   :  { %v1140_v11 = vor.u32 1.1754944e-38, %v1139_v0  ;;  %vm1138_vm14 = vcmp.eq.f32.partialorder %v1137_v4, 8.507059e+37 }
0x1a3d   :  { %v4071_v47 = vpop.eup %4070 }
0x1a3e   :  { %v1129_v48 = vmul.f32 %v4071_v47, %v1127_v46  ;;  %vm1134_vm11 = vweird.f32 %v4071_v47 }
0x1a3f   :  { %vm1135_vm13 = vmor %vm1133_vm12, %vm1134_vm11 }
0x1a40   :  { %v1130_v49 = vsub.f32 1.0, %v1129_v48 }
0x1a42   :  { %v1131_v52 = vmul.f32 %v4071_v47, %v1130_v49 }
0x1a44   :  { %v1132_v54 = vadd.f32 %v4071_v47, %v1131_v52 }
0x1a46   :  { %v1136_v25 = vsel %vm1135_vm13, %v4071_v47, %v1132_v54 }
0x1a47   :  { %v1141_v57 = vsel %vm1138_vm14, %v1140_v11, %v1136_v25 }
0x1a48   :  { %v1144_v9 = vmul.f32 %v1141_v57, %v1089_v6 }
0x1aa5   :  { %v1147_v3 = vpop.permute.xlu0 %1146 }
0x1aa6   :  { %v1149_v58 = vmul.f32 %v1147_v3, %v1141_v57 }
0x1aa8   :  { %1151 = vrot.lane.b32.xlu1 %v1149_v58, %s4404_s30 }
0x1b1a   :  { %v1152_v59 = vpop.permute.xlu1 %1151 }
0x1b1b   :  { %v1154_v61 = vadd.f32 %v1152_v59, %v1144_v9 }
0x1b1d   :  { %4072 = vtanh.f32 %v1154_v61 }
0x1b23   :  { %v4073_v5 = vpop.eup %4072 }
0x1b24   :  { %1157 = vrot.lane.b32.xlu2 %v4073_v5, %s4403_s4  ;;  %v1306_v5 = vld [vmem:[%s5575_s1 + $0x38] sm:$0xff] }
0x1b25   :  { %1368 = vmatpush.msra.mxu1 %v1306_v5 }
0x1b7e   :  { %v1158_v62 = vpop.permute.xlu2 %1157 }
0x1b7f   :  { %v1160_v63 = vmul.f32 %v1158_v62, %v1141_v57  ;;  %v1303_v62 = vld [vmem:[%s5575_s1 + $0x20] sm:$0xff] }
0x1b81   :  { %1162 = vst [vmem:[#allocation1] ss:$4 sm:$0xff] %v1160_v63 }
0x1b88   :  { %v1163_v2 = vld.sshfl [vmem:[#allocation1] sm:$0xff pattern:$0x73625140] }
0x1b89   :  { %1164 = vrot.lane.b32.xlu0 %v1163_v2, %s4404_s30  ;;  %v1302_v2 = vld [vmem:[%s5575_s1 + $0x18] sm:$0xff] }
0x1bfb   :  { %v1165_v10 = vpop.permute.xlu0 %1164 }
0x1bfc   :  { %3878 = vmatmul.msk.f32.vlgmr.msra.gmra.mxu2 %vm175_vm7, %v1165_v10  ;;  %v1299_v10 = vld [vmem:[%s5575_s1] sm:$0xff] }
0x1c7f   :  { %v1185_v14 = vpop.f32.mrf.mxu2 }
0x1c80   :  { %v1188_v15 = vadd.f32 %v1185_v14, %v242_v12  ;;  %v1300_v12 = vld [vmem:[%s5575_s1 + $0x8] sm:$0xff] }
0x1c82   :  { %4074 = vtanh.f32 %v1188_v15  ;;  %v3879_v18 = vmul.f32 -1.442695, %v1188_v15 }
0x1c84   :  { %4076 = vpow2.f32 %v3879_v18 }
0x1c88   :  { %v4075_v16 = vpop.eup %4074 }
0x1c89   :  { %1211 = vrot.lane.b32.xlu1 %v4075_v16, %s4403_s4 }
0x1c8a   :  { %v4077_v19 = vpop.eup %4076 }
0x1c8b   :  { %v1192_v20 = vadd.f32 1.0, %v4077_v19  ;;  %v1297_v19 = vld [vmem:[%s5576_s24 + $0x30] sm:$0xff] }
0x1c8c   :  { %1417 = vmatpush.msrb.mxu2 %v1297_v19 }
0x1c8d   :  { %4078 = vrcp.f32 %v1192_v20  ;;  %v1204_v22 = vand.u32 2147483648, %v1192_v20  ;;  %vm1198_vm0 = vweird.f32 %v1192_v20  ;;  %v1202_v27 = vand.u32 2147483647, %v1192_v20 }
0x1c8f   :  { %v1205_v29 = vor.u32 1.1754944e-38, %v1204_v22  ;;  %vm1203_vm2 = vcmp.eq.f32.partialorder %v1202_v27, 8.507059e+37  ;;  %v1490_v22 = vld [vmem:[%s5551_s11 + $0x8] sm:$0xff]  ;;  %v1489_v27 = vld [vmem:[%s5551_s11] sm:$0xff] }
0x1c93   :  { %v4079_v1 = vpop.eup %4078 }
0x1c94   :  { %v1194_v34 = vmul.f32 %v4079_v1, %v1192_v20  ;;  %vm1199_vm15 = vweird.f32 %v4079_v1  ;;  %v1298_v20 = vld [vmem:[%s5576_s24 + $0x38] sm:$0xff] }
0x1c95   :  { %vm1200_vm1 = vmor %vm1198_vm0, %vm1199_vm15  ;;  %1440 = vmatpush.msrb.mxu3 %v1298_v20 }
0x1c96   :  { %v1195_v21 = vsub.f32 1.0, %v1194_v34  ;;  %v1491_v34 = vld [vmem:[%s5551_s11 + $0x10] sm:$0xff] }
0x1c98   :  { %v1196_v32 = vmul.f32 %v4079_v1, %v1195_v21  ;;  %v1291_v21 = vld [vmem:[%s5576_s24] sm:$0xff] }
0x1c9a   :  { %v1197_v17 = vadd.f32 %v4079_v1, %v1196_v32  ;;  %v1292_v32 = vld [vmem:[%s5576_s24 + $0x8] sm:$0xff] }
0x1c9c   :  { %v1201_v28 = vsel %vm1200_vm1, %v4079_v1, %v1197_v17  ;;  %v1294_v1 = vld [vmem:[%s5576_s24 + $0x18] sm:$0xff] }
0x1c9d   :  { %v1206_v31 = vsel %vm1203_vm2, %v1205_v29, %v1201_v28 }
0x1c9e   :  { %v1209_v35 = vmul.f32 %v1206_v31, %v1154_v61  ;;  %v1305_v61 = vld [vmem:[%s5575_s1 + $0x30] sm:$0xff] }
0x1c9f   :  { %1345 = vmatpush.msra.mxu0 %v1305_v61 }
0x1ca1   :  { %1346 = vmatpush.msra.mxu0 %v1303_v62 }
0x1cfb   :  { %v1212_v30 = vpop.permute.xlu1 %1211 }
0x1cfc   :  { %v1214_v33 = vmul.f32 %v1212_v30, %v1206_v31 }
0x1cfe   :  { %1216 = vrot.lane.b32.xlu2 %v1214_v33, %s4404_s30  ;;  %v4971_v33 = vld [vmem:[%s5577_s22] sm:$0x3] }
0x1d58   :  { %v1217_v26 = vpop.permute.xlu2 %1216 }
0x1d59   :  { %v1219_v6 = vadd.f32 %v1217_v26, %v1209_v35  ;;  %v1453_v35 = vperm.slane %v4971_v33, 0 }
0x1d5b   :  { %4080 = vtanh.f32 %v1219_v6 }
0x1d61   :  { %v4081_v36 = vpop.eup %4080 }
0x1d62   :  { %1222 = vrot.lane.b32.xlu0 %v4081_v36, %s4403_s4 }
0x1dd4   :  { %v1223_v37 = vpop.permute.xlu0 %1222 }
0x1dd5   :  { %v1225_v40 = vmul.f32 %v1223_v37, %v1206_v31 }
0x1dd7   :  { %1227 = vst [vmem:[#allocation1] ss:$4 sm:$0xff] %v1225_v40 }
0x1dde   :  { %v1228_v41 = vld.sshfl [vmem:[#allocation1] sm:$0xff pattern:$0x73625140] }
0x1ddf   :  { %1310 = vst [vmem:[#allocation1 + $0x1] ss:$4 sm:$0xff] %v1225_v40  ;;  %1229 = vrot.lane.b32.xlu1 %v1228_v41, %s4404_s30 }
0x1de0   :  { %1312 = vst [vmem:[#allocation1 + $0x2] ss:$4 sm:$0xff] %v1160_v63  ;;  %v1304_v63 = vld [vmem:[%s5575_s1 + $0x28] sm:$0xff] }
0x1de1   :  { %1314 = vst [vmem:[#allocation1 + $0x3] ss:$4 sm:$0xff] %v4869_v39  ;;  %1369 = vmatpush.msra.mxu1 %v1304_v63 }
0x1de3   :  { %1370 = vmatpush.msra.mxu1 %v1302_v2 }
0x1de5   :  { %1371 = vmatpush.msra.mxu1 %v1300_v12 }
0x1e51   :  { %v1230_v50 = vpop.permute.xlu1 %1229 }
0x1e52   :  { %3880 = vmatmul.msk.f32.vlgmr.msra.gmra.mxu3 %vm175_vm7, %v1230_v50 }
0x1ed5   :  { %v1250_v53 = vpop.f32.mrf.mxu3 }
0x1ed6   :  { %v1253_v55 = vadd.f32 %v1250_v53, %v4791_v56 }
0x1ed8   :  { %4082 = vtanh.f32 %v1253_v55  ;;  %v3881_v44 = vmul.f32 -1.442695, %v1253_v55 }
0x1eda   :  { %4084 = vpow2.f32 %v3881_v44 }
0x1ede   :  { %v4083_v42 = vpop.eup %4082 }
0x1edf   :  { %1276 = vrot.lane.b32.xlu2 %v4083_v42, %s4403_s4 }
0x1ee0   :  { %v4085_v45 = vpop.eup %4084 }
0x1ee1   :  { %v1257_v46 = vadd.f32 1.0, %v4085_v45 }
0x1ee3   :  { %4086 = vrcp.f32 %v1257_v46  ;;  %v1269_v54 = vand.u32 2147483648, %v1257_v46  ;;  %vm1263_vm4 = vweird.f32 %v1257_v46  ;;  %v1267_v0 = vand.u32 2147483647, %v1257_v46 }
0x1ee5   :  { %v1270_v4 = vor.u32 1.1754944e-38, %v1269_v54  ;;  %vm1268_vm6 = vcmp.eq.f32.partialorder %v1267_v0, 8.507059e+37 }
0x1ee9   :  { %v4087_v47 = vpop.eup %4086 }
0x1eea   :  { %v1259_v48 = vmul.f32 %v4087_v47, %v1257_v46  ;;  %vm1264_vm3 = vweird.f32 %v4087_v47 }
0x1eeb   :  { %vm1265_vm5 = vmor %vm1263_vm4, %vm1264_vm3 }
0x1eec   :  { %v1260_v49 = vsub.f32 1.0, %v1259_v48 }
0x1eee   :  { %v1261_v52 = vmul.f32 %v4087_v47, %v1260_v49 }
0x1ef0   :  { %v1262_v39 = vadd.f32 %v4087_v47, %v1261_v52 }
0x1ef2   :  { %v1266_v56 = vsel %vm1265_vm5, %v4087_v47, %v1262_v39  ;;  %v233_v39 = vrot.slane %v4716_v60, 6 }
0x1ef3   :  { %v1271_v11 = vsel %vm1268_vm6, %v1270_v4, %v1266_v56 }
0x1ef4   :  { %v1274_v57 = vmul.f32 %v1271_v11, %v1219_v6  ;;  %v736_v0 = vadd.f32 %v4852_v51, %v233_v39 }
0x1f39   :  { %v1277_v25 = vpop.permute.xlu2 %1276 }
0x1f3a   :  { %v1279_v3 = vmul.f32 %v1277_v25, %v1271_v11 }
0x1f3c   :  { %1281 = vrot.lane.b32.xlu0 %v1279_v3, %s4404_s30 }
0x1fae   :  { %v1282_v58 = vpop.permute.xlu0 %1281 }
0x1faf   :  { %v1284_v9 = vadd.f32 %v1282_v58, %v1274_v57 }
0x1fb1   :  { %4088 = vtanh.f32 %v1284_v9  ;;  %v3866_v9 = vmul.f32 -1.442695, %v736_v0 }
0x1fb7   :  { %v4089_v59 = vpop.eup %4088 }
0x1fb8   :  { %1287 = vrot.lane.b32.xlu1 %v4089_v59, %s4403_s4 }
0x1fc0   :  { %1327 = vrot.lane.b32.xlu1 %v4858_v7, %s4404_s30  ;;  %v1301_v7 = vld [vmem:[%s5575_s1 + $0x10] sm:$0xff] }
0x1fc1   :  { %1347 = vmatpush.msra.mxu0 %v1301_v7 }
0x1fc3   :  { %1348 = vmatpush.msra.mxu0 %v1299_v10 }
0x202a   :  { %v1288_v14 = vpop.permute.xlu1 %1287 }
0x202b   :  { %v1290_v15 = vmul.f32 %v1288_v14, %v1271_v11 }
0x202d   :  { %1308 = vst [vmem:[#allocation1] ss:$4 sm:$0xff] %v1290_v15 }
0x2032   :  { %v1328_v28 = vpop.permute.xlu1 %1327 }
0x2034   :  { %v1323_v16 = vld.sshfl [vmem:[#allocation1] sm:$0xff pattern:$0x73625140] }
0x2035   :  { %1380 = vst [vmem:[#allocation1] ss:$4 sm:$0xff] %v4666_v38  ;;  %1325 = vrot.lane.b32.xlu2 %v1323_v16, %s4404_s30  ;;  %v1295_v38 = vld [vmem:[%s5576_s24 + $0x20] sm:$0xff] }
0x2036   :  { %1382 = vst [vmem:[#allocation1 + $0x1] ss:$4 sm:$0xff] %v4679_v8  ;;  %v1492_v8 = vld [vmem:[%s5551_s11 + $0x18] sm:$0xff]  ;;  %1418 = vmatpush.msrb.mxu2 %v1295_v38 }
0x2037   :  { %1384 = vst [vmem:[#allocation1 + $0x2] ss:$4 sm:$0xff] %v4688_v43  ;;  %v1296_v43 = vld [vmem:[%s5576_s24 + $0x28] sm:$0xff]  ;;  %1505 = vmatpush.msrb.mxu0 %v1492_v8  ;;  %1570 = vmatpush.msrb.mxu1 %v1492_v8 }
0x2038   :  { %1386 = vst [vmem:[#allocation1 + $0x3] ss:$4 sm:$0xff] %v4709_v13  ;;  %v1293_v13 = vld [vmem:[%s5576_s24 + $0x10] sm:$0xff]  ;;  %1441 = vmatpush.msrb.mxu3 %v1296_v43 }
0x2039   :  { %1506 = vmatpush.msrb.mxu0 %v1491_v34  ;;  %1571 = vmatpush.msrb.mxu1 %v1491_v34 }
0x203a   :  { %1419 = vmatpush.msrb.mxu2 %v1293_v13  ;;  %1442 = vmatpush.msrb.mxu3 %v1294_v1 }
0x203b   :  { %1507 = vmatpush.msrb.mxu0 %v1490_v22  ;;  %1572 = vmatpush.msrb.mxu1 %v1490_v22 }
0x203c   :  { %1420 = vmatpush.msrb.mxu2 %v1291_v21  ;;  %1443 = vmatpush.msrb.mxu3 %v1292_v32 }
0x203d   :  { %1508 = vmatpush.msrb.mxu0 %v1489_v27  ;;  %1573 = vmatpush.msrb.mxu1 %v1489_v27 }
0x203e   :  { %1635 = vmatpush.msra.mxu2 %v1492_v8  ;;  %1700 = vmatpush.msra.mxu3 %v1492_v8 }
0x203f   :  { %v1395_v18 = vld.sshfl [vmem:[#allocation1] sm:$0xff pattern:$0x73625140] }
0x2040   :  { %1397 = vrot.lane.b32.xlu0 %v1395_v18, %s4404_s30  ;;  %1636 = vmatpush.msra.mxu2 %v1491_v34 }
0x2041   :  { %1701 = vmatpush.msra.mxu3 %v1491_v34 }
0x2042   :  { %1637 = vmatpush.msra.mxu2 %v1490_v22 }
0x2043   :  { %1702 = vmatpush.msra.mxu3 %v1490_v22 }
0x2044   :  { %1638 = vmatpush.msra.mxu2 %v1489_v27 }
0x2045   :  { %1703 = vmatpush.msra.mxu3 %v1489_v27 }
0x208f   :  { %v1326_v17 = vpop.permute.xlu2 %1325 }
0x2090   :  { %3882 = vmatmul.msk.f32.vlgmr.msra.gmra.mxu0 %vm175_vm7, %v1326_v17  ;;  %3884 = vmatmul.msk.f32.vlgmr.msra.gmra.mxu1 %vm175_vm7, %v1326_v17 }
0x2091   :  { %1765 = vmatpush.msra.mxu0 %v1492_v8  ;;  %1830 = vmatpush.msra.mxu1 %v1492_v8 }
0x2093   :  { %1766 = vmatpush.msra.mxu0 %v1491_v34  ;;  %1831 = vmatpush.msra.mxu1 %v1491_v34 }
0x2095   :  { %1767 = vmatpush.msra.mxu0 %v1490_v22  ;;  %1832 = vmatpush.msra.mxu1 %v1490_v22 }
0x2097   :  { %1768 = vmatpush.msra.mxu0 %v1489_v27  ;;  %1833 = vmatpush.msra.mxu1 %v1489_v27 }
0x2098   :  { %3883 = vmatmul.msk.f32.gmra.mxu0 %vm175_vm7, %v1328_v28  ;;  %3885 = vmatmul.msk.f32.gmra.mxu1 %vm175_vm7, %v1328_v28 }
0x20a0   :  { %1509 = vmatmul.f32.vlgmr.msrb.gmra.mxu0 %v4402_v24 }
0x20b2   :  { %v1398_v29 = vpop.permute.xlu0 %1397 }
0x20b3   :  { %3886 = vmatmul.msk.f32.vlgmr.msrb.gmra.mxu2 %vm175_vm7, %v1398_v29  ;;  %3888 = vmatmul.msk.f32.vlgmr.msrb.gmra.mxu3 %vm175_vm7, %v1398_v29 }
0x20b4   :  { %1895 = vmatpush.msrb.mxu2 %v1492_v8  ;;  %1960 = vmatpush.msrb.mxu3 %v1492_v8 }
0x20b6   :  { %1896 = vmatpush.msrb.mxu2 %v1491_v34  ;;  %1961 = vmatpush.msrb.mxu3 %v1491_v34 }
0x20b8   :  { %1897 = vmatpush.msrb.mxu2 %v1490_v22  ;;  %1962 = vmatpush.msrb.mxu3 %v1490_v22 }
0x20ba   :  { %1898 = vmatpush.msrb.mxu2 %v1489_v27  ;;  %1963 = vmatpush.msrb.mxu3 %v1489_v27 }
0x210d   :  { %v1350_v30 = vpop.f32.mrf.mxu0  ;;  %v4994_v43 = vpop.f32.mrf.mxu1 }
0x2115   :  { %v4966_v31 = vpop.f32.mrf.mxu0  ;;  %v4996_v13 = vpop.f32.mrf.mxu1 }
0x211d   :  { %v1510_v36 = vpop.f32.mrf.mxu0 }
0x2136   :  { %v1422_v26 = vpop.f32.mrf.mxu2 }
0x2137   :  { %v1423_v6 = vadd.f32 %v1422_v26, %v1350_v30 }
0x2139   :  { %v4976_v37 = vadd.f32 %v1453_v35, %v1423_v6 }
0x213b   :  { %v1513_v40 = vadd.f32 %v1510_v36, %v4976_v37  ;;  %v1463_v1 = vrot.slane %v4976_v37, 2 }
0x213d   :  { %4090 = vtanh.f32 %v1513_v40  ;;  %v3890_v50 = vmul.f32 -1.442695, %v1513_v40 }
0x213f   :  { %4092 = vpow2.f32 %v3890_v50 }
0x2143   :  { %v4091_v41 = vpop.eup %4090 }
0x2144   :  { %1536 = vrot.lane.b32.xlu2 %v4091_v41, %s4403_s4 }
0x2145   :  { %v4093_v53 = vpop.eup %4092 }
0x2146   :  { %v1517_v55 = vadd.f32 1.0, %v4093_v53 }
0x2148   :  { %4094 = vrcp.f32 %v1517_v55  ;;  %v1529_v48 = vand.u32 2147483648, %v1517_v55  ;;  %vm1523_vm9 = vweird.f32 %v1517_v55  ;;  %v1527_v49 = vand.u32 2147483647, %v1517_v55 }
0x2149   :  { %4096 = vtanh.f32 %v736_v0 }
0x214a   :  { %v1530_v54 = vor.u32 1.1754944e-38, %v1529_v48  ;;  %vm1528_vm11 = vcmp.eq.f32.partialorder %v1527_v49, 8.507059e+37 }
0x214e   :  { %v4095_v42 = vpop.eup %4094 }
0x214f   :  { %v1519_v44 = vmul.f32 %v4095_v42, %v1517_v55  ;;  %vm1524_vm8 = vweird.f32 %v4095_v42  ;;  %v4097_v11 = vpop.eup %4096 }
0x2150   :  { %vm1525_vm10 = vmor %vm1523_vm9, %vm1524_vm8 }
0x2151   :  { %v1520_v45 = vsub.f32 1.0, %v1519_v44 }
0x2153   :  { %v1521_v46 = vmul.f32 %v4095_v42, %v1520_v45 }
0x2155   :  { %v1522_v47 = vadd.f32 %v4095_v42, %v1521_v46 }
0x2157   :  { %v1526_v52 = vsel %vm1525_vm10, %v4095_v42, %v1522_v47 }
0x2158   :  { %v1531_v4 = vsel %vm1528_vm11, %v1530_v54, %v1526_v52 }
0x2159   :  { %v1534_v3 = vmul.f32 0.0, %v1531_v4 }
0x219e   :  { %v1537_v56 = vpop.permute.xlu2 %1536 }
0x219f   :  { %v1539_v25 = vmul.f32 %v1537_v56, %v1531_v4 }
0x21a1   :  { %1541 = vrot.lane.b32.xlu0 %v1539_v25, %s4404_s30 }
0x21a9   :  { %759 = vrot.lane.b32.xlu0 %v4097_v11, %s4403_s4 }
0x2213   :  { %v1542_v57 = vpop.permute.xlu0 %1541 }
0x2214   :  { %v4984_v58 = vadd.f32 %v1542_v57, %v1534_v3 }
0x2216   :  { %4098 = vtanh.f32 %v4984_v58 }
0x2217   :  { %4100 = vpow2.f32 %v3866_v9 }
0x221b   :  { %v760_v19 = vpop.permute.xlu0 %759 }
0x221c   :  { %v4099_v60 = vpop.eup %4098 }
0x221d   :  { %1547 = vrot.lane.b32.xlu1 %v4099_v60, %s4403_s4  ;;  %v4101_v51 = vpop.eup %4100 }
0x221e   :  { %v740_v59 = vadd.f32 1.0, %v4101_v51 }
0x2220   :  { %4102 = vrcp.f32 %v740_v59  ;;  %v752_v12 = vand.u32 2147483648, %v740_v59  ;;  %vm746_vm13 = vweird.f32 %v740_v59  ;;  %v750_v15 = vand.u32 2147483647, %v740_v59 }
0x2222   :  { %v753_v18 = vor.u32 1.1754944e-38, %v752_v12  ;;  %vm751_vm15 = vcmp.eq.f32.partialorder %v750_v15, 8.507059e+37 }
0x2226   :  { %v4103_v61 = vpop.eup %4102 }
0x2227   :  { %v742_v5 = vmul.f32 %v4103_v61, %v740_v59  ;;  %vm747_vm12 = vweird.f32 %v4103_v61 }
0x2228   :  { %vm748_vm14 = vmor %vm746_vm13, %vm747_vm12 }
0x2229   :  { %v743_v63 = vsub.f32 1.0, %v742_v5 }
0x222b   :  { %v744_v2 = vmul.f32 %v4103_v61, %v743_v63 }
0x222d   :  { %v745_v10 = vadd.f32 %v4103_v61, %v744_v2 }
0x222f   :  { %v749_v16 = vsel %vm748_vm14, %v4103_v61, %v745_v10 }
0x2230   :  { %v754_v20 = vsel %vm751_vm15, %v753_v18, %v749_v16 }
0x2231   :  { %v762_v38 = vmul.f32 %v760_v19, %v754_v20  ;;  %v757_v17 = vmul.f32 %v754_v20, %v4825_v23 }
0x228f   :  { %v1548_v62 = vpop.permute.xlu1 %1547 }
0x2290   :  { %v4988_v7 = vmul.f32 %v1548_v62, %v1531_v4 }
0x2292   :  { %1552 = vst [vmem:[#allocation1] ss:$4 sm:$0xff] %v4988_v7 }
0x2299   :  { %v1553_v14 = vld.sshfl [vmem:[#allocation1] sm:$0xff pattern:$0x73625140] }
0x229a   :  { %1554 = vrot.lane.b32.xlu2 %v1553_v14, %s4404_s30 }
0x22a2   :  { %764 = vrot.lane.b32.xlu2 %v762_v38, %s4404_s30 }
0x22f4   :  { %v1555_v8 = vpop.permute.xlu2 %1554 }
0x22f5   :  { %3891 = vmatmul.msk.f32.vlgmr.msrb.gmra.mxu1 %vm175_vm7, %v1555_v8 }
0x22fc   :  { %v765_v32 = vpop.permute.xlu2 %764 }
0x22fd   :  { %v767_v22 = vadd.f32 %v765_v32, %v757_v17 }
0x2372   :  { %v1575_v34 = vpop.f32.mrf.mxu1 }
0x2373   :  { %v1578_v21 = vadd.f32 %v1575_v34, %v1463_v1 }
0x2375   :  { %4104 = vtanh.f32 %v1578_v21  ;;  %v3892_v29 = vmul.f32 -1.442695, %v1578_v21 }
0x2376   :  { %4106 = vtanh.f32 %v767_v22 }
0x2377   :  { %4108 = vpow2.f32 %v3892_v29 }
0x237b   :  { %v4105_v27 = vpop.eup %4104 }
0x237c   :  { %1601 = vrot.lane.b32.xlu1 %v4105_v27, %s4403_s4  ;;  %v4107_v28 = vpop.eup %4106 }
0x237d   :  { %v4109_v30 = vpop.eup %4108 }
0x237e   :  { %v1582_v26 = vadd.f32 1.0, %v4109_v30  ;;  %v1465_v30 = vrot.slane %v4976_v37, 6 }
0x2380   :  { %4110 = vrcp.f32 %v1582_v26  ;;  %v1594_v23 = vand.u32 2147483648, %v1582_v26  ;;  %vm1588_vm1 = vweird.f32 %v1582_v26  ;;  %v1592_v53 = vand.u32 2147483647, %v1582_v26 }
0x2382   :  { %v1595_v42 = vor.u32 1.1754944e-38, %v1594_v23  ;;  %vm1593_vm3 = vcmp.eq.f32.partialorder %v1592_v53, 8.507059e+37 }
0x2384   :  { %770 = vrot.lane.b32.xlu1 %v4107_v28, %s4403_s4  ;;  %v5024_v28 = vpop.f32.mrf.mxu3 }
0x2386   :  { %v4111_v6 = vpop.eup %4110 }
0x2387   :  { %v1584_v36 = vmul.f32 %v4111_v6, %v1582_v26  ;;  %vm1589_vm0 = vweird.f32 %v4111_v6 }
0x2388   :  { %vm1590_vm2 = vmor %vm1588_vm1, %vm1589_vm0 }
0x2389   :  { %v1585_v40 = vsub.f32 1.0, %v1584_v36 }
0x238b   :  { %v1586_v41 = vmul.f32 %v4111_v6, %v1585_v40 }
0x238d   :  { %v1587_v50 = vadd.f32 %v4111_v6, %v1586_v41 }
0x238f   :  { %v1591_v55 = vsel %vm1590_vm2, %v4111_v6, %v1587_v50 }
0x2390   :  { %v1596_v45 = vsel %vm1593_vm3, %v1595_v42, %v1591_v55 }
0x2391   :  { %v1599_v52 = vmul.f32 %v1596_v45, %v4984_v58  ;;  %v1464_v58 = vrot.slane %v4976_v37, 4 }
0x23ee   :  { %v1602_v44 = vpop.permute.xlu1 %1601 }
0x23ef   :  { %v1604_v46 = vmul.f32 %v1602_v44, %v1596_v45 }
0x23f1   :  { %1606 = vrot.lane.b32.xlu0 %v1604_v46, %s4404_s30 }
0x23f6   :  { %v771_v47 = vpop.permute.xlu1 %770 }
0x23f7   :  { %v773_v48 = vmul.f32 %v771_v47, %v754_v20 }
0x23f9   :  { %1394 = vst [vmem:[#allocation1 + $0x23] ss:$4 sm:$0xff] %v773_v48 }
0x2400   :  { %v1396_v49 = vld.sshfl [vmem:[#allocation1 + $0x20] sm:$0xff pattern:$0x73625140] }
0x2401   :  { %1399 = vrot.lane.b32.xlu0 %v1396_v49, %s4404_s30 }
0x2463   :  { %v1607_v39 = vpop.permute.xlu0 %1606 }
0x2464   :  { %v1609_v54 = vadd.f32 %v1607_v39, %v1599_v52 }
0x2466   :  { %4112 = vtanh.f32 %v1609_v54 }
0x246c   :  { %v4113_v0 = vpop.eup %4112 }
0x246d   :  { %1612 = vrot.lane.b32.xlu2 %v4113_v0, %s4403_s4 }
0x2473   :  { %v1400_v56 = vpop.permute.xlu0 %1399 }
0x2474   :  { %3887 = vmatmul.msk.f32.gmra.mxu2 %vm175_vm7, %v1400_v56  ;;  %3889 = vmatmul.msk.f32.gmra.mxu3 %vm175_vm7, %v1400_v56 }
0x24c7   :  { %v1613_v4 = vpop.permute.xlu2 %1612 }
0x24c8   :  { %v5008_v25 = vmul.f32 %v1613_v4, %v1596_v45 }
0x24ca   :  { %1617 = vst [vmem:[#allocation1] ss:$4 sm:$0xff] %v5008_v25 }
0x24d1   :  { %v1618_v11 = vld.sshfl [vmem:[#allocation1] sm:$0xff pattern:$0x73625140] }
0x24d2   :  { %1619 = vrot.lane.b32.xlu1 %v1618_v11, %s4404_s30 }
0x24f7   :  { %v5013_v57 = vpop.f32.mrf.mxu2  ;;  %v5026_v29 = vpop.f32.mrf.mxu3 }
0x2544   :  { %v1620_v3 = vpop.permute.xlu1 %1619 }
0x2545   :  { %3893 = vmatmul.msk.f32.vlgmr.msra.gmra.mxu2 %vm175_vm7, %v1620_v3 }
0x25c8   :  { %v1640_v60 = vpop.f32.mrf.mxu2 }
0x25c9   :  { %v1643_v9 = vadd.f32 %v1640_v60, %v1464_v58  ;;  %v5042_v58 = vld [vmem:[%s5552_s12 + $0x18] sm:$0xff]  ;;  %v5047_v60 = vld [vmem:[%s5552_s12 + $0x10] sm:$0xff] }
0x25ca   :  { %2022 = vmatpush.msrb.mxu0 %v5042_v58  ;;  %2087 = vmatpush.msrb.mxu1 %v5042_v58 }
0x25cb   :  { %4114 = vtanh.f32 %v1643_v9  ;;  %v3894_v59 = vmul.f32 -1.442695, %v1643_v9  ;;  %v5054_v9 = vld [vmem:[%s5552_s12 + $0x8] sm:$0xff]  ;;  %2152 = vmatpush.msra.mxu2 %v5042_v58 }
0x25cc   :  { %2023 = vmatpush.msrb.mxu0 %v5047_v60  ;;  %2088 = vmatpush.msrb.mxu1 %v5047_v60 }
0x25cd   :  { %4116 = vpow2.f32 %v3894_v59  ;;  %2153 = vmatpush.msra.mxu2 %v5047_v60 }
0x25ce   :  { %2024 = vmatpush.msrb.mxu0 %v5054_v9  ;;  %2089 = vmatpush.msrb.mxu1 %v5054_v9 }
0x25cf   :  { %2154 = vmatpush.msra.mxu2 %v5054_v9 }
0x25d1   :  { %v4115_v51 = vpop.eup %4114 }
0x25d2   :  { %1666 = vrot.lane.b32.xlu2 %v4115_v51, %s4403_s4  ;;  %v5063_v51 = vld [vmem:[%s5552_s12] sm:$0xff] }
0x25d3   :  { %v4117_v61 = vpop.eup %4116  ;;  %2025 = vmatpush.msrb.mxu0 %v5063_v51  ;;  %2090 = vmatpush.msrb.mxu1 %v5063_v51 }
0x25d4   :  { %v1647_v5 = vadd.f32 1.0, %v4117_v61  ;;  %2155 = vmatpush.msra.mxu2 %v5063_v51  ;;  %v1426_v61 = vadd.f32 %v5013_v57, %v4966_v31 }
0x25d6   :  { %4118 = vrcp.f32 %v1647_v5  ;;  %v1659_v14 = vand.u32 2147483648, %v1647_v5  ;;  %vm1653_vm5 = vweird.f32 %v1647_v5  ;;  %v1657_v15 = vand.u32 2147483647, %v1647_v5 }
0x25d8   :  { %v1660_v18 = vor.u32 1.1754944e-38, %v1659_v14  ;;  %vm1658_vm8 = vcmp.eq.f32.partialorder %v1657_v15, 8.507059e+37 }
0x25dc   :  { %v4119_v62 = vpop.eup %4118 }
0x25dd   :  { %v1649_v63 = vmul.f32 %v4119_v62, %v1647_v5  ;;  %vm1654_vm4 = vweird.f32 %v4119_v62  ;;  %v5085_v5 = vadd.f32 %v1453_v35, %v1426_v61 }
0x25de   :  { %vm1655_vm6 = vmor %vm1653_vm5, %vm1654_vm4 }
0x25df   :  { %v1650_v2 = vsub.f32 1.0, %v1649_v63 }
0x25e1   :  { %v1651_v10 = vmul.f32 %v4119_v62, %v1650_v2 }
0x25e3   :  { %v1652_v12 = vadd.f32 %v4119_v62, %v1651_v10 }
0x25e5   :  { %v1656_v16 = vsel %vm1655_vm6, %v4119_v62, %v1652_v12 }
0x25e6   :  { %v1661_v20 = vsel %vm1658_vm8, %v1660_v18, %v1656_v16 }
0x25e7   :  { %v1664_v8 = vmul.f32 %v1661_v20, %v1609_v54 }
0x262c   :  { %v1667_v19 = vpop.permute.xlu2 %1666 }
0x262d   :  { %v1669_v38 = vmul.f32 %v1667_v19, %v1661_v20 }
0x262f   :  { %1671 = vrot.lane.b32.xlu0 %v1669_v38, %s4404_s30 }
0x26a1   :  { %v1672_v1 = vpop.permute.xlu0 %1671 }
0x26a2   :  { %v1674_v34 = vadd.f32 %v1672_v1, %v1664_v8 }
0x26a4   :  { %4120 = vtanh.f32 %v1674_v34 }
0x26aa   :  { %v4121_v21 = vpop.eup %4120 }
0x26ab   :  { %1677 = vrot.lane.b32.xlu1 %v4121_v21, %s4403_s4 }
0x271d   :  { %v1678_v32 = vpop.permute.xlu1 %1677 }
0x271e   :  { %v5019_v17 = vmul.f32 %v1678_v32, %v1661_v20 }
0x2720   :  { %1682 = vst [vmem:[#allocation1] ss:$4 sm:$0xff] %v5019_v17 }
0x2727   :  { %v1683_v22 = vld.sshfl [vmem:[#allocation1] sm:$0xff pattern:$0x73625140] }
0x2728   :  { %1684 = vrot.lane.b32.xlu2 %v1683_v22, %s4404_s30 }
0x2782   :  { %v1685_v27 = vpop.permute.xlu2 %1684 }
0x2783   :  { %3895 = vmatmul.msk.f32.vlgmr.msra.gmra.mxu3 %vm175_vm7, %v1685_v27 }
0x2784   :  { %2217 = vmatpush.msra.mxu3 %v5042_v58 }
0x2786   :  { %2218 = vmatpush.msra.mxu3 %v5047_v60 }
0x2788   :  { %2219 = vmatpush.msra.mxu3 %v5054_v9 }
0x278a   :  { %2220 = vmatpush.msra.mxu3 %v5063_v51 }
0x2806   :  { %v1705_v26 = vpop.f32.mrf.mxu3 }
0x2807   :  { %v1708_v6 = vadd.f32 %v1705_v26, %v1465_v30 }
0x2809   :  { %4122 = vtanh.f32 %v1708_v6  ;;  %v3896_v40 = vmul.f32 -1.442695, %v1708_v6 }
0x280b   :  { %4124 = vpow2.f32 %v3896_v40  ;;  %v1466_v40 = vrot.slane %v5085_v5, 2 }
0x280f   :  { %v4123_v36 = vpop.eup %4122 }
0x2810   :  { %1731 = vrot.lane.b32.xlu0 %v4123_v36, %s4403_s4 }
0x2811   :  { %v4125_v41 = vpop.eup %4124 }
0x2812   :  { %v1712_v50 = vadd.f32 1.0, %v4125_v41 }
0x2814   :  { %4126 = vrcp.f32 %v1712_v50  ;;  %v1724_v45 = vand.u32 2147483648, %v1712_v50  ;;  %vm1718_vm10 = vweird.f32 %v1712_v50  ;;  %v1722_v37 = vand.u32 2147483647, %v1712_v50 }
0x2816   :  { %v1725_v47 = vor.u32 1.1754944e-38, %v1724_v45  ;;  %vm1723_vm12 = vcmp.eq.f32.partialorder %v1722_v37, 8.507059e+37 }
0x281a   :  { %v4127_v23 = vpop.eup %4126 }
0x281b   :  { %v1714_v53 = vmul.f32 %v4127_v23, %v1712_v50  ;;  %vm1719_vm9 = vweird.f32 %v4127_v23 }
0x281c   :  { %vm1720_vm11 = vmor %vm1718_vm10, %vm1719_vm9 }
0x281d   :  { %v1715_v55 = vsub.f32 1.0, %v1714_v53 }
0x281f   :  { %v1716_v42 = vmul.f32 %v4127_v23, %v1715_v55 }
0x2821   :  { %v1717_v44 = vadd.f32 %v4127_v23, %v1716_v42 }
0x2823   :  { %v1721_v46 = vsel %vm1720_vm11, %v4127_v23, %v1717_v44 }
0x2824   :  { %v1726_v49 = vsel %vm1723_vm12, %v1725_v47, %v1721_v46 }
0x2825   :  { %v1729_v39 = vmul.f32 %v1726_v49, %v1674_v34 }
0x2882   :  { %v1732_v48 = vpop.permute.xlu0 %1731 }
0x2883   :  { %v1734_v52 = vmul.f32 %v1732_v48, %v1726_v49 }
0x2885   :  { %1736 = vrot.lane.b32.xlu1 %v1734_v52, %s4404_s30 }
0x28f7   :  { %v1737_v54 = vpop.permute.xlu1 %1736 }
0x28f8   :  { %v5031_v0 = vadd.f32 %v1737_v54, %v1729_v39 }
0x28fa   :  { %4128 = vtanh.f32 %v5031_v0 }
0x2900   :  { %v4129_v56 = vpop.eup %4128 }
0x2901   :  { %1742 = vrot.lane.b32.xlu2 %v4129_v56, %s4403_s4 }
0x295b   :  { %v1743_v4 = vpop.permute.xlu2 %1742 }
0x295c   :  { %v5035_v11 = vmul.f32 %v1743_v4, %v1726_v49  ;;  %v1449_v4 = vadd.f32 %v5026_v29, %v4996_v13 }
0x295e   :  { %1747 = vst [vmem:[#allocation1] ss:$4 sm:$0xff] %v5035_v11 }
0x2965   :  { %v1748_v3 = vld.sshfl [vmem:[#allocation1] sm:$0xff pattern:$0x73625140] }
0x2966   :  { %1749 = vrot.lane.b32.xlu0 %v1748_v3, %s4404_s30  ;;  %v1454_v3 = vperm.slane %v4971_v33, 1 }
0x29d8   :  { %v1750_v59 = vpop.permute.xlu0 %1749 }
0x29d9   :  { %3897 = vmatmul.msk.f32.vlgmr.msra.gmra.mxu0 %vm175_vm7, %v1750_v59 }
0x29da   :  { %2282 = vmatpush.msra.mxu0 %v5042_v58 }
0x29dc   :  { %2283 = vmatpush.msra.mxu0 %v5047_v60 }
0x29de   :  { %2284 = vmatpush.msra.mxu0 %v5054_v9 }
0x29e0   :  { %2285 = vmatpush.msra.mxu0 %v5063_v51 }
0x29e1   :  { %2026 = vmatmul.f32.vlgmr.msrb.gmra.mxu0 %v4402_v24 }
0x2a56   :  { %v1770_v62 = vpop.f32.mrf.mxu0 }
0x2a57   :  { %v1773_v63 = vadd.f32 %v1770_v62, %v5085_v5  ;;  %v5109_v62 = vadd.f32 %v1454_v3, %v1449_v4 }
0x2a59   :  { %4130 = vtanh.f32 %v1773_v63  ;;  %v3898_v10 = vmul.f32 -1.442695, %v1773_v63 }
0x2a5b   :  { %4132 = vpow2.f32 %v3898_v10  ;;  %v1482_v10 = vrot.slane %v5109_v62, 6 }
0x2a5f   :  { %v4131_v2 = vpop.eup %4130 }
0x2a60   :  { %1796 = vrot.lane.b32.xlu1 %v4131_v2, %s4403_s4  ;;  %v2027_v2 = vpop.f32.mrf.mxu0 }
0x2a61   :  { %v4133_v12 = vpop.eup %4132 }
0x2a62   :  { %v1777_v14 = vadd.f32 1.0, %v4133_v12  ;;  %v2030_v12 = vadd.f32 %v2027_v2, %v1482_v10 }
0x2a64   :  { %4134 = vrcp.f32 %v1777_v14  ;;  %v1789_v35 = vand.u32 2147483648, %v1777_v14  ;;  %vm1783_vm14 = vweird.f32 %v1777_v14  ;;  %v1787_v19 = vand.u32 2147483647, %v1777_v14 }
0x2a66   :  { %v1790_v38 = vor.u32 1.1754944e-38, %v1789_v35  ;;  %vm1788_vm0 = vcmp.eq.f32.partialorder %v1787_v19, 8.507059e+37 }
0x2a6a   :  { %v4135_v15 = vpop.eup %4134 }
0x2a6b   :  { %v1779_v16 = vmul.f32 %v4135_v15, %v1777_v14  ;;  %vm1784_vm13 = vweird.f32 %v4135_v15 }
0x2a6c   :  { %vm1785_vm15 = vmor %vm1783_vm14, %vm1784_vm13 }
0x2a6d   :  { %v1780_v18 = vsub.f32 1.0, %v1779_v16 }
0x2a6f   :  { %v1781_v31 = vmul.f32 %v4135_v15, %v1780_v18 }
0x2a71   :  { %v1782_v57 = vadd.f32 %v4135_v15, %v1781_v31  ;;  %v3905_v31 = vmul.f32 -1.442695, %v2030_v12 }
0x2a73   :  { %v1786_v20 = vsel %vm1785_vm15, %v4135_v15, %v1782_v57 }
0x2a74   :  { %v1791_v1 = vsel %vm1788_vm0, %v1790_v38, %v1786_v20  ;;  %v1467_v38 = vrot.slane %v5085_v5, 4 }
0x2a75   :  { %v1794_v21 = vmul.f32 %v1791_v1, %v5031_v0 }
0x2ad2   :  { %v1797_v8 = vpop.permute.xlu1 %1796 }
0x2ad3   :  { %v1799_v34 = vmul.f32 %v1797_v8, %v1791_v1 }
0x2ad5   :  { %1801 = vrot.lane.b32.xlu2 %v1799_v34, %s4404_s30 }
0x2b2f   :  { %v1802_v32 = vpop.permute.xlu2 %1801 }
0x2b30   :  { %v1804_v22 = vadd.f32 %v1802_v32, %v1794_v21 }
0x2b32   :  { %4136 = vtanh.f32 %v1804_v22 }
0x2b38   :  { %v4137_v27 = vpop.eup %4136 }
0x2b39   :  { %1807 = vrot.lane.b32.xlu0 %v4137_v27, %s4403_s4 }
0x2bab   :  { %v1808_v30 = vpop.permute.xlu0 %1807 }
0x2bac   :  { %v5092_v26 = vmul.f32 %v1808_v30, %v1791_v1 }
0x2bae   :  { %1812 = vst [vmem:[#allocation1] ss:$4 sm:$0xff] %v5092_v26 }
0x2bb5   :  { %v1813_v6 = vld.sshfl [vmem:[#allocation1] sm:$0xff pattern:$0x73625140] }
0x2bb6   :  { %1814 = vrot.lane.b32.xlu1 %v1813_v6, %s4404_s30 }
0x2c28   :  { %v1815_v36 = vpop.permute.xlu1 %1814 }
0x2c29   :  { %3899 = vmatmul.msk.f32.vlgmr.msra.gmra.mxu1 %vm175_vm7, %v1815_v36 }
0x2c2a   :  { %2347 = vmatpush.msra.mxu1 %v5042_v58 }
0x2c2c   :  { %2348 = vmatpush.msra.mxu1 %v5047_v60 }
0x2c2e   :  { %2349 = vmatpush.msra.mxu1 %v5054_v9 }
0x2c30   :  { %2350 = vmatpush.msra.mxu1 %v5063_v51 }
0x2ca6   :  { %v1835_v41 = vpop.f32.mrf.mxu1 }
0x2ca7   :  { %v1838_v50 = vadd.f32 %v1835_v41, %v1466_v40 }
0x2ca9   :  { %4138 = vtanh.f32 %v1838_v50  ;;  %v3900_v53 = vmul.f32 -1.442695, %v1838_v50 }
0x2cab   :  { %4140 = vpow2.f32 %v3900_v53 }
0x2caf   :  { %v4139_v23 = vpop.eup %4138 }
0x2cb0   :  { %1861 = vrot.lane.b32.xlu2 %v4139_v23, %s4403_s4 }
0x2cb1   :  { %v4141_v55 = vpop.eup %4140 }
0x2cb2   :  { %v1842_v42 = vadd.f32 1.0, %v4141_v55 }
0x2cb4   :  { %4142 = vrcp.f32 %v1842_v42  ;;  %v1854_v48 = vand.u32 2147483648, %v1842_v42  ;;  %vm1848_vm2 = vweird.f32 %v1842_v42  ;;  %v1852_v49 = vand.u32 2147483647, %v1842_v42 }
0x2cb6   :  { %v1855_v39 = vor.u32 1.1754944e-38, %v1854_v48  ;;  %vm1853_vm4 = vcmp.eq.f32.partialorder %v1852_v49, 8.507059e+37 }
0x2cba   :  { %v4143_v44 = vpop.eup %4142 }
0x2cbb   :  { %v1844_v45 = vmul.f32 %v4143_v44, %v1842_v42  ;;  %vm1849_vm1 = vweird.f32 %v4143_v44 }
0x2cbc   :  { %vm1850_vm3 = vmor %vm1848_vm2, %vm1849_vm1 }
0x2cbd   :  { %v1845_v37 = vsub.f32 1.0, %v1844_v45 }
0x2cbf   :  { %v1846_v46 = vmul.f32 %v4143_v44, %v1845_v37 }
0x2cc1   :  { %v1847_v47 = vadd.f32 %v4143_v44, %v1846_v46 }
0x2cc3   :  { %v1851_v52 = vsel %vm1850_vm3, %v4143_v44, %v1847_v47 }
0x2cc4   :  { %v1856_v0 = vsel %vm1853_vm4, %v1855_v39, %v1851_v52 }
0x2cc5   :  { %v1859_v59 = vmul.f32 %v1856_v0, %v1804_v22 }
0x2d0a   :  { %v1862_v54 = vpop.permute.xlu2 %1861 }
0x2d0b   :  { %v1864_v56 = vmul.f32 %v1862_v54, %v1856_v0 }
0x2d0d   :  { %1866 = vrot.lane.b32.xlu0 %v1864_v56, %s4404_s30 }
0x2d7f   :  { %v1867_v61 = vpop.permute.xlu0 %1866 }
0x2d80   :  { %v5111_v63 = vadd.f32 %v1867_v61, %v1859_v59 }
0x2d82   :  { %4144 = vtanh.f32 %v5111_v63 }
0x2d83   :  { %4146 = vtanh.f32 %v2030_v12 }
0x2d84   :  { %4148 = vpow2.f32 %v3905_v31 }
0x2d88   :  { %v4145_v14 = vpop.eup %4144 }
0x2d89   :  { %1872 = vrot.lane.b32.xlu1 %v4145_v14, %s4403_s4  ;;  %v4147_v13 = vpop.eup %4146 }
0x2d8a   :  { %v4149_v57 = vpop.eup %4148 }
0x2d8b   :  { %v2034_v35 = vadd.f32 1.0, %v4149_v57 }
0x2d8d   :  { %4150 = vrcp.f32 %v2034_v35  ;;  %v2046_v27 = vand.u32 2147483648, %v2034_v35  ;;  %vm2040_vm6 = vweird.f32 %v2034_v35  ;;  %v2044_v30 = vand.u32 2147483647, %v2034_v35 }
0x2d8f   :  { %v2047_v36 = vor.u32 1.1754944e-38, %v2046_v27  ;;  %vm2045_vm9 = vcmp.eq.f32.partialorder %v2044_v30, 8.507059e+37 }
0x2d91   :  { %2053 = vrot.lane.b32.xlu1 %v4147_v13, %s4403_s4 }
0x2d93   :  { %v4151_v19 = vpop.eup %4150 }
0x2d94   :  { %v2036_v20 = vmul.f32 %v4151_v19, %v2034_v35  ;;  %vm2041_vm5 = vweird.f32 %v4151_v19  ;;  %v1481_v35 = vrot.slane %v5109_v62, 4 }
0x2d95   :  { %vm2042_vm8 = vmor %vm2040_vm6, %vm2041_vm5 }
0x2d96   :  { %v2037_v8 = vsub.f32 1.0, %v2036_v20 }
0x2d98   :  { %v2038_v21 = vmul.f32 %v4151_v19, %v2037_v8 }
0x2d9a   :  { %v2039_v32 = vadd.f32 %v4151_v19, %v2038_v21 }
0x2d9c   :  { %v2043_v6 = vsel %vm2042_vm8, %v4151_v19, %v2039_v32 }
0x2d9d   :  { %v2048_v41 = vsel %vm2045_vm9, %v2047_v36, %v2043_v6 }
0x2d9e   :  { %v2051_v56 = vmul.f32 0.0, %v2048_v41 }
0x2dfb   :  { %v1873_v29 = vpop.permute.xlu1 %1872 }
0x2dfc   :  { %v5117_v15 = vmul.f32 %v1873_v29, %v1856_v0 }
0x2dfe   :  { %1877 = vst [vmem:[#allocation1] ss:$4 sm:$0xff] %v5117_v15 }
0x2e03   :  { %v2054_v40 = vpop.permute.xlu1 %2053 }
0x2e04   :  { %v2056_v50 = vmul.f32 %v2054_v40, %v2048_v41 }
0x2e05   :  { %v1878_v16 = vld.sshfl [vmem:[#allocation1] sm:$0xff pattern:$0x73625140] }
0x2e06   :  { %1879 = vrot.lane.b32.xlu2 %v1878_v16, %s4404_s30 }
0x2e60   :  { %v1880_v18 = vpop.permute.xlu2 %1879 }
0x2e61   :  { %3901 = vmatmul.msk.f32.vlgmr.msrb.gmra.mxu2 %vm175_vm7, %v1880_v18 }
0x2e62   :  { %2412 = vmatpush.msrb.mxu2 %v5042_v58 }
0x2e64   :  { %2413 = vmatpush.msrb.mxu2 %v5047_v60 }
0x2e66   :  { %2414 = vmatpush.msrb.mxu2 %v5054_v9 }
0x2e68   :  { %2415 = vmatpush.msrb.mxu2 %v5063_v51 }
0x2ee4   :  { %v1900_v1 = vpop.f32.mrf.mxu2 }
0x2ee5   :  { %v1903_v34 = vadd.f32 %v1900_v1, %v1467_v38 }
0x2ee7   :  { %4152 = vtanh.f32 %v1903_v34  ;;  %v3902_v23 = vmul.f32 -1.442695, %v1903_v34 }
0x2ee9   :  { %4154 = vpow2.f32 %v3902_v23 }
0x2eed   :  { %v4153_v22 = vpop.eup %4152 }
0x2eee   :  { %1926 = vrot.lane.b32.xlu0 %v4153_v22, %s4403_s4 }
0x2eef   :  { %v4155_v53 = vpop.eup %4154 }
0x2ef0   :  { %v1907_v55 = vadd.f32 1.0, %v4155_v53 }
0x2ef2   :  { %4156 = vrcp.f32 %v1907_v55  ;;  %v1919_v47 = vand.u32 2147483648, %v1907_v55  ;;  %vm1913_vm11 = vweird.f32 %v1907_v55  ;;  %v1917_v48 = vand.u32 2147483647, %v1907_v55 }
0x2ef4   :  { %v1920_v52 = vor.u32 1.1754944e-38, %v1919_v47  ;;  %vm1918_vm13 = vcmp.eq.f32.partialorder %v1917_v48, 8.507059e+37 }
0x2ef6   :  { %2058 = vrot.lane.b32.xlu0 %v2056_v50, %s4404_s30 }
0x2ef8   :  { %v4157_v42 = vpop.eup %4156 }
0x2ef9   :  { %v1909_v44 = vmul.f32 %v4157_v42, %v1907_v55  ;;  %vm1914_vm10 = vweird.f32 %v4157_v42 }
0x2efa   :  { %vm1915_vm12 = vmor %vm1913_vm11, %vm1914_vm10 }
0x2efb   :  { %v1910_v45 = vsub.f32 1.0, %v1909_v44 }
0x2efd   :  { %v1911_v37 = vmul.f32 %v4157_v42, %v1910_v45 }
0x2eff   :  { %v1912_v46 = vadd.f32 %v4157_v42, %v1911_v37 }
0x2f01   :  { %v1916_v49 = vsel %vm1915_vm12, %v4157_v42, %v1912_v46 }
0x2f02   :  { %v1921_v54 = vsel %vm1918_vm13, %v1920_v52, %v1916_v49  ;;  %v1480_v49 = vrot.slane %v5109_v62, 2 }
0x2f03   :  { %v1924_v2 = vmul.f32 %v1921_v54, %v5111_v63 }
0x2f60   :  { %v1927_v39 = vpop.permute.xlu0 %1926 }
0x2f61   :  { %v1929_v0 = vmul.f32 %v1927_v39, %v1921_v54 }
0x2f63   :  { %1931 = vrot.lane.b32.xlu2 %v1929_v0, %s4404_s30 }
0x2f68   :  { %v2059_v4 = vpop.permute.xlu0 %2058 }
0x2f69   :  { %v2061_v59 = vadd.f32 %v2059_v4, %v2051_v56 }
0x2f6b   :  { %4158 = vtanh.f32 %v2061_v59 }
0x2f71   :  { %v4159_v61 = vpop.eup %4158 }
0x2f72   :  { %2064 = vrot.lane.b32.xlu2 %v4159_v61, %s4403_s4 }
0x2fbd   :  { %v1932_v10 = vpop.permute.xlu2 %1931 }
0x2fbe   :  { %v5132_v12 = vadd.f32 %v1932_v10, %v1924_v2 }
0x2fc0   :  { %4160 = vtanh.f32 %v5132_v12 }
0x2fc6   :  { %v4161_v14 = vpop.eup %4160 }
0x2fc7   :  { %1937 = vrot.lane.b32.xlu1 %v4161_v14, %s4403_s4 }
0x2fcc   :  { %v2065_v13 = vpop.permute.xlu2 %2064 }
0x2fcd   :  { %v2067_v29 = vmul.f32 %v2065_v13, %v2048_v41 }
0x2fcf   :  { %2554 = vst [vmem:[#allocation1 + $0x23] ss:$4 sm:$0xff] %v2067_v29 }
0x3039   :  { %v1938_v16 = vpop.permute.xlu1 %1937 }
0x303a   :  { %v5136_v18 = vmul.f32 %v1938_v16, %v1921_v54 }
0x303c   :  { %1942 = vst [vmem:[#allocation1] ss:$4 sm:$0xff] %v5136_v18 }
0x3043   :  { %v1943_v31 = vld.sshfl [vmem:[#allocation1] sm:$0xff pattern:$0x73625140] }
0x3044   :  { %2069 = vst [vmem:[#allocation1] ss:$4 sm:$0xff] %v2067_v29 }
0x304b   :  { %v2070_v57 = vld.sshfl [vmem:[#allocation1] sm:$0xff pattern:$0x73625140] }
0x304c   :  { %2071 = vrot.lane.b32.xlu0 %v2070_v57, %s4404_s30 }
0x30be   :  { %v2072_v63 = vpop.permute.xlu0 %2071 }
0x30bf   :  { %3906 = vmatmul.msk.f32.vlgmr.msrb.gmra.mxu1 %vm175_vm7, %v2072_v63 }
0x313c   :  { %v2092_v19 = vpop.f32.mrf.mxu1 }
0x313d   :  { %v2095_v20 = vadd.f32 %v2092_v19, %v1481_v35 }
0x313f   :  { %4162 = vtanh.f32 %v2095_v20  ;;  %v3907_v8 = vmul.f32 -1.442695, %v2095_v20 }
0x3141   :  { %4164 = vpow2.f32 %v3907_v8 }
0x3145   :  { %v4163_v38 = vpop.eup %4162 }
0x3146   :  { %2118 = vrot.lane.b32.xlu1 %v4163_v38, %s4403_s4 }
0x3147   :  { %v4165_v1 = vpop.eup %4164 }
0x3148   :  { %v2099_v34 = vadd.f32 1.0, %v4165_v1 }
0x314a   :  { %4166 = vrcp.f32 %v2099_v34  ;;  %v2111_v6 = vand.u32 2147483648, %v2099_v34  ;;  %vm2105_vm15 = vweird.f32 %v2099_v34  ;;  %v2109_v36 = vand.u32 2147483647, %v2099_v34 }
0x314c   :  { %v2112_v41 = vor.u32 1.1754944e-38, %v2111_v6  ;;  %vm2110_vm1 = vcmp.eq.f32.partialorder %v2109_v36, 8.507059e+37 }
0x3150   :  { %v4167_v21 = vpop.eup %4166 }
0x3151   :  { %v2101_v32 = vmul.f32 %v4167_v21, %v2099_v34  ;;  %vm2106_vm14 = vweird.f32 %v4167_v21 }
0x3152   :  { %vm2107_vm0 = vmor %vm2105_vm15, %vm2106_vm14 }
0x3153   :  { %v2102_v22 = vsub.f32 1.0, %v2101_v32 }
0x3155   :  { %v2103_v27 = vmul.f32 %v4167_v21, %v2102_v22 }
0x3157   :  { %v2104_v30 = vadd.f32 %v4167_v21, %v2103_v27 }
0x3159   :  { %v2108_v40 = vsel %vm2107_vm0, %v4167_v21, %v2104_v30 }
0x315a   :  { %v2113_v23 = vsel %vm2110_vm1, %v2112_v41, %v2108_v40 }
0x315b   :  { %v2116_v55 = vmul.f32 %v2113_v23, %v2061_v59 }
0x31b8   :  { %v2119_v50 = vpop.permute.xlu1 %2118 }
0x31b9   :  { %v2121_v53 = vmul.f32 %v2119_v50, %v2113_v23 }
0x31bb   :  { %2123 = vrot.lane.b32.xlu2 %v2121_v53, %s4404_s30 }
0x3215   :  { %v2124_v42 = vpop.permute.xlu2 %2123 }
0x3216   :  { %v2126_v44 = vadd.f32 %v2124_v42, %v2116_v55 }
0x3218   :  { %4168 = vtanh.f32 %v2126_v44 }
0x321e   :  { %v4169_v45 = vpop.eup %4168 }
0x321f   :  { %2129 = vrot.lane.b32.xlu0 %v4169_v45, %s4403_s4 }
0x3291   :  { %v2130_v37 = vpop.permute.xlu0 %2129 }
0x3292   :  { %v2132_v46 = vmul.f32 %v2130_v37, %v2113_v23 }
0x3294   :  { %2552 = vst [vmem:[#allocation1 + $0x22] ss:$4 sm:$0xff] %v2132_v46 }
0x3295   :  { %2134 = vst [vmem:[#allocation1] ss:$4 sm:$0xff] %v2132_v46 }
0x329c   :  { %v2135_v47 = vld.sshfl [vmem:[#allocation1] sm:$0xff pattern:$0x73625140] }
0x329d   :  { %2136 = vrot.lane.b32.xlu1 %v2135_v47, %s4404_s30 }
0x330f   :  { %v2137_v48 = vpop.permute.xlu1 %2136 }
0x3310   :  { %3908 = vmatmul.msk.f32.vlgmr.msra.gmra.mxu2 %vm175_vm7, %v2137_v48 }
0x3393   :  { %v2157_v52 = vpop.f32.mrf.mxu2 }
0x3394   :  { %v2160_v39 = vadd.f32 %v2157_v52, %v1480_v49 }
0x3396   :  { %4170 = vtanh.f32 %v2160_v39  ;;  %v3909_v0 = vmul.f32 -1.442695, %v2160_v39 }
0x3398   :  { %4172 = vpow2.f32 %v3909_v0 }
0x339c   :  { %v4171_v54 = vpop.eup %4170 }
0x339d   :  { %2183 = vrot.lane.b32.xlu2 %v4171_v54, %s4403_s4 }
0x339e   :  { %v4173_v56 = vpop.eup %4172 }
0x339f   :  { %v2164_v4 = vadd.f32 1.0, %v4173_v56 }
0x33a1   :  { %4174 = vrcp.f32 %v2164_v4  ;;  %v2176_v13 = vand.u32 2147483648, %v2164_v4  ;;  %vm2170_vm3 = vweird.f32 %v2164_v4  ;;  %v2174_v29 = vand.u32 2147483647, %v2164_v4 }
0x33a3   :  { %v2177_v57 = vor.u32 1.1754944e-38, %v2176_v13  ;;  %vm2175_vm5 = vcmp.eq.f32.partialorder %v2174_v29, 8.507059e+37 }
0x33a5   :  { %1944 = vrot.lane.b32.xlu2 %v1943_v31, %s4404_s30 }
0x33a7   :  { %v4175_v59 = vpop.eup %4174 }
0x33a8   :  { %v2166_v61 = vmul.f32 %v4175_v59, %v2164_v4  ;;  %vm2171_vm2 = vweird.f32 %v4175_v59  ;;  %v1446_v4 = vadd.f32 %v5024_v28, %v4994_v43 }
0x33a9   :  { %vm2172_vm4 = vmor %vm2170_vm3, %vm2171_vm2 }
0x33aa   :  { %v2167_v2 = vsub.f32 1.0, %v2166_v61 }
0x33ac   :  { %v2168_v10 = vmul.f32 %v4175_v59, %v2167_v2 }
0x33ae   :  { %v2169_v14 = vadd.f32 %v4175_v59, %v2168_v10 }
0x33b0   :  { %v2173_v16 = vsel %vm2172_vm4, %v4175_v59, %v2169_v14  ;;  %v5176_v59 = vadd.f32 %v1454_v3, %v1446_v4 }
0x33b1   :  { %v2178_v31 = vsel %vm2175_vm5, %v2177_v57, %v2173_v16 }
0x33b2   :  { %v2181_v20 = vmul.f32 %v2178_v31, %v2126_v44  ;;  %v1479_v61 = vrot.slane %v5176_v59, 6 }
0x33f7   :  { %v2184_v63 = vpop.permute.xlu2 %2183 }
0x33f8   :  { %v2186_v35 = vmul.f32 %v2184_v63, %v2178_v31 }
0x33fa   :  { %2188 = vrot.lane.b32.xlu0 %v2186_v35, %s4404_s30 }
0x33ff   :  { %v1945_v19 = vpop.permute.xlu2 %1944 }
0x3400   :  { %3903 = vmatmul.msk.f32.vlgmr.msrb.gmra.mxu3 %vm175_vm7, %v1945_v19 }
0x3401   :  { %2477 = vmatpush.msrb.mxu3 %v5042_v58 }
0x3403   :  { %2478 = vmatpush.msrb.mxu3 %v5047_v60 }
0x3405   :  { %2479 = vmatpush.msrb.mxu3 %v5054_v9 }
0x3407   :  { %2480 = vmatpush.msrb.mxu3 %v5063_v51 }
0x346c   :  { %v2189_v38 = vpop.permute.xlu0 %2188 }
0x346d   :  { %v2191_v8 = vadd.f32 %v2189_v38, %v2181_v20 }
0x346f   :  { %4176 = vtanh.f32 %v2191_v8 }
0x3475   :  { %v4177_v1 = vpop.eup %4176 }
0x3476   :  { %2194 = vrot.lane.b32.xlu1 %v4177_v1, %s4403_s4 }
0x3483   :  { %v5159_v60 = vpop.f32.mrf.mxu3 }
0x34e8   :  { %v2195_v34 = vpop.permute.xlu1 %2194 }
0x34e9   :  { %v2197_v21 = vmul.f32 %v2195_v34, %v2178_v31 }
0x34eb   :  { %2550 = vst [vmem:[#allocation1 + $0x21] ss:$4 sm:$0xff] %v2197_v21 }
0x34ec   :  { %2199 = vst [vmem:[#allocation1] ss:$4 sm:$0xff] %v2197_v21 }
0x34f3   :  { %v2200_v32 = vld.sshfl [vmem:[#allocation1] sm:$0xff pattern:$0x73625140] }
0x34f4   :  { %2201 = vrot.lane.b32.xlu0 %v2200_v32, %s4404_s30 }
0x3566   :  { %v2202_v58 = vpop.permute.xlu0 %2201 }
0x3567   :  { %3910 = vmatmul.msk.f32.vlgmr.msra.gmra.mxu3 %vm175_vm7, %v2202_v58 }
0x35ea   :  { %v2222_v9 = vpop.f32.mrf.mxu3 }
0x35eb   :  { %v2225_v51 = vadd.f32 %v2222_v9, %v5109_v62  ;;  %v1478_v9 = vrot.slane %v5176_v59, 4 }
0x35ed   :  { %4178 = vtanh.f32 %v2225_v51  ;;  %v3911_v27 = vmul.f32 -1.442695, %v2225_v51 }
0x35ef   :  { %4180 = vpow2.f32 %v3911_v27 }
0x35f3   :  { %v4179_v22 = vpop.eup %4178 }
0x35f4   :  { %2248 = vrot.lane.b32.xlu1 %v4179_v22, %s4403_s4 }
0x35f5   :  { %v4181_v30 = vpop.eup %4180 }
0x35f6   :  { %v2229_v6 = vadd.f32 1.0, %v4181_v30 }
0x35f8   :  { %4182 = vrcp.f32 %v2229_v6  ;;  %v2241_v53 = vand.u32 2147483648, %v2229_v6  ;;  %vm2235_vm8 = vweird.f32 %v2229_v6  ;;  %v2239_v55 = vand.u32 2147483647, %v2229_v6 }
0x35fa   :  { %v2242_v42 = vor.u32 1.1754944e-38, %v2241_v53  ;;  %vm2240_vm10 = vcmp.eq.f32.partialorder %v2239_v55, 8.507059e+37 }
0x35fe   :  { %v4183_v36 = vpop.eup %4182 }
0x35ff   :  { %v2231_v40 = vmul.f32 %v4183_v36, %v2229_v6  ;;  %vm2236_vm6 = vweird.f32 %v4183_v36 }
0x3600   :  { %vm2237_vm9 = vmor %vm2235_vm8, %vm2236_vm6 }
0x3601   :  { %v2232_v41 = vsub.f32 1.0, %v2231_v40 }
0x3603   :  { %v2233_v50 = vmul.f32 %v4183_v36, %v2232_v41 }
0x3605   :  { %v2234_v23 = vadd.f32 %v4183_v36, %v2233_v50 }
0x3607   :  { %v2238_v62 = vsel %vm2237_vm9, %v4183_v36, %v2234_v23 }
0x3608   :  { %v2243_v45 = vsel %vm2240_vm10, %v2242_v42, %v2238_v62 }
0x3609   :  { %v2246_v46 = vmul.f32 %v2243_v45, %v2191_v8 }
0x3666   :  { %v2249_v44 = vpop.permute.xlu1 %2248 }
0x3667   :  { %v2251_v37 = vmul.f32 %v2249_v44, %v2243_v45 }
0x3669   :  { %2253 = vrot.lane.b32.xlu2 %v2251_v37, %s4404_s30 }
0x36c3   :  { %v2254_v47 = vpop.permute.xlu2 %2253 }
0x36c4   :  { %v2256_v48 = vadd.f32 %v2254_v47, %v2246_v46 }
0x36c6   :  { %4184 = vtanh.f32 %v2256_v48 }
0x36cc   :  { %v4185_v49 = vpop.eup %4184 }
0x36cd   :  { %2259 = vrot.lane.b32.xlu0 %v4185_v49, %s4403_s4 }
0x373f   :  { %v2260_v52 = vpop.permute.xlu0 %2259 }
0x3740   :  { %v2262_v39 = vmul.f32 %v2260_v52, %v2243_v45 }
0x3742   :  { %2548 = vst [vmem:[#allocation1 + $0x20] ss:$4 sm:$0xff] %v2262_v39 }
0x3743   :  { %2264 = vst [vmem:[#allocation1] ss:$4 sm:$0xff] %v2262_v39 }
0x3749   :  { %v5165_v54 = vld.sshfl [vmem:[#allocation1 + $0x20] sm:$0xff pattern:$0x73625140] }
0x374a   :  { %v2265_v0 = vld.sshfl [vmem:[#allocation1] sm:$0xff pattern:$0x73625140]  ;;  %2620 = vst [vmem:[#allocation1 + $0x20] ss:$4 sm:$0xff] %v5092_v26 }
0x374b   :  { %2266 = vrot.lane.b32.xlu1 %v2265_v0, %s4404_s30  ;;  %2622 = vst [vmem:[#allocation1 + $0x21] ss:$4 sm:$0xff] %v5117_v15 }
0x374c   :  { %2624 = vst [vmem:[#allocation1 + $0x22] ss:$4 sm:$0xff] %v5136_v18 }
0x37bd   :  { %v2267_v56 = vpop.permute.xlu1 %2266 }
0x37be   :  { %3912 = vmatmul.msk.f32.vlgmr.msra.gmra.mxu0 %vm175_vm7, %v2267_v56 }
0x383b   :  { %v2287_v2 = vpop.f32.mrf.mxu0 }
0x383c   :  { %v2290_v26 = vadd.f32 %v2287_v2, %v1479_v61  ;;  %v1477_v61 = vrot.slane %v5176_v59, 2 }
0x383e   :  { %4186 = vtanh.f32 %v2290_v26  ;;  %v3913_v15 = vmul.f32 -1.442695, %v2290_v26 }
0x3840   :  { %4188 = vpow2.f32 %v3913_v15 }
0x3844   :  { %v4187_v10 = vpop.eup %4186 }
0x3845   :  { %2313 = vrot.lane.b32.xlu2 %v4187_v10, %s4403_s4 }
0x3846   :  { %v4189_v18 = vpop.eup %4188 }
0x3847   :  { %v2294_v14 = vadd.f32 1.0, %v4189_v18 }
0x3849   :  { %4190 = vrcp.f32 %v2294_v14  ;;  %v2306_v3 = vand.u32 2147483648, %v2294_v14  ;;  %vm2300_vm12 = vweird.f32 %v2294_v14  ;;  %v2304_v16 = vand.u32 2147483647, %v2294_v14 }
0x384b   :  { %v2307_v63 = vor.u32 1.1754944e-38, %v2306_v3  ;;  %vm2305_vm14 = vcmp.eq.f32.partialorder %v2304_v16, 8.507059e+37 }
0x384f   :  { %v4191_v13 = vpop.eup %4190 }
0x3850   :  { %v2296_v29 = vmul.f32 %v4191_v13, %v2294_v14  ;;  %vm2301_vm11 = vweird.f32 %v4191_v13 }
0x3851   :  { %vm2302_vm13 = vmor %vm2300_vm12, %vm2301_vm11 }
0x3852   :  { %v2297_v43 = vsub.f32 1.0, %v2296_v29 }
0x3854   :  { %v2298_v28 = vmul.f32 %v4191_v13, %v2297_v43 }
0x3856   :  { %v2299_v33 = vadd.f32 %v4191_v13, %v2298_v28 }
0x3858   :  { %v2303_v57 = vsel %vm2302_vm13, %v4191_v13, %v2299_v33 }
0x3859   :  { %v2308_v35 = vsel %vm2305_vm14, %v2307_v63, %v2303_v57 }
0x385a   :  { %v2311_v20 = vmul.f32 %v2308_v35, %v2256_v48 }
0x389f   :  { %v2314_v31 = vpop.permute.xlu2 %2313 }
0x38a0   :  { %v2316_v19 = vmul.f32 %v2314_v31, %v2308_v35 }
0x38a2   :  { %2318 = vrot.lane.b32.xlu0 %v2316_v19, %s4404_s30 }
0x3914   :  { %v2319_v38 = vpop.permute.xlu0 %2318 }
0x3915   :  { %v2321_v8 = vadd.f32 %v2319_v38, %v2311_v20 }
0x3917   :  { %4192 = vtanh.f32 %v2321_v8 }
0x391d   :  { %v4193_v1 = vpop.eup %4192 }
0x391e   :  { %2324 = vrot.lane.b32.xlu1 %v4193_v1, %s4403_s4 }
0x3990   :  { %v2325_v34 = vpop.permute.xlu1 %2324 }
0x3991   :  { %v5182_v21 = vmul.f32 %v2325_v34, %v2308_v35 }
0x3993   :  { %2329 = vst [vmem:[#allocation1] ss:$4 sm:$0xff] %v5182_v21 }
0x399a   :  { %v2330_v32 = vld.sshfl [vmem:[#allocation1] sm:$0xff pattern:$0x73625140] }
0x399b   :  { %2331 = vrot.lane.b32.xlu2 %v2330_v32, %s4404_s30 }
0x39f5   :  { %v2332_v58 = vpop.permute.xlu2 %2331 }
0x39f6   :  { %3914 = vmatmul.msk.f32.vlgmr.msra.gmra.mxu1 %vm175_vm7, %v2332_v58 }
0x3a73   :  { %v2352_v51 = vpop.f32.mrf.mxu1 }
0x3a74   :  { %v2355_v22 = vadd.f32 %v2352_v51, %v1478_v9 }
0x3a76   :  { %4194 = vtanh.f32 %v2355_v22  ;;  %v3915_v30 = vmul.f32 -1.442695, %v2355_v22 }
0x3a78   :  { %4196 = vpow2.f32 %v3915_v30 }
0x3a7c   :  { %v4195_v27 = vpop.eup %4194 }
0x3a7d   :  { %2378 = vrot.lane.b32.xlu0 %v4195_v27, %s4403_s4 }
0x3a7e   :  { %v4197_v6 = vpop.eup %4196 }
0x3a7f   :  { %v2359_v36 = vadd.f32 1.0, %v4197_v6 }
0x3a81   :  { %4198 = vrcp.f32 %v2359_v36  ;;  %v2371_v55 = vand.u32 2147483648, %v2359_v36  ;;  %vm2365_vm0 = vweird.f32 %v2359_v36  ;;  %v2369_v62 = vand.u32 2147483647, %v2359_v36 }
0x3a83   :  { %v2372_v44 = vor.u32 1.1754944e-38, %v2371_v55  ;;  %vm2370_vm2 = vcmp.eq.f32.partialorder %v2369_v62, 8.507059e+37 }
0x3a87   :  { %v4199_v40 = vpop.eup %4198 }
0x3a88   :  { %v2361_v41 = vmul.f32 %v4199_v40, %v2359_v36  ;;  %vm2366_vm15 = vweird.f32 %v4199_v40 }
0x3a89   :  { %vm2367_vm1 = vmor %vm2365_vm0, %vm2366_vm15 }
0x3a8a   :  { %v2362_v50 = vsub.f32 1.0, %v2361_v41 }
0x3a8c   :  { %v2363_v23 = vmul.f32 %v4199_v40, %v2362_v50 }
0x3a8e   :  { %v2364_v53 = vadd.f32 %v4199_v40, %v2363_v23 }
0x3a90   :  { %v2368_v42 = vsel %vm2367_vm1, %v4199_v40, %v2364_v53 }
0x3a91   :  { %v2373_v37 = vsel %vm2370_vm2, %v2372_v44, %v2368_v42 }
0x3a92   :  { %v2376_v47 = vmul.f32 %v2373_v37, %v2321_v8 }
0x3aef   :  { %v2379_v45 = vpop.permute.xlu0 %2378 }
0x3af0   :  { %v2381_v46 = vmul.f32 %v2379_v45, %v2373_v37 }
0x3af2   :  { %2383 = vrot.lane.b32.xlu1 %v2381_v46, %s4404_s30 }
0x3b64   :  { %v2384_v48 = vpop.permute.xlu1 %2383 }
0x3b65   :  { %v2386_v49 = vadd.f32 %v2384_v48, %v2376_v47 }
0x3b67   :  { %4200 = vtanh.f32 %v2386_v49 }
0x3b6d   :  { %v4201_v52 = vpop.eup %4200 }
0x3b6e   :  { %2389 = vrot.lane.b32.xlu2 %v4201_v52, %s4403_s4  ;;  %v2538_v52 = vld [vmem:[%s5547_s7 + $0x38] sm:$0xff] }
0x3b6f   :  { %2600 = vmatpush.msrb.mxu1 %v2538_v52 }
0x3bc8   :  { %v2390_v39 = vpop.permute.xlu2 %2389 }
0x3bc9   :  { %v2392_v0 = vmul.f32 %v2390_v39, %v2373_v37  ;;  %v2535_v39 = vld [vmem:[%s5547_s7 + $0x20] sm:$0xff] }
0x3bcb   :  { %2394 = vst [vmem:[#allocation1] ss:$4 sm:$0xff] %v2392_v0 }
0x3bd2   :  { %v2395_v56 = vld.sshfl [vmem:[#allocation1] sm:$0xff pattern:$0x73625140] }
0x3bd3   :  { %2396 = vrot.lane.b32.xlu0 %v2395_v56, %s4404_s30  ;;  %v2534_v56 = vld [vmem:[%s5547_s7 + $0x18] sm:$0xff] }
0x3c45   :  { %v2397_v4 = vpop.permute.xlu0 %2396 }
0x3c46   :  { %3916 = vmatmul.msk.f32.vlgmr.msrb.gmra.mxu2 %vm175_vm7, %v2397_v4  ;;  %v2531_v4 = vld [vmem:[%s5547_s7] sm:$0xff] }
0x3cc9   :  { %v2417_v2 = vpop.f32.mrf.mxu2 }
0x3cca   :  { %v2420_v26 = vadd.f32 %v2417_v2, %v1477_v61  ;;  %v2532_v61 = vld [vmem:[%s5547_s7 + $0x8] sm:$0xff] }
0x3ccc   :  { %4202 = vtanh.f32 %v2420_v26  ;;  %v3917_v15 = vmul.f32 -1.442695, %v2420_v26 }
0x3cce   :  { %4204 = vpow2.f32 %v3917_v15 }
0x3cd2   :  { %v4203_v10 = vpop.eup %4202 }
0x3cd3   :  { %2443 = vrot.lane.b32.xlu1 %v4203_v10, %s4403_s4 }
0x3cd4   :  { %v4205_v18 = vpop.eup %4204 }
0x3cd5   :  { %v2424_v14 = vadd.f32 1.0, %v4205_v18  ;;  %v2529_v18 = vld [vmem:[%s5546_s6 + $0x30] sm:$0xff] }
0x3cd6   :  { %2649 = vmatpush.msra.mxu2 %v2529_v18 }
0x3cd7   :  { %4206 = vrcp.f32 %v2424_v14  ;;  %v2436_v3 = vand.u32 2147483648, %v2424_v14  ;;  %vm2430_vm4 = vweird.f32 %v2424_v14  ;;  %v2434_v16 = vand.u32 2147483647, %v2424_v14 }
0x3cd9   :  { %v2437_v63 = vor.u32 1.1754944e-38, %v2436_v3  ;;  %vm2435_vm6 = vcmp.eq.f32.partialorder %v2434_v16, 8.507059e+37  ;;  %v2722_v3 = vld [vmem:[%s5553_s13 + $0x8] sm:$0xff]  ;;  %v2721_v16 = vld [vmem:[%s5553_s13] sm:$0xff] }
0x3cdd   :  { %v4207_v13 = vpop.eup %4206 }
0x3cde   :  { %v2426_v29 = vmul.f32 %v4207_v13, %v2424_v14  ;;  %vm2431_vm3 = vweird.f32 %v4207_v13  ;;  %v2530_v14 = vld [vmem:[%s5546_s6 + $0x38] sm:$0xff] }
0x3cdf   :  { %vm2432_vm5 = vmor %vm2430_vm4, %vm2431_vm3  ;;  %2672 = vmatpush.msra.mxu3 %v2530_v14 }
0x3ce0   :  { %v2427_v43 = vsub.f32 1.0, %v2426_v29  ;;  %v2723_v29 = vld [vmem:[%s5553_s13 + $0x10] sm:$0xff] }
0x3ce2   :  { %v2428_v28 = vmul.f32 %v4207_v13, %v2427_v43  ;;  %v2523_v43 = vld [vmem:[%s5546_s6] sm:$0xff] }
0x3ce4   :  { %v2429_v33 = vadd.f32 %v4207_v13, %v2428_v28  ;;  %v2524_v28 = vld [vmem:[%s5546_s6 + $0x8] sm:$0xff] }
0x3ce6   :  { %v2433_v57 = vsel %vm2432_vm5, %v4207_v13, %v2429_v33  ;;  %v2526_v13 = vld [vmem:[%s5546_s6 + $0x18] sm:$0xff] }
0x3ce7   :  { %v2438_v35 = vsel %vm2435_vm6, %v2437_v63, %v2433_v57 }
0x3ce8   :  { %v2441_v20 = vmul.f32 %v2438_v35, %v2386_v49  ;;  %v2537_v49 = vld [vmem:[%s5547_s7 + $0x30] sm:$0xff] }
0x3ce9   :  { %2577 = vmatpush.msrb.mxu0 %v2537_v49 }
0x3ceb   :  { %2578 = vmatpush.msrb.mxu0 %v2535_v39 }
0x3d45   :  { %v2444_v31 = vpop.permute.xlu1 %2443 }
0x3d46   :  { %v2446_v19 = vmul.f32 %v2444_v31, %v2438_v35 }
0x3d48   :  { %2448 = vrot.lane.b32.xlu2 %v2446_v19, %s4404_s30  ;;  %v5284_v19 = vld [vmem:[%s5548_s8] sm:$0x3] }
0x3da2   :  { %v2449_v38 = vpop.permute.xlu2 %2448 }
0x3da3   :  { %v2451_v8 = vadd.f32 %v2449_v38, %v2441_v20  ;;  %v2685_v20 = vperm.slane %v5284_v19, 0 }
0x3da5   :  { %4208 = vtanh.f32 %v2451_v8 }
0x3dab   :  { %v4209_v1 = vpop.eup %4208 }
0x3dac   :  { %2454 = vrot.lane.b32.xlu0 %v4209_v1, %s4403_s4 }
0x3e1e   :  { %v2455_v34 = vpop.permute.xlu0 %2454 }
0x3e1f   :  { %v2457_v32 = vmul.f32 %v2455_v34, %v2438_v35 }
0x3e21   :  { %2459 = vst [vmem:[#allocation1] ss:$4 sm:$0xff] %v2457_v32 }
0x3e28   :  { %v2460_v58 = vld.sshfl [vmem:[#allocation1] sm:$0xff pattern:$0x73625140] }
0x3e29   :  { %2461 = vrot.lane.b32.xlu1 %v2460_v58, %s4404_s30  ;;  %2542 = vst [vmem:[#allocation1 + $0x1] ss:$4 sm:$0xff] %v2457_v32 }
0x3e2a   :  { %2544 = vst [vmem:[#allocation1 + $0x2] ss:$4 sm:$0xff] %v2392_v0  ;;  %v2536_v0 = vld [vmem:[%s5547_s7 + $0x28] sm:$0xff] }
0x3e2b   :  { %2546 = vst [vmem:[#allocation1 + $0x3] ss:$4 sm:$0xff] %v5182_v21  ;;  %2601 = vmatpush.msrb.mxu1 %v2536_v0 }
0x3e2d   :  { %2602 = vmatpush.msrb.mxu1 %v2534_v56 }
0x3e2f   :  { %2603 = vmatpush.msrb.mxu1 %v2532_v61 }
0x3e9b   :  { %v2462_v9 = vpop.permute.xlu1 %2461 }
0x3e9c   :  { %3918 = vmatmul.msk.f32.vlgmr.msrb.gmra.mxu3 %vm175_vm7, %v2462_v9 }
0x3f1f   :  { %v2482_v51 = vpop.f32.mrf.mxu3 }
0x3f20   :  { %v2485_v22 = vadd.f32 %v2482_v51, %v5176_v59 }
0x3f22   :  { %4210 = vtanh.f32 %v2485_v22  ;;  %v3919_v30 = vmul.f32 -1.442695, %v2485_v22 }
0x3f24   :  { %4212 = vpow2.f32 %v3919_v30 }
0x3f28   :  { %v4211_v27 = vpop.eup %4210 }
0x3f29   :  { %2508 = vrot.lane.b32.xlu2 %v4211_v27, %s4403_s4 }
0x3f2a   :  { %v4213_v6 = vpop.eup %4212 }
0x3f2b   :  { %v2489_v36 = vadd.f32 1.0, %v4213_v6 }
0x3f2d   :  { %4214 = vrcp.f32 %v2489_v36  ;;  %v2501_v53 = vand.u32 2147483648, %v2489_v36  ;;  %vm2495_vm9 = vweird.f32 %v2489_v36  ;;  %v2499_v55 = vand.u32 2147483647, %v2489_v36 }
0x3f2f   :  { %v2502_v62 = vor.u32 1.1754944e-38, %v2501_v53  ;;  %vm2500_vm11 = vcmp.eq.f32.partialorder %v2499_v55, 8.507059e+37 }
0x3f33   :  { %v4215_v40 = vpop.eup %4214 }
0x3f34   :  { %v2491_v41 = vmul.f32 %v4215_v40, %v2489_v36  ;;  %vm2496_vm8 = vweird.f32 %v4215_v40 }
0x3f35   :  { %vm2497_vm10 = vmor %vm2495_vm9, %vm2496_vm8 }
0x3f36   :  { %v2492_v50 = vsub.f32 1.0, %v2491_v41 }
0x3f38   :  { %v2493_v23 = vmul.f32 %v4215_v40, %v2492_v50 }
0x3f3a   :  { %v2494_v21 = vadd.f32 %v4215_v40, %v2493_v23 }
0x3f3c   :  { %v2498_v59 = vsel %vm2497_vm10, %v4215_v40, %v2494_v21  ;;  %v1468_v21 = vrot.slane %v5085_v5, 6 }
0x3f3d   :  { %v2503_v44 = vsel %vm2500_vm11, %v2502_v62, %v2498_v59 }
0x3f3e   :  { %v2506_v37 = vmul.f32 %v2503_v44, %v2451_v8  ;;  %v1968_v55 = vadd.f32 %v5159_v60, %v1468_v21 }
0x3f83   :  { %v2509_v42 = vpop.permute.xlu2 %2508 }
0x3f84   :  { %v2511_v45 = vmul.f32 %v2509_v42, %v2503_v44 }
0x3f86   :  { %2513 = vrot.lane.b32.xlu0 %v2511_v45, %s4404_s30 }
0x3ff8   :  { %v2514_v46 = vpop.permute.xlu0 %2513 }
0x3ff9   :  { %v2516_v47 = vadd.f32 %v2514_v46, %v2506_v37 }
0x3ffb   :  { %4216 = vtanh.f32 %v2516_v47  ;;  %v3904_v47 = vmul.f32 -1.442695, %v1968_v55 }
0x4001   :  { %v4217_v48 = vpop.eup %4216 }
0x4002   :  { %2519 = vrot.lane.b32.xlu1 %v4217_v48, %s4403_s4 }
0x400a   :  { %2559 = vrot.lane.b32.xlu1 %v5165_v54, %s4404_s30  ;;  %v2533_v54 = vld [vmem:[%s5547_s7 + $0x10] sm:$0xff] }
0x400b   :  { %2579 = vmatpush.msrb.mxu0 %v2533_v54 }
0x400d   :  { %2580 = vmatpush.msrb.mxu0 %v2531_v4 }
0x4074   :  { %v2520_v2 = vpop.permute.xlu1 %2519 }
0x4075   :  { %v2522_v26 = vmul.f32 %v2520_v2, %v2503_v44 }
0x4077   :  { %2540 = vst [vmem:[#allocation1] ss:$4 sm:$0xff] %v2522_v26 }
0x407c   :  { %v2560_v57 = vpop.permute.xlu1 %2559 }
0x407e   :  { %v2555_v10 = vld.sshfl [vmem:[#allocation1] sm:$0xff pattern:$0x73625140] }
0x407f   :  { %2557 = vrot.lane.b32.xlu2 %v2555_v10, %s4404_s30  ;;  %2612 = vst [vmem:[#allocation1] ss:$4 sm:$0xff] %v4988_v7  ;;  %v2527_v7 = vld [vmem:[%s5546_s6 + $0x20] sm:$0xff] }
0x4080   :  { %2614 = vst [vmem:[#allocation1 + $0x1] ss:$4 sm:$0xff] %v5008_v25  ;;  %v2724_v25 = vld [vmem:[%s5553_s13 + $0x18] sm:$0xff]  ;;  %2650 = vmatpush.msra.mxu2 %v2527_v7 }
0x4081   :  { %2616 = vst [vmem:[#allocation1 + $0x2] ss:$4 sm:$0xff] %v5019_v17  ;;  %v2528_v17 = vld [vmem:[%s5546_s6 + $0x28] sm:$0xff]  ;;  %2737 = vmatpush.msra.mxu0 %v2724_v25  ;;  %2802 = vmatpush.msra.mxu1 %v2724_v25 }
0x4082   :  { %2618 = vst [vmem:[#allocation1 + $0x3] ss:$4 sm:$0xff] %v5035_v11  ;;  %v2525_v11 = vld [vmem:[%s5546_s6 + $0x10] sm:$0xff]  ;;  %2673 = vmatpush.msra.mxu3 %v2528_v17 }
0x4083   :  { %2738 = vmatpush.msra.mxu0 %v2723_v29  ;;  %2803 = vmatpush.msra.mxu1 %v2723_v29 }
0x4084   :  { %2651 = vmatpush.msra.mxu2 %v2525_v11  ;;  %2674 = vmatpush.msra.mxu3 %v2526_v13 }
0x4085   :  { %2739 = vmatpush.msra.mxu0 %v2722_v3  ;;  %2804 = vmatpush.msra.mxu1 %v2722_v3 }
0x4086   :  { %2652 = vmatpush.msra.mxu2 %v2523_v43  ;;  %2675 = vmatpush.msra.mxu3 %v2524_v28 }
0x4087   :  { %2740 = vmatpush.msra.mxu0 %v2721_v16  ;;  %2805 = vmatpush.msra.mxu1 %v2721_v16 }
0x4088   :  { %2867 = vmatpush.msrb.mxu2 %v2724_v25  ;;  %2932 = vmatpush.msrb.mxu3 %v2724_v25 }
0x4089   :  { %v2627_v15 = vld.sshfl [vmem:[#allocation1] sm:$0xff pattern:$0x73625140] }
0x408a   :  { %2629 = vrot.lane.b32.xlu0 %v2627_v15, %s4404_s30  ;;  %2868 = vmatpush.msrb.mxu2 %v2723_v29 }
0x408b   :  { %2933 = vmatpush.msrb.mxu3 %v2723_v29 }
0x408c   :  { %2869 = vmatpush.msrb.mxu2 %v2722_v3 }
0x408d   :  { %2934 = vmatpush.msrb.mxu3 %v2722_v3 }
0x408e   :  { %2870 = vmatpush.msrb.mxu2 %v2721_v16 }
0x408f   :  { %2935 = vmatpush.msrb.mxu3 %v2721_v16 }
0x40d9   :  { %v2558_v33 = vpop.permute.xlu2 %2557 }
0x40da   :  { %3920 = vmatmul.msk.f32.vlgmr.msrb.gmra.mxu0 %vm175_vm7, %v2558_v33  ;;  %3922 = vmatmul.msk.f32.vlgmr.msrb.gmra.mxu1 %vm175_vm7, %v2558_v33 }
0x40db   :  { %2997 = vmatpush.msrb.mxu0 %v2724_v25  ;;  %3062 = vmatpush.msrb.mxu1 %v2724_v25 }
0x40dd   :  { %2998 = vmatpush.msrb.mxu0 %v2723_v29  ;;  %3063 = vmatpush.msrb.mxu1 %v2723_v29 }
0x40df   :  { %2999 = vmatpush.msrb.mxu0 %v2722_v3  ;;  %3064 = vmatpush.msrb.mxu1 %v2722_v3 }
0x40e1   :  { %3000 = vmatpush.msrb.mxu0 %v2721_v16  ;;  %3065 = vmatpush.msrb.mxu1 %v2721_v16 }
0x40e2   :  { %3921 = vmatmul.msk.f32.gmra.mxu0 %vm175_vm7, %v2560_v57  ;;  %3923 = vmatmul.msk.f32.gmra.mxu1 %vm175_vm7, %v2560_v57 }
0x40ea   :  { %2741 = vmatmul.f32.vlgmr.msra.gmra.mxu0 %v4402_v24 }
0x40fc   :  { %v2630_v63 = vpop.permute.xlu0 %2629 }
0x40fd   :  { %3924 = vmatmul.msk.f32.vlgmr.msra.gmra.mxu2 %vm175_vm7, %v2630_v63  ;;  %3926 = vmatmul.msk.f32.vlgmr.msra.gmra.mxu3 %vm175_vm7, %v2630_v63 }
0x40fe   :  { %3127 = vmatpush.msra.mxu2 %v2724_v25  ;;  %3192 = vmatpush.msra.mxu3 %v2724_v25 }
0x4100   :  { %3128 = vmatpush.msra.mxu2 %v2723_v29  ;;  %3193 = vmatpush.msra.mxu3 %v2723_v29 }
0x4102   :  { %3129 = vmatpush.msra.mxu2 %v2722_v3  ;;  %3194 = vmatpush.msra.mxu3 %v2722_v3 }
0x4104   :  { %3130 = vmatpush.msra.mxu2 %v2721_v16  ;;  %3195 = vmatpush.msra.mxu3 %v2721_v16 }
0x4157   :  { %v2582_v31 = vpop.f32.mrf.mxu0  ;;  %v5304_v17 = vpop.f32.mrf.mxu1 }
0x415f   :  { %v5279_v35 = vpop.f32.mrf.mxu0  ;;  %v5306_v11 = vpop.f32.mrf.mxu1 }
0x4167   :  { %v2742_v1 = vpop.f32.mrf.mxu0 }
0x4180   :  { %v2654_v38 = vpop.f32.mrf.mxu2 }
0x4181   :  { %v2655_v8 = vadd.f32 %v2654_v38, %v2582_v31 }
0x4183   :  { %v5289_v34 = vadd.f32 %v2685_v20, %v2655_v8 }
0x4185   :  { %v2745_v32 = vadd.f32 %v2742_v1, %v5289_v34  ;;  %v2695_v13 = vrot.slane %v5289_v34, 2 }
0x4187   :  { %4218 = vtanh.f32 %v2745_v32  ;;  %v3928_v9 = vmul.f32 -1.442695, %v2745_v32 }
0x4189   :  { %4220 = vpow2.f32 %v3928_v9 }
0x418d   :  { %v4219_v58 = vpop.eup %4218 }
0x418e   :  { %2768 = vrot.lane.b32.xlu2 %v4219_v58, %s4403_s4 }
0x418f   :  { %v4221_v51 = vpop.eup %4220 }
0x4190   :  { %v2749_v22 = vadd.f32 1.0, %v4221_v51 }
0x4192   :  { %4222 = vrcp.f32 %v2749_v22  ;;  %v2761_v41 = vand.u32 2147483648, %v2749_v22  ;;  %vm2755_vm13 = vweird.f32 %v2749_v22  ;;  %v2759_v50 = vand.u32 2147483647, %v2749_v22 }
0x4193   :  { %4224 = vtanh.f32 %v1968_v55 }
0x4194   :  { %v2762_v53 = vor.u32 1.1754944e-38, %v2761_v41  ;;  %vm2760_vm15 = vcmp.eq.f32.partialorder %v2759_v50, 8.507059e+37 }
0x4198   :  { %v4223_v27 = vpop.eup %4222 }
0x4199   :  { %v2751_v30 = vmul.f32 %v4223_v27, %v2749_v22  ;;  %vm2756_vm12 = vweird.f32 %v4223_v27  ;;  %v4225_v44 = vpop.eup %4224 }
0x419a   :  { %vm2757_vm14 = vmor %vm2755_vm13, %vm2756_vm12 }
0x419b   :  { %v2752_v6 = vsub.f32 1.0, %v2751_v30 }
0x419d   :  { %v2753_v36 = vmul.f32 %v4223_v27, %v2752_v6 }
0x419f   :  { %v2754_v40 = vadd.f32 %v4223_v27, %v2753_v36 }
0x41a1   :  { %v2758_v23 = vsel %vm2757_vm14, %v4223_v27, %v2754_v40 }
0x41a2   :  { %v2763_v62 = vsel %vm2760_vm15, %v2762_v53, %v2758_v23 }
0x41a3   :  { %v2766_v45 = vmul.f32 0.0, %v2763_v62 }
0x41e8   :  { %v2769_v59 = vpop.permute.xlu2 %2768 }
0x41e9   :  { %v2771_v42 = vmul.f32 %v2769_v59, %v2763_v62 }
0x41eb   :  { %2773 = vrot.lane.b32.xlu0 %v2771_v42, %s4404_s30 }
0x41f3   :  { %1991 = vrot.lane.b32.xlu0 %v4225_v44, %s4403_s4 }
0x425d   :  { %v2774_v37 = vpop.permute.xlu0 %2773 }
0x425e   :  { %v5297_v46 = vadd.f32 %v2774_v37, %v2766_v45 }
0x4260   :  { %4226 = vtanh.f32 %v5297_v46 }
0x4261   :  { %4228 = vpow2.f32 %v3904_v47 }
0x4265   :  { %v1992_v18 = vpop.permute.xlu0 %1991 }
0x4266   :  { %v4227_v5 = vpop.eup %4226 }
0x4267   :  { %2779 = vrot.lane.b32.xlu1 %v4227_v5, %s4403_s4  ;;  %v4229_v60 = vpop.eup %4228 }
0x4268   :  { %v1972_v48 = vadd.f32 1.0, %v4229_v60 }
0x426a   :  { %4230 = vrcp.f32 %v1972_v48  ;;  %v1984_v61 = vand.u32 2147483648, %v1972_v48  ;;  %vm1978_vm1 = vweird.f32 %v1972_v48  ;;  %v1982_v26 = vand.u32 2147483647, %v1972_v48 }
0x426c   :  { %v1985_v15 = vor.u32 1.1754944e-38, %v1984_v61  ;;  %vm1983_vm3 = vcmp.eq.f32.partialorder %v1982_v26, 8.507059e+37 }
0x4270   :  { %v4231_v49 = vpop.eup %4230 }
0x4271   :  { %v1974_v52 = vmul.f32 %v4231_v49, %v1972_v48  ;;  %vm1979_vm0 = vweird.f32 %v4231_v49 }
0x4272   :  { %vm1980_vm2 = vmor %vm1978_vm1, %vm1979_vm0 }
0x4273   :  { %v1975_v0 = vsub.f32 1.0, %v1974_v52 }
0x4275   :  { %v1976_v56 = vmul.f32 %v4231_v49, %v1975_v0 }
0x4277   :  { %v1977_v4 = vadd.f32 %v4231_v49, %v1976_v56 }
0x4279   :  { %v1981_v10 = vsel %vm1980_vm2, %v4231_v49, %v1977_v4 }
0x427a   :  { %v1986_v14 = vsel %vm1983_vm3, %v1985_v15, %v1981_v10 }
0x427b   :  { %v1994_v7 = vmul.f32 %v1992_v18, %v1986_v14  ;;  %v1989_v33 = vmul.f32 %v1986_v14, %v5132_v12 }
0x42d9   :  { %v2780_v39 = vpop.permute.xlu1 %2779 }
0x42da   :  { %v2782_v54 = vmul.f32 %v2780_v39, %v2763_v62 }
0x42dc   :  { %2784 = vst [vmem:[#allocation1] ss:$4 sm:$0xff] %v2782_v54 }
0x42e3   :  { %v2785_v2 = vld.sshfl [vmem:[#allocation1] sm:$0xff pattern:$0x73625140] }
0x42e4   :  { %2786 = vrot.lane.b32.xlu2 %v2785_v2, %s4404_s30 }
0x42ec   :  { %1996 = vrot.lane.b32.xlu2 %v1994_v7, %s4404_s30 }
0x433e   :  { %v2787_v25 = vpop.permute.xlu2 %2786 }
0x433f   :  { %3929 = vmatmul.msk.f32.vlgmr.msra.gmra.mxu1 %vm175_vm7, %v2787_v25 }
0x4346   :  { %v1997_v28 = vpop.permute.xlu2 %1996 }
0x4347   :  { %v1999_v3 = vadd.f32 %v1997_v28, %v1989_v33 }
0x43bc   :  { %v2807_v29 = vpop.f32.mrf.mxu1 }
0x43bd   :  { %v2810_v43 = vadd.f32 %v2807_v29, %v2695_v13 }
0x43bf   :  { %4232 = vtanh.f32 %v2810_v43  ;;  %v3930_v63 = vmul.f32 -1.442695, %v2810_v43 }
0x43c0   :  { %4234 = vtanh.f32 %v1999_v3 }
0x43c1   :  { %4236 = vpow2.f32 %v3930_v63  ;;  %v2697_v63 = vrot.slane %v5289_v34, 6 }
0x43c5   :  { %v4233_v16 = vpop.eup %4232 }
0x43c6   :  { %2833 = vrot.lane.b32.xlu1 %v4233_v16, %s4403_s4  ;;  %v4235_v57 = vpop.eup %4234  ;;  %v5328_v16 = vpop.f32.mrf.mxu3 }
0x43c7   :  { %v4237_v31 = vpop.eup %4236 }
0x43c8   :  { %v2814_v38 = vadd.f32 1.0, %v4237_v31 }
0x43ca   :  { %4238 = vrcp.f32 %v2814_v38  ;;  %v2826_v12 = vand.u32 2147483648, %v2814_v38  ;;  %vm2820_vm5 = vweird.f32 %v2814_v38  ;;  %v2824_v51 = vand.u32 2147483647, %v2814_v38 }
0x43cc   :  { %v2827_v27 = vor.u32 1.1754944e-38, %v2826_v12  ;;  %vm2825_vm8 = vcmp.eq.f32.partialorder %v2824_v51, 8.507059e+37 }
0x43ce   :  { %2002 = vrot.lane.b32.xlu1 %v4235_v57, %s4403_s4 }
0x43d0   :  { %v4239_v8 = vpop.eup %4238 }
0x43d1   :  { %v2816_v1 = vmul.f32 %v4239_v8, %v2814_v38  ;;  %vm2821_vm4 = vweird.f32 %v4239_v8 }
0x43d2   :  { %vm2822_vm6 = vmor %vm2820_vm5, %vm2821_vm4 }
0x43d3   :  { %v2817_v32 = vsub.f32 1.0, %v2816_v1 }
0x43d5   :  { %v2818_v58 = vmul.f32 %v4239_v8, %v2817_v32 }
0x43d7   :  { %v2819_v9 = vadd.f32 %v4239_v8, %v2818_v58 }
0x43d9   :  { %v2823_v22 = vsel %vm2822_vm6, %v4239_v8, %v2819_v9 }
0x43da   :  { %v2828_v6 = vsel %vm2825_vm8, %v2827_v27, %v2823_v22 }
0x43db   :  { %v2831_v23 = vmul.f32 %v2828_v6, %v5297_v46  ;;  %v2696_v46 = vrot.slane %v5289_v34, 4 }
0x4438   :  { %v2834_v30 = vpop.permute.xlu1 %2833 }
0x4439   :  { %v2836_v36 = vmul.f32 %v2834_v30, %v2828_v6 }
0x443b   :  { %2838 = vrot.lane.b32.xlu0 %v2836_v36, %s4404_s30 }
0x4440   :  { %v2003_v40 = vpop.permute.xlu1 %2002 }
0x4441   :  { %v2005_v41 = vmul.f32 %v2003_v40, %v1986_v14 }
0x4443   :  { %2626 = vst [vmem:[#allocation1 + $0x23] ss:$4 sm:$0xff] %v2005_v41 }
0x444a   :  { %v2628_v50 = vld.sshfl [vmem:[#allocation1 + $0x20] sm:$0xff pattern:$0x73625140] }
0x444b   :  { %2631 = vrot.lane.b32.xlu0 %v2628_v50, %s4404_s30 }
0x44ad   :  { %v2839_v21 = vpop.permute.xlu0 %2838 }
0x44ae   :  { %v2841_v53 = vadd.f32 %v2839_v21, %v2831_v23 }
0x44b0   :  { %4240 = vtanh.f32 %v2841_v53 }
0x44b6   :  { %v4241_v55 = vpop.eup %4240 }
0x44b7   :  { %2844 = vrot.lane.b32.xlu2 %v4241_v55, %s4403_s4 }
0x44bd   :  { %v2632_v59 = vpop.permute.xlu0 %2631 }
0x44be   :  { %3925 = vmatmul.msk.f32.gmra.mxu2 %vm175_vm7, %v2632_v59  ;;  %3927 = vmatmul.msk.f32.gmra.mxu3 %vm175_vm7, %v2632_v59 }
0x4511   :  { %v2845_v62 = vpop.permute.xlu2 %2844 }
0x4512   :  { %v2847_v42 = vmul.f32 %v2845_v62, %v2828_v6 }
0x4514   :  { %2849 = vst [vmem:[#allocation1] ss:$4 sm:$0xff] %v2847_v42 }
0x451b   :  { %v2850_v44 = vld.sshfl [vmem:[#allocation1] sm:$0xff pattern:$0x73625140] }
0x451c   :  { %2851 = vrot.lane.b32.xlu1 %v2850_v44, %s4404_s30  ;;  %v5343_v44 = vld [vmem:[%s5554_s14 + $0x18] sm:$0xff] }
0x451d   :  { %3254 = vmatpush.msra.mxu0 %v5343_v44  ;;  %3319 = vmatpush.msra.mxu1 %v5343_v44 }
0x4541   :  { %v5320_v37 = vpop.f32.mrf.mxu2  ;;  %v5330_v57 = vpop.f32.mrf.mxu3 }
0x458e   :  { %v2852_v45 = vpop.permute.xlu1 %2851 }
0x458f   :  { %3931 = vmatmul.msk.f32.vlgmr.msrb.gmra.mxu2 %vm175_vm7, %v2852_v45  ;;  %v5348_v45 = vld [vmem:[%s5554_s14 + $0x10] sm:$0xff] }
0x4590   :  { %3384 = vmatpush.msrb.mxu2 %v5343_v44  ;;  %3255 = vmatpush.msra.mxu0 %v5348_v45 }
0x4591   :  { %3320 = vmatpush.msra.mxu1 %v5348_v45 }
0x4592   :  { %3385 = vmatpush.msrb.mxu2 %v5348_v45 }
0x4612   :  { %v2872_v5 = vpop.f32.mrf.mxu2 }
0x4613   :  { %v2875_v47 = vadd.f32 %v2872_v5, %v2696_v46  ;;  %v5355_v46 = vld [vmem:[%s5554_s14 + $0x8] sm:$0xff]  ;;  %v5364_v5 = vld [vmem:[%s5554_s14] sm:$0xff]  ;;  %s4406_s14 = smov [#allocation2]  }
0x4614   :  { %3256 = vmatpush.msra.mxu0 %v5355_v46  ;;  %3321 = vmatpush.msra.mxu1 %v5355_v46  ;;  %s3821_s29 = sshll.u32 %s4406_s14, 4  ;;  %s3822_s29 = int_to_ptr.vmem [resolvable:$true] %s3821_s29 }
0x4615   :  { %4242 = vtanh.f32 %v2875_v47  ;;  %v3932_v48 = vmul.f32 -1.442695, %v2875_v47  ;;  %3386 = vmatpush.msrb.mxu2 %v5355_v46 }
0x4616   :  { %3257 = vmatpush.msra.mxu0 %v5364_v5  ;;  %3322 = vmatpush.msra.mxu1 %v5364_v5 }
0x4617   :  { %4244 = vpow2.f32 %v3932_v48  ;;  %3387 = vmatpush.msrb.mxu2 %v5364_v5 }
0x461b   :  { %v4243_v60 = vpop.eup %4242 }
0x461c   :  { %2898 = vrot.lane.b32.xlu2 %v4243_v60, %s4403_s4  ;;  %v2658_v60 = vadd.f32 %v5320_v37, %v5279_v35 }
0x461d   :  { %v4245_v49 = vpop.eup %4244 }
0x461e   :  { %v2879_v52 = vadd.f32 1.0, %v4245_v49  ;;  %v5386_v48 = vadd.f32 %v2685_v20, %v2658_v60 }
0x4620   :  { %4246 = vrcp.f32 %v2879_v52  ;;  %v2891_v61 = vand.u32 2147483648, %v2879_v52  ;;  %vm2885_vm10 = vweird.f32 %v2879_v52  ;;  %v2889_v2 = vand.u32 2147483647, %v2879_v52 }
0x4622   :  { %v2892_v10 = vor.u32 1.1754944e-38, %v2891_v61  ;;  %vm2890_vm12 = vcmp.eq.f32.partialorder %v2889_v2, 8.507059e+37 }
0x4626   :  { %v4247_v39 = vpop.eup %4246 }
0x4627   :  { %v2881_v0 = vmul.f32 %v4247_v39, %v2879_v52  ;;  %vm2886_vm9 = vweird.f32 %v4247_v39 }
0x4628   :  { %vm2887_vm11 = vmor %vm2885_vm10, %vm2886_vm9 }
0x4629   :  { %v2882_v54 = vsub.f32 1.0, %v2881_v0 }
0x462b   :  { %v2883_v56 = vmul.f32 %v4247_v39, %v2882_v54 }
0x462d   :  { %v2884_v4 = vadd.f32 %v4247_v39, %v2883_v56 }
0x462f   :  { %v2888_v26 = vsel %vm2887_vm11, %v4247_v39, %v2884_v4 }
0x4630   :  { %v2893_v18 = vsel %vm2890_vm12, %v2892_v10, %v2888_v26 }
0x4631   :  { %v2896_v7 = vmul.f32 %v2893_v18, %v2841_v53 }
0x4676   :  { %v2899_v15 = vpop.permute.xlu2 %2898 }
0x4677   :  { %v2901_v14 = vmul.f32 %v2899_v15, %v2893_v18 }
0x4679   :  { %2903 = vrot.lane.b32.xlu0 %v2901_v14, %s4404_s30 }
0x46eb   :  { %v2904_v25 = vpop.permute.xlu0 %2903 }
0x46ec   :  { %v2906_v13 = vadd.f32 %v2904_v25, %v2896_v7 }
0x46ee   :  { %4248 = vtanh.f32 %v2906_v13 }
0x46f4   :  { %v4249_v29 = vpop.eup %4248 }
0x46f5   :  { %2909 = vrot.lane.b32.xlu1 %v4249_v29, %s4403_s4 }
0x4767   :  { %v2910_v43 = vpop.permute.xlu1 %2909 }
0x4768   :  { %v2912_v28 = vmul.f32 %v2910_v43, %v2893_v18 }
0x476a   :  { %2914 = vst [vmem:[#allocation1] ss:$4 sm:$0xff] %v2912_v28 }
0x4771   :  { %v2915_v33 = vld.sshfl [vmem:[#allocation1] sm:$0xff pattern:$0x73625140] }
0x4772   :  { %2916 = vrot.lane.b32.xlu2 %v2915_v33, %s4404_s30 }
0x47cc   :  { %v2917_v3 = vpop.permute.xlu2 %2916 }
0x47cd   :  { %3933 = vmatmul.msk.f32.vlgmr.msrb.gmra.mxu3 %vm175_vm7, %v2917_v3 }
0x47ce   :  { %3449 = vmatpush.msrb.mxu3 %v5343_v44 }
0x47d0   :  { %3450 = vmatpush.msrb.mxu3 %v5348_v45 }
0x47d2   :  { %3451 = vmatpush.msrb.mxu3 %v5355_v46 }
0x47d4   :  { %3452 = vmatpush.msrb.mxu3 %v5364_v5 }
0x4850   :  { %v2937_v31 = vpop.f32.mrf.mxu3 }
0x4851   :  { %v2940_v38 = vadd.f32 %v2937_v31, %v2697_v63  ;;  %v2698_v63 = vrot.slane %v5386_v48, 2 }
0x4853   :  { %4250 = vtanh.f32 %v2940_v38  ;;  %v3934_v1 = vmul.f32 -1.442695, %v2940_v38 }
0x4855   :  { %4252 = vpow2.f32 %v3934_v1 }
0x4859   :  { %v4251_v8 = vpop.eup %4250 }
0x485a   :  { %2963 = vrot.lane.b32.xlu0 %v4251_v8, %s4403_s4 }
0x485b   :  { %v4253_v32 = vpop.eup %4252 }
0x485c   :  { %v2944_v58 = vadd.f32 1.0, %v4253_v32 }
0x485e   :  { %4254 = vrcp.f32 %v2944_v58  ;;  %v2956_v30 = vand.u32 2147483648, %v2944_v58  ;;  %vm2950_vm14 = vweird.f32 %v2944_v58  ;;  %v2954_v34 = vand.u32 2147483647, %v2944_v58 }
0x4860   :  { %v2957_v36 = vor.u32 1.1754944e-38, %v2956_v30  ;;  %vm2955_vm0 = vcmp.eq.f32.partialorder %v2954_v34, 8.507059e+37 }
0x4864   :  { %v4255_v9 = vpop.eup %4254 }
0x4865   :  { %v2946_v12 = vmul.f32 %v4255_v9, %v2944_v58  ;;  %vm2951_vm13 = vweird.f32 %v4255_v9 }
0x4866   :  { %vm2952_vm15 = vmor %vm2950_vm14, %vm2951_vm13 }
0x4867   :  { %v2947_v51 = vsub.f32 1.0, %v2946_v12 }
0x4869   :  { %v2948_v22 = vmul.f32 %v4255_v9, %v2947_v51 }
0x486b   :  { %v2949_v27 = vadd.f32 %v4255_v9, %v2948_v22 }
0x486d   :  { %v2953_v6 = vsel %vm2952_vm15, %v4255_v9, %v2949_v27 }
0x486e   :  { %v2958_v41 = vsel %vm2955_vm0, %v2957_v36, %v2953_v6 }
0x486f   :  { %v2961_v23 = vmul.f32 %v2958_v41, %v2906_v13 }
0x48cc   :  { %v2964_v40 = vpop.permute.xlu0 %2963 }
0x48cd   :  { %v2966_v50 = vmul.f32 %v2964_v40, %v2958_v41 }
0x48cf   :  { %2968 = vrot.lane.b32.xlu1 %v2966_v50, %s4404_s30 }
0x4941   :  { %v2969_v21 = vpop.permute.xlu1 %2968 }
0x4942   :  { %v5335_v53 = vadd.f32 %v2969_v21, %v2961_v23  ;;  %v2681_v23 = vadd.f32 %v5330_v57, %v5306_v11  ;;  %v2686_v21 = vperm.slane %v5284_v19, 1 }
0x4944   :  { %4256 = vtanh.f32 %v5335_v53 }
0x494a   :  { %v4257_v55 = vpop.eup %4256 }
0x494b   :  { %2974 = vrot.lane.b32.xlu2 %v4257_v55, %s4403_s4 }
0x49a5   :  { %v2975_v59 = vpop.permute.xlu2 %2974 }
0x49a6   :  { %v2977_v62 = vmul.f32 %v2975_v59, %v2958_v41  ;;  %v5407_v59 = vadd.f32 %v2686_v21, %v2681_v23 }
0x49a8   :  { %2979 = vst [vmem:[#allocation1] ss:$4 sm:$0xff] %v2977_v62 }
0x49af   :  { %v2980_v42 = vld.sshfl [vmem:[#allocation1] sm:$0xff pattern:$0x73625140] }
0x49b0   :  { %2981 = vrot.lane.b32.xlu0 %v2980_v42, %s4404_s30 }
0x4a22   :  { %v2982_v47 = vpop.permute.xlu0 %2981 }
0x4a23   :  { %3935 = vmatmul.msk.f32.vlgmr.msrb.gmra.mxu0 %vm175_vm7, %v2982_v47  ;;  %v2714_v47 = vrot.slane %v5407_v59, 6 }
0x4a24   :  { %3514 = vmatpush.msrb.mxu0 %v5343_v44 }
0x4a26   :  { %3515 = vmatpush.msrb.mxu0 %v5348_v45 }
0x4a28   :  { %3516 = vmatpush.msrb.mxu0 %v5355_v46 }
0x4a2a   :  { %3517 = vmatpush.msrb.mxu0 %v5364_v5 }
0x4a2b   :  { %3258 = vmatmul.f32.vlgmr.msra.gmra.mxu0 %v4402_v24 }
0x4aa0   :  { %v3002_v49 = vpop.f32.mrf.mxu0 }
0x4aa1   :  { %v3005_v52 = vadd.f32 %v3002_v49, %v5386_v48 }
0x4aa3   :  { %4258 = vtanh.f32 %v3005_v52  ;;  %v3936_v0 = vmul.f32 -1.442695, %v3005_v52 }
0x4aa5   :  { %4260 = vpow2.f32 %v3936_v0 }
0x4aa8   :  { %v3259_v42 = vpop.f32.mrf.mxu0 }
0x4aa9   :  { %v4259_v39 = vpop.eup %4258  ;;  %v3262_v60 = vadd.f32 %v3259_v42, %v2714_v47  ;;  %v2713_v42 = vrot.slane %v5407_v59, 4 }
0x4aaa   :  { %3028 = vrot.lane.b32.xlu1 %v4259_v39, %s4403_s4 }
0x4aab   :  { %v4261_v54 = vpop.eup %4260 }
0x4aac   :  { %v3009_v56 = vadd.f32 1.0, %v4261_v54  ;;  %v3943_v54 = vmul.f32 -1.442695, %v3262_v60 }
0x4aae   :  { %4262 = vrcp.f32 %v3009_v56  ;;  %v3021_v20 = vand.u32 2147483648, %v3009_v56  ;;  %vm3015_vm2 = vweird.f32 %v3009_v56  ;;  %v3019_v2 = vand.u32 2147483647, %v3009_v56 }
0x4ab0   :  { %v3022_v10 = vor.u32 1.1754944e-38, %v3021_v20  ;;  %vm3020_vm4 = vcmp.eq.f32.partialorder %v3019_v2, 8.507059e+37 }
0x4ab4   :  { %v4263_v24 = vpop.eup %4262 }
0x4ab5   :  { %v3011_v4 = vmul.f32 %v4263_v24, %v3009_v56  ;;  %vm3016_vm1 = vweird.f32 %v4263_v24 }
0x4ab6   :  { %vm3017_vm3 = vmor %vm3015_vm2, %vm3016_vm1 }
0x4ab7   :  { %v3012_v61 = vsub.f32 1.0, %v3011_v4 }
0x4ab9   :  { %v3013_v35 = vmul.f32 %v4263_v24, %v3012_v61 }
0x4abb   :  { %v3014_v37 = vadd.f32 %v4263_v24, %v3013_v35  ;;  %v2699_v35 = vrot.slane %v5386_v48, 4 }
0x4abd   :  { %v3018_v26 = vsel %vm3017_vm3, %v4263_v24, %v3014_v37 }
0x4abe   :  { %v3023_v18 = vsel %vm3020_vm4, %v3022_v10, %v3018_v26 }
0x4abf   :  { %v3026_v7 = vmul.f32 %v3023_v18, %v5335_v53 }
0x4b1c   :  { %v3029_v15 = vpop.permute.xlu1 %3028 }
0x4b1d   :  { %v3031_v14 = vmul.f32 %v3029_v15, %v3023_v18 }
0x4b1f   :  { %3033 = vrot.lane.b32.xlu2 %v3031_v14, %s4404_s30 }
0x4b79   :  { %v3034_v25 = vpop.permute.xlu2 %3033 }
0x4b7a   :  { %v3036_v13 = vadd.f32 %v3034_v25, %v3026_v7 }
0x4b7c   :  { %4264 = vtanh.f32 %v3036_v13 }
0x4b82   :  { %v4265_v29 = vpop.eup %4264 }
0x4b83   :  { %3039 = vrot.lane.b32.xlu0 %v4265_v29, %s4403_s4 }
0x4bf5   :  { %v3040_v43 = vpop.permute.xlu0 %3039 }
0x4bf6   :  { %v3042_v28 = vmul.f32 %v3040_v43, %v3023_v18 }
0x4bf8   :  { %3044 = vst [vmem:[#allocation1] ss:$4 sm:$0xff] %v3042_v28 }
0x4bff   :  { %v3045_v33 = vld.sshfl [vmem:[#allocation1] sm:$0xff pattern:$0x73625140] }
0x4c00   :  { %3046 = vrot.lane.b32.xlu1 %v3045_v33, %s4404_s30 }
0x4c72   :  { %v3047_v3 = vpop.permute.xlu1 %3046 }
0x4c73   :  { %3937 = vmatmul.msk.f32.vlgmr.msrb.gmra.mxu1 %vm175_vm7, %v3047_v3 }
0x4c74   :  { %3579 = vmatpush.msrb.mxu1 %v5343_v44 }
0x4c76   :  { %3580 = vmatpush.msrb.mxu1 %v5348_v45 }
0x4c78   :  { %3581 = vmatpush.msrb.mxu1 %v5355_v46 }
0x4c7a   :  { %3582 = vmatpush.msrb.mxu1 %v5364_v5 }
0x4cf0   :  { %v3067_v31 = vpop.f32.mrf.mxu1 }
0x4cf1   :  { %v3070_v38 = vadd.f32 %v3067_v31, %v2698_v63 }
0x4cf3   :  { %4266 = vtanh.f32 %v3070_v38  ;;  %v3938_v1 = vmul.f32 -1.442695, %v3070_v38 }
0x4cf5   :  { %4268 = vpow2.f32 %v3938_v1 }
0x4cf9   :  { %v4267_v8 = vpop.eup %4266 }
0x4cfa   :  { %3093 = vrot.lane.b32.xlu2 %v4267_v8, %s4403_s4 }
0x4cfb   :  { %v4269_v32 = vpop.eup %4268 }
0x4cfc   :  { %v3074_v58 = vadd.f32 1.0, %v4269_v32 }
0x4cfe   :  { %4270 = vrcp.f32 %v3074_v58  ;;  %v3086_v30 = vand.u32 2147483648, %v3074_v58  ;;  %vm3080_vm6 = vweird.f32 %v3074_v58  ;;  %v3084_v34 = vand.u32 2147483647, %v3074_v58 }
0x4d00   :  { %v3087_v36 = vor.u32 1.1754944e-38, %v3086_v30  ;;  %vm3085_vm9 = vcmp.eq.f32.partialorder %v3084_v34, 8.507059e+37 }
0x4d04   :  { %v4271_v9 = vpop.eup %4270 }
0x4d05   :  { %v3076_v12 = vmul.f32 %v4271_v9, %v3074_v58  ;;  %vm3081_vm5 = vweird.f32 %v4271_v9 }
0x4d06   :  { %vm3082_vm8 = vmor %vm3080_vm6, %vm3081_vm5 }
0x4d07   :  { %v3077_v51 = vsub.f32 1.0, %v3076_v12 }
0x4d09   :  { %v3078_v22 = vmul.f32 %v4271_v9, %v3077_v51 }
0x4d0b   :  { %v3079_v27 = vadd.f32 %v4271_v9, %v3078_v22 }
0x4d0d   :  { %v3083_v6 = vsel %vm3082_vm8, %v4271_v9, %v3079_v27 }
0x4d0e   :  { %v3088_v41 = vsel %vm3085_vm9, %v3087_v36, %v3083_v6 }
0x4d0f   :  { %v3091_v53 = vmul.f32 %v3088_v41, %v3036_v13 }
0x4d54   :  { %v3094_v40 = vpop.permute.xlu2 %3093 }
0x4d55   :  { %v3096_v50 = vmul.f32 %v3094_v40, %v3088_v41 }
0x4d57   :  { %3098 = vrot.lane.b32.xlu0 %v3096_v50, %s4404_s30 }
0x4dc9   :  { %v3099_v55 = vpop.permute.xlu0 %3098 }
0x4dca   :  { %v5409_v62 = vadd.f32 %v3099_v55, %v3091_v53 }
0x4dcc   :  { %4272 = vtanh.f32 %v5409_v62 }
0x4dcd   :  { %4274 = vtanh.f32 %v3262_v60 }
0x4dce   :  { %4276 = vpow2.f32 %v3943_v54 }
0x4dd2   :  { %v4273_v49 = vpop.eup %4272 }
0x4dd3   :  { %3104 = vrot.lane.b32.xlu1 %v4273_v49, %s4403_s4  ;;  %v4275_v11 = vpop.eup %4274 }
0x4dd4   :  { %v4277_v56 = vpop.eup %4276 }
0x4dd5   :  { %v3266_v24 = vadd.f32 1.0, %v4277_v56 }
0x4dd7   :  { %4278 = vrcp.f32 %v3266_v24  ;;  %vm3272_vm11 = vweird.f32 %v3266_v24 }
0x4ddb   :  { %3285 = vrot.lane.b32.xlu1 %v4275_v11, %s4403_s4 }
0x4ddd   :  { %v4279_v4 = vpop.eup %4278 }
0x4dde   :  { %v3268_v61 = vmul.f32 %v4279_v4, %v3266_v24  ;;  %vm3273_vm10 = vweird.f32 %v4279_v4 }
0x4ddf   :  { %vm3274_vm12 = vmor %vm3272_vm11, %vm3273_vm10 }
0x4de0   :  { %v3269_v37 = vsub.f32 1.0, %v3268_v61 }
0x4e45   :  { %v3105_v57 = vpop.permute.xlu1 %3104 }
0x4e46   :  { %v3107_v52 = vmul.f32 %v3105_v57, %v3088_v41 }
0x4e48   :  { %3109 = vst [vmem:[#allocation1] ss:$4 sm:$0xff] %v3107_v52 }
0x4e4d   :  { %v3286_v18 = vpop.permute.xlu1 %3285 }
0x4e4f   :  { %v3110_v39 = vld.sshfl [vmem:[#allocation1] sm:$0xff pattern:$0x73625140] }
0x4e50   :  { %3111 = vrot.lane.b32.xlu2 %v3110_v39, %s4404_s30 }
0x4eaa   :  { %v3112_v0 = vpop.permute.xlu2 %3111 }
0x4eab   :  { %3939 = vmatmul.msk.f32.vlgmr.msra.gmra.mxu2 %vm175_vm7, %v3112_v0 }
0x4eac   :  { %3644 = vmatpush.msra.mxu2 %v5343_v44  ;;  %v3270_v44 = vmul.f32 %v4279_v4, %v3269_v37 }
0x4eae   :  { %3645 = vmatpush.msra.mxu2 %v5348_v45  ;;  %v3271_v26 = vadd.f32 %v4279_v4, %v3270_v44 }
0x4eb0   :  { %3646 = vmatpush.msra.mxu2 %v5355_v46  ;;  %v3278_v46 = vand.u32 2147483648, %v3266_v24  ;;  %v3275_v10 = vsel %vm3274_vm12, %v4279_v4, %v3271_v26 }
0x4eb2   :  { %3647 = vmatpush.msra.mxu2 %v5364_v5  ;;  %v3276_v5 = vand.u32 2147483647, %v3266_v24  ;;  %v3279_v15 = vor.u32 1.1754944e-38, %v3278_v46 }
0x4eb4   :  { %vm3277_vm13 = vcmp.eq.f32.partialorder %v3276_v5, 8.507059e+37 }
0x4eb5   :  { %v3280_v14 = vsel %vm3277_vm13, %v3279_v15, %v3275_v10 }
0x4eb6   :  { %v3288_v7 = vmul.f32 %v3286_v18, %v3280_v14  ;;  %v3283_v12 = vmul.f32 0.0, %v3280_v14 }
0x4f2e   :  { %v3132_v20 = vpop.f32.mrf.mxu2 }
0x4f2f   :  { %v3135_v2 = vadd.f32 %v3132_v20, %v2699_v35 }
0x4f31   :  { %4280 = vtanh.f32 %v3135_v2  ;;  %v3940_v25 = vmul.f32 -1.442695, %v3135_v2 }
0x4f33   :  { %4282 = vpow2.f32 %v3940_v25 }
0x4f37   :  { %v4281_v45 = vpop.eup %4280 }
0x4f38   :  { %3158 = vrot.lane.b32.xlu0 %v4281_v45, %s4403_s4 }
0x4f39   :  { %v4283_v13 = vpop.eup %4282 }
0x4f3a   :  { %v3139_v29 = vadd.f32 1.0, %v4283_v13 }
0x4f3c   :  { %4284 = vrcp.f32 %v3139_v29  ;;  %v3151_v31 = vand.u32 2147483648, %v3139_v29  ;;  %vm3145_vm15 = vweird.f32 %v3139_v29  ;;  %v3149_v38 = vand.u32 2147483647, %v3139_v29 }
0x4f3e   :  { %v3152_v1 = vor.u32 1.1754944e-38, %v3151_v31  ;;  %vm3150_vm1 = vcmp.eq.f32.partialorder %v3149_v38, 8.507059e+37 }
0x4f40   :  { %3290 = vrot.lane.b32.xlu0 %v3288_v7, %s4404_s30  ;;  %v2712_v7 = vrot.slane %v5407_v59, 2 }
0x4f42   :  { %v4285_v43 = vpop.eup %4284 }
0x4f43   :  { %v3141_v28 = vmul.f32 %v4285_v43, %v3139_v29  ;;  %vm3146_vm14 = vweird.f32 %v4285_v43 }
0x4f44   :  { %vm3147_vm0 = vmor %vm3145_vm15, %vm3146_vm14 }
0x4f45   :  { %v3142_v33 = vsub.f32 1.0, %v3141_v28 }
0x4f47   :  { %v3143_v3 = vmul.f32 %v4285_v43, %v3142_v33 }
0x4f49   :  { %v3144_v63 = vadd.f32 %v4285_v43, %v3143_v3 }
0x4f4b   :  { %v3148_v8 = vsel %vm3147_vm0, %v4285_v43, %v3144_v63 }
0x4f4c   :  { %v3153_v58 = vsel %vm3150_vm1, %v3152_v1, %v3148_v8 }
0x4f4d   :  { %v3156_v30 = vmul.f32 %v3153_v58, %v5409_v62 }
0x4faa   :  { %v3159_v32 = vpop.permute.xlu0 %3158 }
0x4fab   :  { %v3161_v9 = vmul.f32 %v3159_v32, %v3153_v58 }
0x4fad   :  { %3163 = vrot.lane.b32.xlu2 %v3161_v9, %s4404_s30 }
0x4fb2   :  { %v3291_v51 = vpop.permute.xlu0 %3290 }
0x4fb3   :  { %v3293_v22 = vadd.f32 %v3291_v51, %v3283_v12 }
0x4fb5   :  { %4286 = vtanh.f32 %v3293_v22 }
0x4fbb   :  { %v4287_v27 = vpop.eup %4286 }
0x4fbc   :  { %3296 = vrot.lane.b32.xlu2 %v4287_v27, %s4403_s4 }
0x5007   :  { %v3164_v34 = vpop.permute.xlu2 %3163 }
0x5008   :  { %v5427_v6 = vadd.f32 %v3164_v34, %v3156_v30 }
0x500a   :  { %4288 = vtanh.f32 %v5427_v6 }
0x5010   :  { %v4289_v36 = vpop.eup %4288 }
0x5011   :  { %3169 = vrot.lane.b32.xlu1 %v4289_v36, %s4403_s4 }
0x5016   :  { %v3297_v50 = vpop.permute.xlu2 %3296 }
0x5017   :  { %v5431_v23 = vmul.f32 %v3297_v50, %v3280_v14 }
0x5083   :  { %v3170_v40 = vpop.permute.xlu1 %3169 }
0x5084   :  { %v3172_v41 = vmul.f32 %v3170_v40, %v3153_v58 }
0x5086   :  { %3174 = vst [vmem:[#allocation1] ss:$4 sm:$0xff] %v3172_v41 }
0x508d   :  { %v3175_v53 = vld.sshfl [vmem:[#allocation1] sm:$0xff pattern:$0x73625140] }
0x508e   :  { %3301 = vst [vmem:[#allocation1] ss:$4 sm:$0xff] %v5431_v23 }
0x5095   :  { %v3302_v55 = vld.sshfl [vmem:[#allocation1] sm:$0xff pattern:$0x73625140] }
0x5096   :  { %3303 = vrot.lane.b32.xlu0 %v3302_v55, %s4404_s30 }
0x5108   :  { %v3304_v62 = vpop.permute.xlu0 %3303 }
0x5109   :  { %3944 = vmatmul.msk.f32.vlgmr.msra.gmra.mxu1 %vm175_vm7, %v3304_v62 }
0x5186   :  { %v3324_v47 = vpop.f32.mrf.mxu1 }
0x5187   :  { %v3327_v60 = vadd.f32 %v3324_v47, %v2713_v42 }
0x5189   :  { %4290 = vtanh.f32 %v3327_v60  ;;  %v3945_v11 = vmul.f32 -1.442695, %v3327_v60 }
0x518b   :  { %4292 = vpow2.f32 %v3945_v11 }
0x518f   :  { %v4291_v49 = vpop.eup %4290 }
0x5190   :  { %3350 = vrot.lane.b32.xlu1 %v4291_v49, %s4403_s4 }
0x5191   :  { %v4293_v57 = vpop.eup %4292 }
0x5192   :  { %v3331_v52 = vadd.f32 1.0, %v4293_v57 }
0x5194   :  { %4294 = vrcp.f32 %v3331_v52  ;;  %v3343_v4 = vand.u32 2147483648, %v3331_v52  ;;  %vm3337_vm3 = vweird.f32 %v3331_v52  ;;  %v3341_v61 = vand.u32 2147483647, %v3331_v52 }
0x5196   :  { %v3344_v37 = vor.u32 1.1754944e-38, %v3343_v4  ;;  %vm3342_vm5 = vcmp.eq.f32.partialorder %v3341_v61, 8.507059e+37 }
0x519a   :  { %v4295_v39 = vpop.eup %4294 }
0x519b   :  { %v3333_v0 = vmul.f32 %v4295_v39, %v3331_v52  ;;  %vm3338_vm2 = vweird.f32 %v4295_v39 }
0x519c   :  { %vm3339_vm4 = vmor %vm3337_vm3, %vm3338_vm2 }
0x519d   :  { %v3334_v54 = vsub.f32 1.0, %v3333_v0 }
0x519f   :  { %v3335_v56 = vmul.f32 %v4295_v39, %v3334_v54 }
0x51a1   :  { %v3336_v24 = vadd.f32 %v4295_v39, %v3335_v56 }
0x51a3   :  { %v3340_v35 = vsel %vm3339_vm4, %v4295_v39, %v3336_v24 }
0x51a4   :  { %v3345_v2 = vsel %vm3342_vm5, %v3344_v37, %v3340_v35 }
0x51a5   :  { %v3348_v26 = vmul.f32 %v3345_v2, %v3293_v22 }
0x5202   :  { %v3351_v20 = vpop.permute.xlu1 %3350 }
0x5203   :  { %v3353_v44 = vmul.f32 %v3351_v20, %v3345_v2 }
0x5205   :  { %3355 = vrot.lane.b32.xlu2 %v3353_v44, %s4404_s30 }
0x525f   :  { %v3356_v45 = vpop.permute.xlu2 %3355 }
0x5260   :  { %v3358_v46 = vadd.f32 %v3356_v45, %v3348_v26 }
0x5262   :  { %4296 = vtanh.f32 %v3358_v46 }
0x5268   :  { %v4297_v5 = vpop.eup %4296 }
0x5269   :  { %3361 = vrot.lane.b32.xlu0 %v4297_v5, %s4403_s4 }
0x52db   :  { %v3362_v10 = vpop.permute.xlu0 %3361 }
0x52dc   :  { %v3364_v15 = vmul.f32 %v3362_v10, %v3345_v2 }
0x52de   :  { %3366 = vst [vmem:[#allocation1] ss:$4 sm:$0xff] %v3364_v15 }
0x52e5   :  { %v3367_v18 = vld.sshfl [vmem:[#allocation1] sm:$0xff pattern:$0x73625140] }
0x52e6   :  { %3368 = vrot.lane.b32.xlu1 %v3367_v18, %s4404_s30  ;;  %v2678_v18 = vadd.f32 %v5328_v16, %v5304_v17 }
0x5358   :  { %v3369_v14 = vpop.permute.xlu1 %3368 }
0x5359   :  { %3946 = vmatmul.msk.f32.vlgmr.msrb.gmra.mxu2 %vm175_vm7, %v3369_v14  ;;  %v5462_v14 = vadd.f32 %v2686_v21, %v2678_v18 }
0x53dc   :  { %v3389_v25 = vpop.f32.mrf.mxu2 }
0x53dd   :  { %v3392_v13 = vadd.f32 %v3389_v25, %v2712_v7  ;;  %v2711_v7 = vrot.slane %v5462_v14, 6 }
0x53df   :  { %4298 = vtanh.f32 %v3392_v13  ;;  %v3947_v43 = vmul.f32 -1.442695, %v3392_v13 }
0x53e1   :  { %4300 = vpow2.f32 %v3947_v43 }
0x53e5   :  { %v4299_v29 = vpop.eup %4298 }
0x53e6   :  { %3415 = vrot.lane.b32.xlu2 %v4299_v29, %s4403_s4 }
0x53e7   :  { %v4301_v28 = vpop.eup %4300 }
0x53e8   :  { %v3396_v33 = vadd.f32 1.0, %v4301_v28 }
0x53ea   :  { %4302 = vrcp.f32 %v3396_v33  ;;  %v3408_v1 = vand.u32 2147483648, %v3396_v33  ;;  %vm3402_vm8 = vweird.f32 %v3396_v33  ;;  %v3406_v32 = vand.u32 2147483647, %v3396_v33 }
0x53ec   :  { %v3409_v9 = vor.u32 1.1754944e-38, %v3408_v1  ;;  %vm3407_vm10 = vcmp.eq.f32.partialorder %v3406_v32, 8.507059e+37 }
0x53ee   :  { %3176 = vrot.lane.b32.xlu2 %v3175_v53, %s4404_s30 }
0x53f0   :  { %v4303_v3 = vpop.eup %4302 }
0x53f1   :  { %v3398_v63 = vmul.f32 %v4303_v3, %v3396_v33  ;;  %vm3403_vm6 = vweird.f32 %v4303_v3 }
0x53f2   :  { %vm3404_vm9 = vmor %vm3402_vm8, %vm3403_vm6 }
0x53f3   :  { %v3399_v31 = vsub.f32 1.0, %v3398_v63 }
0x53f5   :  { %v3400_v38 = vmul.f32 %v4303_v3, %v3399_v31 }
0x53f7   :  { %v3401_v8 = vadd.f32 %v4303_v3, %v3400_v38 }
0x53f9   :  { %v3405_v58 = vsel %vm3404_vm9, %v4303_v3, %v3401_v8 }
0x53fa   :  { %v3410_v51 = vsel %vm3407_vm10, %v3409_v9, %v3405_v58 }
0x53fb   :  { %v3413_v30 = vmul.f32 %v3410_v51, %v3358_v46 }
0x5440   :  { %v3416_v12 = vpop.permute.xlu2 %3415 }
0x5441   :  { %v3418_v22 = vmul.f32 %v3416_v12, %v3410_v51 }
0x5443   :  { %3420 = vrot.lane.b32.xlu0 %v3418_v22, %s4404_s30 }
0x5448   :  { %v3177_v27 = vpop.permute.xlu2 %3176 }
0x5449   :  { %3941 = vmatmul.msk.f32.vlgmr.msra.gmra.mxu3 %vm175_vm7, %v3177_v27 }
0x54b5   :  { %v3421_v34 = vpop.permute.xlu0 %3420 }
0x54b6   :  { %v3423_v36 = vadd.f32 %v3421_v34, %v3413_v30 }
0x54b8   :  { %4304 = vtanh.f32 %v3423_v36 }
0x54be   :  { %v4305_v40 = vpop.eup %4304 }
0x54bf   :  { %3426 = vrot.lane.b32.xlu1 %v4305_v40, %s4403_s4  ;;  %v2710_v40 = vrot.slane %v5462_v14, 4 }
0x54cc   :  { %v5450_v62 = vpop.f32.mrf.mxu3 }
0x5531   :  { %v3427_v41 = vpop.permute.xlu1 %3426 }
0x5532   :  { %v3429_v50 = vmul.f32 %v3427_v41, %v3410_v51 }
0x5534   :  { %3431 = vst [vmem:[#allocation1] ss:$4 sm:$0xff] %v3429_v50 }
0x553b   :  { %v3432_v53 = vld.sshfl [vmem:[#allocation1] sm:$0xff pattern:$0x73625140] }
0x553c   :  { %3433 = vrot.lane.b32.xlu0 %v3432_v53, %s4404_s30 }
0x55ae   :  { %v3434_v55 = vpop.permute.xlu0 %3433 }
0x55af   :  { %3948 = vmatmul.msk.f32.vlgmr.msrb.gmra.mxu3 %vm175_vm7, %v3434_v55 }
0x5632   :  { %v3454_v42 = vpop.f32.mrf.mxu3 }
0x5633   :  { %v3457_v47 = vadd.f32 %v3454_v42, %v5407_v59 }
0x5635   :  { %4306 = vtanh.f32 %v3457_v47  ;;  %v3949_v49 = vmul.f32 -1.442695, %v3457_v47 }
0x5637   :  { %4308 = vpow2.f32 %v3949_v49 }
0x563b   :  { %v4307_v60 = vpop.eup %4306 }
0x563c   :  { %3480 = vrot.lane.b32.xlu1 %v4307_v60, %s4403_s4 }
0x563d   :  { %v4309_v11 = vpop.eup %4308 }
0x563e   :  { %v3461_v57 = vadd.f32 1.0, %v4309_v11 }
0x5640   :  { %4310 = vrcp.f32 %v3461_v57  ;;  %v3473_v24 = vand.u32 2147483648, %v3461_v57  ;;  %vm3467_vm12 = vweird.f32 %v3461_v57  ;;  %v3471_v4 = vand.u32 2147483647, %v3461_v57 }
0x5642   :  { %v3474_v61 = vor.u32 1.1754944e-38, %v3473_v24  ;;  %vm3472_vm14 = vcmp.eq.f32.partialorder %v3471_v4, 8.507059e+37 }
0x5646   :  { %v4311_v52 = vpop.eup %4310 }
0x5647   :  { %v3463_v39 = vmul.f32 %v4311_v52, %v3461_v57  ;;  %vm3468_vm11 = vweird.f32 %v4311_v52 }
0x5648   :  { %vm3469_vm13 = vmor %vm3467_vm12, %vm3468_vm11 }
0x5649   :  { %v3464_v0 = vsub.f32 1.0, %v3463_v39 }
0x564b   :  { %v3465_v54 = vmul.f32 %v4311_v52, %v3464_v0 }
0x564d   :  { %v3466_v56 = vadd.f32 %v4311_v52, %v3465_v54 }
0x564f   :  { %v3470_v59 = vsel %vm3469_vm13, %v4311_v52, %v3466_v56 }
0x5650   :  { %v3475_v37 = vsel %vm3472_vm14, %v3474_v61, %v3470_v59 }
0x5651   :  { %v3478_v2 = vmul.f32 %v3475_v37, %v3423_v36 }
0x56ae   :  { %v3481_v35 = vpop.permute.xlu1 %3480 }
0x56af   :  { %v3483_v20 = vmul.f32 %v3481_v35, %v3475_v37 }
0x56b1   :  { %3485 = vrot.lane.b32.xlu2 %v3483_v20, %s4404_s30  ;;  %v2700_v20 = vrot.slane %v5386_v48, 6 }
0x570b   :  { %v3486_v44 = vpop.permute.xlu2 %3485 }
0x570c   :  { %v3488_v26 = vadd.f32 %v3486_v44, %v3478_v2  ;;  %v3200_v2 = vadd.f32 %v5450_v62, %v2700_v20 }
0x570e   :  { %4312 = vtanh.f32 %v3488_v26 }
0x5714   :  { %v4313_v45 = vpop.eup %4312 }
0x5715   :  { %3491 = vrot.lane.b32.xlu0 %v4313_v45, %s4403_s4 }
0x5787   :  { %v3492_v46 = vpop.permute.xlu0 %3491 }
0x5788   :  { %v3494_v5 = vmul.f32 %v3492_v46, %v3475_v37 }
0x578a   :  { %3496 = vst [vmem:[#allocation1] ss:$4 sm:$0xff] %v3494_v5 }
0x5791   :  { %v3497_v10 = vld.sshfl [vmem:[#allocation1] sm:$0xff pattern:$0x73625140] }
0x5792   :  { %3498 = vrot.lane.b32.xlu1 %v3497_v10, %s4404_s30 }
0x5804   :  { %v3499_v15 = vpop.permute.xlu1 %3498 }
0x5805   :  { %3950 = vmatmul.msk.f32.vlgmr.msrb.gmra.mxu0 %vm175_vm7, %v3499_v15  ;;  %v3942_v15 = vmul.f32 -1.442695, %v3200_v2 }
0x5882   :  { %v3519_v25 = vpop.f32.mrf.mxu0 }
0x5883   :  { %v3522_v13 = vadd.f32 %v3519_v25, %v2711_v7  ;;  %v2709_v25 = vrot.slane %v5462_v14, 2 }
0x5885   :  { %4314 = vtanh.f32 %v3522_v13  ;;  %v3951_v43 = vmul.f32 -1.442695, %v3522_v13 }
0x5887   :  { %4316 = vpow2.f32 %v3951_v43 }
0x588b   :  { %v4315_v29 = vpop.eup %4314 }
0x588c   :  { %3545 = vrot.lane.b32.xlu2 %v4315_v29, %s4403_s4 }
0x588d   :  { %v4317_v28 = vpop.eup %4316 }
0x588e   :  { %v3526_v33 = vadd.f32 1.0, %v4317_v28 }
0x5890   :  { %4318 = vrcp.f32 %v3526_v33  ;;  %v3538_v21 = vand.u32 2147483648, %v3526_v33  ;;  %vm3532_vm0 = vweird.f32 %v3526_v33  ;;  %v3536_v31 = vand.u32 2147483647, %v3526_v33 }
0x5892   :  { %v3539_v8 = vor.u32 1.1754944e-38, %v3538_v21  ;;  %vm3537_vm2 = vcmp.eq.f32.partialorder %v3536_v31, 8.507059e+37 }
0x5896   :  { %v4319_v3 = vpop.eup %4318 }
0x5897   :  { %v3528_v63 = vmul.f32 %v4319_v3, %v3526_v33  ;;  %vm3533_vm15 = vweird.f32 %v4319_v3 }
0x5898   :  { %vm3534_vm1 = vmor %vm3532_vm0, %vm3533_vm15  ;;  %vm3766_vm0 = vcmask 130048  }
0x5899   :  { %v3529_v17 = vsub.f32 1.0, %v3528_v63 }
0x589b   :  { %v3530_v16 = vmul.f32 %v4319_v3, %v3529_v17 }
0x589d   :  { %v3531_v19 = vadd.f32 %v4319_v3, %v3530_v16 }
0x589f   :  { %v3535_v38 = vsel %vm3534_vm1, %v4319_v3, %v3531_v19  ;;  %vm3758_vm1 = vcmask 123904  }
0x58a0   :  { %v3540_v32 = vsel %vm3537_vm2, %v3539_v8, %v3535_v38 }
0x58a1   :  { %v3543_v9 = vmul.f32 %v3540_v32, %v3488_v26 }
0x58e6   :  { %v3546_v1 = vpop.permute.xlu2 %3545 }
0x58e7   :  { %v3548_v58 = vmul.f32 %v3546_v1, %v3540_v32 }
0x58e9   :  { %3550 = vrot.lane.b32.xlu0 %v3548_v58, %s4404_s30 }
0x595b   :  { %v3551_v12 = vpop.permute.xlu0 %3550 }
0x595c   :  { %v3553_v51 = vadd.f32 %v3551_v12, %v3543_v9 }
0x595e   :  { %4320 = vtanh.f32 %v3553_v51 }
0x5964   :  { %v4321_v22 = vpop.eup %4320 }
0x5965   :  { %3556 = vrot.lane.b32.xlu1 %v4321_v22, %s4403_s4 }
0x59d7   :  { %v3557_v27 = vpop.permute.xlu1 %3556 }
0x59d8   :  { %v3559_v30 = vmul.f32 %v3557_v27, %v3540_v32 }
0x59da   :  { %3561 = vst [vmem:[#allocation1] ss:$4 sm:$0xff] %v3559_v30 }
0x59e1   :  { %v3562_v34 = vld.sshfl [vmem:[#allocation1] sm:$0xff pattern:$0x73625140] }
0x59e2   :  { %3563 = vrot.lane.b32.xlu2 %v3562_v34, %s4404_s30 }
0x5a3c   :  { %v3564_v36 = vpop.permute.xlu2 %3563 }
0x5a3d   :  { %3952 = vmatmul.msk.f32.vlgmr.msrb.gmra.mxu1 %vm175_vm7, %v3564_v36 }
0x5aba   :  { %v3584_v41 = vpop.f32.mrf.mxu1 }
0x5abb   :  { %v3587_v50 = vadd.f32 %v3584_v41, %v2710_v40 }
0x5abd   :  { %4322 = vtanh.f32 %v3587_v50  ;;  %v3953_v55 = vmul.f32 -1.442695, %v3587_v50 }
0x5abf   :  { %4324 = vpow2.f32 %v3953_v55 }
0x5ac3   :  { %v4323_v53 = vpop.eup %4322 }
0x5ac4   :  { %3610 = vrot.lane.b32.xlu0 %v4323_v53, %s4403_s4 }
0x5ac5   :  { %v4325_v42 = vpop.eup %4324 }
0x5ac6   :  { %v3591_v47 = vadd.f32 1.0, %v4325_v42 }
0x5ac8   :  { %4326 = vrcp.f32 %v3591_v47  ;;  %v3603_v39 = vand.u32 2147483648, %v3591_v47  ;;  %vm3597_vm4 = vweird.f32 %v3591_v47  ;;  %v3601_v0 = vand.u32 2147483647, %v3591_v47 }
0x5aca   :  { %v3604_v56 = vor.u32 1.1754944e-38, %v3603_v39  ;;  %vm3602_vm6 = vcmp.eq.f32.partialorder %v3601_v0, 8.507059e+37  ;;  %v3692_v39 = vld [vmem:[%s5555_s15] sm:$0xff] }
0x5ace   :  { %v4327_v60 = vpop.eup %4326 }
0x5acf   :  { %v3593_v49 = vmul.f32 %v4327_v60, %v3591_v47  ;;  %vm3598_vm3 = vweird.f32 %v4327_v60 }
0x5ad0   :  { %vm3599_vm5 = vmor %vm3597_vm4, %vm3598_vm3 }
0x5ad1   :  { %v3594_v11 = vsub.f32 1.0, %v3593_v49 }
0x5ad3   :  { %v3595_v57 = vmul.f32 %v4327_v60, %v3594_v11 }
0x5ad5   :  { %v3596_v52 = vadd.f32 %v4327_v60, %v3595_v57  ;;  %v3695_v57 = vld [vmem:[%s5555_s15 + $0x18] sm:$0xff] }
0x5ad6   :  { %3745 = vmatpush.msra.mxu0 %v3695_v57 }
0x5ad7   :  { %v3600_v54 = vsel %vm3599_vm5, %v4327_v60, %v3596_v52  ;;  %v3693_v52 = vld [vmem:[%s5555_s15 + $0x8] sm:$0xff] }
0x5ad8   :  { %v3605_v4 = vsel %vm3602_vm6, %v3604_v56, %v3600_v54 }
0x5ad9   :  { %v3608_v61 = vmul.f32 %v3605_v4, %v3553_v51 }
0x5b36   :  { %v3611_v24 = vpop.permute.xlu0 %3610 }
0x5b37   :  { %v3613_v59 = vmul.f32 %v3611_v24, %v3605_v4 }
0x5b39   :  { %3615 = vrot.lane.b32.xlu1 %v3613_v59, %s4404_s30 }
0x5bab   :  { %v3616_v35 = vpop.permute.xlu1 %3615 }
0x5bac   :  { %v5473_v37 = vadd.f32 %v3616_v35, %v3608_v61  ;;  %v3699_v61 = vld [vmem:[%s5556_s16 + $0x18] sm:$0xff]  ;;  %v3698_v35 = vld [vmem:[%s5556_s16 + $0x10] sm:$0xff] }
0x5bad   :  { %3718 = vmatpush.msra.mxu3 %v3699_v61 }
0x5bae   :  { %4328 = vtanh.f32 %v5473_v37 }
0x5baf   :  { %4330 = vtanh.f32 %v3200_v2  ;;  %3719 = vmatpush.msra.mxu3 %v3698_v35 }
0x5bb0   :  { %4332 = vpow2.f32 %v3942_v15 }
0x5bb4   :  { %v4329_v44 = vpop.eup %4328 }
0x5bb5   :  { %3621 = vrot.lane.b32.xlu2 %v4329_v44, %s4403_s4  ;;  %v4331_v26 = vpop.eup %4330  ;;  %v3761_v44 = vld [vmem:[%s5558_s18 + $0x8] sm:$0xff] }
0x5bb6   :  { %v4333_v48 = vpop.eup %4332  ;;  %3784 = vmatpush.msra.mxu1 %v3761_v44 }
0x5bb7   :  { %v3204_v62 = vadd.f32 1.0, %v4333_v48  ;;  %v3965_v48 = vld [vmem:[%s5559_s19] ss:$0 sm:$0xff]  ;;  %s3834_s19 = sshll.u32 %s5561_s21, 4  ;;  %s3835_s19 = int_to_ptr.hbm [resolvable:$true] %s3834_s19 }
0x5bb9   :  { %4334 = vrcp.f32 %v3204_v62  ;;  %v3216_v63 = vand.u32 2147483648, %v3204_v62  ;;  %vm3210_vm9 = vweird.f32 %v3204_v62  ;;  %v3214_v17 = vand.u32 2147483647, %v3204_v62 }
0x5bbb   :  { %v3217_v19 = vor.u32 1.1754944e-38, %v3216_v63  ;;  %vm3215_vm11 = vcmp.eq.f32.partialorder %v3214_v17, 8.507059e+37 }
0x5bbd   :  { %3223 = vrot.lane.b32.xlu2 %v4331_v26, %s4403_s4  ;;  %v3760_v26 = vld [vmem:[%s5558_s18] sm:$0xff] }
0x5bbe   :  { %3785 = vmatpush.msra.mxu1 %v3760_v26 }
0x5bbf   :  { %v4335_v18 = vpop.eup %4334 }
0x5bc0   :  { %v3206_v7 = vmul.f32 %v4335_v18, %v3204_v62  ;;  %vm3211_vm8 = vweird.f32 %v4335_v18 }
0x5bc1   :  { %vm3212_vm10 = vmor %vm3210_vm9, %vm3211_vm8 }
0x5bc2   :  { %v3207_v13 = vsub.f32 1.0, %v3206_v7 }
0x5bc4   :  { %v3208_v28 = vmul.f32 %v4335_v18, %v3207_v13 }
0x5bc6   :  { %v3209_v33 = vadd.f32 %v4335_v18, %v3208_v28 }
0x5bc8   :  { %v3213_v16 = vsel %vm3212_vm10, %v4335_v18, %v3209_v33 }
0x5bc9   :  { %v3218_v31 = vsel %vm3215_vm11, %v3217_v19, %v3213_v16 }
0x5bca   :  { %v3221_v50 = vmul.f32 %v3218_v31, %v5427_v6  ;;  %v3694_v6 = vld [vmem:[%s5555_s15 + $0x10] sm:$0xff] }
0x5bcb   :  { %3746 = vmatpush.msra.mxu0 %v3694_v6 }
0x5bcd   :  { %3747 = vmatpush.msra.mxu0 %v3693_v52 }
0x5bcf   :  { %3748 = vmatpush.msra.mxu0 %v3692_v39 }
0x5c0f   :  { %v3622_v45 = vpop.permute.xlu2 %3621 }
0x5c10   :  { %v3624_v46 = vmul.f32 %v3622_v45, %v3605_v4  ;;  %v3964_v45 = vld [vmem:[%s5557_s17] ss:$0 sm:$0xff]  ;;  %s4405_s17 = smov [#allocation4]  }
0x5c11   :  { %s3832_s18 = sshll.u32 %s4405_s17, 4  ;;  %s3833_s18 = int_to_ptr.vmem [resolvable:$true] %s3832_s18 }
0x5c12   :  { %3626 = vst [vmem:[#allocation1] ss:$4 sm:$0xff] %v3624_v46 }
0x5c17   :  { %v3224_v21 = vpop.permute.xlu2 %3223 }
0x5c18   :  { %v3226_v14 = vmul.f32 %v3224_v21, %v3218_v31 }
0x5c19   :  { %v3627_v5 = vld.sshfl [vmem:[#allocation1] sm:$0xff pattern:$0x73625140] }
0x5c1a   :  { %3628 = vrot.lane.b32.xlu0 %v3627_v5, %s4404_s30 }
0x5c8c   :  { %v3629_v10 = vpop.permute.xlu0 %3628 }
0x5c8d   :  { %3954 = vmatmul.msk.f32.vlgmr.msra.gmra.mxu2 %vm175_vm7, %v3629_v10 }
0x5d10   :  { %v3649_v29 = vpop.f32.mrf.mxu2 }
0x5d11   :  { %v3652_v43 = vadd.f32 %v3649_v29, %v2709_v25 }
0x5d13   :  { %4336 = vtanh.f32 %v3652_v43  ;;  %v3955_v38 = vmul.f32 -1.442695, %v3652_v43 }
0x5d15   :  { %4338 = vpow2.f32 %v3955_v38 }
0x5d19   :  { %v4337_v3 = vpop.eup %4336 }
0x5d1a   :  { %3675 = vrot.lane.b32.xlu1 %v4337_v3, %s4403_s4 }
0x5d1b   :  { %v4339_v8 = vpop.eup %4338 }
0x5d1c   :  { %v3656_v1 = vadd.f32 1.0, %v4339_v8 }
0x5d1e   :  { %4340 = vrcp.f32 %v3656_v1  ;;  %v3668_v22 = vand.u32 2147483648, %v3656_v1  ;;  %vm3662_vm13 = vweird.f32 %v3656_v1  ;;  %v3666_v27 = vand.u32 2147483647, %v3656_v1 }
0x5d20   :  { %v3669_v34 = vor.u32 1.1754944e-38, %v3668_v22  ;;  %vm3667_vm15 = vcmp.eq.f32.partialorder %v3666_v27, 8.507059e+37 }
0x5d22   :  { %3228 = vrot.lane.b32.xlu1 %v3226_v14, %s4404_s30 }
0x5d24   :  { %v4341_v32 = vpop.eup %4340 }
0x5d25   :  { %v3658_v58 = vmul.f32 %v4341_v32, %v3656_v1  ;;  %vm3663_vm12 = vweird.f32 %v4341_v32 }
0x5d26   :  { %vm3664_vm14 = vmor %vm3662_vm13, %vm3663_vm12 }
0x5d27   :  { %v3659_v9 = vsub.f32 1.0, %v3658_v58 }
0x5d29   :  { %v3660_v12 = vmul.f32 %v4341_v32, %v3659_v9 }
0x5d2b   :  { %v3661_v51 = vadd.f32 %v4341_v32, %v3660_v12 }
0x5d2d   :  { %v3665_v30 = vsel %vm3664_vm14, %v4341_v32, %v3661_v51 }
0x5d2e   :  { %v3670_v40 = vsel %vm3667_vm15, %v3669_v34, %v3665_v30 }
0x5d2f   :  { %v3673_v47 = vmul.f32 %v3670_v40, %v5473_v37  ;;  %v3696_v37 = vld [vmem:[%s5556_s16] sm:$0xff] }
0x5d8c   :  { %v3676_v36 = vpop.permute.xlu1 %3675 }
0x5d8d   :  { %v3678_v41 = vmul.f32 %v3676_v36, %v3670_v40 }
0x5d8f   :  { %3680 = vrot.lane.b32.xlu0 %v3678_v41, %s4404_s30 }
0x5d94   :  { %v3229_v53 = vpop.permute.xlu1 %3228 }
0x5d95   :  { %v3231_v55 = vadd.f32 %v3229_v53, %v3221_v50 }
0x5d97   :  { %4342 = vtanh.f32 %v3231_v55 }
0x5d9d   :  { %v4343_v42 = vpop.eup %4342 }
0x5d9e   :  { %3234 = vrot.lane.b32.xlu0 %v4343_v42, %s4403_s4 }
0x5e01   :  { %v3681_v60 = vpop.permute.xlu0 %3680 }
0x5e02   :  { %v3683_v49 = vadd.f32 %v3681_v60, %v3673_v47 }
0x5e04   :  { %4344 = vtanh.f32 %v3683_v49 }
0x5e0a   :  { %v4345_v11 = vpop.eup %4344 }
0x5e0b   :  { %3686 = vrot.lane.b32.xlu2 %v4345_v11, %s4403_s4 }
0x5e10   :  { %v3235_v56 = vpop.permute.xlu0 %3234 }
0x5e11   :  { %v3237_v24 = vmul.f32 %v3235_v56, %v3218_v31 }
0x5e65   :  { %v3687_v0 = vpop.permute.xlu2 %3686 }
0x5e66   :  { %v3689_v54 = vmul.f32 %v3687_v0, %v3670_v40 }
0x5e68   :  { %3691 = vst [vmem:[#allocation1] ss:$4 sm:$0xff] %v3689_v54 }
0x5e69   :  { %3700 = vst [vmem:[#allocation1] ss:$4 sm:$0xff] %v5431_v23  ;;  %v3697_v23 = vld [vmem:[%s5556_s16 + $0x8] sm:$0xff] }
0x5e6a   :  { %3720 = vmatpush.msra.mxu3 %v3697_v23 }
0x5e6c   :  { %3721 = vmatpush.msra.mxu3 %v3696_v37 }
0x5e70   :  { %v3701_v4 = vld.sshfl [vmem:[#allocation1] sm:$0xff pattern:$0x73625140] }
0x5e71   :  { %3702 = vrot.lane.b32.xlu1 %v3701_v4, %s4404_s30  ;;  %3727 = vst [vmem:[#allocation1] ss:$4 sm:$0xff] %v3237_v24 }
0x5e78   :  { %v3728_v59 = vld.sshfl [vmem:[#allocation1] sm:$0xff pattern:$0x73625140] }
0x5e79   :  { %3729 = vrot.lane.b32.xlu2 %v3728_v59, %s4404_s30 }
0x5ed3   :  { %v3730_v20 = vpop.permute.xlu2 %3729 }
0x5ed4   :  { %3957 = vmatmul.msk.f32.vlgmr.msra.gmra.mxu0 %vm175_vm7, %v3730_v20 }
0x5ee3   :  { %v3703_v2 = vpop.permute.xlu1 %3702 }
0x5ee4   :  { %3956 = vmatmul.msk.f32.vlgmr.msra.gmra.mxu3 %vm175_vm7, %v3703_v2  ;;  %vm3790_vm7 = vcmask 9216  }
0x5f51   :  { %v3750_v46 = vpop.f32.mrf.mxu0 }
0x5f67   :  { %v3723_v5 = vpop.f32.mrf.mxu3 }
0x5f68   :  { %v3751_v10 = vadd.f32 %v3750_v46, %v3723_v5 }
0x5f6a   :  { %v3757_v15 = vadd.f32 %v3964_v45, %v3751_v10 }
0x5f6c   :  { %3958 = vmatmul.msk.f32.vlgmr.msra.gmra.mxu1 %vm3766_vm0, %v3757_v15  ;;  %3759 = vst.msk [vmem:[#allocation4] sm:$0x3] %vm3758_vm1, %v3757_v15 }
0x5f6d   :  { %3837 = dma.vmem_to_hbm [thread:$0]  %s3833_s18, 32, %s3835_s19, [#allocation5]  }
0x5fe9   :  { %v3787_v62 = vpop.f32.mrf.mxu1 }
0x5fea   :  { %v3788_v18 = vadd.f32 %v3965_v48, %v3787_v62 }
0x5fec   :  { %v3791_v7 = vsel %vm3790_vm7, %v3788_v18, -inf }
0x5fed   :  { %3792 = vmax.xlane.f32.xlu0 %v3791_v7 }
0x6060   :  { %v3793_v25 = vpop.xlane.xlu0 %3792 }
0x6061   :  { %v3794_v13 = vsub.f32 %v3788_v18, %v3793_v25 }
0x6063   :  { %v3795_v29 = vmul.f32 1.442695, %v3794_v13 }
0x6065   :  { %4346 = vpow2.f32 %v3795_v29 }
0x606b   :  { %v4347_v43 = vpop.eup %4346 }
0x606c   :  { %v3797_v28 = vsel %vm3790_vm7, %v4347_v43, 0.0 }
0x606d   :  { %3798 = vadd.xlane.f32.xlu1 %v3797_v28 }
0x60e0   :  { %v3799_v33 = vpop.xlane.xlu1 %3798 }
0x60e1   :  { %4348 = vrcp.f32 %v3799_v33  ;;  %v3811_v16 = vand.u32 2147483648, %v3799_v33  ;;  %v3809_v21 = vand.u32 2147483647, %v3799_v33  ;;  %vm3805_vm3 = vweird.f32 %v3799_v33 }
0x60e3   :  { %v3812_v14 = vor.u32 1.1754944e-38, %v3811_v16  ;;  %vm3810_vm5 = vcmp.eq.f32.partialorder %v3809_v21, 8.507059e+37 }
0x60e7   :  { %v4349_v3 = vpop.eup %4348 }
0x60e8   :  { %v3801_v63 = vmul.f32 %v4349_v3, %v3799_v33  ;;  %vm3806_vm2 = vweird.f32 %v4349_v3 }
0x60e9   :  { %vm3807_vm4 = vmor %vm3805_vm3, %vm3806_vm2 }
0x60ea   :  { %v3802_v17 = vsub.f32 1.0, %v3801_v63 }
0x60ec   :  { %v3803_v19 = vmul.f32 %v4349_v3, %v3802_v17 }
0x60ee   :  { %v3804_v31 = vadd.f32 %v4349_v3, %v3803_v19 }
0x60f0   :  { %v3808_v38 = vsel %vm3807_vm4, %v4349_v3, %v3804_v31 }
0x60f1   :  { %v3813_v8 = vsel %vm3810_vm5, %v3812_v14, %v3808_v38 }
0x60f2   :  { %v3814_v1 = vmul.f32 %v4347_v43, %v3813_v8 }
0x60f4   :  { %3815 = vst.msk [vmem:[#allocation2] sm:$0x3] %vm3790_vm7, %v3814_v1 }
0x60f5   :  { %3826 = dma.vmem_to_hbm [thread:$0]  %s3822_s29, 32, %s3824_s9, [#allocation3]  }
0x60f6   :  { %4398 = dma.done.wait [#allocation3], 32  }
0x60f7   :  { %4399 = vsyncadd [#allocation3], 4294967264 }
0x60f8   :  { %4400 = dma.done.wait [#allocation5], 32  }
0x60f9   :  { %4401 = vsyncadd [#allocation5], 4294967264 }
0x60fa   :  { %3846 = vsyncpa [#allocation3], 1 }
0x60fb   :  { %3847 = vsyncpa [#allocation5], 1 }

</bundles_post_ra>
